<compile_context>
chip_gen: v7x
topology: tpu7x:2x2x1
jax: 0.10.0
libtpu: 0.0.40
codegen_flags: <defaults>
</compile_context>

<pallas_src>
import functools

import numpy as np
import jax
import jax.numpy as jnp
from jax.experimental import pallas as pl
from jax.experimental.pallas import tpu as pltpu  # noqa: F401

OUTS_DICT = {"input": {"shape": (1, 1, 3)}}
_BN_EPS = 1e-5


# ----------------------------- in-kernel helpers -----------------------------

def _bn_norm(y, count, gamma, beta, stats_src=None):
    """Training-mode BatchNorm over the lane (M) axis of a (C, M) f32 array."""
    src = y if stats_src is None else stats_src
    inv = 1.0 / count
    mean = jnp.sum(src, axis=1, keepdims=True) * inv
    var = jnp.maximum(jnp.sum(src * src, axis=1, keepdims=True) * inv - mean * mean, 0.0)
    scale = gamma * jax.lax.rsqrt(var + _BN_EPS)
    return (y - mean) * scale + beta


def _build_patches(x, mask, offsets, pad, m):
    """9-tap shift+mask im2col on a flat-padded (C, M+2*pad) activation -> bf16."""
    taps = []
    for k, off in enumerate(offsets):
        t = x[:, pad + off:pad + off + m] * mask[k:k + 1, :]
        taps.append(t.astype(jnp.bfloat16))
    return jnp.concatenate(taps, axis=0)          # (9*C, M) bf16


# ----------------------------- Pallas kernels -----------------------------

def _conv_bn_relu_kernel(p_ref, w_ref, b_ref, g_ref, be_ref, o_ref, *, m):
    """(Cout, K) @ (K, M) + bias -> BatchNorm -> ReLU  (stride-2 encoder convs)."""
    patches = p_ref[...].astype(jnp.bfloat16)
    w = w_ref[...].astype(jnp.bfloat16)
    acc = jnp.dot(w, patches, preferred_element_type=jnp.float32) + b_ref[...]
    acc = _bn_norm(acc, m, g_ref[...], be_ref[...])
    o_ref[...] = jnp.maximum(acc, 0.0)


def _resblock_kernel(*refs, m, pad, offsets, prologue_bn, mid_bn, trail_bn,
                     residual, relu_out):
    """[BN+ReLU prologue] -> ReLU -> 3x3 conv -> [BN] -> ReLU -> 1x1 conv
       -> [+residual] -> [trailing BN] -> [ReLU], all in one kernel."""
    it = iter(refs)
    x_ref = next(it); mask_ref = next(it)
    w1_ref = next(it); b1_ref = next(it); w2_ref = next(it); b2_ref = next(it)
    pg = pb = mg = mb = tg = tb = None
    if prologue_bn:
        pg, pb = next(it), next(it)
    if mid_bn:
        mg, mb = next(it), next(it)
    if trail_bn:
        tg, tb = next(it), next(it)
    o_ref = next(it)

    x = x_ref[...]                                   # (Cin, M + 2*pad) f32
    if prologue_bn:
        center = x[:, pad:pad + m]                   # stats over valid columns only
        x = jnp.maximum(_bn_norm(x, m, pg[...], pb[...], stats_src=center), 0.0)
        xr = x                                       # prologue ReLU == leading ReLU
    else:
        xr = jnp.maximum(x, 0.0)                     # ResBlock leading ReLU (once)
    xc = x[:, pad:pad + m]                           # residual source (pre-lead-ReLU)

    patches = _build_patches(xr, mask_ref[...], offsets, pad, m)
    h = jnp.dot(w1_ref[...].astype(jnp.bfloat16), patches,
                preferred_element_type=jnp.float32) + b1_ref[...]
    if mid_bn:
        h = _bn_norm(h, m, mg[...], mb[...])
    h = jnp.maximum(h, 0.0)
    y = jnp.dot(w2_ref[...].astype(jnp.bfloat16), h.astype(jnp.bfloat16),
                preferred_element_type=jnp.float32) + b2_ref[...]
    if residual:
        y = y + xc
    if trail_bn:
        y = _bn_norm(y, m, tg[...], tb[...])
    if relu_out:
        y = jnp.maximum(y, 0.0)
    o_ref[...] = y


def _convt_kernel(*refs, m, pad, offsets, prologue_bn):
    """[BN+ReLU prologue] -> all 4 output-parity phases of ConvTranspose2d(4,2,1)
       as one (4*Cout, 9*Cin) @ (9*Cin, M) matmul; output is phase-major."""
    it = iter(refs)
    x_ref = next(it); mask_ref = next(it); w_ref = next(it); b_ref = next(it)
    pg = pb = None
    if prologue_bn:
        pg, pb = next(it), next(it)
    o_ref = next(it)

    x = x_ref[...]                                   # (Cin, M + 2*pad) f32
    if prologue_bn:
        center = x[:, pad:pad + m]
        x = jnp.maximum(_bn_norm(x, m, pg[...], pb[...], stats_src=center), 0.0)

    patches = _build_patches(x, mask_ref[...], offsets, pad, m)
    o_ref[...] = jnp.dot(w_ref[...].astype(jnp.bfloat16), patches,
                         preferred_element_type=jnp.float32) + b_ref[...]


def _nearest_embed_kernel(x_ref, et_ref, e_ref, e2_ref, zq_ref, am_ref, *, k):
    x = x_ref[...]                                   # (D, M) f32
    et = et_ref[...]                                 # (K, D)
    e = e_ref[...]                                   # (D, K)
    # argmin_k (||e_k||^2 - 2 e_k.x) == argmin_k ||x - e_k||^2  (x^2 term dropped)
    score = e2_ref[...] - 2.0 * jnp.dot(et, x, preferred_element_type=jnp.float32)
    iota_k = jax.lax.broadcasted_iota(jnp.int32, score.shape, 0)
    smin = jnp.min(score, axis=0, keepdims=True)
    am = jnp.min(jnp.where(score <= smin, iota_k, k), axis=0, keepdims=True)
    onehot = (iota_k == am).astype(jnp.float32)
    zq_ref[...] = jnp.dot(e, onehot, preferred_element_type=jnp.float32)
    am_ref[...] = am


def _upsample_tanh_kernel(x_ref, rwt_ref, rhbd_ref, o_ref):
    t = jnp.dot(x_ref[...], rwt_ref[...], preferred_element_type=jnp.float32)
    y = jnp.dot(rhbd_ref[...], t, preferred_element_type=jnp.float32)
    o_ref[...] = jnp.tanh(y)


# ----------------------------- host-side (static) helpers -----------------------------

def _conv_mask(n, h, w):
    """(9, N*H*W) f32 validity mask for the 9 flat shift-taps (di, dj) in {-1,0,1}^2."""
    hh = np.arange(h)[:, None]
    ww = np.arange(w)[None, :]
    rows = []
    for di in (-1, 0, 1):
        for dj in (-1, 0, 1):
            valid = ((hh + di >= 0) & (hh + di < h) &
                     (ww + dj >= 0) & (ww + dj < w)).astype(np.float32)
            rows.append(np.broadcast_to(valid[None], (n, h, w)).reshape(-1))
    return jnp.asarray(np.stack(rows, axis=0))


def _offsets(w):
    return tuple(di * w + dj for di in (-1, 0, 1) for dj in (-1, 0, 1))


def _interp_matrix_np(out_size, in_size):
    """align_corners=True bilinear interpolation matrix (out_size, in_size)."""
    m = np.zeros((out_size, in_size), np.float32)
    if out_size == 1:
        m[0, 0] = 1.0
        return m
    scale = (in_size - 1) / (out_size - 1)
    for i in range(out_size):
        src = i * scale
        p0 = int(np.floor(src))
        p1 = min(p0 + 1, in_size - 1)
        frac = src - p0
        m[i, p0] += 1.0 - frac
        m[i, p1] += frac
    return m


def _convt_lhs(w):
    """ConvTranspose2d(4,2,1) weight (Cin,Cout,4,4) -> stacked phase LHS (4*Cout, 9*Cin)."""
    cin, cout = w.shape[0], w.shape[1]
    zeros = jnp.zeros((cout, cin), w.dtype)
    blocks = []
    for a in (0, 1):
        for c in (0, 1):
            taps = []
            for di in (-1, 0, 1):
                for dj in (-1, 0, 1):
                    if di in (a - 1, a) and dj in (c - 1, c):
                        taps.append(w[:, :, a + 1 - 2 * di, c + 1 - 2 * dj].T)
                    else:
                        taps.append(zeros)
            blocks.append(jnp.concatenate(taps, axis=1))   # (Cout, 9*Cin)
    return jnp.concatenate(blocks, axis=0)                 # (4*Cout, 9*Cin)


def _interleave_phases(y, cout, n, h, w):
    """(4*Cout, N*H*W) phase-major -> flat (Cout, N*2H*2W)."""
    y = y.reshape(2, 2, cout, n, h, w)
    y = jnp.transpose(y, (2, 3, 4, 0, 5, 1))
    return y.reshape(cout, n * 2 * h * 2 * w)


# ----------------------------- layer wrappers -----------------------------

def conv_s2_bn_relu(x4d, w, b, gamma, beta):
    """Conv2d(k=4, s=2, p=1) + BN + ReLU on a (Cin, N, H, W) input (XLA im2col)."""
    cin, n, h, wd = x4d.shape
    cout = w.shape[0]
    oh, ow = h // 2, wd // 2
    xp = jnp.pad(x4d, ((0, 0), (0, 0), (1, 1), (1, 1)))
    cols = []
    for i in range(4):
        for j in range(4):
            cols.append(xp[:, :, i:i + 2 * (oh - 1) + 1:2, j:j + 2 * (ow - 1) + 1:2])
    patches = jnp.stack(cols, axis=1).reshape(cin * 16, n * oh * ow)
    m = n * oh * ow
    out = pl.pallas_call(
        functools.partial(_conv_bn_relu_kernel, m=m),
        out_shape=jax.ShapeDtypeStruct((cout, m), jnp.float32),
    )(patches, w.reshape(cout, cin * 16), b.reshape(cout, 1),
      gamma.reshape(cout, 1), beta.reshape(cout, 1))
    return out, oh, ow


def res_block_fused(xflat, spatial, rp, *, mid_bn, residual,
                    prologue=None, trailing=None, relu_out=False):
    """Entire ResBlock (+ optional prologue/trailing BN) as one pallas_call."""
    n, h, w = spatial
    m = n * h * w
    pad = w + 1
    cin = xflat.shape[0]
    w1 = rp["w1"]
    mid = w1.shape[0]
    w1m = jnp.transpose(w1, (0, 2, 3, 1)).reshape(mid, 9 * cin)
    w2 = rp["w2"]
    cout = w2.shape[0]
    w2m = w2.reshape(cout, mid)
    xp = jnp.pad(xflat, ((0, 0), (pad, pad)))

    inputs = [xp, _conv_mask(n, h, w), w1m, rp["b1"].reshape(mid, 1),
              w2m, rp["b2"].reshape(cout, 1)]
    if prologue is not None:
        inputs += [prologue[0].reshape(cin, 1), prologue[1].reshape(cin, 1)]
    if mid_bn:
        inputs += [rp["g"].reshape(mid, 1), rp["be"].reshape(mid, 1)]
    if trailing is not None:
        inputs += [trailing[0].reshape(cout, 1), trailing[1].reshape(cout, 1)]

    kern = functools.partial(_resblock_kernel, m=m, pad=pad, offsets=_offsets(w),
                             prologue_bn=prologue is not None, mid_bn=mid_bn,
                             trail_bn=trailing is not None, residual=residual,
                             relu_out=relu_out)
    return pl.pallas_call(
        kern, out_shape=jax.ShapeDtypeStruct((cout, m), jnp.float32))(*inputs)


def conv_transpose_fused(xflat, spatial, w, b, prologue=None):
    """ConvTranspose2d(4,2,1) (+ optional prologue BN+ReLU) -> flat (Cout, N*2H*2W)."""
    n, h, wd = spatial
    m = n * h * wd
    pad = wd + 1
    cin, cout = w.shape[0], w.shape[1]
    xp = jnp.pad(xflat, ((0, 0), (pad, pad)))
    inputs = [xp, _conv_mask(n, h, wd), _convt_lhs(w),
              jnp.tile(b, 4).reshape(4 * cout, 1)]
    if prologue is not None:
        inputs += [prologue[0].reshape(cin, 1), prologue[1].reshape(cin, 1)]
    kern = functools.partial(_convt_kernel, m=m, pad=pad, offsets=_offsets(wd),
                             prologue_bn=prologue is not None)
    raw = pl.pallas_call(
        kern, out_shape=jax.ShapeDtypeStruct((4 * cout, m), jnp.float32))(*inputs)
    return _interleave_phases(raw, cout, n, h, wd)


def nearest_embed_flat(xflat, emb):
    d, m = xflat.shape
    k = emb.shape[1]
    e2 = jnp.sum(emb * emb, axis=0).reshape(k, 1)
    zq, am = pl.pallas_call(
        functools.partial(_nearest_embed_kernel, k=k),
        out_shape=(jax.ShapeDtypeStruct((d, m), jnp.float32),
                   jax.ShapeDtypeStruct((1, m), jnp.int32)),
    )(xflat, emb.T, emb, e2)
    return zq, am


def upsample_tanh(yflat, cout, spatial, target):
    """Bilinear upsample (align_corners=True) to `target` + tanh, batched over C*N."""
    n, h, w = spatial
    th, tw = target
    rwt = np.ascontiguousarray(_interp_matrix_np(tw, w).T)               # (w, tw)
    rh = _interp_matrix_np(th, h)                                        # (th, h)
    rhbd = np.kron(np.eye(cout * n, dtype=np.float32), rh)               # block diag
    x2 = yflat.reshape(cout * n * h, w)
    out = pl.pallas_call(
        _upsample_tanh_kernel,
        out_shape=jax.ShapeDtypeStruct((cout * n * th, tw), jnp.float32),
    )(x2, jnp.asarray(rwt), jnp.asarray(rhbd))
    return jnp.transpose(out.reshape(cout, n, th, tw), (1, 0, 2, 3))     # NCHW


# ----------------------------- model -----------------------------

def decode(p, zq_flat, spatial, insize):
    n, h, w = spatial
    need_a0 = any(s == 0.5 for spec in OUTS_DICT.values() for s in spec["shape"][:2])
    x_a0 = None
    if need_a0:
        x_a0 = res_block_fused(zq_flat, spatial, p["da0_rb"], mid_bn=False,
                               residual=False,
                               trailing=(p["da0_bn_g"], p["da0_bn_b"]),
                               relu_out=True)
    # decoder_b ConvTranspose (its BN+ReLU is deferred into the out-layer prologue)
    xb_flat = conv_transpose_fused(zq_flat, spatial, p["db_ct_w"], p["db_ct_b"])
    sp_b = (n, 2 * h, 2 * w)

    out_imgs = {}
    for key, spec in OUTS_DICT.items():
        target = [insize[0], insize[1]]
        use_a0 = False
        for i in range(2):
            s = spec["shape"][i]
            if s is not None:
                target[i] = int(target[i] * s)
                use_a0 = (s == 0.5)
        wkey, bkey = p["out_" + key + "_w"], p["out_" + key + "_b"]
        cout = wkey.shape[1]
        if use_a0:
            y = conv_transpose_fused(x_a0, spatial, wkey, bkey)
            sp_y = (n, 2 * h, 2 * w)
        else:
            y = conv_transpose_fused(xb_flat, sp_b, wkey, bkey,
                                     prologue=(p["db_bn_g"], p["db_bn_b"]))
            sp_y = (n, 4 * h, 4 * w)
        out_imgs[key] = upsample_tanh(y, cout, sp_y, target)
    return out_imgs


def decompose_net_forward(p, x_nchw):
    n, in_chns, H, W = x_nchw.shape
    insize = (H, W)
    x_cnhw = jnp.transpose(x_nchw, (1, 0, 2, 3))

    # ---- encoder_a ----
    h1, oh1, ow1 = conv_s2_bn_relu(x_cnhw, p["ea_c1_w"], p["ea_c1_b"],
                                   p["ea_bn1_g"], p["ea_bn1_b"])
    h2, oh2, ow2 = conv_s2_bn_relu(h1.reshape(-1, n, oh1, ow1),
                                   p["ea_c2_w"], p["ea_c2_b"],
                                   p["ea_bn2_g"], p["ea_bn2_b"])
    sp2 = (n, oh2, ow2)
    ze_a = res_block_fused(h2, sp2, p["ea_rb"], mid_bn=True, residual=True,
                           trailing=(p["ea_bn3_g"], p["ea_bn3_b"]))

    # ---- embs[0]: embs[0](ze_a) and embs[0](ze_a.detach()) are numerically identical
    zq_a, _ = nearest_embed_flat(ze_a, p["emb0"])
    emb_a = zq_a

    # ---- encoder_b ----
    ze = res_block_fused(zq_a, sp2, p["eb_rb"], mid_bn=True, residual=False,
                         trailing=(p["eb_bn_g"], p["eb_bn_b"]))

    # ---- decoder_a ----
    h = res_block_fused(ze, sp2, p["da_rb1"], mid_bn=False, residual=False,
                        trailing=(p["da_bn1_g"], p["da_bn1_b"]))
    h = conv_transpose_fused(h, sp2, p["da_ct_w"], p["da_ct_b"])     # BN+ReLU deferred
    sp3 = (n, 2 * oh2, 2 * ow2)
    h = res_block_fused(h, sp3, p["da_rb2"], mid_bn=False, residual=False,
                        prologue=(p["da_bn2_g"], p["da_bn2_b"]))

    # ---- embs[1] ----
    zq, argmin = nearest_embed_flat(h, p["emb1"])
    emb, _ = nearest_embed_flat(ze, p["emb1"])

    out_imgs = decode(p, zq, sp3, insize)

    d = ze.shape[0]
    hid = ze_a.shape[0]
    to_nchw = lambda t, c: jnp.transpose(t.reshape(c, n, oh2, ow2), (1, 0, 2, 3))
    return (out_imgs,
            (to_nchw(ze, d), to_nchw(emb, d)),
            (to_nchw(ze_a, hid), to_nchw(emb_a, hid)),
            argmin.reshape(n, 2 * oh2, 2 * ow2))


# ----------------------------- deterministic params -----------------------------

def init_params(key, hidden, k, d, in_chns):
    it = iter(jax.random.split(key, 32))

    def w(shape):
        return jax.random.normal(next(it), shape, jnp.float32) * 0.02

    zeros = lambda *s: jnp.zeros(s, jnp.float32)
    ones = lambda *s: jnp.ones(s, jnp.float32)

    p = {}
    # encoder_a
    p["ea_c1_w"] = w((hidden, in_chns, 4, 4)); p["ea_c1_b"] = zeros(hidden)
    p["ea_bn1_g"] = ones(hidden); p["ea_bn1_b"] = zeros(hidden)
    p["ea_c2_w"] = w((hidden, hidden, 4, 4)); p["ea_c2_b"] = zeros(hidden)
    p["ea_bn2_g"] = ones(hidden); p["ea_bn2_b"] = zeros(hidden)
    p["ea_rb"] = dict(w1=w((hidden, hidden, 3, 3)), b1=zeros(hidden),
                      g=ones(hidden), be=zeros(hidden),
                      w2=w((hidden, hidden, 1, 1)), b2=zeros(hidden))
    p["ea_bn3_g"] = ones(hidden) * (1.0 / 40.0); p["ea_bn3_b"] = zeros(hidden)
    # embeddings (emb_dim, k)
    p["emb0"] = w((hidden, k))
    p["emb1"] = w((d, k))
    # encoder_b
    p["eb_rb"] = dict(w1=w((d, hidden, 3, 3)), b1=zeros(d),
                      g=ones(d), be=zeros(d),
                      w2=w((d, d, 1, 1)), b2=zeros(d))
    p["eb_bn_g"] = ones(d); p["eb_bn_b"] = zeros(d)
    # decoder_a
    p["da_rb1"] = dict(w1=w((hidden, d, 3, 3)), b1=zeros(hidden),
                       w2=w((hidden, hidden, 1, 1)), b2=zeros(hidden))
    p["da_bn1_g"] = ones(hidden); p["da_bn1_b"] = zeros(hidden)
    p["da_ct_w"] = w((hidden, hidden, 4, 4)); p["da_ct_b"] = zeros(hidden)
    p["da_bn2_g"] = ones(hidden); p["da_bn2_b"] = zeros(hidden)
    p["da_rb2"] = dict(w1=w((d, hidden, 3, 3)), b1=zeros(d),
                       w2=w((d, d, 1, 1)), b2=zeros(d))
    # decoder_a0
    p["da0_rb"] = dict(w1=w((hidden, d, 3, 3)), b1=zeros(hidden),
                       w2=w((hidden, hidden, 1, 1)), b2=zeros(hidden))
    p["da0_bn_g"] = ones(hidden); p["da0_bn_b"] = zeros(hidden)
    # decoder_b
    p["db_ct_w"] = w((d, hidden, 4, 4)); p["db_ct_b"] = zeros(hidden)
    p["db_bn_g"] = ones(hidden); p["db_bn_b"] = zeros(hidden)
    # out_layers['input']
    p["out_input_w"] = w((hidden, in_chns, 4, 4)); p["out_input_b"] = zeros(in_chns)
    return p


# ----------------------------- demo -----------------------------

if __name__ == "__main__":
    hidden, k, d, in_chns = 32, 8, 16, 3
    N, H, W = 2, 16, 16

    key = jax.random.PRNGKey(0)
    pkey, xkey = jax.random.split(key)
    params = init_params(pkey, hidden, k, d, in_chns)
    x = jax.random.normal(xkey, (N, in_chns, H, W), jnp.float32)

    fwd = jax.jit(decompose_net_forward)
    out_imgs, (ze, emb), (zea, emba), argmin = jax.block_until_ready(fwd(params, x))

    assert out_imgs["input"].shape == (N, in_chns, H, W)
    assert ze.shape == (N, d, H // 4, W // 4)
    assert emb.shape == (N, d, H // 4, W // 4)
    assert zea.shape == (N, hidden, H // 4, W // 4)
    assert emba.shape == (N, hidden, H // 4, W // 4)
    assert argmin.shape == (N, H // 2, W // 2)
    assert bool(jnp.all(jnp.isfinite(out_imgs["input"])))

    print("KERNEL_OK")
</pallas_src>

<mosaic_0001>
module attributes {stable_mosaic.version = 11 : i64} {
  func.func @_conv_bn_relu_kernel(%arg0: memref<48x128xf32, #tpu.memory_space<vmem>>, %arg1: memref<32x48xf32, #tpu.memory_space<vmem>>, %arg2: memref<32x1xf32, #tpu.memory_space<vmem>>, %arg3: memref<32x1xf32, #tpu.memory_space<vmem>>, %arg4: memref<32x1xf32, #tpu.memory_space<vmem>>, %arg5: memref<32x128xf32, #tpu.memory_space<vmem>>) attributes {dimension_semantics = [], scalar_prefetch = 0 : i64, scratch_operands = 0 : i64, tpu.core_type = #tpu.core_type<tc>} {
    %c0 = arith.constant 0 : index
    %c0_0 = arith.constant 0 : index
    %0 = vector.load %arg0[%c0, %c0_0] : memref<48x128xf32, #tpu.memory_space<vmem>>, vector<48x128xf32>
    %1 = arith.truncf %0 : vector<48x128xf32> to vector<48x128xbf16>
    %c0_1 = arith.constant 0 : index
    %c0_2 = arith.constant 0 : index
    %2 = vector.load %arg1[%c0_1, %c0_2] : memref<32x48xf32, #tpu.memory_space<vmem>>, vector<32x48xf32>
    %3 = arith.truncf %2 : vector<32x48xf32> to vector<32x48xbf16>
    %cst = arith.constant dense<0.000000e+00> : vector<32x128xf32>
    %4 = tpu.matmul %3, %1, %cst {dimension_numbers = #tpu.dot_dimension_numbers<[1], [0], [0], [1], [0, 0, 1, 1], [], []>} : vector<32x48xbf16>, vector<48x128xbf16>, vector<32x128xf32> -> vector<32x128xf32>
    %c0_3 = arith.constant 0 : index
    %c0_4 = arith.constant 0 : index
    %5 = vector.load %arg2[%c0_3, %c0_4] : memref<32x1xf32, #tpu.memory_space<vmem>>, vector<32x1xf32>
    %6 = vector.broadcast %5 : vector<32x1xf32> to vector<32x128xf32>
    %7 = arith.addf %4, %6 : vector<32x128xf32>
    %c0_5 = arith.constant 0 : index
    %c0_6 = arith.constant 0 : index
    %8 = vector.load %arg3[%c0_5, %c0_6] : memref<32x1xf32, #tpu.memory_space<vmem>>, vector<32x1xf32>
    %c0_7 = arith.constant 0 : index
    %c0_8 = arith.constant 0 : index
    %9 = vector.load %arg4[%c0_7, %c0_8] : memref<32x1xf32, #tpu.memory_space<vmem>>, vector<32x1xf32>
    %cst_9 = arith.constant dense<0.000000e+00> : vector<32xf32>
    %10 = vector.multi_reduction <add>, %7, %cst_9 [1] : vector<32x128xf32> to vector<32xf32>
    %11 = vector.shape_cast %10 : vector<32xf32> to vector<32x1xf32>
    %cst_10 = arith.constant 7.812500e-03 : f32
    %12 = vector.broadcast %cst_10 : f32 to vector<32x1xf32>
    %13 = arith.mulf %11, %12 : vector<32x1xf32>
    %14 = arith.mulf %7, %7 : vector<32x128xf32>
    %cst_11 = arith.constant dense<0.000000e+00> : vector<32xf32>
    %15 = vector.multi_reduction <add>, %14, %cst_11 [1] : vector<32x128xf32> to vector<32xf32>
    %16 = vector.shape_cast %15 : vector<32xf32> to vector<32x1xf32>
    %cst_12 = arith.constant 7.812500e-03 : f32
    %17 = vector.broadcast %cst_12 : f32 to vector<32x1xf32>
    %18 = arith.mulf %16, %17 : vector<32x1xf32>
    %19 = arith.mulf %13, %13 : vector<32x1xf32>
    %20 = arith.subf %18, %19 : vector<32x1xf32>
    %cst_13 = arith.constant 0.000000e+00 : f32
    %21 = vector.broadcast %cst_13 : f32 to vector<32x1xf32>
    %22 = arith.maximumf %20, %21 : vector<32x1xf32>
    %cst_14 = arith.constant 9.99999974E-6 : f32
    %23 = vector.broadcast %cst_14 : f32 to vector<32x1xf32>
    %24 = arith.addf %22, %23 : vector<32x1xf32>
    %25 = math.rsqrt %24 : vector<32x1xf32>
    %26 = arith.mulf %8, %25 : vector<32x1xf32>
    %27 = vector.broadcast %13 : vector<32x1xf32> to vector<32x128xf32>
    %28 = arith.subf %7, %27 : vector<32x128xf32>
    %29 = vector.broadcast %26 : vector<32x1xf32> to vector<32x128xf32>
    %30 = arith.mulf %28, %29 : vector<32x128xf32>
    %31 = vector.broadcast %9 : vector<32x1xf32> to vector<32x128xf32>
    %32 = arith.addf %30, %31 : vector<32x128xf32>
    %cst_15 = arith.constant 0.000000e+00 : f32
    %33 = vector.broadcast %cst_15 : f32 to vector<32x128xf32>
    %34 = arith.maximumf %32, %33 : vector<32x128xf32>
    %c0_16 = arith.constant 0 : index
    %c0_17 = arith.constant 0 : index
    %35 = vector.load %arg5[%c0_16, %c0_17] : memref<32x128xf32, #tpu.memory_space<vmem>>, vector<32x128xf32>
    tpu.vector_store %arg5[%c0_16, %c0_17], %34 {strides = array<i32>} : memref<32x128xf32, #tpu.memory_space<vmem>>, vector<32x128xf32>,
    return
  }
}

module attributes {stable_mosaic.version = 11 : i64} {
  func.func @_conv_bn_relu_kernel(%arg0: memref<512x32xf32, #tpu.memory_space<vmem>>, %arg1: memref<32x512xf32, #tpu.memory_space<vmem>>, %arg2: memref<32x1xf32, #tpu.memory_space<vmem>>, %arg3: memref<32x1xf32, #tpu.memory_space<vmem>>, %arg4: memref<32x1xf32, #tpu.memory_space<vmem>>, %arg5: memref<32x32xf32, #tpu.memory_space<vmem>>) attributes {dimension_semantics = [], scalar_prefetch = 0 : i64, scratch_operands = 0 : i64, tpu.core_type = #tpu.core_type<tc>} {
    %c0 = arith.constant 0 : index
    %c0_0 = arith.constant 0 : index
    %0 = vector.load %arg0[%c0, %c0_0] : memref<512x32xf32, #tpu.memory_space<vmem>>, vector<512x32xf32>
    %1 = arith.truncf %0 : vector<512x32xf32> to vector<512x32xbf16>
    %c0_1 = arith.constant 0 : index
    %c0_2 = arith.constant 0 : index
    %2 = vector.load %arg1[%c0_1, %c0_2] : memref<32x512xf32, #tpu.memory_space<vmem>>, vector<32x512xf32>
    %3 = arith.truncf %2 : vector<32x512xf32> to vector<32x512xbf16>
    %cst = arith.constant dense<0.000000e+00> : vector<32x32xf32>
    %4 = tpu.matmul %3, %1, %cst {dimension_numbers = #tpu.dot_dimension_numbers<[1], [0], [0], [1], [0, 0, 1, 1], [], []>} : vector<32x512xbf16>, vector<512x32xbf16>, vector<32x32xf32> -> vector<32x32xf32>
    %c0_3 = arith.constant 0 : index
    %c0_4 = arith.constant 0 : index
    %5 = vector.load %arg2[%c0_3, %c0_4] : memref<32x1xf32, #tpu.memory_space<vmem>>, vector<32x1xf32>
    %6 = vector.broadcast %5 : vector<32x1xf32> to vector<32x32xf32>
    %7 = arith.addf %4, %6 : vector<32x32xf32>
    %c0_5 = arith.constant 0 : index
    %c0_6 = arith.constant 0 : index
    %8 = vector.load %arg3[%c0_5, %c0_6] : memref<32x1xf32, #tpu.memory_space<vmem>>, vector<32x1xf32>
    %c0_7 = arith.constant 0 : index
    %c0_8 = arith.constant 0 : index
    %9 = vector.load %arg4[%c0_7, %c0_8] : memref<32x1xf32, #tpu.memory_space<vmem>>, vector<32x1xf32>
    %cst_9 = arith.constant dense<0.000000e+00> : vector<32xf32>
    %10 = vector.multi_reduction <add>, %7, %cst_9 [1] : vector<32x32xf32> to vector<32xf32>
    %11 = vector.shape_cast %10 : vector<32xf32> to vector<32x1xf32>
    %cst_10 = arith.constant 3.125000e-02 : f32
    %12 = vector.broadcast %cst_10 : f32 to vector<32x1xf32>
    %13 = arith.mulf %11, %12 : vector<32x1xf32>
    %14 = arith.mulf %7, %7 : vector<32x32xf32>
    %cst_11 = arith.constant dense<0.000000e+00> : vector<32xf32>
    %15 = vector.multi_reduction <add>, %14, %cst_11 [1] : vector<32x32xf32> to vector<32xf32>
    %16 = vector.shape_cast %15 : vector<32xf32> to vector<32x1xf32>
    %cst_12 = arith.constant 3.125000e-02 : f32
    %17 = vector.broadcast %cst_12 : f32 to vector<32x1xf32>
    %18 = arith.mulf %16, %17 : vector<32x1xf32>
    %19 = arith.mulf %13, %13 : vector<32x1xf32>
    %20 = arith.subf %18, %19 : vector<32x1xf32>
    %cst_13 = arith.constant 0.000000e+00 : f32
    %21 = vector.broadcast %cst_13 : f32 to vector<32x1xf32>
    %22 = arith.maximumf %20, %21 : vector<32x1xf32>
    %cst_14 = arith.constant 9.99999974E-6 : f32
    %23 = vector.broadcast %cst_14 : f32 to vector<32x1xf32>
    %24 = arith.addf %22, %23 : vector<32x1xf32>
    %25 = math.rsqrt %24 : vector<32x1xf32>
    %26 = arith.mulf %8, %25 : vector<32x1xf32>
    %27 = vector.broadcast %13 : vector<32x1xf32> to vector<32x32xf32>
    %28 = arith.subf %7, %27 : vector<32x32xf32>
    %29 = vector.broadcast %26 : vector<32x1xf32> to vector<32x32xf32>
    %30 = arith.mulf %28, %29 : vector<32x32xf32>
    %31 = vector.broadcast %9 : vector<32x1xf32> to vector<32x32xf32>
    %32 = arith.addf %30, %31 : vector<32x32xf32>
    %cst_15 = arith.constant 0.000000e+00 : f32
    %33 = vector.broadcast %cst_15 : f32 to vector<32x32xf32>
    %34 = arith.maximumf %32, %33 : vector<32x32xf32>
    %c0_16 = arith.constant 0 : index
    %c0_17 = arith.constant 0 : index
    %35 = vector.load %arg5[%c0_16, %c0_17] : memref<32x32xf32, #tpu.memory_space<vmem>>, vector<32x32xf32>
    tpu.vector_store %arg5[%c0_16, %c0_17], %34 {strides = array<i32>} : memref<32x32xf32, #tpu.memory_space<vmem>>, vector<32x32xf32>,
    return
  }
}

module attributes {stable_mosaic.version = 11 : i64} {
  func.func @_resblock_kernel(%arg0: memref<32x42xf32, #tpu.memory_space<vmem>>, %arg1: memref<9x32xf32, #tpu.memory_space<vmem>>, %arg2: memref<32x288xf32, #tpu.memory_space<vmem>>, %arg3: memref<32x1xf32, #tpu.memory_space<vmem>>, %arg4: memref<32x32xf32, #tpu.memory_space<vmem>>, %arg5: memref<32x1xf32, #tpu.memory_space<vmem>>, %arg6: memref<32x1xf32, #tpu.memory_space<vmem>>, %arg7: memref<32x1xf32, #tpu.memory_space<vmem>>, %arg8: memref<32x1xf32, #tpu.memory_space<vmem>>, %arg9: memref<32x1xf32, #tpu.memory_space<vmem>>, %arg10: memref<32x32xf32, #tpu.memory_space<vmem>>) attributes {dimension_semantics = [], scalar_prefetch = 0 : i64, scratch_operands = 0 : i64, tpu.core_type = #tpu.core_type<tc>} {
    %c0 = arith.constant 0 : index
    %c0_0 = arith.constant 0 : index
    %0 = vector.load %arg0[%c0, %c0_0] : memref<32x42xf32, #tpu.memory_space<vmem>>, vector<32x42xf32>
    %cst = arith.constant 0.000000e+00 : f32
    %1 = vector.broadcast %cst : f32 to vector<32x42xf32>
    %2 = arith.maximumf %0, %1 : vector<32x42xf32>
    %3 = vector.extract_strided_slice %0 {offsets = [0, 5], sizes = [32, 32], strides = [1, 1]} : vector<32x42xf32> to vector<32x32xf32>
    %c0_1 = arith.constant 0 : index
    %c0_2 = arith.constant 0 : index
    %4 = vector.load %arg1[%c0_1, %c0_2] : memref<9x32xf32, #tpu.memory_space<vmem>>, vector<9x32xf32>
    %5 = vector.extract_strided_slice %2 {offsets = [0, 0], sizes = [32, 32], strides = [1, 1]} : vector<32x42xf32> to vector<32x32xf32>
    %6 = vector.extract_strided_slice %4 {offsets = [0, 0], sizes = [1, 32], strides = [1, 1]} : vector<9x32xf32> to vector<1x32xf32>
    %7 = vector.broadcast %6 : vector<1x32xf32> to vector<32x32xf32>
    %8 = arith.mulf %5, %7 : vector<32x32xf32>
    %9 = arith.truncf %8 : vector<32x32xf32> to vector<32x32xbf16>
    %10 = vector.extract_strided_slice %2 {offsets = [0, 1], sizes = [32, 32], strides = [1, 1]} : vector<32x42xf32> to vector<32x32xf32>
    %11 = vector.extract_strided_slice %4 {offsets = [1, 0], sizes = [1, 32], strides = [1, 1]} : vector<9x32xf32> to vector<1x32xf32>
    %12 = vector.broadcast %11 : vector<1x32xf32> to vector<32x32xf32>
    %13 = arith.mulf %10, %12 : vector<32x32xf32>
    %14 = arith.truncf %13 : vector<32x32xf32> to vector<32x32xbf16>
    %15 = vector.extract_strided_slice %2 {offsets = [0, 2], sizes = [32, 32], strides = [1, 1]} : vector<32x42xf32> to vector<32x32xf32>
    %16 = vector.extract_strided_slice %4 {offsets = [2, 0], sizes = [1, 32], strides = [1, 1]} : vector<9x32xf32> to vector<1x32xf32>
    %17 = vector.broadcast %16 : vector<1x32xf32> to vector<32x32xf32>
    %18 = arith.mulf %15, %17 : vector<32x32xf32>
    %19 = arith.truncf %18 : vector<32x32xf32> to vector<32x32xbf16>
    %20 = vector.extract_strided_slice %2 {offsets = [0, 4], sizes = [32, 32], strides = [1, 1]} : vector<32x42xf32> to vector<32x32xf32>
    %21 = vector.extract_strided_slice %4 {offsets = [3, 0], sizes = [1, 32], strides = [1, 1]} : vector<9x32xf32> to vector<1x32xf32>
    %22 = vector.broadcast %21 : vector<1x32xf32> to vector<32x32xf32>
    %23 = arith.mulf %20, %22 : vector<32x32xf32>
    %24 = arith.truncf %23 : vector<32x32xf32> to vector<32x32xbf16>
    %25 = vector.extract_strided_slice %2 {offsets = [0, 5], sizes = [32, 32], strides = [1, 1]} : vector<32x42xf32> to vector<32x32xf32>
    %26 = vector.extract_strided_slice %4 {offsets = [4, 0], sizes = [1, 32], strides = [1, 1]} : vector<9x32xf32> to vector<1x32xf32>
    %27 = vector.broadcast %26 : vector<1x32xf32> to vector<32x32xf32>
    %28 = arith.mulf %25, %27 : vector<32x32xf32>
    %29 = arith.truncf %28 : vector<32x32xf32> to vector<32x32xbf16>
    %30 = vector.extract_strided_slice %2 {offsets = [0, 6], sizes = [32, 32], strides = [1, 1]} : vector<32x42xf32> to vector<32x32xf32>
    %31 = vector.extract_strided_slice %4 {offsets = [5, 0], sizes = [1, 32], strides = [1, 1]} : vector<9x32xf32> to vector<1x32xf32>
    %32 = vector.broadcast %31 : vector<1x32xf32> to vector<32x32xf32>
    %33 = arith.mulf %30, %32 : vector<32x32xf32>
    %34 = arith.truncf %33 : vector<32x32xf32> to vector<32x32xbf16>
    %35 = vector.extract_strided_slice %2 {offsets = [0, 8], sizes = [32, 32], strides = [1, 1]} : vector<32x42xf32> to vector<32x32xf32>
    %36 = vector.extract_strided_slice %4 {offsets = [6, 0], sizes = [1, 32], strides = [1, 1]} : vector<9x32xf32> to vector<1x32xf32>
    %37 = vector.broadcast %36 : vector<1x32xf32> to vector<32x32xf32>
    %38 = arith.mulf %35, %37 : vector<32x32xf32>
    %39 = arith.truncf %38 : vector<32x32xf32> to vector<32x32xbf16>
    %40 = vector.extract_strided_slice %2 {offsets = [0, 9], sizes = [32, 32], strides = [1, 1]} : vector<32x42xf32> to vector<32x32xf32>
    %41 = vector.extract_strided_slice %4 {offsets = [7, 0], sizes = [1, 32], strides = [1, 1]} : vector<9x32xf32> to vector<1x32xf32>
    %42 = vector.broadcast %41 : vector<1x32xf32> to vector<32x32xf32>
    %43 = arith.mulf %40, %42 : vector<32x32xf32>
    %44 = arith.truncf %43 : vector<32x32xf32> to vector<32x32xbf16>
    %45 = vector.extract_strided_slice %2 {offsets = [0, 10], sizes = [32, 32], strides = [1, 1]} : vector<32x42xf32> to vector<32x32xf32>
    %46 = vector.extract_strided_slice %4 {offsets = [8, 0], sizes = [1, 32], strides = [1, 1]} : vector<9x32xf32> to vector<1x32xf32>
    %47 = vector.broadcast %46 : vector<1x32xf32> to vector<32x32xf32>
    %48 = arith.mulf %45, %47 : vector<32x32xf32>
    %49 = arith.truncf %48 : vector<32x32xf32> to vector<32x32xbf16>
    %50 = tpu.concatenate %9, %14, %19, %24, %29, %34, %39, %44, %49 in 0 : vector<32x32xbf16>, vector<32x32xbf16>, vector<32x32xbf16>, vector<32x32xbf16>, vector<32x32xbf16>, vector<32x32xbf16>, vector<32x32xbf16>, vector<32x32xbf16>, vector<32x32xbf16> -> vector<288x32xbf16>
    %c0_3 = arith.constant 0 : index
    %c0_4 = arith.constant 0 : index
    %51 = vector.load %arg2[%c0_3, %c0_4] : memref<32x288xf32, #tpu.memory_space<vmem>>, vector<32x288xf32>
    %52 = arith.truncf %51 : vector<32x288xf32> to vector<32x288xbf16>
    %cst_5 = arith.constant dense<0.000000e+00> : vector<32x32xf32>
    %53 = tpu.matmul %52, %50, %cst_5 {dimension_numbers = #tpu.dot_dimension_numbers<[1], [0], [0], [1], [0, 0, 1, 1], [], []>} : vector<32x288xbf16>, vector<288x32xbf16>, vector<32x32xf32> -> vector<32x32xf32>
    %c0_6 = arith.constant 0 : index
    %c0_7 = arith.constant 0 : index
    %54 = vector.load %arg3[%c0_6, %c0_7] : memref<32x1xf32, #tpu.memory_space<vmem>>, vector<32x1xf32>
    %55 = vector.broadcast %54 : vector<32x1xf32> to vector<32x32xf32>
    %56 = arith.addf %53, %55 : vector<32x32xf32>
    %c0_8 = arith.constant 0 : index
    %c0_9 = arith.constant 0 : index
    %57 = vector.load %arg6[%c0_8, %c0_9] : memref<32x1xf32, #tpu.memory_space<vmem>>, vector<32x1xf32>
    %c0_10 = arith.constant 0 : index
    %c0_11 = arith.constant 0 : index
    %58 = vector.load %arg7[%c0_10, %c0_11] : memref<32x1xf32, #tpu.memory_space<vmem>>, vector<32x1xf32>
    %cst_12 = arith.constant dense<0.000000e+00> : vector<32xf32>
    %59 = vector.multi_reduction <add>, %56, %cst_12 [1] : vector<32x32xf32> to vector<32xf32>
    %60 = vector.shape_cast %59 : vector<32xf32> to vector<32x1xf32>
    %cst_13 = arith.constant 3.125000e-02 : f32
    %61 = vector.broadcast %cst_13 : f32 to vector<32x1xf32>
    %62 = arith.mulf %60, %61 : vector<32x1xf32>
    %63 = arith.mulf %56, %56 : vector<32x32xf32>
    %cst_14 = arith.constant dense<0.000000e+00> : vector<32xf32>
    %64 = vector.multi_reduction <add>, %63, %cst_14 [1] : vector<32x32xf32> to vector<32xf32>
    %65 = vector.shape_cast %64 : vector<32xf32> to vector<32x1xf32>
    %cst_15 = arith.constant 3.125000e-02 : f32
    %66 = vector.broadcast %cst_15 : f32 to vector<32x1xf32>
    %67 = arith.mulf %65, %66 : vector<32x1xf32>
    %68 = arith.mulf %62, %62 : vector<32x1xf32>
    %69 = arith.subf %67, %68 : vector<32x1xf32>
    %cst_16 = arith.constant 0.000000e+00 : f32
    %70 = vector.broadcast %cst_16 : f32 to vector<32x1xf32>
    %71 = arith.maximumf %69, %70 : vector<32x1xf32>
    %cst_17 = arith.constant 9.99999974E-6 : f32
    %72 = vector.broadcast %cst_17 : f32 to vector<32x1xf32>
    %73 = arith.addf %71, %72 : vector<32x1xf32>
    %74 = math.rsqrt %73 : vector<32x1xf32>
    %75 = arith.mulf %57, %74 : vector<32x1xf32>
    %76 = vector.broadcast %62 : vector<32x1xf32> to vector<32x32xf32>
    %77 = arith.subf %56, %76 : vector<32x32xf32>
    %78 = vector.broadcast %75 : vector<32x1xf32> to vector<32x32xf32>
    %79 = arith.mulf %77, %78 : vector<32x32xf32>
    %80 = vector.broadcast %58 : vector<32x1xf32> to vector<32x32xf32>
    %81 = arith.addf %79, %80 : vector<32x32xf32>
    %cst_18 = arith.constant 0.000000e+00 : f32
    %82 = vector.broadcast %cst_18 : f32 to vector<32x32xf32>
    %83 = arith.maximumf %81, %82 : vector<32x32xf32>
    %c0_19 = arith.constant 0 : index
    %c0_20 = arith.constant 0 : index
    %84 = vector.load %arg4[%c0_19, %c0_20] : memref<32x32xf32, #tpu.memory_space<vmem>>, vector<32x32xf32>
    %85 = arith.truncf %84 : vector<32x32xf32> to vector<32x32xbf16>
    %86 = arith.truncf %83 : vector<32x32xf32> to vector<32x32xbf16>
    %cst_21 = arith.constant dense<0.000000e+00> : vector<32x32xf32>
    %87 = tpu.matmul %85, %86, %cst_21 {dimension_numbers = #tpu.dot_dimension_numbers<[1], [0], [0], [1], [0, 0, 1, 1], [], []>} : vector<32x32xbf16>, vector<32x32xbf16>, vector<32x32xf32> -> vector<32x32xf32>
    %c0_22 = arith.constant 0 : index
    %c0_23 = arith.constant 0 : index
    %88 = vector.load %arg5[%c0_22, %c0_23] : memref<32x1xf32, #tpu.memory_space<vmem>>, vector<32x1xf32>
    %89 = vector.broadcast %88 : vector<32x1xf32> to vector<32x32xf32>
    %90 = arith.addf %87, %89 : vector<32x32xf32>
    %91 = arith.addf %90, %3 : vector<32x32xf32>
    %c0_24 = arith.constant 0 : index
    %c0_25 = arith.constant 0 : index
    %92 = vector.load %arg8[%c0_24, %c0_25] : memref<32x1xf32, #tpu.memory_space<vmem>>, vector<32x1xf32>
    %c0_26 = arith.constant 0 : index
    %c0_27 = arith.constant 0 : index
    %93 = vector.load %arg9[%c0_26, %c0_27] : memref<32x1xf32, #tpu.memory_space<vmem>>, vector<32x1xf32>
    %cst_28 = arith.constant dense<0.000000e+00> : vector<32xf32>
    %94 = vector.multi_reduction <add>, %91, %cst_28 [1] : vector<32x32xf32> to vector<32xf32>
    %95 = vector.shape_cast %94 : vector<32xf32> to vector<32x1xf32>
    %cst_29 = arith.constant 3.125000e-02 : f32
    %96 = vector.broadcast %cst_29 : f32 to vector<32x1xf32>
    %97 = arith.mulf %95, %96 : vector<32x1xf32>
    %98 = arith.mulf %91, %91 : vector<32x32xf32>
    %cst_30 = arith.constant dense<0.000000e+00> : vector<32xf32>
    %99 = vector.multi_reduction <add>, %98, %cst_30 [1] : vector<32x32xf32> to vector<32xf32>
    %100 = vector.shape_cast %99 : vector<32xf32> to vector<32x1xf32>
    %cst_31 = arith.constant 3.125000e-02 : f32
    %101 = vector.broadcast %cst_31 : f32 to vector<32x1xf32>
    %102 = arith.mulf %100, %101 : vector<32x1xf32>
    %103 = arith.mulf %97, %97 : vector<32x1xf32>
    %104 = arith.subf %102, %103 : vector<32x1xf32>
    %cst_32 = arith.constant 0.000000e+00 : f32
    %105 = vector.broadcast %cst_32 : f32 to vector<32x1xf32>
    %106 = arith.maximumf %104, %105 : vector<32x1xf32>
    %cst_33 = arith.constant 9.99999974E-6 : f32
    %107 = vector.broadcast %cst_33 : f32 to vector<32x1xf32>
    %108 = arith.addf %106, %107 : vector<32x1xf32>
    %109 = math.rsqrt %108 : vector<32x1xf32>
    %110 = arith.mulf %92, %109 : vector<32x1xf32>
    %111 = vector.broadcast %97 : vector<32x1xf32> to vector<32x32xf32>
    %112 = arith.subf %91, %111 : vector<32x32xf32>
    %113 = vector.broadcast %110 : vector<32x1xf32> to vector<32x32xf32>
    %114 = arith.mulf %112, %113 : vector<32x32xf32>
    %115 = vector.broadcast %93 : vector<32x1xf32> to vector<32x32xf32>
    %116 = arith.addf %114, %115 : vector<32x32xf32>
    %c0_34 = arith.constant 0 : index
    %c0_35 = arith.constant 0 : index
    %117 = vector.load %arg10[%c0_34, %c0_35] : memref<32x32xf32, #tpu.memory_space<vmem>>, vector<32x32xf32>
    tpu.vector_store %arg10[%c0_34, %c0_35], %116 {strides = array<i32>} : memref<32x32xf32, #tpu.memory_space<vmem>>, vector<32x32xf32>,
    return
  }
}

module attributes {stable_mosaic.version = 11 : i64} {
  func.func @_nearest_embed_kernel(%arg0: memref<32x32xf32, #tpu.memory_space<vmem>>, %arg1: memref<8x32xf32, #tpu.memory_space<vmem>>, %arg2: memref<32x8xf32, #tpu.memory_space<vmem>>, %arg3: memref<8x1xf32, #tpu.memory_space<vmem>>, %arg4: memref<32x32xf32, #tpu.memory_space<vmem>>, %arg5: memref<1x32xi32, #tpu.memory_space<vmem>>) attributes {dimension_semantics = [], scalar_prefetch = 0 : i64, scratch_operands = 0 : i64, tpu.core_type = #tpu.core_type<tc>} {
    %c0 = arith.constant 0 : index
    %c0_0 = arith.constant 0 : index
    %0 = vector.load %arg0[%c0, %c0_0] : memref<32x32xf32, #tpu.memory_space<vmem>>, vector<32x32xf32>
    %c0_1 = arith.constant 0 : index
    %c0_2 = arith.constant 0 : index
    %1 = vector.load %arg1[%c0_1, %c0_2] : memref<8x32xf32, #tpu.memory_space<vmem>>, vector<8x32xf32>
    %c0_3 = arith.constant 0 : index
    %c0_4 = arith.constant 0 : index
    %2 = vector.load %arg2[%c0_3, %c0_4] : memref<32x8xf32, #tpu.memory_space<vmem>>, vector<32x8xf32>
    %c0_5 = arith.constant 0 : index
    %c0_6 = arith.constant 0 : index
    %3 = vector.load %arg3[%c0_5, %c0_6] : memref<8x1xf32, #tpu.memory_space<vmem>>, vector<8x1xf32>
    %cst = arith.constant dense<0.000000e+00> : vector<8x32xf32>
    %4 = tpu.matmul %1, %0, %cst {dimension_numbers = #tpu.dot_dimension_numbers<[1], [0], [0], [1], [0, 0, 1, 1], [], []>} : vector<8x32xf32>, vector<32x32xf32>, vector<8x32xf32> -> vector<8x32xf32>
    %cst_7 = arith.constant 2.000000e+00 : f32
    %5 = vector.broadcast %cst_7 : f32 to vector<8x32xf32>
    %6 = arith.mulf %5, %4 : vector<8x32xf32>
    %7 = vector.broadcast %3 : vector<8x1xf32> to vector<8x32xf32>
    %8 = arith.subf %7, %6 : vector<8x32xf32>
    %9 = tpu.iota {dimensions = array<i32: 0>} : vector<8x32xi32>
    %cst_8 = arith.constant dense<0x7F800000> : vector<32xf32>
    %10 = vector.multi_reduction <minimumf>, %8, %cst_8 [0] : vector<8x32xf32> to vector<32xf32>
    %11 = vector.shape_cast %10 : vector<32xf32> to vector<1x32xf32>
    %12 = vector.broadcast %11 : vector<1x32xf32> to vector<8x32xf32>
    %13 = arith.cmpf ole, %8, %12 : vector<8x32xf32>
    %c8_i32 = arith.constant 8 : i32
    %14 = vector.broadcast %c8_i32 : i32 to vector<8x32xi32>
    %15 = arith.select %13, %9, %14 : vector<8x32xi1>, vector<8x32xi32>
    %cst_9 = arith.constant dense<2147483647> : vector<32xi32>
    %16 = vector.multi_reduction <minsi>, %15, %cst_9 [0] : vector<8x32xi32> to vector<32xi32>
    %17 = vector.shape_cast %16 : vector<32xi32> to vector<1x32xi32>
    %18 = vector.broadcast %17 : vector<1x32xi32> to vector<8x32xi32>
    %19 = arith.cmpi eq, %9, %18 : vector<8x32xi32>
    %20 = arith.extui %19 : vector<8x32xi1> to vector<8x32xi32>
    %21 = arith.sitofp %20 : vector<8x32xi32> to vector<8x32xf32>
    %cst_10 = arith.constant dense<0.000000e+00> : vector<32x32xf32>
    %22 = tpu.matmul %2, %21, %cst_10 {dimension_numbers = #tpu.dot_dimension_numbers<[1], [0], [0], [1], [0, 0, 1, 1], [], []>} : vector<32x8xf32>, vector<8x32xf32>, vector<32x32xf32> -> vector<32x32xf32>
    %c0_11 = arith.constant 0 : index
    %c0_12 = arith.constant 0 : index
    %23 = vector.load %arg4[%c0_11, %c0_12] : memref<32x32xf32, #tpu.memory_space<vmem>>, vector<32x32xf32>
    tpu.vector_store %arg4[%c0_11, %c0_12], %22 {strides = array<i32>} : memref<32x32xf32, #tpu.memory_space<vmem>>, vector<32x32xf32>,
    %c0_13 = arith.constant 0 : index
    %c0_14 = arith.constant 0 : index
    %24 = vector.load %arg5[%c0_13, %c0_14] : memref<1x32xi32, #tpu.memory_space<vmem>>, vector<1x32xi32>
    tpu.vector_store %arg5[%c0_13, %c0_14], %17 {strides = array<i32>} : memref<1x32xi32, #tpu.memory_space<vmem>>, vector<1x32xi32>,
    return
  }
}

module attributes {stable_mosaic.version = 11 : i64} {
  func.func @_resblock_kernel(%arg0: memref<32x42xf32, #tpu.memory_space<vmem>>, %arg1: memref<9x32xf32, #tpu.memory_space<vmem>>, %arg2: memref<16x288xf32, #tpu.memory_space<vmem>>, %arg3: memref<16x1xf32, #tpu.memory_space<vmem>>, %arg4: memref<16x16xf32, #tpu.memory_space<vmem>>, %arg5: memref<16x1xf32, #tpu.memory_space<vmem>>, %arg6: memref<16x1xf32, #tpu.memory_space<vmem>>, %arg7: memref<16x1xf32, #tpu.memory_space<vmem>>, %arg8: memref<16x1xf32, #tpu.memory_space<vmem>>, %arg9: memref<16x1xf32, #tpu.memory_space<vmem>>, %arg10: memref<16x32xf32, #tpu.memory_space<vmem>>) attributes {dimension_semantics = [], scalar_prefetch = 0 : i64, scratch_operands = 0 : i64, tpu.core_type = #tpu.core_type<tc>} {
    %c0 = arith.constant 0 : index
    %c0_0 = arith.constant 0 : index
    %0 = vector.load %arg0[%c0, %c0_0] : memref<32x42xf32, #tpu.memory_space<vmem>>, vector<32x42xf32>
    %cst = arith.constant 0.000000e+00 : f32
    %1 = vector.broadcast %cst : f32 to vector<32x42xf32>
    %2 = arith.maximumf %0, %1 : vector<32x42xf32>
    %c0_1 = arith.constant 0 : index
    %c0_2 = arith.constant 0 : index
    %3 = vector.load %arg1[%c0_1, %c0_2] : memref<9x32xf32, #tpu.memory_space<vmem>>, vector<9x32xf32>
    %4 = vector.extract_strided_slice %2 {offsets = [0, 0], sizes = [32, 32], strides = [1, 1]} : vector<32x42xf32> to vector<32x32xf32>
    %5 = vector.extract_strided_slice %3 {offsets = [0, 0], sizes = [1, 32], strides = [1, 1]} : vector<9x32xf32> to vector<1x32xf32>
    %6 = vector.broadcast %5 : vector<1x32xf32> to vector<32x32xf32>
    %7 = arith.mulf %4, %6 : vector<32x32xf32>
    %8 = arith.truncf %7 : vector<32x32xf32> to vector<32x32xbf16>
    %9 = vector.extract_strided_slice %2 {offsets = [0, 1], sizes = [32, 32], strides = [1, 1]} : vector<32x42xf32> to vector<32x32xf32>
    %10 = vector.extract_strided_slice %3 {offsets = [1, 0], sizes = [1, 32], strides = [1, 1]} : vector<9x32xf32> to vector<1x32xf32>
    %11 = vector.broadcast %10 : vector<1x32xf32> to vector<32x32xf32>
    %12 = arith.mulf %9, %11 : vector<32x32xf32>
    %13 = arith.truncf %12 : vector<32x32xf32> to vector<32x32xbf16>
    %14 = vector.extract_strided_slice %2 {offsets = [0, 2], sizes = [32, 32], strides = [1, 1]} : vector<32x42xf32> to vector<32x32xf32>
    %15 = vector.extract_strided_slice %3 {offsets = [2, 0], sizes = [1, 32], strides = [1, 1]} : vector<9x32xf32> to vector<1x32xf32>
    %16 = vector.broadcast %15 : vector<1x32xf32> to vector<32x32xf32>
    %17 = arith.mulf %14, %16 : vector<32x32xf32>
    %18 = arith.truncf %17 : vector<32x32xf32> to vector<32x32xbf16>
    %19 = vector.extract_strided_slice %2 {offsets = [0, 4], sizes = [32, 32], strides = [1, 1]} : vector<32x42xf32> to vector<32x32xf32>
    %20 = vector.extract_strided_slice %3 {offsets = [3, 0], sizes = [1, 32], strides = [1, 1]} : vector<9x32xf32> to vector<1x32xf32>
    %21 = vector.broadcast %20 : vector<1x32xf32> to vector<32x32xf32>
    %22 = arith.mulf %19, %21 : vector<32x32xf32>
    %23 = arith.truncf %22 : vector<32x32xf32> to vector<32x32xbf16>
    %24 = vector.extract_strided_slice %2 {offsets = [0, 5], sizes = [32, 32], strides = [1, 1]} : vector<32x42xf32> to vector<32x32xf32>
    %25 = vector.extract_strided_slice %3 {offsets = [4, 0], sizes = [1, 32], strides = [1, 1]} : vector<9x32xf32> to vector<1x32xf32>
    %26 = vector.broadcast %25 : vector<1x32xf32> to vector<32x32xf32>
    %27 = arith.mulf %24, %26 : vector<32x32xf32>
    %28 = arith.truncf %27 : vector<32x32xf32> to vector<32x32xbf16>
    %29 = vector.extract_strided_slice %2 {offsets = [0, 6], sizes = [32, 32], strides = [1, 1]} : vector<32x42xf32> to vector<32x32xf32>
    %30 = vector.extract_strided_slice %3 {offsets = [5, 0], sizes = [1, 32], strides = [1, 1]} : vector<9x32xf32> to vector<1x32xf32>
    %31 = vector.broadcast %30 : vector<1x32xf32> to vector<32x32xf32>
    %32 = arith.mulf %29, %31 : vector<32x32xf32>
    %33 = arith.truncf %32 : vector<32x32xf32> to vector<32x32xbf16>
    %34 = vector.extract_strided_slice %2 {offsets = [0, 8], sizes = [32, 32], strides = [1, 1]} : vector<32x42xf32> to vector<32x32xf32>
    %35 = vector.extract_strided_slice %3 {offsets = [6, 0], sizes = [1, 32], strides = [1, 1]} : vector<9x32xf32> to vector<1x32xf32>
    %36 = vector.broadcast %35 : vector<1x32xf32> to vector<32x32xf32>
    %37 = arith.mulf %34, %36 : vector<32x32xf32>
    %38 = arith.truncf %37 : vector<32x32xf32> to vector<32x32xbf16>
    %39 = vector.extract_strided_slice %2 {offsets = [0, 9], sizes = [32, 32], strides = [1, 1]} : vector<32x42xf32> to vector<32x32xf32>
    %40 = vector.extract_strided_slice %3 {offsets = [7, 0], sizes = [1, 32], strides = [1, 1]} : vector<9x32xf32> to vector<1x32xf32>
    %41 = vector.broadcast %40 : vector<1x32xf32> to vector<32x32xf32>
    %42 = arith.mulf %39, %41 : vector<32x32xf32>
    %43 = arith.truncf %42 : vector<32x32xf32> to vector<32x32xbf16>
    %44 = vector.extract_strided_slice %2 {offsets = [0, 10], sizes = [32, 32], strides = [1, 1]} : vector<32x42xf32> to vector<32x32xf32>
    %45 = vector.extract_strided_slice %3 {offsets = [8, 0], sizes = [1, 32], strides = [1, 1]} : vector<9x32xf32> to vector<1x32xf32>
    %46 = vector.broadcast %45 : vector<1x32xf32> to vector<32x32xf32>
    %47 = arith.mulf %44, %46 : vector<32x32xf32>
    %48 = arith.truncf %47 : vector<32x32xf32> to vector<32x32xbf16>
    %49 = tpu.concatenate %8, %13, %18, %23, %28, %33, %38, %43, %48 in 0 : vector<32x32xbf16>, vector<32x32xbf16>, vector<32x32xbf16>, vector<32x32xbf16>, vector<32x32xbf16>, vector<32x32xbf16>, vector<32x32xbf16>, vector<32x32xbf16>, vector<32x32xbf16> -> vector<288x32xbf16>
    %c0_3 = arith.constant 0 : index
    %c0_4 = arith.constant 0 : index
    %50 = vector.load %arg2[%c0_3, %c0_4] : memref<16x288xf32, #tpu.memory_space<vmem>>, vector<16x288xf32>
    %51 = arith.truncf %50 : vector<16x288xf32> to vector<16x288xbf16>
    %cst_5 = arith.constant dense<0.000000e+00> : vector<16x32xf32>
    %52 = tpu.matmul %51, %49, %cst_5 {dimension_numbers = #tpu.dot_dimension_numbers<[1], [0], [0], [1], [0, 0, 1, 1], [], []>} : vector<16x288xbf16>, vector<288x32xbf16>, vector<16x32xf32> -> vector<16x32xf32>
    %c0_6 = arith.constant 0 : index
    %c0_7 = arith.constant 0 : index
    %53 = vector.load %arg3[%c0_6, %c0_7] : memref<16x1xf32, #tpu.memory_space<vmem>>, vector<16x1xf32>
    %54 = vector.broadcast %53 : vector<16x1xf32> to vector<16x32xf32>
    %55 = arith.addf %52, %54 : vector<16x32xf32>
    %c0_8 = arith.constant 0 : index
    %c0_9 = arith.constant 0 : index
    %56 = vector.load %arg6[%c0_8, %c0_9] : memref<16x1xf32, #tpu.memory_space<vmem>>, vector<16x1xf32>
    %c0_10 = arith.constant 0 : index
    %c0_11 = arith.constant 0 : index
    %57 = vector.load %arg7[%c0_10, %c0_11] : memref<16x1xf32, #tpu.memory_space<vmem>>, vector<16x1xf32>
    %cst_12 = arith.constant dense<0.000000e+00> : vector<16xf32>
    %58 = vector.multi_reduction <add>, %55, %cst_12 [1] : vector<16x32xf32> to vector<16xf32>
    %59 = vector.shape_cast %58 : vector<16xf32> to vector<16x1xf32>
    %cst_13 = arith.constant 3.125000e-02 : f32
    %60 = vector.broadcast %cst_13 : f32 to vector<16x1xf32>
    %61 = arith.mulf %59, %60 : vector<16x1xf32>
    %62 = arith.mulf %55, %55 : vector<16x32xf32>
    %cst_14 = arith.constant dense<0.000000e+00> : vector<16xf32>
    %63 = vector.multi_reduction <add>, %62, %cst_14 [1] : vector<16x32xf32> to vector<16xf32>
    %64 = vector.shape_cast %63 : vector<16xf32> to vector<16x1xf32>
    %cst_15 = arith.constant 3.125000e-02 : f32
    %65 = vector.broadcast %cst_15 : f32 to vector<16x1xf32>
    %66 = arith.mulf %64, %65 : vector<16x1xf32>
    %67 = arith.mulf %61, %61 : vector<16x1xf32>
    %68 = arith.subf %66, %67 : vector<16x1xf32>
    %cst_16 = arith.constant 0.000000e+00 : f32
    %69 = vector.broadcast %cst_16 : f32 to vector<16x1xf32>
    %70 = arith.maximumf %68, %69 : vector<16x1xf32>
    %cst_17 = arith.constant 9.99999974E-6 : f32
    %71 = vector.broadcast %cst_17 : f32 to vector<16x1xf32>
    %72 = arith.addf %70, %71 : vector<16x1xf32>
    %73 = math.rsqrt %72 : vector<16x1xf32>
    %74 = arith.mulf %56, %73 : vector<16x1xf32>
    %75 = vector.broadcast %61 : vector<16x1xf32> to vector<16x32xf32>
    %76 = arith.subf %55, %75 : vector<16x32xf32>
    %77 = vector.broadcast %74 : vector<16x1xf32> to vector<16x32xf32>
    %78 = arith.mulf %76, %77 : vector<16x32xf32>
    %79 = vector.broadcast %57 : vector<16x1xf32> to vector<16x32xf32>
    %80 = arith.addf %78, %79 : vector<16x32xf32>
    %cst_18 = arith.constant 0.000000e+00 : f32
    %81 = vector.broadcast %cst_18 : f32 to vector<16x32xf32>
    %82 = arith.maximumf %80, %81 : vector<16x32xf32>
    %c0_19 = arith.constant 0 : index
    %c0_20 = arith.constant 0 : index
    %83 = vector.load %arg4[%c0_19, %c0_20] : memref<16x16xf32, #tpu.memory_space<vmem>>, vector<16x16xf32>
    %84 = arith.truncf %83 : vector<16x16xf32> to vector<16x16xbf16>
    %85 = arith.truncf %82 : vector<16x32xf32> to vector<16x32xbf16>
    %cst_21 = arith.constant dense<0.000000e+00> : vector<16x32xf32>
    %86 = tpu.matmul %84, %85, %cst_21 {dimension_numbers = #tpu.dot_dimension_numbers<[1], [0], [0], [1], [0, 0, 1, 1], [], []>} : vector<16x16xbf16>, vector<16x32xbf16>, vector<16x32xf32> -> vector<16x32xf32>
    %c0_22 = arith.constant 0 : index
    %c0_23 = arith.constant 0 : index
    %87 = vector.load %arg5[%c0_22, %c0_23] : memref<16x1xf32, #tpu.memory_space<vmem>>, vector<16x1xf32>
    %88 = vector.broadcast %87 : vector<16x1xf32> to vector<16x32xf32>
    %89 = arith.addf %86, %88 : vector<16x32xf32>
    %c0_24 = arith.constant 0 : index
    %c0_25 = arith.constant 0 : index
    %90 = vector.load %arg8[%c0_24, %c0_25] : memref<16x1xf32, #tpu.memory_space<vmem>>, vector<16x1xf32>
    %c0_26 = arith.constant 0 : index
    %c0_27 = arith.constant 0 : index
    %91 = vector.load %arg9[%c0_26, %c0_27] : memref<16x1xf32, #tpu.memory_space<vmem>>, vector<16x1xf32>
    %cst_28 = arith.constant dense<0.000000e+00> : vector<16xf32>
    %92 = vector.multi_reduction <add>, %89, %cst_28 [1] : vector<16x32xf32> to vector<16xf32>
    %93 = vector.shape_cast %92 : vector<16xf32> to vector<16x1xf32>
    %cst_29 = arith.constant 3.125000e-02 : f32
    %94 = vector.broadcast %cst_29 : f32 to vector<16x1xf32>
    %95 = arith.mulf %93, %94 : vector<16x1xf32>
    %96 = arith.mulf %89, %89 : vector<16x32xf32>
    %cst_30 = arith.constant dense<0.000000e+00> : vector<16xf32>
    %97 = vector.multi_reduction <add>, %96, %cst_30 [1] : vector<16x32xf32> to vector<16xf32>
    %98 = vector.shape_cast %97 : vector<16xf32> to vector<16x1xf32>
    %cst_31 = arith.constant 3.125000e-02 : f32
    %99 = vector.broadcast %cst_31 : f32 to vector<16x1xf32>
    %100 = arith.mulf %98, %99 : vector<16x1xf32>
    %101 = arith.mulf %95, %95 : vector<16x1xf32>
    %102 = arith.subf %100, %101 : vector<16x1xf32>
    %cst_32 = arith.constant 0.000000e+00 : f32
    %103 = vector.broadcast %cst_32 : f32 to vector<16x1xf32>
    %104 = arith.maximumf %102, %103 : vector<16x1xf32>
    %cst_33 = arith.constant 9.99999974E-6 : f32
    %105 = vector.broadcast %cst_33 : f32 to vector<16x1xf32>
    %106 = arith.addf %104, %105 : vector<16x1xf32>
    %107 = math.rsqrt %106 : vector<16x1xf32>
    %108 = arith.mulf %90, %107 : vector<16x1xf32>
    %109 = vector.broadcast %95 : vector<16x1xf32> to vector<16x32xf32>
    %110 = arith.subf %89, %109 : vector<16x32xf32>
    %111 = vector.broadcast %108 : vector<16x1xf32> to vector<16x32xf32>
    %112 = arith.mulf %110, %111 : vector<16x32xf32>
    %113 = vector.broadcast %91 : vector<16x1xf32> to vector<16x32xf32>
    %114 = arith.addf %112, %113 : vector<16x32xf32>
    %c0_34 = arith.constant 0 : index
    %c0_35 = arith.constant 0 : index
    %115 = vector.load %arg10[%c0_34, %c0_35] : memref<16x32xf32, #tpu.memory_space<vmem>>, vector<16x32xf32>
    tpu.vector_store %arg10[%c0_34, %c0_35], %114 {strides = array<i32>} : memref<16x32xf32, #tpu.memory_space<vmem>>, vector<16x32xf32>,
    return
  }
}

module attributes {stable_mosaic.version = 11 : i64} {
  func.func @_resblock_kernel(%arg0: memref<16x42xf32, #tpu.memory_space<vmem>>, %arg1: memref<9x32xf32, #tpu.memory_space<vmem>>, %arg2: memref<32x144xf32, #tpu.memory_space<vmem>>, %arg3: memref<32x1xf32, #tpu.memory_space<vmem>>, %arg4: memref<32x32xf32, #tpu.memory_space<vmem>>, %arg5: memref<32x1xf32, #tpu.memory_space<vmem>>, %arg6: memref<32x1xf32, #tpu.memory_space<vmem>>, %arg7: memref<32x1xf32, #tpu.memory_space<vmem>>, %arg8: memref<32x32xf32, #tpu.memory_space<vmem>>) attributes {dimension_semantics = [], scalar_prefetch = 0 : i64, scratch_operands = 0 : i64, tpu.core_type = #tpu.core_type<tc>} {
    %c0 = arith.constant 0 : index
    %c0_0 = arith.constant 0 : index
    %0 = vector.load %arg0[%c0, %c0_0] : memref<16x42xf32, #tpu.memory_space<vmem>>, vector<16x42xf32>
    %cst = arith.constant 0.000000e+00 : f32
    %1 = vector.broadcast %cst : f32 to vector<16x42xf32>
    %2 = arith.maximumf %0, %1 : vector<16x42xf32>
    %c0_1 = arith.constant 0 : index
    %c0_2 = arith.constant 0 : index
    %3 = vector.load %arg1[%c0_1, %c0_2] : memref<9x32xf32, #tpu.memory_space<vmem>>, vector<9x32xf32>
    %4 = vector.extract_strided_slice %2 {offsets = [0, 0], sizes = [16, 32], strides = [1, 1]} : vector<16x42xf32> to vector<16x32xf32>
    %5 = vector.extract_strided_slice %3 {offsets = [0, 0], sizes = [1, 32], strides = [1, 1]} : vector<9x32xf32> to vector<1x32xf32>
    %6 = vector.broadcast %5 : vector<1x32xf32> to vector<16x32xf32>
    %7 = arith.mulf %4, %6 : vector<16x32xf32>
    %8 = arith.truncf %7 : vector<16x32xf32> to vector<16x32xbf16>
    %9 = vector.extract_strided_slice %2 {offsets = [0, 1], sizes = [16, 32], strides = [1, 1]} : vector<16x42xf32> to vector<16x32xf32>
    %10 = vector.extract_strided_slice %3 {offsets = [1, 0], sizes = [1, 32], strides = [1, 1]} : vector<9x32xf32> to vector<1x32xf32>
    %11 = vector.broadcast %10 : vector<1x32xf32> to vector<16x32xf32>
    %12 = arith.mulf %9, %11 : vector<16x32xf32>
    %13 = arith.truncf %12 : vector<16x32xf32> to vector<16x32xbf16>
    %14 = vector.extract_strided_slice %2 {offsets = [0, 2], sizes = [16, 32], strides = [1, 1]} : vector<16x42xf32> to vector<16x32xf32>
    %15 = vector.extract_strided_slice %3 {offsets = [2, 0], sizes = [1, 32], strides = [1, 1]} : vector<9x32xf32> to vector<1x32xf32>
    %16 = vector.broadcast %15 : vector<1x32xf32> to vector<16x32xf32>
    %17 = arith.mulf %14, %16 : vector<16x32xf32>
    %18 = arith.truncf %17 : vector<16x32xf32> to vector<16x32xbf16>
    %19 = vector.extract_strided_slice %2 {offsets = [0, 4], sizes = [16, 32], strides = [1, 1]} : vector<16x42xf32> to vector<16x32xf32>
    %20 = vector.extract_strided_slice %3 {offsets = [3, 0], sizes = [1, 32], strides = [1, 1]} : vector<9x32xf32> to vector<1x32xf32>
    %21 = vector.broadcast %20 : vector<1x32xf32> to vector<16x32xf32>
    %22 = arith.mulf %19, %21 : vector<16x32xf32>
    %23 = arith.truncf %22 : vector<16x32xf32> to vector<16x32xbf16>
    %24 = vector.extract_strided_slice %2 {offsets = [0, 5], sizes = [16, 32], strides = [1, 1]} : vector<16x42xf32> to vector<16x32xf32>
    %25 = vector.extract_strided_slice %3 {offsets = [4, 0], sizes = [1, 32], strides = [1, 1]} : vector<9x32xf32> to vector<1x32xf32>
    %26 = vector.broadcast %25 : vector<1x32xf32> to vector<16x32xf32>
    %27 = arith.mulf %24, %26 : vector<16x32xf32>
    %28 = arith.truncf %27 : vector<16x32xf32> to vector<16x32xbf16>
    %29 = vector.extract_strided_slice %2 {offsets = [0, 6], sizes = [16, 32], strides = [1, 1]} : vector<16x42xf32> to vector<16x32xf32>
    %30 = vector.extract_strided_slice %3 {offsets = [5, 0], sizes = [1, 32], strides = [1, 1]} : vector<9x32xf32> to vector<1x32xf32>
    %31 = vector.broadcast %30 : vector<1x32xf32> to vector<16x32xf32>
    %32 = arith.mulf %29, %31 : vector<16x32xf32>
    %33 = arith.truncf %32 : vector<16x32xf32> to vector<16x32xbf16>
    %34 = vector.extract_strided_slice %2 {offsets = [0, 8], sizes = [16, 32], strides = [1, 1]} : vector<16x42xf32> to vector<16x32xf32>
    %35 = vector.extract_strided_slice %3 {offsets = [6, 0], sizes = [1, 32], strides = [1, 1]} : vector<9x32xf32> to vector<1x32xf32>
    %36 = vector.broadcast %35 : vector<1x32xf32> to vector<16x32xf32>
    %37 = arith.mulf %34, %36 : vector<16x32xf32>
    %38 = arith.truncf %37 : vector<16x32xf32> to vector<16x32xbf16>
    %39 = vector.extract_strided_slice %2 {offsets = [0, 9], sizes = [16, 32], strides = [1, 1]} : vector<16x42xf32> to vector<16x32xf32>
    %40 = vector.extract_strided_slice %3 {offsets = [7, 0], sizes = [1, 32], strides = [1, 1]} : vector<9x32xf32> to vector<1x32xf32>
    %41 = vector.broadcast %40 : vector<1x32xf32> to vector<16x32xf32>
    %42 = arith.mulf %39, %41 : vector<16x32xf32>
    %43 = arith.truncf %42 : vector<16x32xf32> to vector<16x32xbf16>
    %44 = vector.extract_strided_slice %2 {offsets = [0, 10], sizes = [16, 32], strides = [1, 1]} : vector<16x42xf32> to vector<16x32xf32>
    %45 = vector.extract_strided_slice %3 {offsets = [8, 0], sizes = [1, 32], strides = [1, 1]} : vector<9x32xf32> to vector<1x32xf32>
    %46 = vector.broadcast %45 : vector<1x32xf32> to vector<16x32xf32>
    %47 = arith.mulf %44, %46 : vector<16x32xf32>
    %48 = arith.truncf %47 : vector<16x32xf32> to vector<16x32xbf16>
    %49 = tpu.concatenate %8, %13, %18, %23, %28, %33, %38, %43, %48 in 0 : vector<16x32xbf16>, vector<16x32xbf16>, vector<16x32xbf16>, vector<16x32xbf16>, vector<16x32xbf16>, vector<16x32xbf16>, vector<16x32xbf16>, vector<16x32xbf16>, vector<16x32xbf16> -> vector<144x32xbf16>
    %c0_3 = arith.constant 0 : index
    %c0_4 = arith.constant 0 : index
    %50 = vector.load %arg2[%c0_3, %c0_4] : memref<32x144xf32, #tpu.memory_space<vmem>>, vector<32x144xf32>
    %51 = arith.truncf %50 : vector<32x144xf32> to vector<32x144xbf16>
    %cst_5 = arith.constant dense<0.000000e+00> : vector<32x32xf32>
    %52 = tpu.matmul %51, %49, %cst_5 {dimension_numbers = #tpu.dot_dimension_numbers<[1], [0], [0], [1], [0, 0, 1, 1], [], []>} : vector<32x144xbf16>, vector<144x32xbf16>, vector<32x32xf32> -> vector<32x32xf32>
    %c0_6 = arith.constant 0 : index
    %c0_7 = arith.constant 0 : index
    %53 = vector.load %arg3[%c0_6, %c0_7] : memref<32x1xf32, #tpu.memory_space<vmem>>, vector<32x1xf32>
    %54 = vector.broadcast %53 : vector<32x1xf32> to vector<32x32xf32>
    %55 = arith.addf %52, %54 : vector<32x32xf32>
    %cst_8 = arith.constant 0.000000e+00 : f32
    %56 = vector.broadcast %cst_8 : f32 to vector<32x32xf32>
    %57 = arith.maximumf %55, %56 : vector<32x32xf32>
    %c0_9 = arith.constant 0 : index
    %c0_10 = arith.constant 0 : index
    %58 = vector.load %arg4[%c0_9, %c0_10] : memref<32x32xf32, #tpu.memory_space<vmem>>, vector<32x32xf32>
    %59 = arith.truncf %58 : vector<32x32xf32> to vector<32x32xbf16>
    %60 = arith.truncf %57 : vector<32x32xf32> to vector<32x32xbf16>
    %cst_11 = arith.constant dense<0.000000e+00> : vector<32x32xf32>
    %61 = tpu.matmul %59, %60, %cst_11 {dimension_numbers = #tpu.dot_dimension_numbers<[1], [0], [0], [1], [0, 0, 1, 1], [], []>} : vector<32x32xbf16>, vector<32x32xbf16>, vector<32x32xf32> -> vector<32x32xf32>
    %c0_12 = arith.constant 0 : index
    %c0_13 = arith.constant 0 : index
    %62 = vector.load %arg5[%c0_12, %c0_13] : memref<32x1xf32, #tpu.memory_space<vmem>>, vector<32x1xf32>
    %63 = vector.broadcast %62 : vector<32x1xf32> to vector<32x32xf32>
    %64 = arith.addf %61, %63 : vector<32x32xf32>
    %c0_14 = arith.constant 0 : index
    %c0_15 = arith.constant 0 : index
    %65 = vector.load %arg6[%c0_14, %c0_15] : memref<32x1xf32, #tpu.memory_space<vmem>>, vector<32x1xf32>
    %c0_16 = arith.constant 0 : index
    %c0_17 = arith.constant 0 : index
    %66 = vector.load %arg7[%c0_16, %c0_17] : memref<32x1xf32, #tpu.memory_space<vmem>>, vector<32x1xf32>
    %cst_18 = arith.constant dense<0.000000e+00> : vector<32xf32>
    %67 = vector.multi_reduction <add>, %64, %cst_18 [1] : vector<32x32xf32> to vector<32xf32>
    %68 = vector.shape_cast %67 : vector<32xf32> to vector<32x1xf32>
    %cst_19 = arith.constant 3.125000e-02 : f32
    %69 = vector.broadcast %cst_19 : f32 to vector<32x1xf32>
    %70 = arith.mulf %68, %69 : vector<32x1xf32>
    %71 = arith.mulf %64, %64 : vector<32x32xf32>
    %cst_20 = arith.constant dense<0.000000e+00> : vector<32xf32>
    %72 = vector.multi_reduction <add>, %71, %cst_20 [1] : vector<32x32xf32> to vector<32xf32>
    %73 = vector.shape_cast %72 : vector<32xf32> to vector<32x1xf32>
    %cst_21 = arith.constant 3.125000e-02 : f32
    %74 = vector.broadcast %cst_21 : f32 to vector<32x1xf32>
    %75 = arith.mulf %73, %74 : vector<32x1xf32>
    %76 = arith.mulf %70, %70 : vector<32x1xf32>
    %77 = arith.subf %75, %76 : vector<32x1xf32>
    %cst_22 = arith.constant 0.000000e+00 : f32
    %78 = vector.broadcast %cst_22 : f32 to vector<32x1xf32>
    %79 = arith.maximumf %77, %78 : vector<32x1xf32>
    %cst_23 = arith.constant 9.99999974E-6 : f32
    %80 = vector.broadcast %cst_23 : f32 to vector<32x1xf32>
    %81 = arith.addf %79, %80 : vector<32x1xf32>
    %82 = math.rsqrt %81 : vector<32x1xf32>
    %83 = arith.mulf %65, %82 : vector<32x1xf32>
    %84 = vector.broadcast %70 : vector<32x1xf32> to vector<32x32xf32>
    %85 = arith.subf %64, %84 : vector<32x32xf32>
    %86 = vector.broadcast %83 : vector<32x1xf32> to vector<32x32xf32>
    %87 = arith.mulf %85, %86 : vector<32x32xf32>
    %88 = vector.broadcast %66 : vector<32x1xf32> to vector<32x32xf32>
    %89 = arith.addf %87, %88 : vector<32x32xf32>
    %c0_24 = arith.constant 0 : index
    %c0_25 = arith.constant 0 : index
    %90 = vector.load %arg8[%c0_24, %c0_25] : memref<32x32xf32, #tpu.memory_space<vmem>>, vector<32x32xf32>
    tpu.vector_store %arg8[%c0_24, %c0_25], %89 {strides = array<i32>} : memref<32x32xf32, #tpu.memory_space<vmem>>, vector<32x32xf32>,
    return
  }
}

module attributes {stable_mosaic.version = 11 : i64} {
  func.func @_convt_kernel(%arg0: memref<32x42xf32, #tpu.memory_space<vmem>>, %arg1: memref<9x32xf32, #tpu.memory_space<vmem>>, %arg2: memref<128x288xf32, #tpu.memory_space<vmem>>, %arg3: memref<128x1xf32, #tpu.memory_space<vmem>>, %arg4: memref<128x32xf32, #tpu.memory_space<vmem>>) attributes {dimension_semantics = [], scalar_prefetch = 0 : i64, scratch_operands = 0 : i64, tpu.core_type = #tpu.core_type<tc>} {
    %c0 = arith.constant 0 : index
    %c0_0 = arith.constant 0 : index
    %0 = vector.load %arg0[%c0, %c0_0] : memref<32x42xf32, #tpu.memory_space<vmem>>, vector<32x42xf32>
    %c0_1 = arith.constant 0 : index
    %c0_2 = arith.constant 0 : index
    %1 = vector.load %arg1[%c0_1, %c0_2] : memref<9x32xf32, #tpu.memory_space<vmem>>, vector<9x32xf32>
    %2 = vector.extract_strided_slice %0 {offsets = [0, 0], sizes = [32, 32], strides = [1, 1]} : vector<32x42xf32> to vector<32x32xf32>
    %3 = vector.extract_strided_slice %1 {offsets = [0, 0], sizes = [1, 32], strides = [1, 1]} : vector<9x32xf32> to vector<1x32xf32>
    %4 = vector.broadcast %3 : vector<1x32xf32> to vector<32x32xf32>
    %5 = arith.mulf %2, %4 : vector<32x32xf32>
    %6 = arith.truncf %5 : vector<32x32xf32> to vector<32x32xbf16>
    %7 = vector.extract_strided_slice %0 {offsets = [0, 1], sizes = [32, 32], strides = [1, 1]} : vector<32x42xf32> to vector<32x32xf32>
    %8 = vector.extract_strided_slice %1 {offsets = [1, 0], sizes = [1, 32], strides = [1, 1]} : vector<9x32xf32> to vector<1x32xf32>
    %9 = vector.broadcast %8 : vector<1x32xf32> to vector<32x32xf32>
    %10 = arith.mulf %7, %9 : vector<32x32xf32>
    %11 = arith.truncf %10 : vector<32x32xf32> to vector<32x32xbf16>
    %12 = vector.extract_strided_slice %0 {offsets = [0, 2], sizes = [32, 32], strides = [1, 1]} : vector<32x42xf32> to vector<32x32xf32>
    %13 = vector.extract_strided_slice %1 {offsets = [2, 0], sizes = [1, 32], strides = [1, 1]} : vector<9x32xf32> to vector<1x32xf32>
    %14 = vector.broadcast %13 : vector<1x32xf32> to vector<32x32xf32>
    %15 = arith.mulf %12, %14 : vector<32x32xf32>
    %16 = arith.truncf %15 : vector<32x32xf32> to vector<32x32xbf16>
    %17 = vector.extract_strided_slice %0 {offsets = [0, 4], sizes = [32, 32], strides = [1, 1]} : vector<32x42xf32> to vector<32x32xf32>
    %18 = vector.extract_strided_slice %1 {offsets = [3, 0], sizes = [1, 32], strides = [1, 1]} : vector<9x32xf32> to vector<1x32xf32>
    %19 = vector.broadcast %18 : vector<1x32xf32> to vector<32x32xf32>
    %20 = arith.mulf %17, %19 : vector<32x32xf32>
    %21 = arith.truncf %20 : vector<32x32xf32> to vector<32x32xbf16>
    %22 = vector.extract_strided_slice %0 {offsets = [0, 5], sizes = [32, 32], strides = [1, 1]} : vector<32x42xf32> to vector<32x32xf32>
    %23 = vector.extract_strided_slice %1 {offsets = [4, 0], sizes = [1, 32], strides = [1, 1]} : vector<9x32xf32> to vector<1x32xf32>
    %24 = vector.broadcast %23 : vector<1x32xf32> to vector<32x32xf32>
    %25 = arith.mulf %22, %24 : vector<32x32xf32>
    %26 = arith.truncf %25 : vector<32x32xf32> to vector<32x32xbf16>
    %27 = vector.extract_strided_slice %0 {offsets = [0, 6], sizes = [32, 32], strides = [1, 1]} : vector<32x42xf32> to vector<32x32xf32>
    %28 = vector.extract_strided_slice %1 {offsets = [5, 0], sizes = [1, 32], strides = [1, 1]} : vector<9x32xf32> to vector<1x32xf32>
    %29 = vector.broadcast %28 : vector<1x32xf32> to vector<32x32xf32>
    %30 = arith.mulf %27, %29 : vector<32x32xf32>
    %31 = arith.truncf %30 : vector<32x32xf32> to vector<32x32xbf16>
    %32 = vector.extract_strided_slice %0 {offsets = [0, 8], sizes = [32, 32], strides = [1, 1]} : vector<32x42xf32> to vector<32x32xf32>
    %33 = vector.extract_strided_slice %1 {offsets = [6, 0], sizes = [1, 32], strides = [1, 1]} : vector<9x32xf32> to vector<1x32xf32>
    %34 = vector.broadcast %33 : vector<1x32xf32> to vector<32x32xf32>
    %35 = arith.mulf %32, %34 : vector<32x32xf32>
    %36 = arith.truncf %35 : vector<32x32xf32> to vector<32x32xbf16>
    %37 = vector.extract_strided_slice %0 {offsets = [0, 9], sizes = [32, 32], strides = [1, 1]} : vector<32x42xf32> to vector<32x32xf32>
    %38 = vector.extract_strided_slice %1 {offsets = [7, 0], sizes = [1, 32], strides = [1, 1]} : vector<9x32xf32> to vector<1x32xf32>
    %39 = vector.broadcast %38 : vector<1x32xf32> to vector<32x32xf32>
    %40 = arith.mulf %37, %39 : vector<32x32xf32>
    %41 = arith.truncf %40 : vector<32x32xf32> to vector<32x32xbf16>
    %42 = vector.extract_strided_slice %0 {offsets = [0, 10], sizes = [32, 32], strides = [1, 1]} : vector<32x42xf32> to vector<32x32xf32>
    %43 = vector.extract_strided_slice %1 {offsets = [8, 0], sizes = [1, 32], strides = [1, 1]} : vector<9x32xf32> to vector<1x32xf32>
    %44 = vector.broadcast %43 : vector<1x32xf32> to vector<32x32xf32>
    %45 = arith.mulf %42, %44 : vector<32x32xf32>
    %46 = arith.truncf %45 : vector<32x32xf32> to vector<32x32xbf16>
    %47 = tpu.concatenate %6, %11, %16, %21, %26, %31, %36, %41, %46 in 0 : vector<32x32xbf16>, vector<32x32xbf16>, vector<32x32xbf16>, vector<32x32xbf16>, vector<32x32xbf16>, vector<32x32xbf16>, vector<32x32xbf16>, vector<32x32xbf16>, vector<32x32xbf16> -> vector<288x32xbf16>
    %c0_3 = arith.constant 0 : index
    %c0_4 = arith.constant 0 : index
    %48 = vector.load %arg2[%c0_3, %c0_4] : memref<128x288xf32, #tpu.memory_space<vmem>>, vector<128x288xf32>
    %49 = arith.truncf %48 : vector<128x288xf32> to vector<128x288xbf16>
    %cst = arith.constant dense<0.000000e+00> : vector<128x32xf32>
    %50 = tpu.matmul %49, %47, %cst {dimension_numbers = #tpu.dot_dimension_numbers<[1], [0], [0], [1], [0, 0, 1, 1], [], []>} : vector<128x288xbf16>, vector<288x32xbf16>, vector<128x32xf32> -> vector<128x32xf32>
    %c0_5 = arith.constant 0 : index
    %c0_6 = arith.constant 0 : index
    %51 = vector.load %arg3[%c0_5, %c0_6] : memref<128x1xf32, #tpu.memory_space<vmem>>, vector<128x1xf32>
    %52 = vector.broadcast %51 : vector<128x1xf32> to vector<128x32xf32>
    %53 = arith.addf %50, %52 : vector<128x32xf32>
    %c0_7 = arith.constant 0 : index
    %c0_8 = arith.constant 0 : index
    %54 = vector.load %arg4[%c0_7, %c0_8] : memref<128x32xf32, #tpu.memory_space<vmem>>, vector<128x32xf32>
    tpu.vector_store %arg4[%c0_7, %c0_8], %53 {strides = array<i32>} : memref<128x32xf32, #tpu.memory_space<vmem>>, vector<128x32xf32>,
    return
  }
}

module attributes {stable_mosaic.version = 11 : i64} {
  func.func @_resblock_kernel(%arg0: memref<32x146xf32, #tpu.memory_space<vmem>>, %arg1: memref<9x128xf32, #tpu.memory_space<vmem>>, %arg2: memref<16x288xf32, #tpu.memory_space<vmem>>, %arg3: memref<16x1xf32, #tpu.memory_space<vmem>>, %arg4: memref<16x16xf32, #tpu.memory_space<vmem>>, %arg5: memref<16x1xf32, #tpu.memory_space<vmem>>, %arg6: memref<32x1xf32, #tpu.memory_space<vmem>>, %arg7: memref<32x1xf32, #tpu.memory_space<vmem>>, %arg8: memref<16x128xf32, #tpu.memory_space<vmem>>) attributes {dimension_semantics = [], scalar_prefetch = 0 : i64, scratch_operands = 0 : i64, tpu.core_type = #tpu.core_type<tc>} {
    %c0 = arith.constant 0 : index
    %c0_0 = arith.constant 0 : index
    %0 = vector.load %arg0[%c0, %c0_0] : memref<32x146xf32, #tpu.memory_space<vmem>>, vector<32x146xf32>
    %1 = vector.extract_strided_slice %0 {offsets = [0, 9], sizes = [32, 128], strides = [1, 1]} : vector<32x146xf32> to vector<32x128xf32>
    %c0_1 = arith.constant 0 : index
    %c0_2 = arith.constant 0 : index
    %2 = vector.load %arg6[%c0_1, %c0_2] : memref<32x1xf32, #tpu.memory_space<vmem>>, vector<32x1xf32>
    %c0_3 = arith.constant 0 : index
    %c0_4 = arith.constant 0 : index
    %3 = vector.load %arg7[%c0_3, %c0_4] : memref<32x1xf32, #tpu.memory_space<vmem>>, vector<32x1xf32>
    %cst = arith.constant dense<0.000000e+00> : vector<32xf32>
    %4 = vector.multi_reduction <add>, %1, %cst [1] : vector<32x128xf32> to vector<32xf32>
    %5 = vector.shape_cast %4 : vector<32xf32> to vector<32x1xf32>
    %cst_5 = arith.constant 7.812500e-03 : f32
    %6 = vector.broadcast %cst_5 : f32 to vector<32x1xf32>
    %7 = arith.mulf %5, %6 : vector<32x1xf32>
    %8 = arith.mulf %1, %1 : vector<32x128xf32>
    %cst_6 = arith.constant dense<0.000000e+00> : vector<32xf32>
    %9 = vector.multi_reduction <add>, %8, %cst_6 [1] : vector<32x128xf32> to vector<32xf32>
    %10 = vector.shape_cast %9 : vector<32xf32> to vector<32x1xf32>
    %cst_7 = arith.constant 7.812500e-03 : f32
    %11 = vector.broadcast %cst_7 : f32 to vector<32x1xf32>
    %12 = arith.mulf %10, %11 : vector<32x1xf32>
    %13 = arith.mulf %7, %7 : vector<32x1xf32>
    %14 = arith.subf %12, %13 : vector<32x1xf32>
    %cst_8 = arith.constant 0.000000e+00 : f32
    %15 = vector.broadcast %cst_8 : f32 to vector<32x1xf32>
    %16 = arith.maximumf %14, %15 : vector<32x1xf32>
    %cst_9 = arith.constant 9.99999974E-6 : f32
    %17 = vector.broadcast %cst_9 : f32 to vector<32x1xf32>
    %18 = arith.addf %16, %17 : vector<32x1xf32>
    %19 = math.rsqrt %18 : vector<32x1xf32>
    %20 = arith.mulf %2, %19 : vector<32x1xf32>
    %21 = vector.broadcast %7 : vector<32x1xf32> to vector<32x146xf32>
    %22 = arith.subf %0, %21 : vector<32x146xf32>
    %23 = vector.broadcast %20 : vector<32x1xf32> to vector<32x146xf32>
    %24 = arith.mulf %22, %23 : vector<32x146xf32>
    %25 = vector.broadcast %3 : vector<32x1xf32> to vector<32x146xf32>
    %26 = arith.addf %24, %25 : vector<32x146xf32>
    %cst_10 = arith.constant 0.000000e+00 : f32
    %27 = vector.broadcast %cst_10 : f32 to vector<32x146xf32>
    %28 = arith.maximumf %26, %27 : vector<32x146xf32>
    %c0_11 = arith.constant 0 : index
    %c0_12 = arith.constant 0 : index
    %29 = vector.load %arg1[%c0_11, %c0_12] : memref<9x128xf32, #tpu.memory_space<vmem>>, vector<9x128xf32>
    %30 = vector.extract_strided_slice %28 {offsets = [0, 0], sizes = [32, 128], strides = [1, 1]} : vector<32x146xf32> to vector<32x128xf32>
    %31 = vector.extract_strided_slice %29 {offsets = [0, 0], sizes = [1, 128], strides = [1, 1]} : vector<9x128xf32> to vector<1x128xf32>
    %32 = vector.broadcast %31 : vector<1x128xf32> to vector<32x128xf32>
    %33 = arith.mulf %30, %32 : vector<32x128xf32>
    %34 = arith.truncf %33 : vector<32x128xf32> to vector<32x128xbf16>
    %35 = vector.extract_strided_slice %28 {offsets = [0, 1], sizes = [32, 128], strides = [1, 1]} : vector<32x146xf32> to vector<32x128xf32>
    %36 = vector.extract_strided_slice %29 {offsets = [1, 0], sizes = [1, 128], strides = [1, 1]} : vector<9x128xf32> to vector<1x128xf32>
    %37 = vector.broadcast %36 : vector<1x128xf32> to vector<32x128xf32>
    %38 = arith.mulf %35, %37 : vector<32x128xf32>
    %39 = arith.truncf %38 : vector<32x128xf32> to vector<32x128xbf16>
    %40 = vector.extract_strided_slice %28 {offsets = [0, 2], sizes = [32, 128], strides = [1, 1]} : vector<32x146xf32> to vector<32x128xf32>
    %41 = vector.extract_strided_slice %29 {offsets = [2, 0], sizes = [1, 128], strides = [1, 1]} : vector<9x128xf32> to vector<1x128xf32>
    %42 = vector.broadcast %41 : vector<1x128xf32> to vector<32x128xf32>
    %43 = arith.mulf %40, %42 : vector<32x128xf32>
    %44 = arith.truncf %43 : vector<32x128xf32> to vector<32x128xbf16>
    %45 = vector.extract_strided_slice %28 {offsets = [0, 8], sizes = [32, 128], strides = [1, 1]} : vector<32x146xf32> to vector<32x128xf32>
    %46 = vector.extract_strided_slice %29 {offsets = [3, 0], sizes = [1, 128], strides = [1, 1]} : vector<9x128xf32> to vector<1x128xf32>
    %47 = vector.broadcast %46 : vector<1x128xf32> to vector<32x128xf32>
    %48 = arith.mulf %45, %47 : vector<32x128xf32>
    %49 = arith.truncf %48 : vector<32x128xf32> to vector<32x128xbf16>
    %50 = vector.extract_strided_slice %28 {offsets = [0, 9], sizes = [32, 128], strides = [1, 1]} : vector<32x146xf32> to vector<32x128xf32>
    %51 = vector.extract_strided_slice %29 {offsets = [4, 0], sizes = [1, 128], strides = [1, 1]} : vector<9x128xf32> to vector<1x128xf32>
    %52 = vector.broadcast %51 : vector<1x128xf32> to vector<32x128xf32>
    %53 = arith.mulf %50, %52 : vector<32x128xf32>
    %54 = arith.truncf %53 : vector<32x128xf32> to vector<32x128xbf16>
    %55 = vector.extract_strided_slice %28 {offsets = [0, 10], sizes = [32, 128], strides = [1, 1]} : vector<32x146xf32> to vector<32x128xf32>
    %56 = vector.extract_strided_slice %29 {offsets = [5, 0], sizes = [1, 128], strides = [1, 1]} : vector<9x128xf32> to vector<1x128xf32>
    %57 = vector.broadcast %56 : vector<1x128xf32> to vector<32x128xf32>
    %58 = arith.mulf %55, %57 : vector<32x128xf32>
    %59 = arith.truncf %58 : vector<32x128xf32> to vector<32x128xbf16>
    %60 = vector.extract_strided_slice %28 {offsets = [0, 16], sizes = [32, 128], strides = [1, 1]} : vector<32x146xf32> to vector<32x128xf32>
    %61 = vector.extract_strided_slice %29 {offsets = [6, 0], sizes = [1, 128], strides = [1, 1]} : vector<9x128xf32> to vector<1x128xf32>
    %62 = vector.broadcast %61 : vector<1x128xf32> to vector<32x128xf32>
    %63 = arith.mulf %60, %62 : vector<32x128xf32>
    %64 = arith.truncf %63 : vector<32x128xf32> to vector<32x128xbf16>
    %65 = vector.extract_strided_slice %28 {offsets = [0, 17], sizes = [32, 128], strides = [1, 1]} : vector<32x146xf32> to vector<32x128xf32>
    %66 = vector.extract_strided_slice %29 {offsets = [7, 0], sizes = [1, 128], strides = [1, 1]} : vector<9x128xf32> to vector<1x128xf32>
    %67 = vector.broadcast %66 : vector<1x128xf32> to vector<32x128xf32>
    %68 = arith.mulf %65, %67 : vector<32x128xf32>
    %69 = arith.truncf %68 : vector<32x128xf32> to vector<32x128xbf16>
    %70 = vector.extract_strided_slice %28 {offsets = [0, 18], sizes = [32, 128], strides = [1, 1]} : vector<32x146xf32> to vector<32x128xf32>
    %71 = vector.extract_strided_slice %29 {offsets = [8, 0], sizes = [1, 128], strides = [1, 1]} : vector<9x128xf32> to vector<1x128xf32>
    %72 = vector.broadcast %71 : vector<1x128xf32> to vector<32x128xf32>
    %73 = arith.mulf %70, %72 : vector<32x128xf32>
    %74 = arith.truncf %73 : vector<32x128xf32> to vector<32x128xbf16>
    %75 = tpu.concatenate %34, %39, %44, %49, %54, %59, %64, %69, %74 in 0 : vector<32x128xbf16>, vector<32x128xbf16>, vector<32x128xbf16>, vector<32x128xbf16>, vector<32x128xbf16>, vector<32x128xbf16>, vector<32x128xbf16>, vector<32x128xbf16>, vector<32x128xbf16> -> vector<288x128xbf16>
    %c0_13 = arith.constant 0 : index
    %c0_14 = arith.constant 0 : index
    %76 = vector.load %arg2[%c0_13, %c0_14] : memref<16x288xf32, #tpu.memory_space<vmem>>, vector<16x288xf32>
    %77 = arith.truncf %76 : vector<16x288xf32> to vector<16x288xbf16>
    %cst_15 = arith.constant dense<0.000000e+00> : vector<16x128xf32>
    %78 = tpu.matmul %77, %75, %cst_15 {dimension_numbers = #tpu.dot_dimension_numbers<[1], [0], [0], [1], [0, 0, 1, 1], [], []>} : vector<16x288xbf16>, vector<288x128xbf16>, vector<16x128xf32> -> vector<16x128xf32>
    %c0_16 = arith.constant 0 : index
    %c0_17 = arith.constant 0 : index
    %79 = vector.load %arg3[%c0_16, %c0_17] : memref<16x1xf32, #tpu.memory_space<vmem>>, vector<16x1xf32>
    %80 = vector.broadcast %79 : vector<16x1xf32> to vector<16x128xf32>
    %81 = arith.addf %78, %80 : vector<16x128xf32>
    %cst_18 = arith.constant 0.000000e+00 : f32
    %82 = vector.broadcast %cst_18 : f32 to vector<16x128xf32>
    %83 = arith.maximumf %81, %82 : vector<16x128xf32>
    %c0_19 = arith.constant 0 : index
    %c0_20 = arith.constant 0 : index
    %84 = vector.load %arg4[%c0_19, %c0_20] : memref<16x16xf32, #tpu.memory_space<vmem>>, vector<16x16xf32>
    %85 = arith.truncf %84 : vector<16x16xf32> to vector<16x16xbf16>
    %86 = arith.truncf %83 : vector<16x128xf32> to vector<16x128xbf16>
    %cst_21 = arith.constant dense<0.000000e+00> : vector<16x128xf32>
    %87 = tpu.matmul %85, %86, %cst_21 {dimension_numbers = #tpu.dot_dimension_numbers<[1], [0], [0], [1], [0, 0, 1, 1], [], []>} : vector<16x16xbf16>, vector<16x128xbf16>, vector<16x128xf32> -> vector<16x128xf32>
    %c0_22 = arith.constant 0 : index
    %c0_23 = arith.constant 0 : index
    %88 = vector.load %arg5[%c0_22, %c0_23] : memref<16x1xf32, #tpu.memory_space<vmem>>, vector<16x1xf32>
    %89 = vector.broadcast %88 : vector<16x1xf32> to vector<16x128xf32>
    %90 = arith.addf %87, %89 : vector<16x128xf32>
    %c0_24 = arith.constant 0 : index
    %c0_25 = arith.constant 0 : index
    %91 = vector.load %arg8[%c0_24, %c0_25] : memref<16x128xf32, #tpu.memory_space<vmem>>, vector<16x128xf32>
    tpu.vector_store %arg8[%c0_24, %c0_25], %90 {strides = array<i32>} : memref<16x128xf32, #tpu.memory_space<vmem>>, vector<16x128xf32>,
    return
  }
}

module attributes {stable_mosaic.version = 11 : i64} {
  func.func @_nearest_embed_kernel(%arg0: memref<16x128xf32, #tpu.memory_space<vmem>>, %arg1: memref<8x16xf32, #tpu.memory_space<vmem>>, %arg2: memref<16x8xf32, #tpu.memory_space<vmem>>, %arg3: memref<8x1xf32, #tpu.memory_space<vmem>>, %arg4: memref<16x128xf32, #tpu.memory_space<vmem>>, %arg5: memref<1x128xi32, #tpu.memory_space<vmem>>) attributes {dimension_semantics = [], scalar_prefetch = 0 : i64, scratch_operands = 0 : i64, tpu.core_type = #tpu.core_type<tc>} {
    %c0 = arith.constant 0 : index
    %c0_0 = arith.constant 0 : index
    %0 = vector.load %arg0[%c0, %c0_0] : memref<16x128xf32, #tpu.memory_space<vmem>>, vector<16x128xf32>
    %c0_1 = arith.constant 0 : index
    %c0_2 = arith.constant 0 : index
    %1 = vector.load %arg1[%c0_1, %c0_2] : memref<8x16xf32, #tpu.memory_space<vmem>>, vector<8x16xf32>
    %c0_3 = arith.constant 0 : index
    %c0_4 = arith.constant 0 : index
    %2 = vector.load %arg2[%c0_3, %c0_4] : memref<16x8xf32, #tpu.memory_space<vmem>>, vector<16x8xf32>
    %c0_5 = arith.constant 0 : index
    %c0_6 = arith.constant 0 : index
    %3 = vector.load %arg3[%c0_5, %c0_6] : memref<8x1xf32, #tpu.memory_space<vmem>>, vector<8x1xf32>
    %cst = arith.constant dense<0.000000e+00> : vector<8x128xf32>
    %4 = tpu.matmul %1, %0, %cst {dimension_numbers = #tpu.dot_dimension_numbers<[1], [0], [0], [1], [0, 0, 1, 1], [], []>} : vector<8x16xf32>, vector<16x128xf32>, vector<8x128xf32> -> vector<8x128xf32>
    %cst_7 = arith.constant 2.000000e+00 : f32
    %5 = vector.broadcast %cst_7 : f32 to vector<8x128xf32>
    %6 = arith.mulf %5, %4 : vector<8x128xf32>
    %7 = vector.broadcast %3 : vector<8x1xf32> to vector<8x128xf32>
    %8 = arith.subf %7, %6 : vector<8x128xf32>
    %9 = tpu.iota {dimensions = array<i32: 0>} : vector<8x128xi32>
    %cst_8 = arith.constant dense<0x7F800000> : vector<128xf32>
    %10 = vector.multi_reduction <minimumf>, %8, %cst_8 [0] : vector<8x128xf32> to vector<128xf32>
    %11 = vector.shape_cast %10 : vector<128xf32> to vector<1x128xf32>
    %12 = vector.broadcast %11 : vector<1x128xf32> to vector<8x128xf32>
    %13 = arith.cmpf ole, %8, %12 : vector<8x128xf32>
    %c8_i32 = arith.constant 8 : i32
    %14 = vector.broadcast %c8_i32 : i32 to vector<8x128xi32>
    %15 = arith.select %13, %9, %14 : vector<8x128xi1>, vector<8x128xi32>
    %cst_9 = arith.constant dense<2147483647> : vector<128xi32>
    %16 = vector.multi_reduction <minsi>, %15, %cst_9 [0] : vector<8x128xi32> to vector<128xi32>
    %17 = vector.shape_cast %16 : vector<128xi32> to vector<1x128xi32>
    %18 = vector.broadcast %17 : vector<1x128xi32> to vector<8x128xi32>
    %19 = arith.cmpi eq, %9, %18 : vector<8x128xi32>
    %20 = arith.extui %19 : vector<8x128xi1> to vector<8x128xi32>
    %21 = arith.sitofp %20 : vector<8x128xi32> to vector<8x128xf32>
    %cst_10 = arith.constant dense<0.000000e+00> : vector<16x128xf32>
    %22 = tpu.matmul %2, %21, %cst_10 {dimension_numbers = #tpu.dot_dimension_numbers<[1], [0], [0], [1], [0, 0, 1, 1], [], []>} : vector<16x8xf32>, vector<8x128xf32>, vector<16x128xf32> -> vector<16x128xf32>
    %c0_11 = arith.constant 0 : index
    %c0_12 = arith.constant 0 : index
    %23 = vector.load %arg4[%c0_11, %c0_12] : memref<16x128xf32, #tpu.memory_space<vmem>>, vector<16x128xf32>
    tpu.vector_store %arg4[%c0_11, %c0_12], %22 {strides = array<i32>} : memref<16x128xf32, #tpu.memory_space<vmem>>, vector<16x128xf32>,
    %c0_13 = arith.constant 0 : index
    %c0_14 = arith.constant 0 : index
    %24 = vector.load %arg5[%c0_13, %c0_14] : memref<1x128xi32, #tpu.memory_space<vmem>>, vector<1x128xi32>
    tpu.vector_store %arg5[%c0_13, %c0_14], %17 {strides = array<i32>} : memref<1x128xi32, #tpu.memory_space<vmem>>, vector<1x128xi32>,
    return
  }
}

module attributes {stable_mosaic.version = 11 : i64} {
  func.func @_convt_kernel(%arg0: memref<16x146xf32, #tpu.memory_space<vmem>>, %arg1: memref<9x128xf32, #tpu.memory_space<vmem>>, %arg2: memref<128x144xf32, #tpu.memory_space<vmem>>, %arg3: memref<128x1xf32, #tpu.memory_space<vmem>>, %arg4: memref<128x128xf32, #tpu.memory_space<vmem>>) attributes {dimension_semantics = [], scalar_prefetch = 0 : i64, scratch_operands = 0 : i64, tpu.core_type = #tpu.core_type<tc>} {
    %c0 = arith.constant 0 : index
    %c0_0 = arith.constant 0 : index
    %0 = vector.load %arg0[%c0, %c0_0] : memref<16x146xf32, #tpu.memory_space<vmem>>, vector<16x146xf32>
    %c0_1 = arith.constant 0 : index
    %c0_2 = arith.constant 0 : index
    %1 = vector.load %arg1[%c0_1, %c0_2] : memref<9x128xf32, #tpu.memory_space<vmem>>, vector<9x128xf32>
    %2 = vector.extract_strided_slice %0 {offsets = [0, 0], sizes = [16, 128], strides = [1, 1]} : vector<16x146xf32> to vector<16x128xf32>
    %3 = vector.extract_strided_slice %1 {offsets = [0, 0], sizes = [1, 128], strides = [1, 1]} : vector<9x128xf32> to vector<1x128xf32>
    %4 = vector.broadcast %3 : vector<1x128xf32> to vector<16x128xf32>
    %5 = arith.mulf %2, %4 : vector<16x128xf32>
    %6 = arith.truncf %5 : vector<16x128xf32> to vector<16x128xbf16>
    %7 = vector.extract_strided_slice %0 {offsets = [0, 1], sizes = [16, 128], strides = [1, 1]} : vector<16x146xf32> to vector<16x128xf32>
    %8 = vector.extract_strided_slice %1 {offsets = [1, 0], sizes = [1, 128], strides = [1, 1]} : vector<9x128xf32> to vector<1x128xf32>
    %9 = vector.broadcast %8 : vector<1x128xf32> to vector<16x128xf32>
    %10 = arith.mulf %7, %9 : vector<16x128xf32>
    %11 = arith.truncf %10 : vector<16x128xf32> to vector<16x128xbf16>
    %12 = vector.extract_strided_slice %0 {offsets = [0, 2], sizes = [16, 128], strides = [1, 1]} : vector<16x146xf32> to vector<16x128xf32>
    %13 = vector.extract_strided_slice %1 {offsets = [2, 0], sizes = [1, 128], strides = [1, 1]} : vector<9x128xf32> to vector<1x128xf32>
    %14 = vector.broadcast %13 : vector<1x128xf32> to vector<16x128xf32>
    %15 = arith.mulf %12, %14 : vector<16x128xf32>
    %16 = arith.truncf %15 : vector<16x128xf32> to vector<16x128xbf16>
    %17 = vector.extract_strided_slice %0 {offsets = [0, 8], sizes = [16, 128], strides = [1, 1]} : vector<16x146xf32> to vector<16x128xf32>
    %18 = vector.extract_strided_slice %1 {offsets = [3, 0], sizes = [1, 128], strides = [1, 1]} : vector<9x128xf32> to vector<1x128xf32>
    %19 = vector.broadcast %18 : vector<1x128xf32> to vector<16x128xf32>
    %20 = arith.mulf %17, %19 : vector<16x128xf32>
    %21 = arith.truncf %20 : vector<16x128xf32> to vector<16x128xbf16>
    %22 = vector.extract_strided_slice %0 {offsets = [0, 9], sizes = [16, 128], strides = [1, 1]} : vector<16x146xf32> to vector<16x128xf32>
    %23 = vector.extract_strided_slice %1 {offsets = [4, 0], sizes = [1, 128], strides = [1, 1]} : vector<9x128xf32> to vector<1x128xf32>
    %24 = vector.broadcast %23 : vector<1x128xf32> to vector<16x128xf32>
    %25 = arith.mulf %22, %24 : vector<16x128xf32>
    %26 = arith.truncf %25 : vector<16x128xf32> to vector<16x128xbf16>
    %27 = vector.extract_strided_slice %0 {offsets = [0, 10], sizes = [16, 128], strides = [1, 1]} : vector<16x146xf32> to vector<16x128xf32>
    %28 = vector.extract_strided_slice %1 {offsets = [5, 0], sizes = [1, 128], strides = [1, 1]} : vector<9x128xf32> to vector<1x128xf32>
    %29 = vector.broadcast %28 : vector<1x128xf32> to vector<16x128xf32>
    %30 = arith.mulf %27, %29 : vector<16x128xf32>
    %31 = arith.truncf %30 : vector<16x128xf32> to vector<16x128xbf16>
    %32 = vector.extract_strided_slice %0 {offsets = [0, 16], sizes = [16, 128], strides = [1, 1]} : vector<16x146xf32> to vector<16x128xf32>
    %33 = vector.extract_strided_slice %1 {offsets = [6, 0], sizes = [1, 128], strides = [1, 1]} : vector<9x128xf32> to vector<1x128xf32>
    %34 = vector.broadcast %33 : vector<1x128xf32> to vector<16x128xf32>
    %35 = arith.mulf %32, %34 : vector<16x128xf32>
    %36 = arith.truncf %35 : vector<16x128xf32> to vector<16x128xbf16>
    %37 = vector.extract_strided_slice %0 {offsets = [0, 17], sizes = [16, 128], strides = [1, 1]} : vector<16x146xf32> to vector<16x128xf32>
    %38 = vector.extract_strided_slice %1 {offsets = [7, 0], sizes = [1, 128], strides = [1, 1]} : vector<9x128xf32> to vector<1x128xf32>
    %39 = vector.broadcast %38 : vector<1x128xf32> to vector<16x128xf32>
    %40 = arith.mulf %37, %39 : vector<16x128xf32>
    %41 = arith.truncf %40 : vector<16x128xf32> to vector<16x128xbf16>
    %42 = vector.extract_strided_slice %0 {offsets = [0, 18], sizes = [16, 128], strides = [1, 1]} : vector<16x146xf32> to vector<16x128xf32>
    %43 = vector.extract_strided_slice %1 {offsets = [8, 0], sizes = [1, 128], strides = [1, 1]} : vector<9x128xf32> to vector<1x128xf32>
    %44 = vector.broadcast %43 : vector<1x128xf32> to vector<16x128xf32>
    %45 = arith.mulf %42, %44 : vector<16x128xf32>
    %46 = arith.truncf %45 : vector<16x128xf32> to vector<16x128xbf16>
    %47 = tpu.concatenate %6, %11, %16, %21, %26, %31, %36, %41, %46 in 0 : vector<16x128xbf16>, vector<16x128xbf16>, vector<16x128xbf16>, vector<16x128xbf16>, vector<16x128xbf16>, vector<16x128xbf16>, vector<16x128xbf16>, vector<16x128xbf16>, vector<16x128xbf16> -> vector<144x128xbf16>
    %c0_3 = arith.constant 0 : index
    %c0_4 = arith.constant 0 : index
    %48 = vector.load %arg2[%c0_3, %c0_4] : memref<128x144xf32, #tpu.memory_space<vmem>>, vector<128x144xf32>
    %49 = arith.truncf %48 : vector<128x144xf32> to vector<128x144xbf16>
    %cst = arith.constant dense<0.000000e+00> : vector<128x128xf32>
    %50 = tpu.matmul %49, %47, %cst {dimension_numbers = #tpu.dot_dimension_numbers<[1], [0], [0], [1], [0, 0, 1, 1], [], []>} : vector<128x144xbf16>, vector<144x128xbf16>, vector<128x128xf32> -> vector<128x128xf32>
    %c0_5 = arith.constant 0 : index
    %c0_6 = arith.constant 0 : index
    %51 = vector.load %arg3[%c0_5, %c0_6] : memref<128x1xf32, #tpu.memory_space<vmem>>, vector<128x1xf32>
    %52 = vector.broadcast %51 : vector<128x1xf32> to vector<128x128xf32>
    %53 = arith.addf %50, %52 : vector<128x128xf32>
    %c0_7 = arith.constant 0 : index
    %c0_8 = arith.constant 0 : index
    %54 = vector.load %arg4[%c0_7, %c0_8] : memref<128x128xf32, #tpu.memory_space<vmem>>, vector<128x128xf32>
    tpu.vector_store %arg4[%c0_7, %c0_8], %53 {strides = array<i32>} : memref<128x128xf32, #tpu.memory_space<vmem>>, vector<128x128xf32>,
    return
  }
}

module attributes {stable_mosaic.version = 11 : i64} {
  func.func @_convt_kernel(%arg0: memref<32x546xf32, #tpu.memory_space<vmem>>, %arg1: memref<9x512xf32, #tpu.memory_space<vmem>>, %arg2: memref<12x288xf32, #tpu.memory_space<vmem>>, %arg3: memref<12x1xf32, #tpu.memory_space<vmem>>, %arg4: memref<32x1xf32, #tpu.memory_space<vmem>>, %arg5: memref<32x1xf32, #tpu.memory_space<vmem>>, %arg6: memref<12x512xf32, #tpu.memory_space<vmem>>) attributes {dimension_semantics = [], scalar_prefetch = 0 : i64, scratch_operands = 0 : i64, tpu.core_type = #tpu.core_type<tc>} {
    %c0 = arith.constant 0 : index
    %c0_0 = arith.constant 0 : index
    %0 = vector.load %arg0[%c0, %c0_0] : memref<32x546xf32, #tpu.memory_space<vmem>>, vector<32x546xf32>
    %1 = vector.extract_strided_slice %0 {offsets = [0, 17], sizes = [32, 512], strides = [1, 1]} : vector<32x546xf32> to vector<32x512xf32>
    %c0_1 = arith.constant 0 : index
    %c0_2 = arith.constant 0 : index
    %2 = vector.load %arg4[%c0_1, %c0_2] : memref<32x1xf32, #tpu.memory_space<vmem>>, vector<32x1xf32>
    %c0_3 = arith.constant 0 : index
    %c0_4 = arith.constant 0 : index
    %3 = vector.load %arg5[%c0_3, %c0_4] : memref<32x1xf32, #tpu.memory_space<vmem>>, vector<32x1xf32>
    %cst = arith.constant dense<0.000000e+00> : vector<32xf32>
    %4 = vector.multi_reduction <add>, %1, %cst [1] : vector<32x512xf32> to vector<32xf32>
    %5 = vector.shape_cast %4 : vector<32xf32> to vector<32x1xf32>
    %cst_5 = arith.constant 0.001953125 : f32
    %6 = vector.broadcast %cst_5 : f32 to vector<32x1xf32>
    %7 = arith.mulf %5, %6 : vector<32x1xf32>
    %8 = arith.mulf %1, %1 : vector<32x512xf32>
    %cst_6 = arith.constant dense<0.000000e+00> : vector<32xf32>
    %9 = vector.multi_reduction <add>, %8, %cst_6 [1] : vector<32x512xf32> to vector<32xf32>
    %10 = vector.shape_cast %9 : vector<32xf32> to vector<32x1xf32>
    %cst_7 = arith.constant 0.001953125 : f32
    %11 = vector.broadcast %cst_7 : f32 to vector<32x1xf32>
    %12 = arith.mulf %10, %11 : vector<32x1xf32>
    %13 = arith.mulf %7, %7 : vector<32x1xf32>
    %14 = arith.subf %12, %13 : vector<32x1xf32>
    %cst_8 = arith.constant 0.000000e+00 : f32
    %15 = vector.broadcast %cst_8 : f32 to vector<32x1xf32>
    %16 = arith.maximumf %14, %15 : vector<32x1xf32>
    %cst_9 = arith.constant 9.99999974E-6 : f32
    %17 = vector.broadcast %cst_9 : f32 to vector<32x1xf32>
    %18 = arith.addf %16, %17 : vector<32x1xf32>
    %19 = math.rsqrt %18 : vector<32x1xf32>
    %20 = arith.mulf %2, %19 : vector<32x1xf32>
    %21 = vector.broadcast %7 : vector<32x1xf32> to vector<32x546xf32>
    %22 = arith.subf %0, %21 : vector<32x546xf32>
    %23 = vector.broadcast %20 : vector<32x1xf32> to vector<32x546xf32>
    %24 = arith.mulf %22, %23 : vector<32x546xf32>
    %25 = vector.broadcast %3 : vector<32x1xf32> to vector<32x546xf32>
    %26 = arith.addf %24, %25 : vector<32x546xf32>
    %cst_10 = arith.constant 0.000000e+00 : f32
    %27 = vector.broadcast %cst_10 : f32 to vector<32x546xf32>
    %28 = arith.maximumf %26, %27 : vector<32x546xf32>
    %c0_11 = arith.constant 0 : index
    %c0_12 = arith.constant 0 : index
    %29 = vector.load %arg1[%c0_11, %c0_12] : memref<9x512xf32, #tpu.memory_space<vmem>>, vector<9x512xf32>
    %30 = vector.extract_strided_slice %28 {offsets = [0, 0], sizes = [32, 512], strides = [1, 1]} : vector<32x546xf32> to vector<32x512xf32>
    %31 = vector.extract_strided_slice %29 {offsets = [0, 0], sizes = [1, 512], strides = [1, 1]} : vector<9x512xf32> to vector<1x512xf32>
    %32 = vector.broadcast %31 : vector<1x512xf32> to vector<32x512xf32>
    %33 = arith.mulf %30, %32 : vector<32x512xf32>
    %34 = arith.truncf %33 : vector<32x512xf32> to vector<32x512xbf16>
    %35 = vector.extract_strided_slice %28 {offsets = [0, 1], sizes = [32, 512], strides = [1, 1]} : vector<32x546xf32> to vector<32x512xf32>
    %36 = vector.extract_strided_slice %29 {offsets = [1, 0], sizes = [1, 512], strides = [1, 1]} : vector<9x512xf32> to vector<1x512xf32>
    %37 = vector.broadcast %36 : vector<1x512xf32> to vector<32x512xf32>
    %38 = arith.mulf %35, %37 : vector<32x512xf32>
    %39 = arith.truncf %38 : vector<32x512xf32> to vector<32x512xbf16>
    %40 = vector.extract_strided_slice %28 {offsets = [0, 2], sizes = [32, 512], strides = [1, 1]} : vector<32x546xf32> to vector<32x512xf32>
    %41 = vector.extract_strided_slice %29 {offsets = [2, 0], sizes = [1, 512], strides = [1, 1]} : vector<9x512xf32> to vector<1x512xf32>
    %42 = vector.broadcast %41 : vector<1x512xf32> to vector<32x512xf32>
    %43 = arith.mulf %40, %42 : vector<32x512xf32>
    %44 = arith.truncf %43 : vector<32x512xf32> to vector<32x512xbf16>
    %45 = vector.extract_strided_slice %28 {offsets = [0, 16], sizes = [32, 512], strides = [1, 1]} : vector<32x546xf32> to vector<32x512xf32>
    %46 = vector.extract_strided_slice %29 {offsets = [3, 0], sizes = [1, 512], strides = [1, 1]} : vector<9x512xf32> to vector<1x512xf32>
    %47 = vector.broadcast %46 : vector<1x512xf32> to vector<32x512xf32>
    %48 = arith.mulf %45, %47 : vector<32x512xf32>
    %49 = arith.truncf %48 : vector<32x512xf32> to vector<32x512xbf16>
    %50 = vector.extract_strided_slice %28 {offsets = [0, 17], sizes = [32, 512], strides = [1, 1]} : vector<32x546xf32> to vector<32x512xf32>
    %51 = vector.extract_strided_slice %29 {offsets = [4, 0], sizes = [1, 512], strides = [1, 1]} : vector<9x512xf32> to vector<1x512xf32>
    %52 = vector.broadcast %51 : vector<1x512xf32> to vector<32x512xf32>
    %53 = arith.mulf %50, %52 : vector<32x512xf32>
    %54 = arith.truncf %53 : vector<32x512xf32> to vector<32x512xbf16>
    %55 = vector.extract_strided_slice %28 {offsets = [0, 18], sizes = [32, 512], strides = [1, 1]} : vector<32x546xf32> to vector<32x512xf32>
    %56 = vector.extract_strided_slice %29 {offsets = [5, 0], sizes = [1, 512], strides = [1, 1]} : vector<9x512xf32> to vector<1x512xf32>
    %57 = vector.broadcast %56 : vector<1x512xf32> to vector<32x512xf32>
    %58 = arith.mulf %55, %57 : vector<32x512xf32>
    %59 = arith.truncf %58 : vector<32x512xf32> to vector<32x512xbf16>
    %60 = vector.extract_strided_slice %28 {offsets = [0, 32], sizes = [32, 512], strides = [1, 1]} : vector<32x546xf32> to vector<32x512xf32>
    %61 = vector.extract_strided_slice %29 {offsets = [6, 0], sizes = [1, 512], strides = [1, 1]} : vector<9x512xf32> to vector<1x512xf32>
    %62 = vector.broadcast %61 : vector<1x512xf32> to vector<32x512xf32>
    %63 = arith.mulf %60, %62 : vector<32x512xf32>
    %64 = arith.truncf %63 : vector<32x512xf32> to vector<32x512xbf16>
    %65 = vector.extract_strided_slice %28 {offsets = [0, 33], sizes = [32, 512], strides = [1, 1]} : vector<32x546xf32> to vector<32x512xf32>
    %66 = vector.extract_strided_slice %29 {offsets = [7, 0], sizes = [1, 512], strides = [1, 1]} : vector<9x512xf32> to vector<1x512xf32>
    %67 = vector.broadcast %66 : vector<1x512xf32> to vector<32x512xf32>
    %68 = arith.mulf %65, %67 : vector<32x512xf32>
    %69 = arith.truncf %68 : vector<32x512xf32> to vector<32x512xbf16>
    %70 = vector.extract_strided_slice %28 {offsets = [0, 34], sizes = [32, 512], strides = [1, 1]} : vector<32x546xf32> to vector<32x512xf32>
    %71 = vector.extract_strided_slice %29 {offsets = [8, 0], sizes = [1, 512], strides = [1, 1]} : vector<9x512xf32> to vector<1x512xf32>
    %72 = vector.broadcast %71 : vector<1x512xf32> to vector<32x512xf32>
    %73 = arith.mulf %70, %72 : vector<32x512xf32>
    %74 = arith.truncf %73 : vector<32x512xf32> to vector<32x512xbf16>
    %75 = tpu.concatenate %34, %39, %44, %49, %54, %59, %64, %69, %74 in 0 : vector<32x512xbf16>, vector<32x512xbf16>, vector<32x512xbf16>, vector<32x512xbf16>, vector<32x512xbf16>, vector<32x512xbf16>, vector<32x512xbf16>, vector<32x512xbf16>, vector<32x512xbf16> -> vector<288x512xbf16>
    %c0_13 = arith.constant 0 : index
    %c0_14 = arith.constant 0 : index
    %76 = vector.load %arg2[%c0_13, %c0_14] : memref<12x288xf32, #tpu.memory_space<vmem>>, vector<12x288xf32>
    %77 = arith.truncf %76 : vector<12x288xf32> to vector<12x288xbf16>
    %cst_15 = arith.constant dense<0.000000e+00> : vector<12x512xf32>
    %78 = tpu.matmul %77, %75, %cst_15 {dimension_numbers = #tpu.dot_dimension_numbers<[1], [0], [0], [1], [0, 0, 1, 1], [], []>} : vector<12x288xbf16>, vector<288x512xbf16>, vector<12x512xf32> -> vector<12x512xf32>
    %c0_16 = arith.constant 0 : index
    %c0_17 = arith.constant 0 : index
    %79 = vector.load %arg3[%c0_16, %c0_17] : memref<12x1xf32, #tpu.memory_space<vmem>>, vector<12x1xf32>
    %80 = vector.broadcast %79 : vector<12x1xf32> to vector<12x512xf32>
    %81 = arith.addf %78, %80 : vector<12x512xf32>
    %c0_18 = arith.constant 0 : index
    %c0_19 = arith.constant 0 : index
    %82 = vector.load %arg6[%c0_18, %c0_19] : memref<12x512xf32, #tpu.memory_space<vmem>>, vector<12x512xf32>
    tpu.vector_store %arg6[%c0_18, %c0_19], %81 {strides = array<i32>} : memref<12x512xf32, #tpu.memory_space<vmem>>, vector<12x512xf32>,
    return
  }
}

module attributes {stable_mosaic.version = 11 : i64} {
  func.func @_upsample_tanh_kernel(%arg0: memref<192x32xf32, #tpu.memory_space<vmem>>, %arg1: memref<32x16xf32, #tpu.memory_space<vmem>>, %arg2: memref<96x192xf32, #tpu.memory_space<vmem>>, %arg3: memref<96x16xf32, #tpu.memory_space<vmem>>) attributes {dimension_semantics = [], scalar_prefetch = 0 : i64, scratch_operands = 0 : i64, tpu.core_type = #tpu.core_type<tc>} {
    %c0 = arith.constant 0 : index
    %c0_0 = arith.constant 0 : index
    %0 = vector.load %arg0[%c0, %c0_0] : memref<192x32xf32, #tpu.memory_space<vmem>>, vector<192x32xf32>
    %c0_1 = arith.constant 0 : index
    %c0_2 = arith.constant 0 : index
    %1 = vector.load %arg1[%c0_1, %c0_2] : memref<32x16xf32, #tpu.memory_space<vmem>>, vector<32x16xf32>
    %cst = arith.constant dense<0.000000e+00> : vector<192x16xf32>
    %2 = tpu.matmul %0, %1, %cst {dimension_numbers = #tpu.dot_dimension_numbers<[1], [0], [0], [1], [0, 0, 1, 1], [], []>} : vector<192x32xf32>, vector<32x16xf32>, vector<192x16xf32> -> vector<192x16xf32>
    %c0_3 = arith.constant 0 : index
    %c0_4 = arith.constant 0 : index
    %3 = vector.load %arg2[%c0_3, %c0_4] : memref<96x192xf32, #tpu.memory_space<vmem>>, vector<96x192xf32>
    %cst_5 = arith.constant dense<0.000000e+00> : vector<96x16xf32>
    %4 = tpu.matmul %3, %2, %cst_5 {dimension_numbers = #tpu.dot_dimension_numbers<[1], [0], [0], [1], [0, 0, 1, 1], [], []>} : vector<96x192xf32>, vector<192x16xf32>, vector<96x16xf32> -> vector<96x16xf32>
    %5 = math.tanh %4 : vector<96x16xf32>
    %c0_6 = arith.constant 0 : index
    %c0_7 = arith.constant 0 : index
    %6 = vector.load %arg3[%c0_6, %c0_7] : memref<96x16xf32, #tpu.memory_space<vmem>>, vector<96x16xf32>
    tpu.vector_store %arg3[%c0_6, %c0_7], %5 {strides = array<i32>} : memref<96x16xf32, #tpu.memory_space<vmem>>, vector<96x16xf32>,
    return
  }
}

module attributes {stable_mosaic.version = 11 : i64} {
  func.func @_nearest_embed_kernel(%arg0: memref<16x32xf32, #tpu.memory_space<vmem>>, %arg1: memref<8x16xf32, #tpu.memory_space<vmem>>, %arg2: memref<16x8xf32, #tpu.memory_space<vmem>>, %arg3: memref<8x1xf32, #tpu.memory_space<vmem>>, %arg4: memref<16x32xf32, #tpu.memory_space<vmem>>, %arg5: memref<1x32xi32, #tpu.memory_space<vmem>>) attributes {dimension_semantics = [], scalar_prefetch = 0 : i64, scratch_operands = 0 : i64, tpu.core_type = #tpu.core_type<tc>} {
    %c0 = arith.constant 0 : index
    %c0_0 = arith.constant 0 : index
    %0 = vector.load %arg0[%c0, %c0_0] : memref<16x32xf32, #tpu.memory_space<vmem>>, vector<16x32xf32>
    %c0_1 = arith.constant 0 : index
    %c0_2 = arith.constant 0 : index
    %1 = vector.load %arg1[%c0_1, %c0_2] : memref<8x16xf32, #tpu.memory_space<vmem>>, vector<8x16xf32>
    %c0_3 = arith.constant 0 : index
    %c0_4 = arith.constant 0 : index
    %2 = vector.load %arg2[%c0_3, %c0_4] : memref<16x8xf32, #tpu.memory_space<vmem>>, vector<16x8xf32>
    %c0_5 = arith.constant 0 : index
    %c0_6 = arith.constant 0 : index
    %3 = vector.load %arg3[%c0_5, %c0_6] : memref<8x1xf32, #tpu.memory_space<vmem>>, vector<8x1xf32>
    %cst = arith.constant dense<0.000000e+00> : vector<8x32xf32>
    %4 = tpu.matmul %1, %0, %cst {dimension_numbers = #tpu.dot_dimension_numbers<[1], [0], [0], [1], [0, 0, 1, 1], [], []>} : vector<8x16xf32>, vector<16x32xf32>, vector<8x32xf32> -> vector<8x32xf32>
    %cst_7 = arith.constant 2.000000e+00 : f32
    %5 = vector.broadcast %cst_7 : f32 to vector<8x32xf32>
    %6 = arith.mulf %5, %4 : vector<8x32xf32>
    %7 = vector.broadcast %3 : vector<8x1xf32> to vector<8x32xf32>
    %8 = arith.subf %7, %6 : vector<8x32xf32>
    %9 = tpu.iota {dimensions = array<i32: 0>} : vector<8x32xi32>
    %cst_8 = arith.constant dense<0x7F800000> : vector<32xf32>
    %10 = vector.multi_reduction <minimumf>, %8, %cst_8 [0] : vector<8x32xf32> to vector<32xf32>
    %11 = vector.shape_cast %10 : vector<32xf32> to vector<1x32xf32>
    %12 = vector.broadcast %11 : vector<1x32xf32> to vector<8x32xf32>
    %13 = arith.cmpf ole, %8, %12 : vector<8x32xf32>
    %c8_i32 = arith.constant 8 : i32
    %14 = vector.broadcast %c8_i32 : i32 to vector<8x32xi32>
    %15 = arith.select %13, %9, %14 : vector<8x32xi1>, vector<8x32xi32>
    %cst_9 = arith.constant dense<2147483647> : vector<32xi32>
    %16 = vector.multi_reduction <minsi>, %15, %cst_9 [0] : vector<8x32xi32> to vector<32xi32>
    %17 = vector.shape_cast %16 : vector<32xi32> to vector<1x32xi32>
    %18 = vector.broadcast %17 : vector<1x32xi32> to vector<8x32xi32>
    %19 = arith.cmpi eq, %9, %18 : vector<8x32xi32>
    %20 = arith.extui %19 : vector<8x32xi1> to vector<8x32xi32>
    %21 = arith.sitofp %20 : vector<8x32xi32> to vector<8x32xf32>
    %cst_10 = arith.constant dense<0.000000e+00> : vector<16x32xf32>
    %22 = tpu.matmul %2, %21, %cst_10 {dimension_numbers = #tpu.dot_dimension_numbers<[1], [0], [0], [1], [0, 0, 1, 1], [], []>} : vector<16x8xf32>, vector<8x32xf32>, vector<16x32xf32> -> vector<16x32xf32>
    %c0_11 = arith.constant 0 : index
    %c0_12 = arith.constant 0 : index
    %23 = vector.load %arg4[%c0_11, %c0_12] : memref<16x32xf32, #tpu.memory_space<vmem>>, vector<16x32xf32>
    tpu.vector_store %arg4[%c0_11, %c0_12], %22 {strides = array<i32>} : memref<16x32xf32, #tpu.memory_space<vmem>>, vector<16x32xf32>,
    %c0_13 = arith.constant 0 : index
    %c0_14 = arith.constant 0 : index
    %24 = vector.load %arg5[%c0_13, %c0_14] : memref<1x32xi32, #tpu.memory_space<vmem>>, vector<1x32xi32>
    tpu.vector_store %arg5[%c0_13, %c0_14], %17 {strides = array<i32>} : memref<1x32xi32, #tpu.memory_space<vmem>>, vector<1x32xi32>,
    return
  }
}

</mosaic_0001>

<bundles_post_ra>
// kernel: decompose_net_forward.13
= control target key start
LH: loop header
LB: loop body
LE: loop exit
PB: predicated region body
PF: predicated region fallthrough
CT: control target
= control target key end

     0   :  { %v268_v3 = vmov 0   ;;  %vm60_vm0 = vcmask 392192   ;;  %s413_s0 = inlined_call_operand.vmem [shape: f32[48,128], index: 0, kind: input, shape index: {}]   ;;  %s414_s1 = inlined_call_operand.vmem [shape: f32[32,48], index: 1, kind: input, shape index: {}]   ;;  %s415_s2 = inlined_call_operand.vmem [shape: f32[32,1], index: 2, kind: input, shape index: {}]   ;;  %s416_s4 = inlined_call_operand.vmem [shape: f32[32,1], index: 4, kind: input, shape index: {}]   ;;  %s417_s3 = inlined_call_operand.vmem [shape: f32[32,1], index: 3, kind: input, shape index: {}]   ;;  %s418_s5 = inlined_call_operand.vmem [shape: f32[32,128], index: 5, kind: output, shape index: {}]  }
   0x1   :  { %v21_v0 = vld [vmem:[%s413_s0] sm:$0xff]  ;;  %v22_v1 = vld [vmem:[%s413_s0 + $0x8] sm:$0xff]  ;;  %v23_v2 = vld [vmem:[%s413_s0 + $0x10] sm:$0xff]  ;;  %258 = vset.pattern.permute.xlu0 %v268_v3  ;;  %259 = vset.pattern.permute.xlu1 %v268_v3 }
   0x2   :  { %v27_v4 = vpack.c.bf16 %v22_v1, %v21_v0  ;;  %v24_v5 = vld [vmem:[%s413_s0 + $0x18] sm:$0xff]  ;;  %v25_v6 = vld [vmem:[%s413_s0 + $0x20] sm:$0xff]  ;;  %v26_v8 = vld [vmem:[%s413_s0 + $0x28] sm:$0xff] }
   0x3   :  { %v28_v7 = vpack.c.bf16 %v24_v5, %v23_v2  ;;  %v30_v9 = vld [vmem:[%s414_s1] sm:$0xff]  ;;  %v31_v10 = vld [vmem:[%s414_s1 + $0x8] sm:$0xff]  ;;  %v38_v13 = vld [vmem:[%s415_s2 + $0x10] sm:$0xff]  ;;  %v29_v14 = vpack.c.bf16 %v26_v8, %v25_v6 }
   0x4   :  { %247 = vmatprep.subr.bf16.mxu0 %v27_v4  ;;  %v34_v11 = vpack.c.bf16 %v31_v10, %v30_v9  ;;  %v36_v12 = vld [vmem:[%s415_s2] sm:$0xff]  ;;  %v37_v15 = vld [vmem:[%s415_s2 + $0x8] sm:$0xff]  ;;  %52 = vperm.xlu1 %259, %v38_v13   ;;  %v39_v16 = vld [vmem:[%s415_s2 + $0x18] sm:$0xff] }
   0x5   :  { %248 = vmatpush3.bf16.msra.mxu0 %v27_v4  ;;  %42 = vperm.xlu0 %258, %v36_v12   ;;  %v32_v17 = vld [vmem:[%s414_s1 + $0x10] sm:$0xff]  ;;  %v33_v18 = vld [vmem:[%s414_s1 + $0x18] sm:$0xff]  ;;  %v121_v36 = vld [vmem:[%s416_s4 + $0x8] sm:$0xff] }
   0x6   :  { %249 = vmatprep.subr.bf16.mxu0 %v28_v7  ;;  %253 = vmatprep.mubr.msk.bf16.mxu0 %vm60_vm0, %v34_v11  ;;  %v35_v19 = vpack.c.bf16 %v33_v18, %v32_v17  ;;  %v120_v37 = vld [vmem:[%s416_s4] sm:$0xff]  ;;  %v118_v6 = vld [vmem:[%s417_s3 + $0x10] sm:$0xff]  ;;  %v119_v17 = vld [vmem:[%s417_s3 + $0x18] sm:$0xff] }
   0x7   :  { %v116_v13 = vld [vmem:[%s417_s3] sm:$0xff] }
   0x8   :  { %57 = vperm.xlu1 %259, %v39_v16  }
   0x9   :  { %250 = vmatpush3.bf16.msra.mxu0 %v28_v7  ;;  %47 = vperm.xlu0 %258, %v37_v15   ;;  %v117_v7 = vld [vmem:[%s417_s3 + $0x8] sm:$0xff]  ;;  %v122_v15 = vld [vmem:[%s416_s4 + $0x10] sm:$0xff] }
   0xa   :  { %251 = vmatprep.subr.bf16.mxu0 %v29_v14 }
   0xd   :  { %252 = vmatpush3.bf16.msra.mxu0 %v29_v14 }
  0x10   :  { %254 = vmatmul.mubr.msk.bf16.vlgmr.msra.gmra.mrb[0].mxu0 %vm60_vm0, %v35_v19  ;;  %v123_v19 = vld [vmem:[%s416_s4 + $0x18] sm:$0xff] }
  0x83   :  { %v53_v21 = vpop.permute.xlu1 %52 }
  0x84   :  { %v43_v20 = vpop.permute.xlu0 %42 }
  0x87   :  { %v58_v30 = vpop.permute.xlu1 %57 }
  0x88   :  { %v48_v26 = vpop.permute.xlu0 %47 }
  0xe3   :  { %v255_v22 = vpop.f32.mrb[0].mxu0 }
  0xe4   :  { %v343_v23 = vadd.f32 %v255_v22, %v53_v21  ;;  %v101_v24 = vpop.f32.mrb[1].mxu0 }
  0xe5   :  { %v256_v25 = vpop.f32.mrb[2].mxu0  ;;  %v346_v28 = vadd.f32 %v101_v24, %v43_v20 }
  0xe6   :  { %128 = vadd.xlane.f32.xlu0 %v343_v23  ;;  %v104_v27 = vpop.f32.mrb[3].mxu0  ;;  %v354_v32 = vadd.f32 %v256_v25, %v58_v30  ;;  %v138_v33 = vmul.f32 %v343_v23, %v343_v23 }
  0xe7   :  { %v348_v29 = vadd.f32 %v104_v27, %v48_v26  ;;  %v136_v31 = vmul.f32 %v346_v28, %v346_v28 }
  0xe8   :  { %v139_v35 = vmul.f32 %v354_v32, %v354_v32 }
  0xe9   :  { %126 = vadd.xlane.f32.xlu1 %v348_v29  ;;  %v137_v34 = vmul.f32 %v348_v29, %v348_v29 }
  0xea   :  { %124 = vadd.xlane.f32.xlu0 %v346_v28 }
  0xed   :  { %140 = vadd.xlane.f32.xlu1 %v136_v31 }
  0xee   :  { %130 = vadd.xlane.f32.xlu0 %v354_v32 }
  0xf1   :  { %144 = vadd.xlane.f32.xlu1 %v138_v33 }
  0xf2   :  { %142 = vadd.xlane.f32.xlu0 %v137_v34 }
  0xf6   :  { %146 = vadd.xlane.f32.xlu0 %v139_v35 }
 0x102   :  { %211 = vperm.xlu1 %259, %v121_v36  }
 0x10c   :  { %206 = vperm.xlu0 %258, %v120_v37  }
 0x173   :  { %v129_v38 = vpop.xlane.xlu0 %128 }
 0x174   :  { %v134_v44 = vmul.f32 0.0078125, %v129_v38 }
 0x176   :  { %v127_v39 = vpop.xlane.xlu1 %126  ;;  %v154_v50 = vmul.f32 %v134_v44, %v134_v44  ;;  %v178_v26 = vsub.f32 %v343_v23, %v134_v44 }
 0x177   :  { %v125_v40 = vpop.xlane.xlu0 %124  ;;  %v133_v47 = vmul.f32 0.0078125, %v127_v39 }
 0x178   :  { %v369_v41 = vmul.f32 0.0078125, %v125_v40 }
 0x179   :  { %v153_v53 = vmul.f32 %v133_v47, %v133_v47  ;;  %v177_v24 = vsub.f32 %v348_v29, %v133_v47 }
 0x17a   :  { %v152_v42 = vmul.f32 %v369_v41, %v369_v41  ;;  %v141_v43 = vpop.xlane.xlu1 %140  ;;  %v176_v30 = vsub.f32 %v346_v28, %v369_v41 }
 0x17b   :  { %v148_v45 = vmul.f32 0.0078125, %v141_v43  ;;  %v131_v46 = vpop.xlane.xlu0 %130 }
 0x17c   :  { %v373_v54 = vmul.f32 0.0078125, %v131_v46 }
 0x17d   :  { %v156_v48 = vsub.f32 %v148_v45, %v152_v42 }
 0x17e   :  { %v145_v49 = vpop.xlane.xlu1 %144  ;;  %v155_v61 = vmul.f32 %v373_v54, %v373_v54  ;;  %v179_v23 = vsub.f32 %v354_v32, %v373_v54 }
 0x17f   :  { %v150_v51 = vmul.f32 0.0078125, %v145_v49  ;;  %v143_v52 = vpop.xlane.xlu0 %142  ;;  %v160_v56 = vmax.f32 %v156_v48, 0.0 }
 0x180   :  { %v149_v55 = vmul.f32 0.0078125, %v143_v52 }
 0x181   :  { %v158_v57 = vsub.f32 %v150_v51, %v154_v50  ;;  %v164_v0 = vadd.f32 1e-05, %v160_v56 }
 0x182   :  { %v157_v58 = vsub.f32 %v149_v55, %v153_v53  ;;  %v212_v20 = vpop.permute.xlu1 %211 }
 0x183   :  { %v162_v59 = vmax.f32 %v158_v57, 0.0  ;;  %v147_v60 = vpop.xlane.xlu0 %146 }
 0x184   :  { %v161_v62 = vmax.f32 %v157_v58, 0.0  ;;  %v151_v63 = vmul.f32 0.0078125, %v147_v60 }
 0x185   :  { %v166_v1 = vadd.f32 1e-05, %v162_v59 }
 0x186   :  { %v165_v2 = vadd.f32 1e-05, %v161_v62  ;;  %v159_v3 = vsub.f32 %v151_v63, %v155_v61 }
 0x187   :  { %260 = vrsqrt.f32 %v166_v1 }
 0x188   :  { %262 = vrsqrt.f32 %v165_v2  ;;  %v163_v4 = vmax.f32 %v159_v3, 0.0 }
 0x189   :  { %264 = vrsqrt.f32 %v164_v0 }
 0x18a   :  { %v167_v5 = vadd.f32 1e-05, %v163_v4 }
 0x18b   :  { %v207_v21 = vpop.permute.xlu0 %206 }
 0x18c   :  { %266 = vrsqrt.f32 %v167_v5 }
 0x191   :  { %v261_v8 = vpop.eup %260 }
 0x192   :  { %v263_v9 = vpop.eup %262  ;;  %v174_v10 = vmul.f32 %v261_v8, %v118_v6 }
 0x193   :  { %v265_v11 = vpop.eup %264  ;;  %v173_v12 = vmul.f32 %v263_v9, %v117_v7 }
 0x194   :  { %192 = vperm.xlu1 %259, %v174_v10   ;;  %v172_v14 = vmul.f32 %v265_v11, %v116_v13 }
 0x195   :  { %187 = vperm.xlu0 %258, %v173_v12  }
 0x196   :  { %v267_v16 = vpop.eup %266 }
 0x197   :  { %v175_v18 = vmul.f32 %v267_v16, %v119_v17 }
 0x198   :  { %182 = vperm.xlu1 %259, %v172_v14  }
 0x199   :  { %216 = vperm.xlu0 %258, %v122_v15  }
 0x19c   :  { %197 = vperm.xlu1 %259, %v175_v18  }
 0x1a0   :  { %221 = vperm.xlu1 %259, %v123_v19  }
 0x213   :  { %v193_v22 = vpop.permute.xlu1 %192 }
 0x214   :  { %v188_v25 = vpop.permute.xlu0 %187  ;;  %v202_v31 = vmul.f32 %v193_v22, %v178_v26 }
 0x215   :  { %v201_v27 = vmul.f32 %v188_v25, %v177_v24 }
 0x217   :  { %v225_v33 = vadd.f32 %v212_v20, %v201_v27  ;;  %v183_v34 = vpop.permute.xlu1 %182 }
 0x218   :  { %v200_v35 = vmul.f32 %v183_v34, %v176_v30  ;;  %v217_v36 = vpop.permute.xlu0 %216 }
 0x219   :  { %v229_v37 = vmax.f32 %v225_v33, 0.0  ;;  %v226_v38 = vadd.f32 %v217_v36, %v202_v31 }
 0x21a   :  { %v224_v39 = vadd.f32 %v207_v21, %v200_v35 }
 0x21b   :  { %233 = vst [vmem:[%s418_s5 + $0x8] sm:$0xff] %v229_v37  ;;  %v230_v29 = vmax.f32 %v226_v38, 0.0  ;;  %v198_v40 = vpop.permute.xlu1 %197 }
 0x21c   :  { %v228_v42 = vmax.f32 %v224_v39, 0.0  ;;  %v203_v28 = vmul.f32 %v198_v40, %v179_v23 }
 0x21d   :  { %234 = vst [vmem:[%s418_s5 + $0x10] sm:$0xff] %v230_v29 }
 0x21e   :  { %232 = vst [vmem:[%s418_s5] sm:$0xff] %v228_v42 }
 0x21f   :  { %v222_v41 = vpop.permute.xlu1 %221 }
 0x220   :  { %v227_v43 = vadd.f32 %v222_v41, %v203_v28 }
 0x222   :  { %v231_v44 = vmax.f32 %v227_v43, 0.0 }
 0x224   :  { %235 = vst [vmem:[%s418_s5 + $0x18] sm:$0xff] %v231_v44 }

// kernel: decompose_net_forward.14
= control target key start
LH: loop header
LB: loop body
LE: loop exit
PB: predicated region body
PF: predicated region fallthrough
CT: control target
= control target key end

     0   :  { %v463_v3 = vmov 0   ;;  %vm271_vm0 = vcmask 261120   ;;  %s823_s0 = inlined_call_operand.vmem [shape: f32[512,32], index: 0, kind: input, shape index: {}]   ;;  %s824_s1 = inlined_call_operand.vmem [shape: f32[32,512], index: 1, kind: input, shape index: {}]   ;;  %s825_s2 = inlined_call_operand.vmem [shape: f32[32,1], index: 2, kind: input, shape index: {}]   ;;  %s826_s4 = inlined_call_operand.vmem [shape: f32[32,1], index: 4, kind: input, shape index: {}]   ;;  %s827_s3 = inlined_call_operand.vmem [shape: f32[32,1], index: 3, kind: input, shape index: {}]   ;;  %s828_s5 = inlined_call_operand.vmem [shape: f32[32,32], index: 5, kind: output, shape index: {}]  }
   0x1   :  { %v37_v0 = vld [vmem:[%s823_s0 + $0x80] sm:$0xff]  ;;  %v38_v1 = vld [vmem:[%s823_s0 + $0x88] sm:$0xff]  ;;  %453 = vset.pattern.permute.xlu0 %v463_v3  ;;  %454 = vset.pattern.permute.xlu1 %v463_v3  ;;  %v39_v12 = vld [vmem:[%s823_s0 + $0x90] sm:$0xff] }
   0x2   :  { %v69_v2 = vld [vmem:[%s823_s0 + $0x180] sm:$0xff]  ;;  %v93_v4 = vpack.c.bf16 %v38_v1, %v37_v0  ;;  %v70_v5 = vld [vmem:[%s823_s0 + $0x188] sm:$0xff]  ;;  %v40_v14 = vld [vmem:[%s823_s0 + $0x98] sm:$0xff] }
   0x3   :  { %v21_v6 = vld [vmem:[%s823_s0] sm:$0xff]  ;;  %v22_v7 = vld [vmem:[%s823_s0 + $0x8] sm:$0xff]  ;;  %v109_v8 = vpack.c.bf16 %v70_v5, %v69_v2  ;;  %v71_v15 = vld [vmem:[%s823_s0 + $0x190] sm:$0xff]  ;;  %v94_v17 = vpack.c.bf16 %v40_v14, %v39_v12 }
   0x4   :  { %v85_v9 = vpack.c.bf16 %v22_v7, %v21_v6  ;;  %v53_v10 = vld [vmem:[%s823_s0 + $0x100] sm:$0xff]  ;;  %v54_v11 = vld [vmem:[%s823_s0 + $0x108] sm:$0xff]  ;;  %396 = vmatprep.subr.bf16.mxu0 %v93_v4  ;;  %v72_v16 = vld [vmem:[%s823_s0 + $0x198] sm:$0xff] }
   0x5   :  { %v101_v13 = vpack.c.bf16 %v54_v11, %v53_v10  ;;  %424 = vmatprep.subr.bf16.mxu1 %v109_v8  ;;  %v110_v18 = vpack.c.bf16 %v72_v16, %v71_v15  ;;  %v23_v19 = vld [vmem:[%s823_s0 + $0x10] sm:$0xff]  ;;  %v24_v20 = vld [vmem:[%s823_s0 + $0x18] sm:$0xff]  ;;  %v41_v24 = vld [vmem:[%s823_s0 + $0xa0] sm:$0xff] }
   0x6   :  { %397 = vmatpush3.bf16.msra.mxu0 %v85_v9  ;;  %v55_v21 = vld [vmem:[%s823_s0 + $0x110] sm:$0xff]  ;;  %v86_v22 = vpack.c.bf16 %v24_v20, %v23_v19  ;;  %v56_v23 = vld [vmem:[%s823_s0 + $0x118] sm:$0xff]  ;;  %v42_v25 = vld [vmem:[%s823_s0 + $0xa8] sm:$0xff] }
   0x7   :  { %425 = vmatpush3.bf16.msra.mxu1 %v101_v13  ;;  %398 = vmatprep.subr.bf16.mxu0 %v94_v17  ;;  %v102_v26 = vpack.c.bf16 %v56_v23, %v55_v21  ;;  %v95_v27 = vpack.c.bf16 %v42_v25, %v41_v24  ;;  %v73_v28 = vld [vmem:[%s823_s0 + $0x1a0] sm:$0xff]  ;;  %v74_v29 = vld [vmem:[%s823_s0 + $0x1a8] sm:$0xff]  ;;  %v43_v36 = vld [vmem:[%s823_s0 + $0xb0] sm:$0xff] }
   0x8   :  { %426 = vmatprep.subr.bf16.mxu1 %v110_v18  ;;  %v25_v30 = vld [vmem:[%s823_s0 + $0x20] sm:$0xff]  ;;  %v111_v31 = vpack.c.bf16 %v74_v29, %v73_v28  ;;  %v26_v32 = vld [vmem:[%s823_s0 + $0x28] sm:$0xff]  ;;  %v44_v37 = vld [vmem:[%s823_s0 + $0xb8] sm:$0xff] }
   0x9   :  { %v57_v33 = vld [vmem:[%s823_s0 + $0x120] sm:$0xff]  ;;  %v58_v34 = vld [vmem:[%s823_s0 + $0x128] sm:$0xff]  ;;  %v87_v35 = vpack.c.bf16 %v26_v32, %v25_v30  ;;  %v75_v38 = vld [vmem:[%s823_s0 + $0x1b0] sm:$0xff]  ;;  %v96_v40 = vpack.c.bf16 %v44_v37, %v43_v36 }
   0xa   :  { %399 = vmatpush3.bf16.msra.mxu0 %v86_v22  ;;  %v103_v39 = vpack.c.bf16 %v58_v34, %v57_v33  ;;  %v76_v41 = vld [vmem:[%s823_s0 + $0x1b8] sm:$0xff]  ;;  %v27_v42 = vld [vmem:[%s823_s0 + $0x30] sm:$0xff]  ;;  %v45_v47 = vld [vmem:[%s823_s0 + $0xc0] sm:$0xff] }
   0xb   :  { %427 = vmatpush3.bf16.msra.mxu1 %v102_v26  ;;  %400 = vmatprep.subr.bf16.mxu0 %v95_v27  ;;  %v28_v43 = vld [vmem:[%s823_s0 + $0x38] sm:$0xff]  ;;  %v112_v44 = vpack.c.bf16 %v76_v41, %v75_v38  ;;  %v59_v45 = vld [vmem:[%s823_s0 + $0x130] sm:$0xff]  ;;  %v46_v48 = vld [vmem:[%s823_s0 + $0xc8] sm:$0xff] }
   0xc   :  { %428 = vmatprep.subr.bf16.mxu1 %v111_v31  ;;  %v60_v46 = vld [vmem:[%s823_s0 + $0x138] sm:$0xff]  ;;  %v77_v49 = vld [vmem:[%s823_s0 + $0x1c0] sm:$0xff]  ;;  %v78_v50 = vld [vmem:[%s823_s0 + $0x1c8] sm:$0xff]  ;;  %v88_v51 = vpack.c.bf16 %v28_v43, %v27_v42  ;;  %v97_v53 = vpack.c.bf16 %v46_v48, %v45_v47 }
   0xd   :  { %v104_v52 = vpack.c.bf16 %v60_v46, %v59_v45  ;;  %v29_v54 = vld [vmem:[%s823_s0 + $0x40] sm:$0xff]  ;;  %v30_v55 = vld [vmem:[%s823_s0 + $0x48] sm:$0xff]  ;;  %v113_v57 = vpack.c.bf16 %v78_v50, %v77_v49  ;;  %v47_v59 = vld [vmem:[%s823_s0 + $0xd0] sm:$0xff] }
   0xe   :  { %401 = vmatpush3.bf16.msra.mxu0 %v87_v35  ;;  %v61_v56 = vld [vmem:[%s823_s0 + $0x140] sm:$0xff]  ;;  %v62_v58 = vld [vmem:[%s823_s0 + $0x148] sm:$0xff]  ;;  %v48_v60 = vld [vmem:[%s823_s0 + $0xd8] sm:$0xff]  ;;  %v89_v63 = vpack.c.bf16 %v30_v55, %v29_v54 }
   0xf   :  { %429 = vmatpush3.bf16.msra.mxu1 %v103_v39  ;;  %402 = vmatprep.subr.bf16.mxu0 %v96_v40  ;;  %v79_v61 = vld [vmem:[%s823_s0 + $0x1d0] sm:$0xff]  ;;  %v80_v62 = vld [vmem:[%s823_s0 + $0x1d8] sm:$0xff]  ;;  %v105_v0 = vpack.c.bf16 %v62_v58, %v61_v56  ;;  %v98_v1 = vpack.c.bf16 %v48_v60, %v47_v59  ;;  %v49_v7 = vld [vmem:[%s823_s0 + $0xe0] sm:$0xff] }
  0x10   :  { %430 = vmatprep.subr.bf16.mxu1 %v112_v44  ;;  %v31_v2 = vld [vmem:[%s823_s0 + $0x50] sm:$0xff]  ;;  %v32_v3 = vld [vmem:[%s823_s0 + $0x58] sm:$0xff]  ;;  %v114_v5 = vpack.c.bf16 %v80_v62, %v79_v61  ;;  %v50_v8 = vld [vmem:[%s823_s0 + $0xe8] sm:$0xff] }
  0x11   :  { %v63_v4 = vld [vmem:[%s823_s0 + $0x150] sm:$0xff]  ;;  %v64_v6 = vld [vmem:[%s823_s0 + $0x158] sm:$0xff]  ;;  %v81_v9 = vld [vmem:[%s823_s0 + $0x1e0] sm:$0xff]  ;;  %v90_v12 = vpack.c.bf16 %v32_v3, %v31_v2  ;;  %v99_v17 = vpack.c.bf16 %v50_v8, %v49_v7 }
  0x12   :  { %403 = vmatpush3.bf16.msra.mxu0 %v88_v51  ;;  %v82_v10 = vld [vmem:[%s823_s0 + $0x1e8] sm:$0xff]  ;;  %v33_v11 = vld [vmem:[%s823_s0 + $0x60] sm:$0xff]  ;;  %v106_v16 = vpack.c.bf16 %v64_v6, %v63_v4  ;;  %v51_v18 = vld [vmem:[%s823_s0 + $0xf0] sm:$0xff] }
  0x13   :  { %431 = vmatpush3.bf16.msra.mxu1 %v104_v52  ;;  %404 = vmatprep.subr.bf16.mxu0 %v97_v53  ;;  %v34_v13 = vld [vmem:[%s823_s0 + $0x68] sm:$0xff]  ;;  %v65_v14 = vld [vmem:[%s823_s0 + $0x160] sm:$0xff]  ;;  %v115_v21 = vpack.c.bf16 %v82_v10, %v81_v9  ;;  %v52_v22 = vld [vmem:[%s823_s0 + $0xf8] sm:$0xff] }
  0x14   :  { %432 = vmatprep.subr.bf16.mxu1 %v113_v57  ;;  %v66_v15 = vld [vmem:[%s823_s0 + $0x168] sm:$0xff]  ;;  %v120_v24 = vld [vmem:[%s824_s1 + $0x18] sm:$0xff]  ;;  %v83_v26 = vld [vmem:[%s823_s0 + $0x1f0] sm:$0xff]  ;;  %v91_v29 = vpack.c.bf16 %v34_v13, %v33_v11  ;;  %v100_v31 = vpack.c.bf16 %v52_v22, %v51_v18 }
  0x15   :  { %v118_v19 = vld [vmem:[%s824_s1 + $0x8] sm:$0xff]  ;;  %v124_v25 = vld [vmem:[%s824_s1 + $0x38] sm:$0xff]  ;;  %v107_v30 = vpack.c.bf16 %v66_v15, %v65_v14  ;;  %v35_v32 = vld [vmem:[%s823_s0 + $0x70] sm:$0xff] }
  0x16   :  { %405 = vmatpush3.bf16.msra.mxu0 %v89_v63  ;;  %v122_v20 = vld [vmem:[%s824_s1 + $0x28] sm:$0xff]  ;;  %v84_v27 = vld [vmem:[%s823_s0 + $0x1f8] sm:$0xff]  ;;  %v136_v28 = vpack.c.bf16 %v124_v25, %v120_v24  ;;  %v67_v35 = vld [vmem:[%s823_s0 + $0x170] sm:$0xff] }
  0x17   :  { %433 = vmatpush3.bf16.msra.mxu1 %v105_v0  ;;  %406 = vmatprep.subr.bf16.mxu0 %v98_v1  ;;  %v134_v23 = vpack.c.bf16 %v122_v20, %v118_v19  ;;  %v36_v33 = vld [vmem:[%s823_s0 + $0x78] sm:$0xff]  ;;  %v116_v34 = vpack.c.bf16 %v84_v27, %v83_v26  ;;  %v141_v37 = vld [vmem:[%s825_s2] sm:$0xff]  ;;  %v143_v40 = vld [vmem:[%s825_s2 + $0x10] sm:$0xff] }
  0x18   :  { %434 = vmatprep.subr.bf16.mxu1 %v114_v5  ;;  %v68_v36 = vld [vmem:[%s823_s0 + $0x178] sm:$0xff]  ;;  %246 = vmatprep.mubr.bf16.mxu1 %v136_v28  ;;  %v117_v38 = vld [vmem:[%s824_s1] sm:$0xff]  ;;  %v92_v41 = vpack.c.bf16 %v36_v33, %v35_v32  ;;  %v119_v42 = vld [vmem:[%s824_s1 + $0x10] sm:$0xff] }
  0x19   :  { %197 = vmatprep.mubr.bf16.mxu0 %v134_v23  ;;  %v121_v39 = vld [vmem:[%s824_s1 + $0x20] sm:$0xff]  ;;  %147 = vperm.xlu0 %453, %v141_v37   ;;  %v123_v43 = vld [vmem:[%s824_s1 + $0x30] sm:$0xff]  ;;  %v142_v44 = vld [vmem:[%s825_s2 + $0x8] sm:$0xff]  ;;  %v108_v45 = vpack.c.bf16 %v68_v36, %v67_v35 }
  0x1a   :  { %407 = vmatpush3.bf16.msra.mxu0 %v90_v12  ;;  %157 = vperm.xlu1 %454, %v143_v40   ;;  %v126_v46 = vld [vmem:[%s824_s1 + $0x48] sm:$0xff]  ;;  %v144_v48 = vld [vmem:[%s825_s2 + $0x18] sm:$0xff]  ;;  %v133_v51 = vpack.c.bf16 %v121_v39, %v117_v38  ;;  %v135_v52 = vpack.c.bf16 %v123_v43, %v119_v42  ;;  %v125_v55 = vld [vmem:[%s824_s1 + $0x40] sm:$0xff] }
  0x1b   :  { %435 = vmatpush3.bf16.msra.mxu1 %v106_v16  ;;  %408 = vmatprep.subr.bf16.mxu0 %v99_v17  ;;  %v130_v47 = vld [vmem:[%s824_s1 + $0x68] sm:$0xff]  ;;  %v128_v49 = vld [vmem:[%s824_s1 + $0x58] sm:$0xff]  ;;  %v129_v56 = vld [vmem:[%s824_s1 + $0x60] sm:$0xff] }
  0x1c   :  { %436 = vmatprep.subr.bf16.mxu1 %v115_v21  ;;  %v132_v50 = vld [vmem:[%s824_s1 + $0x78] sm:$0xff]  ;;  %v138_v53 = vpack.c.bf16 %v130_v47, %v126_v46  ;;  %v127_v57 = vld [vmem:[%s824_s1 + $0x50] sm:$0xff]  ;;  %v137_v59 = vpack.c.bf16 %v129_v56, %v125_v55  ;;  %v267_v46 = vld [vmem:[%s826_s4] sm:$0xff] }
  0x1d   :  { %152 = vperm.xlu0 %453, %v142_v44   ;;  %v140_v54 = vpack.c.bf16 %v132_v50, %v128_v49  ;;  %v131_v58 = vld [vmem:[%s824_s1 + $0x70] sm:$0xff] }
  0x1e   :  { %409 = vmatpush3.bf16.msra.mxu0 %v91_v29  ;;  %162 = vperm.xlu1 %454, %v144_v48   ;;  %v139_v60 = vpack.c.bf16 %v131_v58, %v127_v57 }
  0x1f   :  { %437 = vmatpush3.bf16.msra.mxu1 %v107_v30  ;;  %410 = vmatprep.subr.bf16.mxu0 %v100_v31 }
  0x20   :  { %438 = vmatprep.subr.bf16.mxu1 %v116_v34 }
  0x22   :  { %411 = vmatpush3.bf16.msra.mxu0 %v92_v41 }
  0x23   :  { %439 = vmatpush3.bf16.msra.mxu1 %v108_v45  ;;  %v268_v45 = vld [vmem:[%s826_s4 + $0x8] sm:$0xff] }
  0x25   :  { %198 = vmatmul.mubr.bf16.vlgmr.msra.gmra.mrb[0].mxu0 %v133_v51 }
  0x26   :  { %247 = vmatmul.mubr.bf16.vlgmr.msra.gmra.mrb[0].mxu1 %v135_v52  ;;  %205 = vmatprep.mubr.bf16.mxu0 %v138_v53 }
  0x27   :  { %254 = vmatprep.mubr.bf16.mxu1 %v140_v54 }
  0x2d   :  { %206 = vmatmul.mubr.bf16.gmra.mrb[4].mxu0 %v137_v59 }
  0x2e   :  { %255 = vmatmul.mubr.bf16.gmra.mrb[4].mxu1 %v139_v60 }
  0x98   :  { %v148_v61 = vpop.permute.xlu0 %147 }
  0x99   :  { %v158_v14 = vpop.permute.xlu1 %157 }
  0x9c   :  { %v153_v10 = vpop.permute.xlu0 %152 }
  0x9d   :  { %v163_v33 = vpop.permute.xlu1 %162 }
  0xf8   :  { %v412_v62 = vpop.f32.mrb[0].mxu0 }
  0xf9   :  { %v440_v63 = vpop.f32.mrb[0].mxu1  ;;  %v413_v0 = vpop.f32.mrb[1].mxu0 }
  0xfa   :  { %v414_v1 = vadd.f32 %v413_v0, %v412_v62  ;;  %v441_v2 = vpop.f32.mrb[1].mxu1  ;;  %v415_v3 = vpop.f32.mrb[2].mxu0 }
  0xfb   :  { %v442_v4 = vadd.f32 %v441_v2, %v440_v63  ;;  %v443_v5 = vpop.f32.mrb[2].mxu1  ;;  %v416_v6 = vpop.f32.mrb[3].mxu0 }
  0xfc   :  { %v200_v7 = vadd.f32 %v414_v1, %v148_v61  ;;  %v417_v8 = vadd.f32 %v416_v6, %v415_v3  ;;  %v444_v9 = vpop.f32.mrb[3].mxu1 }
  0xfd   :  { %v445_v11 = vadd.f32 %v444_v9, %v443_v5 }
  0xfe   :  { %v746_v12 = vadd.f32 %v442_v4, %v200_v7  ;;  %v203_v13 = vadd.f32 %v417_v8, %v153_v10 }
 0x100   :  { %v748_v15 = vadd.f32 %v445_v11, %v203_v13  ;;  %v418_v16 = vpop.f32.mrb[4].mxu0  ;;  %v272_v17 = vsel %vm271_vm0, %v746_v12, 0.0  ;;  %v288_v25 = vmul.f32 %v746_v12, %v746_v12 }
 0x101   :  { %v446_v18 = vpop.f32.mrb[4].mxu1  ;;  %v419_v19 = vpop.f32.mrb[5].mxu0  ;;  %273 = vadd.xlane.f32.xlu0 %v272_v17 }
 0x102   :  { %v420_v20 = vadd.f32 %v419_v19, %v418_v16  ;;  %v447_v21 = vpop.f32.mrb[5].mxu1  ;;  %v421_v22 = vpop.f32.mrb[6].mxu0  ;;  %v275_v23 = vsel %vm271_vm0, %v748_v15, 0.0  ;;  %v289_v24 = vmul.f32 %v748_v15, %v748_v15  ;;  %v292_v37 = vsel %vm271_vm0, %v288_v25, 0.0  ;;  %v264_v16 = vld [vmem:[%s827_s3 + $0x8] sm:$0xff]  ;;  %v263_v19 = vld [vmem:[%s827_s3] sm:$0xff] }
 0x103   :  { %v448_v26 = vadd.f32 %v447_v21, %v446_v18  ;;  %v449_v27 = vpop.f32.mrb[6].mxu1  ;;  %v422_v28 = vpop.f32.mrb[7].mxu0  ;;  %276 = vadd.xlane.f32.xlu1 %v275_v23  ;;  %v269_v23 = vld [vmem:[%s826_s4 + $0x10] sm:$0xff] }
 0x104   :  { %v208_v29 = vadd.f32 %v420_v20, %v158_v14  ;;  %v423_v30 = vadd.f32 %v422_v28, %v421_v22  ;;  %v450_v31 = vpop.f32.mrb[7].mxu1  ;;  %v295_v32 = vsel %vm271_vm0, %v289_v24, 0.0  ;;  %v265_v24 = vld [vmem:[%s827_s3 + $0x10] sm:$0xff] }
 0x105   :  { %v451_v34 = vadd.f32 %v450_v31, %v449_v27  ;;  %296 = vadd.xlane.f32.xlu0 %v295_v32  ;;  %v266_v27 = vld [vmem:[%s827_s3 + $0x18] sm:$0xff] }
 0x106   :  { %v759_v35 = vadd.f32 %v448_v26, %v208_v29  ;;  %v211_v36 = vadd.f32 %v423_v30, %v163_v33  ;;  %v270_v30 = vld [vmem:[%s826_s4 + $0x18] sm:$0xff] }
 0x107   :  { %293 = vadd.xlane.f32.xlu1 %v292_v37 }
 0x108   :  { %v762_v38 = vadd.f32 %v451_v34, %v211_v36  ;;  %v278_v39 = vsel %vm271_vm0, %v759_v35, 0.0  ;;  %v290_v40 = vmul.f32 %v759_v35, %v759_v35 }
 0x109   :  { %279 = vadd.xlane.f32.xlu0 %v278_v39 }
 0x10a   :  { %v298_v41 = vsel %vm271_vm0, %v290_v40, 0.0  ;;  %v281_v42 = vsel %vm271_vm0, %v762_v38, 0.0  ;;  %v291_v43 = vmul.f32 %v762_v38, %v762_v38 }
 0x10b   :  { %299 = vadd.xlane.f32.xlu1 %v298_v41 }
 0x10c   :  { %v301_v44 = vsel %vm271_vm0, %v291_v43, 0.0 }
 0x10d   :  { %282 = vadd.xlane.f32.xlu0 %v281_v42 }
 0x111   :  { %302 = vadd.xlane.f32.xlu0 %v301_v44 }
 0x11c   :  { %367 = vperm.xlu1 %454, %v268_v45  }
 0x127   :  { %362 = vperm.xlu0 %453, %v267_v46  }
 0x18e   :  { %v274_v47 = vpop.xlane.xlu0 %273 }
 0x18f   :  { %v780_v49 = vmul.f32 0.03125, %v274_v47 }
 0x190   :  { %v277_v48 = vpop.xlane.xlu1 %276 }
 0x191   :  { %v285_v50 = vmul.f32 0.03125, %v277_v48  ;;  %v308_v55 = vmul.f32 %v780_v49, %v780_v49  ;;  %v332_v37 = vsub.f32 %v746_v12, %v780_v49 }
 0x192   :  { %v297_v51 = vpop.xlane.xlu0 %296 }
 0x193   :  { %v309_v52 = vmul.f32 %v285_v50, %v285_v50  ;;  %v305_v53 = vmul.f32 0.03125, %v297_v51  ;;  %v333_v33 = vsub.f32 %v748_v15, %v285_v50 }
 0x194   :  { %v294_v54 = vpop.xlane.xlu1 %293 }
 0x195   :  { %v313_v56 = vsub.f32 %v305_v53, %v309_v52  ;;  %v304_v57 = vmul.f32 0.03125, %v294_v54 }
 0x196   :  { %v280_v58 = vpop.xlane.xlu0 %279 }
 0x197   :  { %v317_v59 = vmax.f32 %v313_v56, 0.0  ;;  %v312_v60 = vsub.f32 %v304_v57, %v308_v55  ;;  %v286_v61 = vmul.f32 0.03125, %v280_v58 }
 0x198   :  { %v300_v62 = vpop.xlane.xlu1 %299 }
 0x199   :  { %v321_v63 = vadd.f32 1e-05, %v317_v59  ;;  %v316_v0 = vmax.f32 %v312_v60, 0.0  ;;  %v310_v1 = vmul.f32 %v286_v61, %v286_v61  ;;  %v306_v2 = vmul.f32 0.03125, %v300_v62 }
 0x19a   :  { %v283_v3 = vpop.xlane.xlu0 %282  ;;  %v334_v44 = vsub.f32 %v759_v35, %v286_v61 }
 0x19b   :  { %455 = vrsqrt.f32 %v321_v63  ;;  %v320_v4 = vadd.f32 1e-05, %v316_v0  ;;  %v314_v5 = vsub.f32 %v306_v2, %v310_v1  ;;  %v287_v6 = vmul.f32 0.03125, %v283_v3 }
 0x19c   :  { %v368_v32 = vpop.permute.xlu1 %367 }
 0x19d   :  { %457 = vrsqrt.f32 %v320_v4  ;;  %v318_v7 = vmax.f32 %v314_v5, 0.0  ;;  %v311_v10 = vmul.f32 %v287_v6, %v287_v6  ;;  %v335_v35 = vsub.f32 %v762_v38, %v287_v6 }
 0x19e   :  { %v303_v8 = vpop.xlane.xlu0 %302 }
 0x19f   :  { %v322_v9 = vadd.f32 1e-05, %v318_v7  ;;  %v307_v11 = vmul.f32 0.03125, %v303_v8 }
 0x1a1   :  { %459 = vrsqrt.f32 %v322_v9  ;;  %v315_v13 = vsub.f32 %v307_v11, %v311_v10 }
 0x1a3   :  { %v319_v14 = vmax.f32 %v315_v13, 0.0 }
 0x1a5   :  { %v456_v17 = vpop.eup %455  ;;  %v323_v18 = vadd.f32 1e-05, %v319_v14 }
 0x1a6   :  { %v329_v20 = vmul.f32 %v456_v17, %v264_v16  ;;  %v363_v31 = vpop.permute.xlu0 %362 }
 0x1a7   :  { %v458_v21 = vpop.eup %457  ;;  %461 = vrsqrt.f32 %v323_v18 }
 0x1a8   :  { %343 = vperm.xlu0 %453, %v329_v20   ;;  %v328_v22 = vmul.f32 %v458_v21, %v263_v19 }
 0x1aa   :  { %338 = vperm.xlu1 %454, %v328_v22  }
 0x1ab   :  { %v460_v25 = vpop.eup %459 }
 0x1ac   :  { %372 = vperm.xlu0 %453, %v269_v23   ;;  %v330_v26 = vmul.f32 %v460_v25, %v265_v24 }
 0x1ae   :  { %348 = vperm.xlu1 %454, %v330_v26  }
 0x1b1   :  { %v462_v28 = vpop.eup %461 }
 0x1b2   :  { %v331_v29 = vmul.f32 %v462_v28, %v266_v27 }
 0x1b4   :  { %353 = vperm.xlu1 %454, %v331_v29  }
 0x1b8   :  { %377 = vperm.xlu1 %454, %v270_v30  }
 0x227   :  { %v344_v34 = vpop.permute.xlu0 %343 }
 0x228   :  { %v357_v36 = vmul.f32 %v344_v34, %v333_v33 }
 0x229   :  { %v339_v39 = vpop.permute.xlu1 %338 }
 0x22a   :  { %v381_v40 = vadd.f32 %v368_v32, %v357_v36  ;;  %v356_v41 = vmul.f32 %v339_v39, %v332_v37 }
 0x22b   :  { %v373_v47 = vpop.permute.xlu0 %372 }
 0x22c   :  { %v385_v42 = vmax.f32 %v381_v40, 0.0  ;;  %v380_v43 = vadd.f32 %v363_v31, %v356_v41 }
 0x22d   :  { %v349_v45 = vpop.permute.xlu1 %348 }
 0x22e   :  { %389 = vst.msk [vmem:[%s828_s5 + $0x8] sm:$0xff] %vm271_vm0, %v385_v42  ;;  %v384_v46 = vmax.f32 %v380_v43, 0.0  ;;  %v358_v15 = vmul.f32 %v349_v45, %v334_v44 }
 0x230   :  { %388 = vst.msk [vmem:[%s828_s5] sm:$0xff] %vm271_vm0, %v384_v46  ;;  %v382_v12 = vadd.f32 %v373_v47, %v358_v15 }
 0x232   :  { %v386_v48 = vmax.f32 %v382_v12, 0.0 }
 0x233   :  { %v354_v49 = vpop.permute.xlu1 %353 }
 0x234   :  { %390 = vst.msk [vmem:[%s828_s5 + $0x10] sm:$0xff] %vm271_vm0, %v386_v48  ;;  %v359_v50 = vmul.f32 %v354_v49, %v335_v35 }
 0x237   :  { %v378_v51 = vpop.permute.xlu1 %377 }
 0x238   :  { %v383_v52 = vadd.f32 %v378_v51, %v359_v50 }
 0x23a   :  { %v387_v53 = vmax.f32 %v383_v52, 0.0 }
 0x23c   :  { %391 = vst.msk [vmem:[%s828_s5 + $0x18] sm:$0xff] %vm271_vm0, %v387_v53 }

// kernel: decompose_net_forward.16
= control target key start
LH: loop header
LB: loop body
LE: loop exit
PB: predicated region body
PF: predicated region fallthrough
CT: control target
= control target key end

     0   :  { %v330_v3 = vmov 0.0|0.0   ;;  %vm331_vm0 = vmmov 0   ;;  %v332_v6 = vmov 0.0   ;;  %v333_v8 = vmov 0   ;;  %s431_s0 = inlined_call_operand.vmem [shape: f32[32,32], index: 0, kind: input, shape index: {}]   ;;  %s432_s1 = inlined_call_operand.vmem [shape: f32[8,32], index: 1, kind: input, shape index: {}]   ;;  %s433_s2 = inlined_call_operand.vmem [shape: f32[32,8], index: 2, kind: input, shape index: {}]   ;;  %s434_s3 = inlined_call_operand.vmem [shape: f32[8,1], index: 3, kind: input, shape index: {}]   ;;  %s435_s4 = inlined_call_operand.vmem [shape: f32[32,32], index: 4, kind: output, shape index: {0}]   ;;  %s436_s5 = inlined_call_operand.hbm [shape: s32[1,32], index: 5, kind: output, shape index: {1}]  }
   0x1   :  { %v20_v0 = vld [vmem:[%s431_s0] sm:$0xff]  ;;  %v21_v1 = vld [vmem:[%s431_s0 + $0x8] sm:$0xff]  ;;  %v22_v2 = vld [vmem:[%s431_s0 + $0x10] sm:$0xff]  ;;  %293 = vmatprep.subr.bf16.mxu0 %v330_v3  ;;  %282 = vmatprep.mubr.msk.f32.mxu0 %vm331_vm0, %v332_v6 }
   0x2   :  { %v294_v4 = vpack.c.bf16 %v21_v1, %v20_v0  ;;  %v23_v5 = vld [vmem:[%s431_s0 + $0x18] sm:$0xff]  ;;  %v29_v7 = vld [vmem:[%s434_s3] sm:$0xff]  ;;  %305 = vset.pattern.permute.xlu0 %v333_v8 }
   0x3   :  { %11 = vsyncpa [#allocation3], 0  ;;  %v297_v9 = vpack.c.bf16 %v23_v5, %v22_v2  ;;  %107 = vperm.xlu0 %305, %v29_v7   ;;  %v24_v10 = vld [vmem:[%s432_s1] sm:$0xff]  ;;  %vm30_vm1 = vcmask 261120   ;;  %vm135_vm2 = vcmask 64512   ;;  %v111_v21 = vlaneseq  ;;  %v26_v34 = vld [vmem:[%s433_s2 + $0x8] sm:$0xff] }
   0x4   :  { %295 = vmatpush3.bf16.msra.mxu0 %v294_v4  ;;  %v25_v11 = vld [vmem:[%s433_s2] sm:$0xff]  ;;  %vm237_vm6 = vcmask 253952   ;;  %v334_v35 = vmov 1.0   ;;  %v27_v36 = vld [vmem:[%s433_s2 + $0x10] sm:$0xff]  ;;  %v28_v37 = vld [vmem:[%s433_s2 + $0x18] sm:$0xff]  ;;  %s335_s10 = smov [#allocation2]  }
   0x5   :  { %296 = vmatprep.subr.bf16.mxu0 %v330_v3  ;;  %287 = vmatprep.mubr.msk.f32.mxu1 %vm135_vm2, %v25_v11  ;;  %v112_v24 = vshrl.u32 %v111_v21, 7  ;;  %s247_s11 = sshll.u32 %s335_s10, 4  ;;  %s248_s11 = int_to_ptr.vmem [resolvable:$true] %s247_s11 }
   0x6   :  { %s306_s12 = scalar_lea.vmem %s248_s11, 16  ;;  %s310_s13 = scalar_lea.vmem %s248_s11, 32 }
   0x7   :  { %p307_p0 = scmp.ne.s32.totalorder %s248_s11, %s306_s12  ;;  %p311_p1 = scmp.lt.s32.totalorder %s248_s11, %s248_s11 }
   0x8   :  { %298 = vmatpush3.bf16.msra.mxu0 %v297_v9  ;;  %p312_p2 = scmp.lt.s32.totalorder %s310_s13, %s306_s12 }
   0xa   :  { %p313_p3 = por %p312_p2, %p311_p1 }
   0xb   :  { %283 = vmatmul.mubr.msk.f32.vlgmr.msra.gmra.mrb[0].mxu0 %vm30_vm1, %v24_v10 }
   0xc   :  { %p314_p4 = pnand %p313_p3, %p307_p0 }
  0x82   :  { %v108_v13 = vpop.permute.xlu0 %107 }
  0xde   :  { %v100_v12 = vpop.f32.mrb[0].mxu0 }
  0xdf   :  { %v104_v14 = vmul.f32 2.0, %v100_v12  ;;  %v284_v15 = vpop.f32.mrb[1].mxu0 }
  0xe1   :  { %v110_v16 = vsub.f32 %v108_v13, %v104_v14 }
  0xe3   :  { %v113_v17 = vsel %vm30_vm1, %v110_v16, inf }
  0xe4   :  { %v114_v18 = vrot.slane %v113_v17, 4 }
  0xe6   :  { %v115_v19 = vmin.f32 %v113_v17, %v114_v18 }
  0xe8   :  { %v116_v20 = vrot.slane %v115_v19, 2 }
  0xea   :  { %v117_v22 = vmin.f32 %v115_v19, %v116_v20 }
  0xec   :  { %v118_v23 = vrot.slane %v117_v22, 1 }
  0xee   :  { %v119_v25 = vmin.f32 %v117_v22, %v118_v23 }
  0xf0   :  { %vm120_vm3 = vcmp.le.f32.partialorder %v110_v16, %v119_v25 }
  0xf1   :  { %v121_v26 = vsel %vm120_vm3, %v112_v24, 8 }
  0xf2   :  { %v122_v27 = vsel %vm30_vm1, %v121_v26, 2147483647 }
  0xf3   :  { %v123_v28 = vrot.slane %v122_v27, 4 }
  0xf5   :  { %vm124_vm4 = vcmp.lt.s32.totalorder %v122_v27, %v123_v28 }
  0xf6   :  { %v125_v29 = vsel %vm124_vm4, %v122_v27, %v123_v28 }
  0xf7   :  { %v126_v30 = vrot.slane %v125_v29, 2 }
  0xf9   :  { %vm127_vm5 = vcmp.lt.s32.totalorder %v125_v29, %v126_v30 }
  0xfa   :  { %v128_v31 = vsel %vm127_vm5, %v125_v29, %v126_v30 }
  0xfb   :  { %v129_v32 = vrot.slane %v128_v31, 1 }
  0xfd   :  { %vm130_vm7 = vcmp.lt.s32.totalorder %v128_v31, %v129_v32 }
  0xfe   :  { %v131_v33 = vsel %vm130_vm7, %v128_v31, %v129_v32 }
  0xff   :  { %vm132_vm8 = vcmp.eq.s32.totalorder %v112_v24, %v131_v33  ;;  %238 = vst.msk [vmem:[#allocation2] sm:$0x1] %vm237_vm6, %v131_v33 }
 0x100   :  { %285 = vmatprep.subr.msk.mxu1 %vm132_vm8, %v334_v35 }
 0x101   :  { %286 = vmatpush3.msk.msra.mxu1 %vm132_vm8, %v334_v35 }
 0x102   :  { %288 = vmatmul.mubr.msk.f32.vlgmr.msra.gmra.mrb[0].mxu1 %vm135_vm2, %v26_v34 }
 0x103   :  { %290 = vmatprep.mubr.msk.f32.mxu1 %vm135_vm2, %v27_v36 }
 0x106   :  { %291 = vmatmul.mubr.msk.f32.gmra.mrb[2].mxu1 %vm135_vm2, %v28_v37 }
 0x107   :  { %317 = shalt.err (!%p314_p4)
}
 0x108   :  { %s318_s16 = scalar_lea.hbm %s436_s5, 16 }
 0x109   :  { %p319_p5 = scmp.ne.s32.totalorder %s436_s5, %s318_s16  ;;  %p322_p6 = scmp.lt.u32.totalorder %s318_s16, %s436_s5 }
 0x10b   :  { %p324_p7 = pnand %p322_p6, %p319_p5 }
 0x10d   :  { %327 = shalt.err (!%p324_p7)
}
 0x10e   :  { %250 = dma.vmem_to_hbm [thread:$0]  %s248_s11, 16, %s436_s5, [#allocation3]  }
 0x1d5   :  { %v289_v38 = vpop.f32.mrb[0].mxu1 }
 0x1d6   :  { %234 = vst.msk [vmem:[%s435_s4 + $0x8] sm:$0xff] %vm30_vm1, %v289_v38  ;;  %v214_v39 = vpop.f32.mrb[1].mxu1 }
 0x1d7   :  { %233 = vst.msk [vmem:[%s435_s4] sm:$0xff] %vm30_vm1, %v214_v39 }
 0x1d9   :  { %v292_v40 = vpop.f32.mrb[2].mxu1 }
 0x1da   :  { %236 = vst.msk [vmem:[%s435_s4 + $0x18] sm:$0xff] %vm30_vm1, %v292_v40  ;;  %v224_v41 = vpop.f32.mrb[3].mxu1 }
 0x1db   :  { %235 = vst.msk [vmem:[%s435_s4 + $0x10] sm:$0xff] %vm30_vm1, %v224_v41 }
 0x1dc   :  { %328 = dma.done.wait [#allocation3], 16  }
 0x1dd   :  { %329 = vsyncadd [#allocation3], 4294967280 }
 0x1de   :  { %256 = vsyncpa [#allocation3], 1 }

// kernel: decompose_net_forward.15
= control target key start
LH: loop header
LB: loop body
LE: loop exit
PB: predicated region body
PF: predicated region fallthrough
CT: control target
= control target key end

     0   :  { %v46_v0 = vlaneseq  ;;  %s830_s15 = smov 5   ;;  %s831_s16 = smov 1   ;;  %vm274_vm0 = vcmask 261120   ;;  %s1238_s1 = inlined_call_operand.vmem [shape: f32[9,32], index: 1, kind: input, shape index: {}]   ;;  %s1239_s0 = inlined_call_operand.vmem [shape: f32[32,42], index: 0, kind: input, shape index: {}]   ;;  %s1240_s2 = inlined_call_operand.vmem [shape: f32[32,288], index: 2, kind: input, shape index: {}]   ;;  %s1241_s3 = inlined_call_operand.vmem [shape: f32[32,1], index: 3, kind: input, shape index: {}]   ;;  %s1242_s7 = inlined_call_operand.vmem [shape: f32[32,1], index: 7, kind: input, shape index: {}]   ;;  %s1243_s6 = inlined_call_operand.vmem [shape: f32[32,1], index: 6, kind: input, shape index: {}]   ;;  %s1244_s5 = inlined_call_operand.vmem [shape: f32[32,1], index: 5, kind: input, shape index: {}]   ;;  %s1245_s4 = inlined_call_operand.vmem [shape: f32[32,32], index: 4, kind: input, shape index: {}]   ;;  %s1246_s9 = inlined_call_operand.vmem [shape: f32[32,1], index: 9, kind: input, shape index: {}]   ;;  %s1247_s8 = inlined_call_operand.vmem [shape: f32[32,1], index: 8, kind: input, shape index: {}]   ;;  %s1248_s10 = inlined_call_operand.vmem [shape: f32[32,32], index: 10, kind: output, shape index: {}]  }
   0x1   :  { %v44_v2 = vld [vmem:[%s1238_s1] sm:$0xff]  ;;  %s832_s17 = smov 6   ;;  %s833_s18 = smov 8   ;;  %v738_v17 = vld [vmem:[%s1238_s1 + $0x8] ss:$0 sm:$0xff]  ;;  %v927_v24 = vld [vmem:[%s1239_s0 + $0x10] sm:$0xff] }
   0x2   :  { %v47_v1 = vshrl.u32 %v46_v0, 7  ;;  %s834_s19 = smov 2   ;;  %s835_s20 = smov 9   ;;  %v911_v18 = vld [vmem:[%s1239_s0] sm:$0xff]  ;;  %v916_v19 = vld [vmem:[%s1239_s0 + $0x8] sm:$0xff]  ;;  %v932_v25 = vld [vmem:[%s1239_s0 + $0x18] sm:$0xff] }
   0x3   :  { %s836_s23 = smov 4   ;;  %s837_s24 = smov 10   ;;  %v919_v21 = vmax.f32 %v911_v18, 0.0  ;;  %v922_v22 = vmax.f32 %v916_v19, 0.0  ;;  %v941_v28 = vmax.f32 %v927_v24, 0.0  ;;  %v944_v29 = vmax.f32 %v932_v25, 0.0 }
   0x4   :  { %v100_v3 = vsub.s32 4, %v47_v1  ;;  %v114_v4 = vsub.s32 5, %v47_v1  ;;  %v58_v5 = vsub.s32 1, %v47_v1  ;;  %v128_v6 = vsub.s32 6, %v47_v1  ;;  %s838_s0 = smov 123   ;;  %s839_s12 = smov 127  }
   0x5   :  { %v72_v10 = vsub.s32 2, %v47_v1  ;;  %v142_v12 = vsub.s32 7, %v47_v1  ;;  %v86_v14 = vsub.s32 3, %v47_v1  ;;  %v48_v20 = vsub.s32 0, %v47_v1  ;;  %s840_s13 = smov 122   ;;  %s841_s14 = smov 126  }
   0x6   :  { %v101_v7 = vrot.slane %v44_v2, %v100_v3  ;;  %v59_v8 = vrot.slane %v44_v2, %v58_v5  ;;  %v115_v9 = vrot.slane %v44_v2, %v114_v4  ;;  %v129_v11 = vrot.slane %v44_v2, %v128_v6  ;;  %s844_s25 = smov 119   ;;  %s845_s26 = smov 118  }
   0x7   :  { %v73_v13 = vrot.slane %v44_v2, %v72_v10  ;;  %v143_v15 = vrot.slane %v44_v2, %v142_v12  ;;  %v87_v16 = vrot.slane %v44_v2, %v86_v14  ;;  %v49_v23 = vrot.slane %v44_v2, %v48_v20  ;;  %v233_v14 = vld [vmem:[%s1240_s2 + $0x8] sm:$0xff] }
   0x8   :  { %103 = vrot.lane.b32.xlu0 %v101_v7, %s830_s15  ;;  %61 = vrot.lane.b32.xlu1 %v59_v8, %s831_s16  ;;  %s842_s15 = smov 120  }
   0x9   :  { %v935_v26 = vmul.f32 %v49_v23, %v919_v21  ;;  %v938_v27 = vmul.f32 %v49_v23, %v922_v22  ;;  %v949_v31 = vmul.f32 %v49_v23, %v941_v28  ;;  %v952_v32 = vmul.f32 %v49_v23, %v944_v29 }
   0xb   :  { %v54_v30 = vpack.c.bf16 %v938_v27, %v935_v26  ;;  %v55_v33 = vpack.c.bf16 %v952_v32, %v949_v31  ;;  %v232_v32 = vld [vmem:[%s1240_s2] sm:$0xff] }
   0xc   :  { %117 = vrot.lane.b32.xlu0 %v115_v9, %s832_s17  ;;  %131 = vrot.lane.b32.xlu1 %v129_v11, %s833_s18 }
  0x10   :  { %75 = vrot.lane.b32.xlu0 %v73_v13, %s834_s19  ;;  %145 = vrot.lane.b32.xlu1 %v143_v15, %s835_s20  ;;  %v236_v15 = vld [vmem:[%s1240_s2 + $0x20] sm:$0xff]  ;;  %s843_s20 = smov 124  }
  0x11   :  { %v245_v20 = vpack.c.bf16 %v236_v15, %v233_v14 }
  0x13   :  { %313 = vmatprep.mubr.bf16.mxu0 %v245_v20 }
  0x14   :  { %89 = vrot.lane.b32.xlu0 %v87_v16, %s836_s23  ;;  %159 = vrot.lane.b32.xlu1 %v738_v17, %s837_s24 }
  0x7a   :  { %v104_v34 = vpop.permute.xlu0 %103  ;;  %v62_v35 = vpop.permute.xlu1 %61 }
  0x7b   :  { %v106_v36 = vmul.f32 %v104_v34, %v919_v21  ;;  %v107_v37 = vmul.f32 %v104_v34, %v922_v22  ;;  %v108_v38 = vmul.f32 %v104_v34, %v941_v28  ;;  %v109_v39 = vmul.f32 %v104_v34, %v944_v29 }
  0x7c   :  { %v64_v40 = vmul.f32 %v62_v35, %v919_v21  ;;  %v65_v41 = vmul.f32 %v62_v35, %v922_v22  ;;  %v66_v45 = vmul.f32 %v62_v35, %v941_v28  ;;  %v67_v48 = vmul.f32 %v62_v35, %v944_v29 }
  0x7d   :  { %v111_v42 = vpack.c.bf16 %v109_v39, %v108_v38  ;;  %v110_v43 = vpack.c.bf16 %v107_v37, %v106_v36  ;;  %v234_v38 = vld [vmem:[%s1240_s2 + $0x10] sm:$0xff]  ;;  %v237_v39 = vld [vmem:[%s1240_s2 + $0x28] sm:$0xff] }
  0x7e   :  { %v118_v44 = vpop.permute.xlu0 %117  ;;  %v68_v49 = vpack.c.bf16 %v65_v41, %v64_v40  ;;  %v132_v51 = vpop.permute.xlu1 %131  ;;  %v69_v57 = vpack.c.bf16 %v67_v48, %v66_v45  ;;  %v252_v45 = vld [vmem:[%s1241_s3 + $0x10] sm:$0xff] }
  0x7f   :  { %v120_v46 = vmul.f32 %v118_v44, %v919_v21  ;;  %v121_v47 = vmul.f32 %v118_v44, %v922_v22  ;;  %196 = vrot.lane.b32.xlu1 %v111_v42, %s838_s0  ;;  %194 = vrot.lane.b32.xlu0 %v110_v43, %s838_s0  ;;  %v122_v52 = vmul.f32 %v118_v44, %v941_v28 }
  0x80   :  { %v123_v53 = vmul.f32 %v118_v44, %v944_v29  ;;  %v134_v58 = vmul.f32 %v132_v51, %v919_v21  ;;  %v135_v59 = vmul.f32 %v132_v51, %v922_v22  ;;  %v136_v3 = vmul.f32 %v132_v51, %v941_v28 }
  0x81   :  { %v124_v50 = vpack.c.bf16 %v121_v47, %v120_v46  ;;  %v137_v4 = vmul.f32 %v132_v51, %v944_v29  ;;  %v246_v42 = vpack.c.bf16 %v237_v39, %v234_v38  ;;  %v846_v44 = vmov 0   ;;  %v253_v46 = vld [vmem:[%s1241_s3 + $0x18] sm:$0xff] }
  0x82   :  { %v76_v54 = vpop.permute.xlu0 %75  ;;  %v125_v60 = vpack.c.bf16 %v123_v53, %v122_v52  ;;  %v138_v0 = vpack.c.bf16 %v135_v59, %v134_v58  ;;  %v146_v2 = vpop.permute.xlu1 %145  ;;  %813 = vset.pattern.permute.xlu1 %v846_v44  ;;  %812 = vset.pattern.permute.xlu0 %v846_v44  ;;  %v242_v58 = vld [vmem:[%s1240_s2 + $0x50] sm:$0xff] }
  0x83   :  { %170 = vrot.lane.b32.xlu1 %v68_v49, %s839_s12  ;;  %v78_v55 = vmul.f32 %v76_v54, %v919_v21  ;;  %v79_v56 = vmul.f32 %v76_v54, %v922_v22  ;;  %202 = vrot.lane.b32.xlu0 %v124_v50, %s840_s13  ;;  %v80_v61 = vmul.f32 %v76_v54, %v941_v28 }
  0x84   :  { %v81_v62 = vmul.f32 %v76_v54, %v944_v29  ;;  %v148_v8 = vmul.f32 %v146_v2, %v919_v21  ;;  %v149_v9 = vmul.f32 %v146_v2, %v922_v22  ;;  %v139_v10 = vpack.c.bf16 %v137_v4, %v136_v3  ;;  %783 = vmatprep.mubr.msk.bf16.mxu1 %vm274_vm0, %v246_v42  ;;  %v241_v3 = vld [vmem:[%s1240_s2 + $0x48] sm:$0xff] }
  0x85   :  { %v82_v63 = vpack.c.bf16 %v79_v56, %v78_v55  ;;  %v150_v23 = vmul.f32 %v146_v2, %v941_v28  ;;  %v151_v34 = vmul.f32 %v146_v2, %v944_v29  ;;  %v238_v2 = vld [vmem:[%s1240_s2 + $0x30] sm:$0xff] }
  0x86   :  { %v90_v1 = vpop.permute.xlu0 %89  ;;  %v83_v7 = vpack.c.bf16 %v81_v62, %v80_v61  ;;  %v152_v16 = vpack.c.bf16 %v149_v9, %v148_v8  ;;  %v160_v17 = vpop.permute.xlu1 %159  ;;  %v240_v62 = vld [vmem:[%s1240_s2 + $0x40] sm:$0xff]  ;;  %v247_v4 = vpack.c.bf16 %v241_v3, %v238_v2 }
  0x87   :  { %172 = vrot.lane.b32.xlu1 %v69_v57, %s839_s12  ;;  %204 = vrot.lane.b32.xlu0 %v125_v60, %s840_s13  ;;  %v92_v5 = vmul.f32 %v90_v1, %v919_v21  ;;  %v93_v6 = vmul.f32 %v90_v1, %v922_v22  ;;  %v94_v11 = vmul.f32 %v90_v1, %v941_v28  ;;  %v239_v57 = vld [vmem:[%s1240_s2 + $0x38] sm:$0xff] }
  0x88   :  { %v95_v12 = vmul.f32 %v90_v1, %v944_v29  ;;  %v164_v35 = vmul.f32 %v160_v17, %v941_v28  ;;  %v165_v36 = vmul.f32 %v160_v17, %v944_v29  ;;  %v162_v40 = vmul.f32 %v160_v17, %v919_v21  ;;  %v251_v21 = vld [vmem:[%s1241_s3 + $0x8] sm:$0xff] }
  0x89   :  { %v96_v13 = vpack.c.bf16 %v93_v6, %v92_v5  ;;  %v163_v41 = vmul.f32 %v160_v17, %v922_v22  ;;  %v153_v28 = vpack.c.bf16 %v151_v34, %v150_v23  ;;  %v250_v22 = vld [vmem:[%s1241_s3] sm:$0xff] }
  0x8a   :  { %v97_v37 = vpack.c.bf16 %v95_v12, %v94_v11  ;;  %v167_v29 = vpack.c.bf16 %v165_v36, %v164_v35 }
  0x8b   :  { %178 = vrot.lane.b32.xlu1 %v82_v63, %s841_s14  ;;  %210 = vrot.lane.b32.xlu0 %v138_v0, %s842_s15  ;;  %v166_v43 = vpack.c.bf16 %v163_v41, %v162_v40  ;;  %v243_v63 = vld [vmem:[%s1240_s2 + $0x58] sm:$0xff]  ;;  %v248_v0 = vpack.c.bf16 %v242_v58, %v239_v57 }
  0x8c   :  { %v249_v1 = vpack.c.bf16 %v243_v63, %v240_v62 }
  0x8f   :  { %180 = vrot.lane.b32.xlu1 %v83_v7, %s841_s14  ;;  %212 = vrot.lane.b32.xlu0 %v139_v10, %s842_s15 }
  0x93   :  { %186 = vrot.lane.b32.xlu1 %v96_v13, %s843_s20  ;;  %218 = vrot.lane.b32.xlu0 %v152_v16, %s844_s25 }
  0x97   :  { %188 = vrot.lane.b32.xlu1 %v97_v37, %s843_s20  ;;  %220 = vrot.lane.b32.xlu0 %v153_v28, %s844_s25 }
  0x9b   :  { %228 = vrot.lane.b32.xlu1 %v167_v29, %s845_s26  ;;  %226 = vrot.lane.b32.xlu0 %v166_v43, %s845_s26 }
  0x9f   :  { %261 = vperm.xlu1 %813, %v251_v21   ;;  %256 = vperm.xlu0 %812, %v250_v22  }
  0xa3   :  { %266 = vperm.xlu1 %813, %v252_v45   ;;  %271 = vperm.xlu0 %812, %v253_v46  }
  0xf1   :  { %v197_v47 = vpop.permute.xlu1 %196  ;;  %v195_v48 = vpop.permute.xlu0 %194 }
  0xf2   :  { %743 = vmatprep.subr.bf16.mxu0 %v195_v48 }
  0xf3   :  { %744 = vmatpush3.bf16.msra.mxu0 %v54_v30 }
  0xf4   :  { %745 = vmatprep.subr.bf16.mxu0 %v197_v47 }
  0xf5   :  { %v171_v49 = vpop.permute.xlu1 %170  ;;  %v203_v50 = vpop.permute.xlu0 %202 }
  0xf7   :  { %746 = vmatpush3.bf16.msra.mxu0 %v55_v33  ;;  %v235_v33 = vld [vmem:[%s1240_s2 + $0x18] sm:$0xff] }
  0xf8   :  { %747 = vmatprep.subr.bf16.mxu0 %v203_v50  ;;  %v244_v60 = vpack.c.bf16 %v235_v33, %v232_v32 }
  0xf9   :  { %v173_v51 = vpop.permute.xlu1 %172  ;;  %v205_v52 = vpop.permute.xlu0 %204 }
  0xfb   :  { %748 = vmatpush3.bf16.msra.mxu0 %v171_v49 }
  0xfc   :  { %749 = vmatprep.subr.bf16.mxu0 %v205_v52 }
  0xfd   :  { %v179_v53 = vpop.permute.xlu1 %178  ;;  %v211_v54 = vpop.permute.xlu0 %210 }
  0xff   :  { %750 = vmatpush3.bf16.msra.mxu0 %v173_v51 }
 0x100   :  { %751 = vmatprep.subr.bf16.mxu0 %v211_v54 }
 0x101   :  { %v181_v55 = vpop.permute.xlu1 %180  ;;  %v213_v56 = vpop.permute.xlu0 %212 }
 0x103   :  { %752 = vmatpush3.bf16.msra.mxu0 %v179_v53 }
 0x104   :  { %753 = vmatprep.subr.bf16.mxu0 %v213_v56  ;;  %v384_v56 = vld [vmem:[%s1242_s7 + $0x8] sm:$0xff] }
 0x105   :  { %v187_v26 = vpop.permute.xlu1 %186  ;;  %v219_v27 = vpop.permute.xlu0 %218 }
 0x107   :  { %754 = vmatpush3.bf16.msra.mxu0 %v181_v55  ;;  %v383_v55 = vld [vmem:[%s1242_s7] sm:$0xff] }
 0x108   :  { %755 = vmatprep.subr.bf16.mxu0 %v219_v27 }
 0x109   :  { %v221_v30 = vpop.permute.xlu0 %220  ;;  %v189_v31 = vpop.permute.xlu1 %188 }
 0x10b   :  { %756 = vmatpush3.bf16.msra.mxu0 %v187_v26 }
 0x10c   :  { %757 = vmatprep.subr.bf16.mxu0 %v221_v30 }
 0x10d   :  { %v227_v59 = vpop.permute.xlu0 %226  ;;  %v229_v61 = vpop.permute.xlu1 %228 }
 0x10e   :  { %779 = vmatprep.subr.bf16.mxu1 %v227_v59 }
 0x10f   :  { %758 = vmatpush3.bf16.msra.mxu0 %v189_v31  ;;  %780 = vmatpush3.bf16.msra.mxu1 %v227_v59 }
 0x110   :  { %781 = vmatprep.subr.bf16.mxu1 %v229_v61 }
 0x112   :  { %314 = vmatmul.mubr.bf16.vlgmr.msra.gmra.mrb[0].mxu0 %v244_v60 }
 0x113   :  { %782 = vmatpush3.bf16.msra.mxu1 %v229_v61  ;;  %321 = vmatprep.mubr.bf16.mxu0 %v248_v0 }
 0x116   :  { %784 = vmatmul.mubr.msk.bf16.vlgmr.msra.gmra.mrb[0].mxu1 %vm274_vm0, %v249_v1 }
 0x11a   :  { %322 = vmatmul.mubr.bf16.gmra.mrb[4].mxu0 %v247_v4 }
 0x11e   :  { %v257_v9 = vpop.permute.xlu0 %256  ;;  %v262_v14 = vpop.permute.xlu1 %261 }
 0x122   :  { %v267_v28 = vpop.permute.xlu1 %266  ;;  %v272_v22 = vpop.permute.xlu0 %271 }
 0x1e5   :  { %v759_v5 = vpop.f32.mrb[0].mxu0 }
 0x1e6   :  { %v760_v6 = vpop.f32.mrb[1].mxu0 }
 0x1e7   :  { %v761_v7 = vadd.f32 %v760_v6, %v759_v5  ;;  %v762_v8 = vpop.f32.mrb[2].mxu0 }
 0x1e8   :  { %v763_v10 = vpop.f32.mrb[3].mxu0 }
 0x1e9   :  { %v764_v11 = vadd.f32 %v763_v10, %v762_v8  ;;  %v785_v12 = vpop.f32.mrb[0].mxu1  ;;  %v316_v13 = vadd.f32 %v761_v7, %v257_v9 }
 0x1ea   :  { %v364_v15 = vpop.f32.mrb[1].mxu1 }
 0x1eb   :  { %v1046_v16 = vadd.f32 %v364_v15, %v316_v13  ;;  %v786_v17 = vpop.f32.mrb[2].mxu1  ;;  %v319_v20 = vadd.f32 %v764_v11, %v262_v14 }
 0x1ec   :  { %v367_v23 = vpop.f32.mrb[3].mxu1 }
 0x1ed   :  { %v1048_v34 = vadd.f32 %v367_v23, %v319_v20  ;;  %v765_v35 = vpop.f32.mrb[4].mxu0  ;;  %v387_v36 = vsel %vm274_vm0, %v1046_v16, 0.0  ;;  %v403_v42 = vmul.f32 %v1046_v16, %v1046_v16 }
 0x1ee   :  { %v766_v37 = vpop.f32.mrb[5].mxu0  ;;  %388 = vadd.xlane.f32.xlu1 %v387_v36 }
 0x1ef   :  { %v767_v38 = vadd.f32 %v766_v37, %v765_v35  ;;  %v768_v39 = vpop.f32.mrb[6].mxu0  ;;  %v390_v40 = vsel %vm274_vm0, %v1048_v34, 0.0  ;;  %v404_v41 = vmul.f32 %v1048_v34, %v1048_v34  ;;  %v407_v47 = vsel %vm274_vm0, %v403_v42, 0.0  ;;  %v380_v35 = vld [vmem:[%s1243_s6 + $0x8] sm:$0xff]  ;;  %v379_v37 = vld [vmem:[%s1243_s6] sm:$0xff]  ;;  %v382_v42 = vld [vmem:[%s1243_s6 + $0x18] sm:$0xff] }
 0x1f0   :  { %v769_v29 = vpop.f32.mrb[7].mxu0  ;;  %391 = vadd.xlane.f32.xlu0 %v390_v40 }
 0x1f1   :  { %v324_v43 = vadd.f32 %v767_v38, %v267_v28  ;;  %v770_v44 = vadd.f32 %v769_v29, %v768_v39  ;;  %v410_v21 = vsel %vm274_vm0, %v404_v41, 0.0  ;;  %v381_v41 = vld [vmem:[%s1243_s6 + $0x10] sm:$0xff] }
 0x1f2   :  { %411 = vadd.xlane.f32.xlu1 %v410_v21  ;;  %v385_v21 = vld [vmem:[%s1242_s7 + $0x10] sm:$0xff] }
 0x1f3   :  { %v1059_v45 = vadd.f32 %v785_v12, %v324_v43  ;;  %v327_v46 = vadd.f32 %v770_v44, %v272_v22  ;;  %v386_v22 = vld [vmem:[%s1242_s7 + $0x18] sm:$0xff] }
 0x1f4   :  { %408 = vadd.xlane.f32.xlu0 %v407_v47  ;;  %v512_v47 = vld [vmem:[%s1244_s5 + $0x8] sm:$0xff] }
 0x1f5   :  { %v1062_v48 = vadd.f32 %v786_v17, %v327_v46  ;;  %v393_v49 = vsel %vm274_vm0, %v1059_v45, 0.0  ;;  %v405_v51 = vmul.f32 %v1059_v45, %v1059_v45  ;;  %v511_v46 = vld [vmem:[%s1244_s5] sm:$0xff] }
 0x1f7   :  { %v396_v50 = vsel %vm274_vm0, %v1062_v48, 0.0  ;;  %v406_v52 = vmul.f32 %v1062_v48, %v1062_v48  ;;  %v413_v53 = vsel %vm274_vm0, %v405_v51, 0.0  ;;  %v503_v51 = vld [vmem:[%s1245_s4] sm:$0xff] }
 0x1f8   :  { %394 = vadd.xlane.f32.xlu0 %v393_v49  ;;  %397 = vadd.xlane.f32.xlu1 %v396_v50  ;;  %v513_v49 = vld [vmem:[%s1244_s5 + $0x10] sm:$0xff]  ;;  %v514_v50 = vld [vmem:[%s1244_s5 + $0x18] sm:$0xff] }
 0x1f9   :  { %v416_v54 = vsel %vm274_vm0, %v406_v52, 0.0  ;;  %v504_v52 = vld [vmem:[%s1245_s4 + $0x8] sm:$0xff] }
 0x1fc   :  { %414 = vadd.xlane.f32.xlu0 %v413_v53  ;;  %417 = vadd.xlane.f32.xlu1 %v416_v54  ;;  %v507_v53 = vpack.c.bf16 %v504_v52, %v503_v51  ;;  %v614_v51 = vld [vmem:[%s1246_s9] sm:$0xff]  ;;  %v615_v52 = vld [vmem:[%s1246_s9 + $0x8] sm:$0xff] }
 0x1fe   :  { %791 = vmatprep.mubr.msk.bf16.mxu1 %vm274_vm0, %v507_v53 }
 0x20d   :  { %477 = vperm.xlu1 %813, %v383_v55  }
 0x212   :  { %482 = vperm.xlu0 %812, %v384_v56  }
 0x27b   :  { %v389_v26 = vpop.xlane.xlu1 %388 }
 0x27c   :  { %v1080_v30 = vmul.f32 0.03125, %v389_v26 }
 0x27d   :  { %v392_v27 = vpop.xlane.xlu0 %391 }
 0x27e   :  { %v1082_v31 = vmul.f32 0.03125, %v392_v27  ;;  %v423_v59 = vmul.f32 %v1080_v30, %v1080_v30 }
 0x27f   :  { %v412_v32 = vpop.xlane.xlu1 %411 }
 0x280   :  { %v424_v33 = vmul.f32 %v1082_v31, %v1082_v31  ;;  %v420_v57 = vmul.f32 0.03125, %v412_v32  ;;  %v448_v56 = vsub.f32 %v1048_v34, %v1082_v31  ;;  %v447_v32 = vsub.f32 %v1046_v16, %v1080_v30 }
 0x281   :  { %v409_v58 = vpop.xlane.xlu0 %408 }
 0x282   :  { %v428_v60 = vsub.f32 %v420_v57, %v424_v33  ;;  %v419_v61 = vmul.f32 0.03125, %v409_v58 }
 0x284   :  { %v432_v62 = vmax.f32 %v428_v60, 0.0  ;;  %v427_v63 = vsub.f32 %v419_v61, %v423_v59 }
 0x285   :  { %v395_v0 = vpop.xlane.xlu0 %394  ;;  %v398_v1 = vpop.xlane.xlu1 %397 }
 0x286   :  { %v436_v2 = vadd.f32 1e-05, %v432_v62  ;;  %v431_v3 = vmax.f32 %v427_v63, 0.0  ;;  %v1088_v4 = vmul.f32 0.03125, %v395_v0  ;;  %v1090_v5 = vmul.f32 0.03125, %v398_v1 }
 0x288   :  { %814 = vrsqrt.f32 %v436_v2  ;;  %v435_v6 = vadd.f32 1e-05, %v431_v3  ;;  %v425_v7 = vmul.f32 %v1088_v4, %v1088_v4  ;;  %v426_v10 = vmul.f32 %v1090_v5, %v1090_v5  ;;  %v505_v3 = vld [vmem:[%s1245_s4 + $0x10] sm:$0xff] }
 0x289   :  { %v415_v8 = vpop.xlane.xlu0 %414  ;;  %v418_v9 = vpop.xlane.xlu1 %417  ;;  %v450_v34 = vsub.f32 %v1062_v48, %v1090_v5 }
 0x28a   :  { %816 = vrsqrt.f32 %v435_v6  ;;  %v421_v11 = vmul.f32 0.03125, %v415_v8  ;;  %v422_v12 = vmul.f32 0.03125, %v418_v9 }
 0x28c   :  { %v429_v13 = vsub.f32 %v421_v11, %v425_v7  ;;  %v430_v14 = vsub.f32 %v422_v12, %v426_v10 }
 0x28d   :  { %v478_v54 = vpop.permute.xlu1 %477 }
 0x28e   :  { %v433_v15 = vmax.f32 %v429_v13, 0.0  ;;  %v434_v17 = vmax.f32 %v430_v14, 0.0 }
 0x290   :  { %v437_v20 = vadd.f32 1e-05, %v433_v15  ;;  %v438_v23 = vadd.f32 1e-05, %v434_v17 }
 0x291   :  { %v483_v55 = vpop.permute.xlu0 %482 }
 0x292   :  { %v815_v36 = vpop.eup %814  ;;  %818 = vrsqrt.f32 %v437_v20 }
 0x293   :  { %820 = vrsqrt.f32 %v438_v23  ;;  %v444_v38 = vmul.f32 %v815_v36, %v380_v35 }
 0x294   :  { %v817_v39 = vpop.eup %816 }
 0x295   :  { %458 = vperm.xlu1 %813, %v444_v38   ;;  %v443_v40 = vmul.f32 %v817_v39, %v379_v37 }
 0x297   :  { %453 = vperm.xlu0 %812, %v443_v40  }
 0x29c   :  { %v819_v28 = vpop.eup %818 }
 0x29d   :  { %v821_v29 = vpop.eup %820  ;;  %v445_v43 = vmul.f32 %v819_v28, %v381_v41 }
 0x29e   :  { %v446_v44 = vmul.f32 %v821_v29, %v382_v42 }
 0x29f   :  { %463 = vperm.xlu1 %813, %v445_v43  }
 0x2a0   :  { %468 = vperm.xlu0 %812, %v446_v44  }
 0x2a3   :  { %487 = vperm.xlu1 %813, %v385_v21  }
 0x2a4   :  { %492 = vperm.xlu0 %812, %v386_v22  }
 0x2a7   :  { %517 = vperm.xlu1 %813, %v511_v46  }
 0x2a8   :  { %522 = vperm.xlu0 %812, %v512_v47  }
 0x2ab   :  { %527 = vperm.xlu1 %813, %v513_v49  }
 0x2ac   :  { %532 = vperm.xlu0 %812, %v514_v50  }
 0x2af   :  { %594 = vrot.lane.b32.xlu1 %v911_v18, %s838_s0 }
 0x2b0   :  { %596 = vrot.lane.b32.xlu0 %v916_v19, %s838_s0 }
 0x2b3   :  { %598 = vrot.lane.b32.xlu1 %v927_v24, %s838_s0 }
 0x2b4   :  { %600 = vrot.lane.b32.xlu0 %v932_v25, %s838_s0  ;;  %v449_v25 = vsub.f32 %v1059_v45, %v1088_v4  ;;  %v506_v45 = vld [vmem:[%s1245_s4 + $0x18] sm:$0xff] }
 0x2b5   :  { %v508_v48 = vpack.c.bf16 %v506_v45, %v505_v3 }
 0x314   :  { %v459_v26 = vpop.permute.xlu1 %458 }
 0x315   :  { %v472_v27 = vmul.f32 %v459_v26, %v448_v56 }
 0x316   :  { %v454_v18 = vpop.permute.xlu0 %453 }
 0x317   :  { %v496_v33 = vadd.f32 %v483_v55, %v472_v27  ;;  %v471_v57 = vmul.f32 %v454_v18, %v447_v32 }
 0x319   :  { %v495_v19 = vadd.f32 %v478_v54, %v471_v57  ;;  %v500_v58 = vmax.f32 %v496_v33, 0.0 }
 0x31b   :  { %v499_v59 = vmax.f32 %v495_v19, 0.0 }
 0x31d   :  { %v509_v24 = vpack.c.bf16 %v500_v58, %v499_v59 }
 0x31e   :  { %v464_v60 = vpop.permute.xlu1 %463 }
 0x31f   :  { %v469_v61 = vpop.permute.xlu0 %468  ;;  %787 = vmatprep.subr.bf16.mxu1 %v509_v24  ;;  %v473_v31 = vmul.f32 %v464_v60, %v449_v25 }
 0x320   :  { %788 = vmatpush3.bf16.msra.mxu1 %v509_v24  ;;  %v474_v62 = vmul.f32 %v469_v61, %v450_v34 }
 0x322   :  { %v488_v16 = vpop.permute.xlu1 %487 }
 0x323   :  { %v493_v30 = vpop.permute.xlu0 %492  ;;  %v497_v63 = vadd.f32 %v488_v16, %v473_v31 }
 0x324   :  { %v498_v0 = vadd.f32 %v493_v30, %v474_v62 }
 0x325   :  { %v501_v1 = vmax.f32 %v497_v63, 0.0 }
 0x326   :  { %v502_v2 = vmax.f32 %v498_v0, 0.0  ;;  %v518_v5 = vpop.permute.xlu1 %517 }
 0x327   :  { %v523_v6 = vpop.permute.xlu0 %522 }
 0x328   :  { %v510_v4 = vpack.c.bf16 %v502_v2, %v501_v1 }
 0x32a   :  { %789 = vmatprep.subr.bf16.mxu1 %v510_v4  ;;  %v528_v7 = vpop.permute.xlu1 %527 }
 0x32b   :  { %790 = vmatpush3.bf16.msra.mxu1 %v510_v4  ;;  %v533_v8 = vpop.permute.xlu0 %532 }
 0x32e   :  { %792 = vmatmul.mubr.msk.bf16.vlgmr.msra.gmra.mrb[4].mxu1 %vm274_vm0, %v508_v48  ;;  %v595_v9 = vpop.permute.xlu1 %594 }
 0x32f   :  { %v597_v10 = vpop.permute.xlu0 %596 }
 0x332   :  { %v599_v12 = vpop.permute.xlu1 %598 }
 0x333   :  { %v601_v36 = vpop.permute.xlu0 %600 }
 0x401   :  { %v793_v11 = vpop.f32.mrb[4].mxu1 }
 0x402   :  { %v584_v13 = vadd.f32 %v793_v11, %v528_v7  ;;  %v575_v14 = vpop.f32.mrb[5].mxu1  ;;  %v610_v7 = vld [vmem:[%s1247_s8] sm:$0xff]  ;;  %v613_v11 = vld [vmem:[%s1247_s8 + $0x18] sm:$0xff] }
 0x403   :  { %v576_v15 = vadd.f32 %v575_v14, %v518_v5  ;;  %v794_v17 = vpop.f32.mrb[6].mxu1 }
 0x404   :  { %v587_v20 = vadd.f32 %v794_v17, %v533_v8  ;;  %v1156_v23 = vadd.f32 %v599_v12, %v584_v13  ;;  %v578_v35 = vpop.f32.mrb[7].mxu1 }
 0x405   :  { %v1158_v37 = vadd.f32 %v595_v9, %v576_v15  ;;  %v579_v38 = vadd.f32 %v578_v35, %v523_v6 }
 0x406   :  { %v624_v39 = vsel %vm274_vm0, %v1156_v23, 0.0  ;;  %v1164_v41 = vadd.f32 %v601_v36, %v587_v20  ;;  %v636_v22 = vmul.f32 %v1156_v23, %v1156_v23  ;;  %v611_v20 = vld [vmem:[%s1247_s8 + $0x8] sm:$0xff]  ;;  %v617_v36 = vld [vmem:[%s1246_s9 + $0x18] sm:$0xff] }
 0x407   :  { %v1162_v40 = vadd.f32 %v597_v10, %v579_v38  ;;  %625 = vadd.xlane.f32.xlu0 %v624_v39  ;;  %v618_v42 = vsel %vm274_vm0, %v1158_v37, 0.0  ;;  %v634_v29 = vmul.f32 %v1158_v37, %v1158_v37  ;;  %v612_v10 = vld [vmem:[%s1247_s8 + $0x10] sm:$0xff] }
 0x408   :  { %619 = vadd.xlane.f32.xlu1 %v618_v42  ;;  %v627_v43 = vsel %vm274_vm0, %v1164_v41, 0.0  ;;  %v637_v47 = vmul.f32 %v1164_v41, %v1164_v41  ;;  %v644_v49 = vsel %vm274_vm0, %v636_v22, 0.0  ;;  %v616_v38 = vld [vmem:[%s1246_s9 + $0x10] sm:$0xff] }
 0x409   :  { %v621_v28 = vsel %vm274_vm0, %v1162_v40, 0.0  ;;  %v635_v44 = vmul.f32 %v1162_v40, %v1162_v40  ;;  %v638_v21 = vsel %vm274_vm0, %v634_v29, 0.0 }
 0x40a   :  { %v647_v50 = vsel %vm274_vm0, %v637_v47, 0.0 }
 0x40b   :  { %622 = vadd.xlane.f32.xlu0 %v621_v28  ;;  %v641_v46 = vsel %vm274_vm0, %v635_v44, 0.0 }
 0x40c   :  { %628 = vadd.xlane.f32.xlu1 %v627_v43 }
 0x40f   :  { %639 = vadd.xlane.f32.xlu0 %v638_v21 }
 0x410   :  { %642 = vadd.xlane.f32.xlu1 %v641_v46 }
 0x413   :  { %645 = vadd.xlane.f32.xlu0 %v644_v49 }
 0x414   :  { %648 = vadd.xlane.f32.xlu1 %v647_v50 }
 0x425   :  { %708 = vperm.xlu1 %813, %v614_v51  }
 0x429   :  { %713 = vperm.xlu0 %812, %v615_v52  }
 0x494   :  { %v626_v53 = vpop.xlane.xlu0 %625 }
 0x495   :  { %v620_v54 = vpop.xlane.xlu1 %619  ;;  %v1192_v18 = vmul.f32 0.03125, %v626_v53 }
 0x496   :  { %v630_v56 = vmul.f32 0.03125, %v620_v54 }
 0x497   :  { %v656_v34 = vmul.f32 %v1192_v18, %v1192_v18 }
 0x498   :  { %v623_v55 = vpop.xlane.xlu0 %622  ;;  %v654_v33 = vmul.f32 %v630_v56, %v630_v56  ;;  %v678_v42 = vsub.f32 %v1158_v37, %v630_v56  ;;  %v680_v37 = vsub.f32 %v1156_v23, %v1192_v18 }
 0x499   :  { %v629_v26 = vpop.xlane.xlu1 %628  ;;  %v1190_v27 = vmul.f32 0.03125, %v623_v55 }
 0x49a   :  { %v633_v59 = vmul.f32 0.03125, %v629_v26 }
 0x49b   :  { %v655_v58 = vmul.f32 %v1190_v27, %v1190_v27  ;;  %v679_v47 = vsub.f32 %v1162_v40, %v1190_v27 }
 0x49c   :  { %v640_v32 = vpop.xlane.xlu0 %639  ;;  %v657_v30 = vmul.f32 %v633_v59, %v633_v59  ;;  %v681_v46 = vsub.f32 %v1164_v41, %v633_v59 }
 0x49d   :  { %v650_v57 = vmul.f32 0.03125, %v640_v32  ;;  %v643_v19 = vpop.xlane.xlu1 %642 }
 0x49e   :  { %v651_v24 = vmul.f32 0.03125, %v643_v19 }
 0x49f   :  { %v658_v60 = vsub.f32 %v650_v57, %v654_v33 }
 0x4a0   :  { %v659_v61 = vsub.f32 %v651_v24, %v655_v58  ;;  %v646_v25 = vpop.xlane.xlu0 %645 }
 0x4a1   :  { %v662_v31 = vmax.f32 %v658_v60, 0.0  ;;  %v652_v62 = vmul.f32 0.03125, %v646_v25  ;;  %v649_v16 = vpop.xlane.xlu1 %648 }
 0x4a2   :  { %v653_v63 = vmul.f32 0.03125, %v649_v16  ;;  %v663_v1 = vmax.f32 %v659_v61, 0.0 }
 0x4a3   :  { %v666_v0 = vadd.f32 1e-05, %v662_v31  ;;  %v660_v2 = vsub.f32 %v652_v62, %v656_v34 }
 0x4a4   :  { %v661_v3 = vsub.f32 %v653_v63, %v657_v30  ;;  %v667_v48 = vadd.f32 1e-05, %v663_v1 }
 0x4a5   :  { %822 = vrsqrt.f32 %v666_v0  ;;  %v664_v45 = vmax.f32 %v660_v2, 0.0  ;;  %v709_v28 = vpop.permute.xlu1 %708 }
 0x4a6   :  { %v665_v4 = vmax.f32 %v661_v3, 0.0 }
 0x4a7   :  { %v668_v5 = vadd.f32 1e-05, %v664_v45 }
 0x4a8   :  { %v669_v6 = vadd.f32 1e-05, %v665_v4  ;;  %v714_v39 = vpop.permute.xlu0 %713 }
 0x4a9   :  { %824 = vrsqrt.f32 %v668_v5 }
 0x4aa   :  { %826 = vrsqrt.f32 %v669_v6 }
 0x4ab   :  { %828 = vrsqrt.f32 %v667_v48 }
 0x4af   :  { %v823_v8 = vpop.eup %822 }
 0x4b0   :  { %v674_v9 = vmul.f32 %v823_v8, %v610_v7 }
 0x4b2   :  { %684 = vperm.xlu0 %812, %v674_v9  }
 0x4b3   :  { %v825_v12 = vpop.eup %824 }
 0x4b4   :  { %v827_v13 = vpop.eup %826  ;;  %v676_v14 = vmul.f32 %v825_v12, %v612_v10 }
 0x4b5   :  { %v829_v15 = vpop.eup %828  ;;  %v677_v17 = vmul.f32 %v827_v13, %v613_v11 }
 0x4b6   :  { %694 = vperm.xlu1 %813, %v676_v14   ;;  %v675_v35 = vmul.f32 %v829_v15, %v611_v20 }
 0x4b7   :  { %699 = vperm.xlu0 %812, %v677_v17  }
 0x4ba   :  { %689 = vperm.xlu1 %813, %v675_v35  }
 0x4bb   :  { %723 = vperm.xlu0 %812, %v617_v36  }
 0x4be   :  { %718 = vperm.xlu1 %813, %v616_v38  }
 0x531   :  { %v685_v29 = vpop.permute.xlu0 %684 }
 0x532   :  { %v702_v43 = vmul.f32 %v685_v29, %v678_v42 }
 0x534   :  { %v726_v44 = vadd.f32 %v709_v28, %v702_v43 }
 0x535   :  { %v695_v21 = vpop.permute.xlu1 %694 }
 0x536   :  { %730 = vst.msk [vmem:[%s1248_s10] sm:$0xff] %vm274_vm0, %v726_v44  ;;  %v700_v22 = vpop.permute.xlu0 %699  ;;  %v704_v54 = vmul.f32 %v695_v21, %v680_v37 }
 0x537   :  { %v705_v49 = vmul.f32 %v700_v22, %v681_v46 }
 0x539   :  { %v690_v50 = vpop.permute.xlu1 %689 }
 0x53a   :  { %v703_v51 = vmul.f32 %v690_v50, %v679_v47  ;;  %v724_v52 = vpop.permute.xlu0 %723 }
 0x53b   :  { %v729_v53 = vadd.f32 %v724_v52, %v705_v49 }
 0x53c   :  { %v727_v55 = vadd.f32 %v714_v39, %v703_v51 }
 0x53d   :  { %733 = vst.msk [vmem:[%s1248_s10 + $0x18] sm:$0xff] %vm274_vm0, %v729_v53  ;;  %v719_v56 = vpop.permute.xlu1 %718 }
 0x53e   :  { %731 = vst.msk [vmem:[%s1248_s10 + $0x8] sm:$0xff] %vm274_vm0, %v727_v55  ;;  %v728_v40 = vadd.f32 %v719_v56, %v704_v54 }
 0x540   :  { %732 = vst.msk [vmem:[%s1248_s10 + $0x10] sm:$0xff] %vm274_vm0, %v728_v40 }

// kernel: decompose_net_forward.17
= control target key start
LH: loop header
LB: loop body
LE: loop exit
PB: predicated region body
PF: predicated region fallthrough
CT: control target
= control target key end

     0   :  { %v46_v0 = vlaneseq  ;;  %s601_s15 = smov 5   ;;  %s602_s16 = smov 1   ;;  %vm617_vm0 = vmmov 0   ;;  %vm253_vm1 = vcmask 261120   ;;  %vm417_vm2 = vcmask 130048   ;;  %s839_s1 = inlined_call_operand.vmem [shape: f32[9,32], index: 1, kind: input, shape index: {}]   ;;  %s840_s0 = inlined_call_operand.vmem [shape: f32[32,42], index: 0, kind: input, shape index: {}]   ;;  %s841_s2 = inlined_call_operand.vmem [shape: f32[16,288], index: 2, kind: input, shape index: {}]   ;;  %s842_s3 = inlined_call_operand.vmem [shape: f32[16,1], index: 3, kind: input, shape index: {}]   ;;  %s843_s6 = inlined_call_operand.vmem [shape: f32[16,1], index: 6, kind: input, shape index: {}]   ;;  %s844_s7 = inlined_call_operand.vmem [shape: f32[16,1], index: 7, kind: input, shape index: {}]   ;;  %s845_s5 = inlined_call_operand.vmem [shape: f32[16,1], index: 5, kind: input, shape index: {}]   ;;  %s846_s4 = inlined_call_operand.vmem [shape: f32[16,16], index: 4, kind: input, shape index: {}]   ;;  %s847_s8 = inlined_call_operand.vmem [shape: f32[16,1], index: 8, kind: input, shape index: {}]   ;;  %s848_s9 = inlined_call_operand.vmem [shape: f32[16,1], index: 9, kind: input, shape index: {}]   ;;  %s849_s10 = inlined_call_operand.vmem [shape: f32[16,32], index: 10, kind: output, shape index: {}]  }
   0x1   :  { %v44_v2 = vld [vmem:[%s839_s1] sm:$0xff]  ;;  %s603_s17 = smov 6   ;;  %s604_s18 = smov 8   ;;  %v528_v17 = vld [vmem:[%s839_s1 + $0x8] ss:$0 sm:$0xff]  ;;  %v38_v24 = vld [vmem:[%s840_s0 + $0x10] sm:$0xff] }
   0x2   :  { %v47_v1 = vshrl.u32 %v46_v0, 7  ;;  %s605_s19 = smov 2   ;;  %s606_s20 = smov 9   ;;  %v36_v18 = vld [vmem:[%s840_s0] sm:$0xff]  ;;  %v37_v19 = vld [vmem:[%s840_s0 + $0x8] sm:$0xff]  ;;  %v39_v25 = vld [vmem:[%s840_s0 + $0x18] sm:$0xff] }
   0x3   :  { %s607_s23 = smov 4   ;;  %s608_s24 = smov 10   ;;  %v687_v21 = vmax.f32 %v36_v18, 0.0  ;;  %v689_v22 = vmax.f32 %v37_v19, 0.0  ;;  %v703_v28 = vmax.f32 %v38_v24, 0.0  ;;  %v705_v29 = vmax.f32 %v39_v25, 0.0 }
   0x4   :  { %v100_v3 = vsub.s32 4, %v47_v1  ;;  %v114_v4 = vsub.s32 5, %v47_v1  ;;  %v58_v5 = vsub.s32 1, %v47_v1  ;;  %v128_v6 = vsub.s32 6, %v47_v1  ;;  %s609_s0 = smov 123   ;;  %s610_s12 = smov 127  }
   0x5   :  { %v72_v11 = vsub.s32 2, %v47_v1  ;;  %v142_v12 = vsub.s32 7, %v47_v1  ;;  %v86_v15 = vsub.s32 3, %v47_v1  ;;  %v48_v20 = vsub.s32 0, %v47_v1  ;;  %s611_s13 = smov 122   ;;  %s612_s14 = smov 126  }
   0x6   :  { %v101_v7 = vrot.slane %v44_v2, %v100_v3  ;;  %v59_v8 = vrot.slane %v44_v2, %v58_v5  ;;  %v115_v9 = vrot.slane %v44_v2, %v114_v4  ;;  %v129_v10 = vrot.slane %v44_v2, %v128_v6  ;;  %s616_s21 = smov 119   ;;  %s619_s22 = smov 118  }
   0x7   :  { %v73_v13 = vrot.slane %v44_v2, %v72_v11  ;;  %v143_v14 = vrot.slane %v44_v2, %v142_v12  ;;  %v87_v16 = vrot.slane %v44_v2, %v86_v15  ;;  %v49_v23 = vrot.slane %v44_v2, %v48_v20  ;;  %v233_v15 = vld [vmem:[%s841_s2 + $0x8] sm:$0xff] }
   0x8   :  { %103 = vrot.lane.b32.xlu0 %v101_v7, %s601_s15  ;;  %61 = vrot.lane.b32.xlu1 %v59_v8, %s602_s16  ;;  %s613_s15 = smov 120   ;;  %v614_v11 = vmov 0.0  }
   0x9   :  { %v698_v26 = vmul.f32 %v49_v23, %v687_v21  ;;  %v701_v27 = vmul.f32 %v49_v23, %v689_v22  ;;  %v710_v31 = vmul.f32 %v49_v23, %v703_v28  ;;  %v713_v32 = vmul.f32 %v49_v23, %v705_v29  ;;  %558 = vmatprep.subr.bf16.mxu1 %v614_v11 }
   0xa   :  { %562 = vmatprep.mubr.msk.bf16.mxu1 %vm617_vm0, %v614_v11 }
   0xb   :  { %v54_v30 = vpack.c.bf16 %v701_v27, %v698_v26  ;;  %v55_v33 = vpack.c.bf16 %v713_v32, %v710_v31  ;;  %v232_v32 = vld [vmem:[%s841_s2] sm:$0xff] }
   0xc   :  { %117 = vrot.lane.b32.xlu0 %v115_v9, %s603_s17  ;;  %131 = vrot.lane.b32.xlu1 %v129_v10, %s604_s18 }
  0x10   :  { %75 = vrot.lane.b32.xlu0 %v73_v13, %s605_s19  ;;  %145 = vrot.lane.b32.xlu1 %v143_v14, %s606_s20  ;;  %s615_s20 = smov 124  }
  0x14   :  { %89 = vrot.lane.b32.xlu0 %v87_v16, %s607_s23  ;;  %159 = vrot.lane.b32.xlu1 %v528_v17, %s608_s24  ;;  %v236_v16 = vld [vmem:[%s841_s2 + $0x20] sm:$0xff] }
  0x15   :  { %v239_v18 = vpack.c.bf16 %v236_v16, %v233_v15 }
  0x17   :  { %289 = vmatprep.mubr.bf16.mxu0 %v239_v18 }
  0x7a   :  { %v104_v34 = vpop.permute.xlu0 %103  ;;  %v62_v35 = vpop.permute.xlu1 %61 }
  0x7b   :  { %v106_v36 = vmul.f32 %v104_v34, %v687_v21  ;;  %v107_v37 = vmul.f32 %v104_v34, %v689_v22  ;;  %v108_v38 = vmul.f32 %v104_v34, %v703_v28  ;;  %v109_v39 = vmul.f32 %v104_v34, %v705_v29 }
  0x7c   :  { %v64_v40 = vmul.f32 %v62_v35, %v687_v21  ;;  %v65_v41 = vmul.f32 %v62_v35, %v689_v22  ;;  %v66_v45 = vmul.f32 %v62_v35, %v703_v28  ;;  %v67_v48 = vmul.f32 %v62_v35, %v705_v29 }
  0x7d   :  { %v111_v42 = vpack.c.bf16 %v109_v39, %v108_v38  ;;  %v110_v43 = vpack.c.bf16 %v107_v37, %v106_v36  ;;  %v618_v39 = vmov 0  }
  0x7e   :  { %v118_v44 = vpop.permute.xlu0 %117  ;;  %v68_v49 = vpack.c.bf16 %v65_v41, %v64_v40  ;;  %v132_v51 = vpop.permute.xlu1 %131  ;;  %v69_v57 = vpack.c.bf16 %v67_v48, %v66_v45  ;;  %591 = vset.pattern.permute.xlu0 %v618_v39  ;;  %592 = vset.pattern.permute.xlu1 %v618_v39  ;;  %v340_v39 = vld [vmem:[%s843_s6 + $0x8] sm:$0xff] }
  0x7f   :  { %v120_v46 = vmul.f32 %v118_v44, %v687_v21  ;;  %v121_v47 = vmul.f32 %v118_v44, %v689_v22  ;;  %196 = vrot.lane.b32.xlu1 %v111_v42, %s609_s0  ;;  %194 = vrot.lane.b32.xlu0 %v110_v43, %s609_s0  ;;  %v122_v52 = vmul.f32 %v118_v44, %v703_v28 }
  0x80   :  { %v123_v53 = vmul.f32 %v118_v44, %v705_v29  ;;  %v134_v58 = vmul.f32 %v132_v51, %v687_v21  ;;  %v135_v59 = vmul.f32 %v132_v51, %v689_v22  ;;  %v136_v3 = vmul.f32 %v132_v51, %v703_v28 }
  0x81   :  { %v124_v50 = vpack.c.bf16 %v121_v47, %v120_v46  ;;  %v137_v4 = vmul.f32 %v132_v51, %v705_v29  ;;  %v234_v51 = vld [vmem:[%s841_s2 + $0x10] sm:$0xff] }
  0x82   :  { %v76_v54 = vpop.permute.xlu0 %75  ;;  %v125_v60 = vpack.c.bf16 %v123_v53, %v122_v52  ;;  %v138_v0 = vpack.c.bf16 %v135_v59, %v134_v58  ;;  %v146_v2 = vpop.permute.xlu1 %145  ;;  %v237_v52 = vld [vmem:[%s841_s2 + $0x28] sm:$0xff] }
  0x83   :  { %170 = vrot.lane.b32.xlu1 %v68_v49, %s610_s12  ;;  %v78_v55 = vmul.f32 %v76_v54, %v687_v21  ;;  %v79_v56 = vmul.f32 %v76_v54, %v689_v22  ;;  %202 = vrot.lane.b32.xlu0 %v124_v50, %s611_s13  ;;  %v80_v61 = vmul.f32 %v76_v54, %v703_v28 }
  0x84   :  { %v81_v62 = vmul.f32 %v76_v54, %v705_v29  ;;  %v148_v8 = vmul.f32 %v146_v2, %v687_v21  ;;  %v149_v9 = vmul.f32 %v146_v2, %v689_v22  ;;  %v139_v10 = vpack.c.bf16 %v137_v4, %v136_v3 }
  0x85   :  { %v82_v63 = vpack.c.bf16 %v79_v56, %v78_v55  ;;  %v150_v20 = vmul.f32 %v146_v2, %v703_v28  ;;  %v151_v23 = vmul.f32 %v146_v2, %v705_v29  ;;  %v240_v54 = vpack.c.bf16 %v237_v52, %v234_v51  ;;  %v401_v51 = vld [vmem:[%s846_s4] sm:$0xff]  ;;  %v402_v52 = vld [vmem:[%s846_s4 + $0x8] sm:$0xff] }
  0x86   :  { %v90_v1 = vpop.permute.xlu0 %89  ;;  %v83_v7 = vpack.c.bf16 %v81_v62, %v80_v61  ;;  %v152_v17 = vpack.c.bf16 %v149_v9, %v148_v8  ;;  %v160_v19 = vpop.permute.xlu1 %159 }
  0x87   :  { %172 = vrot.lane.b32.xlu1 %v69_v57, %s610_s12  ;;  %204 = vrot.lane.b32.xlu0 %v125_v60, %s611_s13  ;;  %v92_v5 = vmul.f32 %v90_v1, %v687_v21  ;;  %v93_v6 = vmul.f32 %v90_v1, %v689_v22  ;;  %v94_v12 = vmul.f32 %v90_v1, %v703_v28 }
  0x88   :  { %v95_v13 = vmul.f32 %v90_v1, %v705_v29  ;;  %v164_v24 = vmul.f32 %v160_v19, %v703_v28  ;;  %v165_v25 = vmul.f32 %v160_v19, %v705_v29  ;;  %v162_v35 = vmul.f32 %v160_v19, %v687_v21  ;;  %v242_v21 = vld [vmem:[%s842_s3 + $0x8] sm:$0xff] }
  0x89   :  { %v96_v14 = vpack.c.bf16 %v93_v6, %v92_v5  ;;  %v163_v36 = vmul.f32 %v160_v19, %v689_v22  ;;  %v153_v37 = vpack.c.bf16 %v151_v23, %v150_v20  ;;  %v241_v22 = vld [vmem:[%s842_s3] sm:$0xff] }
  0x8a   :  { %v97_v34 = vpack.c.bf16 %v95_v13, %v94_v12  ;;  %v167_v38 = vpack.c.bf16 %v165_v25, %v164_v24 }
  0x8b   :  { %178 = vrot.lane.b32.xlu1 %v82_v63, %s612_s14  ;;  %210 = vrot.lane.b32.xlu0 %v138_v0, %s613_s15  ;;  %v166_v28 = vpack.c.bf16 %v163_v36, %v162_v35 }
  0x8f   :  { %180 = vrot.lane.b32.xlu1 %v83_v7, %s612_s14  ;;  %212 = vrot.lane.b32.xlu0 %v139_v10, %s613_s15 }
  0x93   :  { %186 = vrot.lane.b32.xlu1 %v96_v14, %s615_s20  ;;  %218 = vrot.lane.b32.xlu0 %v152_v17, %s616_s21 }
  0x97   :  { %188 = vrot.lane.b32.xlu1 %v97_v34, %s615_s20  ;;  %220 = vrot.lane.b32.xlu0 %v153_v37, %s616_s21 }
  0x9b   :  { %228 = vrot.lane.b32.xlu1 %v167_v38, %s619_s22  ;;  %226 = vrot.lane.b32.xlu0 %v166_v28, %s619_s22 }
  0x9f   :  { %250 = vperm.xlu1 %592, %v242_v21   ;;  %245 = vperm.xlu0 %591, %v241_v22   ;;  %v339_v21 = vld [vmem:[%s843_s6] sm:$0xff] }
  0xf1   :  { %v197_v29 = vpop.permute.xlu1 %196  ;;  %v195_v40 = vpop.permute.xlu0 %194 }
  0xf2   :  { %531 = vmatprep.subr.bf16.mxu0 %v195_v40 }
  0xf3   :  { %532 = vmatpush3.bf16.msra.mxu0 %v54_v30 }
  0xf4   :  { %533 = vmatprep.subr.bf16.mxu0 %v197_v29 }
  0xf5   :  { %v171_v41 = vpop.permute.xlu1 %170  ;;  %v203_v42 = vpop.permute.xlu0 %202 }
  0xf7   :  { %534 = vmatpush3.bf16.msra.mxu0 %v55_v33  ;;  %v235_v33 = vld [vmem:[%s841_s2 + $0x18] sm:$0xff] }
  0xf8   :  { %535 = vmatprep.subr.bf16.mxu0 %v203_v42  ;;  %v238_v50 = vpack.c.bf16 %v235_v33, %v232_v32  ;;  %v342_v42 = vld [vmem:[%s844_s7 + $0x8] sm:$0xff] }
  0xf9   :  { %v173_v43 = vpop.permute.xlu1 %172  ;;  %v205_v44 = vpop.permute.xlu0 %204 }
  0xfb   :  { %536 = vmatpush3.bf16.msra.mxu0 %v171_v41  ;;  %v341_v41 = vld [vmem:[%s844_s7] sm:$0xff] }
  0xfc   :  { %537 = vmatprep.subr.bf16.mxu0 %v205_v44  ;;  %v406_v44 = vld [vmem:[%s845_s5 + $0x8] sm:$0xff] }
  0xfd   :  { %v179_v45 = vpop.permute.xlu1 %178  ;;  %v211_v46 = vpop.permute.xlu0 %210 }
  0xff   :  { %538 = vmatpush3.bf16.msra.mxu0 %v173_v43  ;;  %v405_v43 = vld [vmem:[%s845_s5] sm:$0xff] }
 0x100   :  { %539 = vmatprep.subr.bf16.mxu0 %v211_v46 }
 0x101   :  { %v181_v47 = vpop.permute.xlu1 %180  ;;  %v213_v48 = vpop.permute.xlu0 %212 }
 0x103   :  { %540 = vmatpush3.bf16.msra.mxu0 %v179_v45 }
 0x104   :  { %541 = vmatprep.subr.bf16.mxu0 %v213_v48 }
 0x105   :  { %v219_v26 = vpop.permute.xlu0 %218  ;;  %v187_v27 = vpop.permute.xlu1 %186 }
 0x107   :  { %542 = vmatpush3.bf16.msra.mxu0 %v181_v47 }
 0x108   :  { %543 = vmatprep.subr.bf16.mxu0 %v219_v26 }
 0x109   :  { %v221_v30 = vpop.permute.xlu0 %220  ;;  %v189_v31 = vpop.permute.xlu1 %188 }
 0x10b   :  { %544 = vmatpush3.bf16.msra.mxu0 %v187_v27 }
 0x10c   :  { %545 = vmatprep.subr.bf16.mxu0 %v221_v30 }
 0x10d   :  { %v227_v49 = vpop.permute.xlu0 %226  ;;  %v229_v53 = vpop.permute.xlu1 %228 }
 0x10e   :  { %559 = vmatpush3.bf16.msra.mxu1 %v227_v49 }
 0x10f   :  { %546 = vmatpush3.bf16.msra.mxu0 %v189_v31  ;;  %560 = vmatprep.subr.bf16.mxu1 %v614_v11 }
 0x112   :  { %290 = vmatmul.mubr.bf16.vlgmr.msra.gmra.mrb[0].mxu0 %v238_v50  ;;  %561 = vmatpush3.bf16.msra.mxu1 %v229_v53 }
 0x113   :  { %566 = vmatprep.subr.bf16.mxu1 %v614_v11 }
 0x115   :  { %563 = vmatmul.mubr.msk.bf16.vlgmr.msra.gmra.mrb[0].mxu1 %vm253_vm1, %v240_v54  ;;  %v403_v54 = vpack.c.bf16 %v402_v52, %v401_v51 }
 0x116   :  { %568 = vmatprep.mubr.msk.bf16.mxu1 %vm617_vm0, %v614_v11 }
 0x11e   :  { %v246_v57 = vpop.permute.xlu0 %245  ;;  %v251_v60 = vpop.permute.xlu1 %250 }
 0x1e5   :  { %v547_v55 = vpop.f32.mrb[0].mxu0 }
 0x1e6   :  { %v548_v56 = vpop.f32.mrb[1].mxu0 }
 0x1e7   :  { %v549_v58 = vadd.f32 %v548_v56, %v547_v55  ;;  %v550_v59 = vpop.f32.mrb[2].mxu0 }
 0x1e8   :  { %v551_v61 = vpop.f32.mrb[3].mxu0  ;;  %v332_v62 = vpop.f32.mrb[0].mxu1 }
 0x1e9   :  { %v292_v63 = vadd.f32 %v549_v58, %v246_v57  ;;  %v552_v0 = vadd.f32 %v551_v61, %v550_v59  ;;  %v564_v1 = vpop.f32.mrb[1].mxu1 }
 0x1ea   :  { %v335_v2 = vpop.f32.mrb[2].mxu1 }
 0x1eb   :  { %v333_v3 = vadd.f32 %v332_v62, %v292_v63  ;;  %v295_v4 = vadd.f32 %v552_v0, %v251_v60  ;;  %v565_v5 = vpop.f32.mrb[3].mxu1 }
 0x1ed   :  { %v336_v6 = vadd.f32 %v335_v2, %v295_v4  ;;  %v343_v7 = vsel %vm253_vm1, %v333_v3, 0.0  ;;  %v351_v10 = vmul.f32 %v333_v3, %v333_v3 }
 0x1ee   :  { %344 = vadd.xlane.f32.xlu1 %v343_v7 }
 0x1ef   :  { %v346_v8 = vsel %vm253_vm1, %v336_v6, 0.0  ;;  %v352_v9 = vmul.f32 %v336_v6, %v336_v6  ;;  %v353_v12 = vsel %vm253_vm1, %v351_v10, 0.0 }
 0x1f0   :  { %347 = vadd.xlane.f32.xlu0 %v346_v8 }
 0x1f1   :  { %v356_v11 = vsel %vm253_vm1, %v352_v9, 0.0 }
 0x1f2   :  { %357 = vadd.xlane.f32.xlu1 %v356_v11 }
 0x1f4   :  { %354 = vadd.xlane.f32.xlu0 %v353_v12 }
 0x27b   :  { %v345_v13 = vpop.xlane.xlu1 %344 }
 0x27c   :  { %v349_v15 = vmul.f32 0.03125, %v345_v13 }
 0x27d   :  { %v348_v14 = vpop.xlane.xlu0 %347 }
 0x27e   :  { %v350_v16 = vmul.f32 0.03125, %v348_v14  ;;  %v361_v23 = vmul.f32 %v349_v15, %v349_v15  ;;  %v373_v46 = vsub.f32 %v333_v3, %v349_v15 }
 0x27f   :  { %v358_v17 = vpop.xlane.xlu1 %357 }
 0x280   :  { %v362_v18 = vmul.f32 %v350_v16, %v350_v16  ;;  %v360_v19 = vmul.f32 0.03125, %v358_v17  ;;  %v374_v48 = vsub.f32 %v336_v6, %v350_v16 }
 0x281   :  { %v355_v20 = vpop.xlane.xlu0 %354 }
 0x282   :  { %v364_v24 = vsub.f32 %v360_v19, %v362_v18  ;;  %v359_v25 = vmul.f32 0.03125, %v355_v20 }
 0x284   :  { %v366_v34 = vmax.f32 %v364_v24, 0.0  ;;  %v363_v35 = vsub.f32 %v359_v25, %v361_v23  ;;  %v463_v23 = vld [vmem:[%s847_s8 + $0x8] sm:$0xff]  ;;  %v462_v25 = vld [vmem:[%s847_s8] sm:$0xff] }
 0x286   :  { %v368_v36 = vadd.f32 1e-05, %v366_v34  ;;  %v365_v37 = vmax.f32 %v363_v35, 0.0 }
 0x288   :  { %593 = vrsqrt.f32 %v368_v36  ;;  %v367_v38 = vadd.f32 1e-05, %v365_v37  ;;  %v464_v37 = vld [vmem:[%s848_s9] sm:$0xff] }
 0x28a   :  { %595 = vrsqrt.f32 %v367_v38  ;;  %v465_v38 = vld [vmem:[%s848_s9 + $0x8] sm:$0xff] }
 0x292   :  { %v594_v28 = vpop.eup %593 }
 0x293   :  { %v372_v22 = vmul.f32 %v594_v28, %v340_v39 }
 0x294   :  { %v596_v29 = vpop.eup %595 }
 0x295   :  { %382 = vperm.xlu1 %592, %v372_v22   ;;  %v371_v40 = vmul.f32 %v596_v29, %v339_v21 }
 0x297   :  { %377 = vperm.xlu0 %591, %v371_v40  }
 0x299   :  { %389 = vperm.xlu1 %592, %v341_v41  }
 0x29b   :  { %394 = vperm.xlu0 %591, %v342_v42  }
 0x29d   :  { %409 = vperm.xlu1 %592, %v405_v43  }
 0x29f   :  { %414 = vperm.xlu0 %591, %v406_v44  }
 0x314   :  { %v383_v45 = vpop.permute.xlu1 %382 }
 0x315   :  { %v386_v30 = vmul.f32 %v383_v45, %v374_v48 }
 0x316   :  { %v378_v47 = vpop.permute.xlu0 %377 }
 0x317   :  { %v385_v26 = vmul.f32 %v378_v47, %v373_v46 }
 0x318   :  { %v390_v27 = vpop.permute.xlu1 %389 }
 0x319   :  { %v397_v31 = vadd.f32 %v390_v27, %v385_v26 }
 0x31a   :  { %v395_v32 = vpop.permute.xlu0 %394 }
 0x31b   :  { %v398_v33 = vadd.f32 %v395_v32, %v386_v30  ;;  %v399_v49 = vmax.f32 %v397_v31, 0.0 }
 0x31c   :  { %v410_v55 = vpop.permute.xlu1 %409 }
 0x31d   :  { %v400_v50 = vmax.f32 %v398_v33, 0.0 }
 0x31e   :  { %v415_v59 = vpop.permute.xlu0 %414 }
 0x31f   :  { %v404_v53 = vpack.c.bf16 %v400_v50, %v399_v49 }
 0x321   :  { %567 = vmatpush3.bf16.msra.mxu1 %v404_v53 }
 0x324   :  { %569 = vmatmul.mubr.msk.bf16.vlgmr.msra.gmra.mrb[4].mxu1 %vm417_vm2, %v403_v54 }
 0x3f7   :  { %v455_v56 = vpop.f32.mrb[4].mxu1 }
 0x3f8   :  { %v456_v57 = vadd.f32 %v455_v56, %v410_v55  ;;  %v570_v58 = vpop.f32.mrb[5].mxu1 }
 0x3f9   :  { %v458_v60 = vpop.f32.mrb[6].mxu1 }
 0x3fa   :  { %v459_v61 = vadd.f32 %v458_v60, %v415_v59  ;;  %v466_v62 = vsel %vm253_vm1, %v456_v57, 0.0  ;;  %v571_v63 = vpop.f32.mrb[7].mxu1  ;;  %v474_v2 = vmul.f32 %v456_v57, %v456_v57 }
 0x3fb   :  { %467 = vadd.xlane.f32.xlu1 %v466_v62 }
 0x3fc   :  { %v469_v0 = vsel %vm253_vm1, %v459_v61, 0.0  ;;  %v475_v1 = vmul.f32 %v459_v61, %v459_v61  ;;  %v476_v4 = vsel %vm253_vm1, %v474_v2, 0.0 }
 0x3fd   :  { %470 = vadd.xlane.f32.xlu0 %v469_v0 }
 0x3fe   :  { %v479_v3 = vsel %vm253_vm1, %v475_v1, 0.0 }
 0x3ff   :  { %480 = vadd.xlane.f32.xlu1 %v479_v3 }
 0x401   :  { %477 = vadd.xlane.f32.xlu0 %v476_v4 }
 0x488   :  { %v468_v5 = vpop.xlane.xlu1 %467 }
 0x489   :  { %v472_v7 = vmul.f32 0.03125, %v468_v5 }
 0x48a   :  { %v471_v6 = vpop.xlane.xlu0 %470 }
 0x48b   :  { %v473_v8 = vmul.f32 0.03125, %v471_v6  ;;  %v484_v13 = vmul.f32 %v472_v7, %v472_v7  ;;  %v496_v28 = vsub.f32 %v456_v57, %v472_v7 }
 0x48c   :  { %v481_v9 = vpop.xlane.xlu1 %480 }
 0x48d   :  { %v485_v10 = vmul.f32 %v473_v8, %v473_v8  ;;  %v483_v11 = vmul.f32 0.03125, %v481_v9  ;;  %v497_v22 = vsub.f32 %v459_v61, %v473_v8 }
 0x48e   :  { %v478_v12 = vpop.xlane.xlu0 %477 }
 0x48f   :  { %v487_v14 = vsub.f32 %v483_v11, %v485_v10  ;;  %v482_v15 = vmul.f32 0.03125, %v478_v12 }
 0x491   :  { %v489_v16 = vmax.f32 %v487_v14, 0.0  ;;  %v486_v17 = vsub.f32 %v482_v15, %v484_v13 }
 0x493   :  { %v491_v18 = vadd.f32 1e-05, %v489_v16  ;;  %v488_v19 = vmax.f32 %v486_v17, 0.0 }
 0x495   :  { %597 = vrsqrt.f32 %v491_v18  ;;  %v490_v20 = vadd.f32 1e-05, %v488_v19 }
 0x497   :  { %599 = vrsqrt.f32 %v490_v20 }
 0x49f   :  { %v598_v24 = vpop.eup %597 }
 0x4a0   :  { %v495_v34 = vmul.f32 %v598_v24, %v463_v23 }
 0x4a1   :  { %v600_v35 = vpop.eup %599 }
 0x4a2   :  { %505 = vperm.xlu1 %592, %v495_v34   ;;  %v494_v36 = vmul.f32 %v600_v35, %v462_v25 }
 0x4a4   :  { %500 = vperm.xlu0 %591, %v494_v36  }
 0x4a6   :  { %512 = vperm.xlu1 %592, %v464_v37  }
 0x4a8   :  { %517 = vperm.xlu0 %591, %v465_v38  }
 0x521   :  { %v506_v39 = vpop.permute.xlu1 %505 }
 0x522   :  { %v509_v41 = vmul.f32 %v506_v39, %v497_v22 }
 0x523   :  { %v501_v21 = vpop.permute.xlu0 %500 }
 0x524   :  { %v508_v29 = vmul.f32 %v501_v21, %v496_v28 }
 0x525   :  { %v513_v40 = vpop.permute.xlu1 %512 }
 0x526   :  { %v520_v42 = vadd.f32 %v513_v40, %v508_v29 }
 0x527   :  { %v518_v43 = vpop.permute.xlu0 %517 }
 0x528   :  { %522 = vst.msk [vmem:[%s849_s10] sm:$0xff] %vm253_vm1, %v520_v42  ;;  %v521_v44 = vadd.f32 %v518_v43, %v509_v41 }
 0x52a   :  { %523 = vst.msk [vmem:[%s849_s10 + $0x8] sm:$0xff] %vm253_vm1, %v521_v44 }

// kernel: tile.18
= control target key start
LH: loop header
LB: loop body
LE: loop exit
PB: predicated region body
PF: predicated region fallthrough
CT: control target
= control target key end

     0   :  { %s22_s0 = inlined_call_operand.vmem [shape: f32[32], index: 0, kind: input, shape index: {}]   ;;  %s23_s1 = inlined_call_operand.vmem [shape: f32[4,32], index: 1, kind: output, shape index: {}]  }
   0x1   :  { %v4_v0 = vld [vmem:[%s22_s0] ss:$0 sm:$0xff] }
   0x2   :  { %5 = vst [vmem:[%s23_s1] sm:$0xf] %v4_v0 }

// kernel: tile.0
= control target key start
LH: loop header
LB: loop body
LE: loop exit
PB: predicated region body
PF: predicated region fallthrough
CT: control target
= control target key end

     0   :  { %s546_s8 = smov 125   ;;  %s547_s9 = smov 126   ;;  %vm7_vm0 = vcmask 7168   ;;  %s1101_s0 = inlined_call_operand.vmem [shape: f32[4,32], index: 0, kind: input, shape index: {}]   ;;  %s1102_s1 = inlined_call_operand.vmem [shape: f32[128,1], index: 1, kind: output, shape index: {}]  }
   0x1   :  { %v4_v0 = vld [vmem:[%s1101_s0] sm:$0xf]  ;;  %s545_s0 = smov 127   ;;  %s548_s10 = smov 124  }
   0x2   :  { %5 = vst [vmem:[#allocation0] sm:$0xf] %v4_v0  ;;  %s549_s11 = smov 123   ;;  %s550_s12 = smov 122  }
   0x3   :  { %s551_s13 = smov 121   ;;  %s552_s14 = smov 120  }
   0x4   :  { %s553_s15 = smov 119   ;;  %s554_s16 = smov 118  }
   0x5   :  { %s555_s17 = smov 117   ;;  %s556_s18 = smov 116  }
   0x6   :  { %s557_s19 = smov 115   ;;  %s558_s20 = smov 114  }
   0x7   :  { %s559_s21 = smov 113   ;;  %s560_s22 = smov 112  }
   0x8   :  { %s561_s23 = smov 111   ;;  %s562_s24 = smov 110  }
   0x9   :  { %v15_v1 = vld [vmem:[#allocation0] sm:$0xf]   ;;  %s563_s25 = smov 109   ;;  %s564_s26 = smov 108  }
   0xa   :  { %v39_v2 = vld [vmem:[#allocation0] sm:$0xf]   ;;  %16 = vrot.lane.b32.xlu0 %v15_v1, %s545_s0  ;;  %s565_s27 = smov 107   ;;  %s566_s28 = smov 106  }
   0xb   :  { %40 = vrot.lane.b32.xlu1 %v39_v2, %s546_s8  ;;  %v27_v3 = vld [vmem:[#allocation0] sm:$0xf]   ;;  %s567_s29 = smov 105   ;;  %s568_s30 = smov 104  }
   0xc   :  { %v51_v4 = vld [vmem:[#allocation0] sm:$0xf]  }
   0xd   :  { %v63_v5 = vld [vmem:[#allocation0] sm:$0xf]  }
   0xe   :  { %28 = vrot.lane.b32.xlu0 %v27_v3, %s547_s9  ;;  %v75_v6 = vld [vmem:[#allocation0] sm:$0xf]   ;;  %s569_s9 = smov 103  }
   0xf   :  { %52 = vrot.lane.b32.xlu1 %v51_v4, %s548_s10  ;;  %v87_v7 = vld [vmem:[#allocation0] sm:$0xf]   ;;  %s570_s10 = smov 102  }
  0x10   :  { %v99_v8 = vld [vmem:[#allocation0] sm:$0xf]  }
  0x11   :  { %v111_v9 = vld [vmem:[#allocation0] sm:$0xf]  }
  0x12   :  { %64 = vrot.lane.b32.xlu0 %v63_v5, %s549_s11  ;;  %v123_v10 = vld [vmem:[#allocation0] sm:$0xf]   ;;  %s571_s11 = smov 101  }
  0x13   :  { %76 = vrot.lane.b32.xlu1 %v75_v6, %s550_s12  ;;  %v135_v11 = vld [vmem:[#allocation0] sm:$0xf]   ;;  %s572_s12 = smov 100  }
  0x14   :  { %v147_v12 = vld [vmem:[#allocation0] sm:$0xf]  }
  0x15   :  { %v159_v13 = vld [vmem:[#allocation0] sm:$0xf]  }
  0x16   :  { %88 = vrot.lane.b32.xlu0 %v87_v7, %s551_s13  ;;  %v171_v14 = vld [vmem:[#allocation0] sm:$0xf]   ;;  %s573_s13 = smov 99  }
  0x17   :  { %100 = vrot.lane.b32.xlu1 %v99_v8, %s552_s14  ;;  %v183_v15 = vld [vmem:[#allocation0] sm:$0xf]   ;;  %s574_s14 = smov 98  }
  0x18   :  { %v195_v16 = vld [vmem:[#allocation0] sm:$0xf]  }
  0x19   :  { %v207_v17 = vld [vmem:[#allocation0] sm:$0xf]  }
  0x1a   :  { %112 = vrot.lane.b32.xlu0 %v111_v9, %s553_s15  ;;  %v219_v18 = vld [vmem:[#allocation0] sm:$0xf]   ;;  %s575_s15 = smov 97  }
  0x1b   :  { %124 = vrot.lane.b32.xlu1 %v123_v10, %s554_s16  ;;  %v231_v19 = vld [vmem:[#allocation0] sm:$0xf]  }
  0x1c   :  { %v243_v20 = vld [vmem:[#allocation0] sm:$0xf]  }
  0x1d   :  { %v255_v21 = vld [vmem:[#allocation0] sm:$0xf]  }
  0x1e   :  { %136 = vrot.lane.b32.xlu0 %v135_v11, %s555_s17  ;;  %v267_v22 = vld [vmem:[#allocation0] sm:$0xf]  }
  0x1f   :  { %148 = vrot.lane.b32.xlu1 %v147_v12, %s556_s18  ;;  %v279_v23 = vld [vmem:[#allocation0] sm:$0xf]  }
  0x20   :  { %v291_v24 = vld [vmem:[#allocation0] sm:$0xf]  }
  0x21   :  { %v303_v25 = vld [vmem:[#allocation0] sm:$0xf]  }
  0x22   :  { %160 = vrot.lane.b32.xlu0 %v159_v13, %s557_s19  ;;  %v315_v26 = vld [vmem:[#allocation0] sm:$0xf]  }
  0x23   :  { %172 = vrot.lane.b32.xlu1 %v171_v14, %s558_s20  ;;  %v6_v27 = vld [vmem:[#allocation0] sm:$0xf]  }
  0x24   :  { %8 = vst.msk [vmem:[%s1102_s1] sm:$0x1] %vm7_vm0, %v6_v27   ;;  %387 = vst.msk [vmem:[%s1102_s1 + $0x1f] sm:$0x2] %vm7_vm0, %v6_v27   ;;  %v327_v28 = vld [vmem:[#allocation0] sm:$0xf]  }
  0x25   :  { %388 = vst.msk [vmem:[%s1102_s1 + $0x3e] sm:$0x4] %vm7_vm0, %v6_v27   ;;  %389 = vst.msk [vmem:[%s1102_s1 + $0x5d] sm:$0x8] %vm7_vm0, %v6_v27   ;;  %v339_v29 = vld [vmem:[#allocation0] sm:$0xf]  }
  0x26   :  { %184 = vrot.lane.b32.xlu0 %v183_v15, %s559_s21  ;;  %v351_v30 = vld [vmem:[#allocation0] sm:$0xf]  }
  0x27   :  { %196 = vrot.lane.b32.xlu1 %v195_v16, %s560_s22  ;;  %v363_v31 = vld [vmem:[#allocation0] sm:$0xf]  }
  0x28   :  { %v375_v32 = vld [vmem:[#allocation0] sm:$0xf]  }
  0x2a   :  { %208 = vrot.lane.b32.xlu0 %v207_v17, %s561_s23 }
  0x2b   :  { %220 = vrot.lane.b32.xlu1 %v219_v18, %s562_s24 }
  0x2e   :  { %232 = vrot.lane.b32.xlu0 %v231_v19, %s563_s25 }
  0x2f   :  { %244 = vrot.lane.b32.xlu1 %v243_v20, %s564_s26 }
  0x32   :  { %256 = vrot.lane.b32.xlu0 %v255_v21, %s565_s27 }
  0x33   :  { %268 = vrot.lane.b32.xlu1 %v267_v22, %s566_s28 }
  0x36   :  { %280 = vrot.lane.b32.xlu0 %v279_v23, %s567_s29 }
  0x37   :  { %292 = vrot.lane.b32.xlu1 %v291_v24, %s568_s30 }
  0x3a   :  { %304 = vrot.lane.b32.xlu0 %v303_v25, %s569_s9 }
  0x3b   :  { %316 = vrot.lane.b32.xlu1 %v315_v26, %s570_s10 }
  0x3e   :  { %328 = vrot.lane.b32.xlu0 %v327_v28, %s571_s11 }
  0x3f   :  { %340 = vrot.lane.b32.xlu1 %v339_v29, %s572_s12 }
  0x42   :  { %352 = vrot.lane.b32.xlu0 %v351_v30, %s573_s13 }
  0x43   :  { %364 = vrot.lane.b32.xlu1 %v363_v31, %s574_s14 }
  0x46   :  { %376 = vrot.lane.b32.xlu0 %v375_v32, %s575_s15 }
  0x7c   :  { %v17_v33 = vpop.permute.xlu0 %16  }
  0x7d   :  { %v41_v34 = vpop.permute.xlu1 %40   ;;  %390 = vst.msk [vmem:[%s1102_s1 + $0x1] sm:$0x1] %vm7_vm0, %v17_v33   ;;  %391 = vst.msk [vmem:[%s1102_s1 + $0x20] sm:$0x2] %vm7_vm0, %v17_v33  }
  0x7e   :  { %392 = vst.msk [vmem:[%s1102_s1 + $0x3f] sm:$0x4] %vm7_vm0, %v17_v33   ;;  %393 = vst.msk [vmem:[%s1102_s1 + $0x5e] sm:$0x8] %vm7_vm0, %v17_v33  }
  0x7f   :  { %398 = vst.msk [vmem:[%s1102_s1 + $0x3] sm:$0x1] %vm7_vm0, %v41_v34   ;;  %399 = vst.msk [vmem:[%s1102_s1 + $0x22] sm:$0x2] %vm7_vm0, %v41_v34  }
  0x80   :  { %400 = vst.msk [vmem:[%s1102_s1 + $0x41] sm:$0x4] %vm7_vm0, %v41_v34   ;;  %401 = vst.msk [vmem:[%s1102_s1 + $0x60] sm:$0x8] %vm7_vm0, %v41_v34   ;;  %v29_v35 = vpop.permute.xlu0 %28  }
  0x81   :  { %v53_v36 = vpop.permute.xlu1 %52   ;;  %394 = vst.msk [vmem:[%s1102_s1 + $0x2] sm:$0x1] %vm7_vm0, %v29_v35   ;;  %395 = vst.msk [vmem:[%s1102_s1 + $0x21] sm:$0x2] %vm7_vm0, %v29_v35  }
  0x82   :  { %396 = vst.msk [vmem:[%s1102_s1 + $0x40] sm:$0x4] %vm7_vm0, %v29_v35   ;;  %397 = vst.msk [vmem:[%s1102_s1 + $0x5f] sm:$0x8] %vm7_vm0, %v29_v35  }
  0x83   :  { %402 = vst.msk [vmem:[%s1102_s1 + $0x4] sm:$0x1] %vm7_vm0, %v53_v36   ;;  %403 = vst.msk [vmem:[%s1102_s1 + $0x23] sm:$0x2] %vm7_vm0, %v53_v36  }
  0x84   :  { %404 = vst.msk [vmem:[%s1102_s1 + $0x42] sm:$0x4] %vm7_vm0, %v53_v36   ;;  %405 = vst.msk [vmem:[%s1102_s1 + $0x61] sm:$0x8] %vm7_vm0, %v53_v36   ;;  %v65_v37 = vpop.permute.xlu0 %64  }
  0x85   :  { %v77_v38 = vpop.permute.xlu1 %76   ;;  %406 = vst.msk [vmem:[%s1102_s1 + $0x5] sm:$0x1] %vm7_vm0, %v65_v37   ;;  %407 = vst.msk [vmem:[%s1102_s1 + $0x24] sm:$0x2] %vm7_vm0, %v65_v37  }
  0x86   :  { %408 = vst.msk [vmem:[%s1102_s1 + $0x43] sm:$0x4] %vm7_vm0, %v65_v37   ;;  %409 = vst.msk [vmem:[%s1102_s1 + $0x62] sm:$0x8] %vm7_vm0, %v65_v37  }
  0x87   :  { %410 = vst.msk [vmem:[%s1102_s1 + $0x6] sm:$0x1] %vm7_vm0, %v77_v38   ;;  %411 = vst.msk [vmem:[%s1102_s1 + $0x25] sm:$0x2] %vm7_vm0, %v77_v38  }
  0x88   :  { %412 = vst.msk [vmem:[%s1102_s1 + $0x44] sm:$0x4] %vm7_vm0, %v77_v38   ;;  %413 = vst.msk [vmem:[%s1102_s1 + $0x63] sm:$0x8] %vm7_vm0, %v77_v38   ;;  %v89_v39 = vpop.permute.xlu0 %88  }
  0x89   :  { %v101_v40 = vpop.permute.xlu1 %100   ;;  %414 = vst.msk [vmem:[%s1102_s1 + $0x7] sm:$0x1] %vm7_vm0, %v89_v39   ;;  %415 = vst.msk [vmem:[%s1102_s1 + $0x26] sm:$0x2] %vm7_vm0, %v89_v39  }
  0x8a   :  { %416 = vst.msk [vmem:[%s1102_s1 + $0x45] sm:$0x4] %vm7_vm0, %v89_v39   ;;  %417 = vst.msk [vmem:[%s1102_s1 + $0x64] sm:$0x8] %vm7_vm0, %v89_v39  }
  0x8b   :  { %418 = vst.msk [vmem:[%s1102_s1 + $0x8] sm:$0x1] %vm7_vm0, %v101_v40   ;;  %419 = vst.msk [vmem:[%s1102_s1 + $0x27] sm:$0x2] %vm7_vm0, %v101_v40  }
  0x8c   :  { %420 = vst.msk [vmem:[%s1102_s1 + $0x46] sm:$0x4] %vm7_vm0, %v101_v40   ;;  %421 = vst.msk [vmem:[%s1102_s1 + $0x65] sm:$0x8] %vm7_vm0, %v101_v40   ;;  %v113_v41 = vpop.permute.xlu0 %112  }
  0x8d   :  { %v125_v42 = vpop.permute.xlu1 %124   ;;  %422 = vst.msk [vmem:[%s1102_s1 + $0x9] sm:$0x1] %vm7_vm0, %v113_v41   ;;  %423 = vst.msk [vmem:[%s1102_s1 + $0x28] sm:$0x2] %vm7_vm0, %v113_v41  }
  0x8e   :  { %424 = vst.msk [vmem:[%s1102_s1 + $0x47] sm:$0x4] %vm7_vm0, %v113_v41   ;;  %425 = vst.msk [vmem:[%s1102_s1 + $0x66] sm:$0x8] %vm7_vm0, %v113_v41  }
  0x8f   :  { %426 = vst.msk [vmem:[%s1102_s1 + $0xa] sm:$0x1] %vm7_vm0, %v125_v42   ;;  %427 = vst.msk [vmem:[%s1102_s1 + $0x29] sm:$0x2] %vm7_vm0, %v125_v42  }
  0x90   :  { %428 = vst.msk [vmem:[%s1102_s1 + $0x48] sm:$0x4] %vm7_vm0, %v125_v42   ;;  %429 = vst.msk [vmem:[%s1102_s1 + $0x67] sm:$0x8] %vm7_vm0, %v125_v42   ;;  %v137_v43 = vpop.permute.xlu0 %136  }
  0x91   :  { %v149_v44 = vpop.permute.xlu1 %148   ;;  %430 = vst.msk [vmem:[%s1102_s1 + $0xb] sm:$0x1] %vm7_vm0, %v137_v43   ;;  %431 = vst.msk [vmem:[%s1102_s1 + $0x2a] sm:$0x2] %vm7_vm0, %v137_v43  }
  0x92   :  { %432 = vst.msk [vmem:[%s1102_s1 + $0x49] sm:$0x4] %vm7_vm0, %v137_v43   ;;  %433 = vst.msk [vmem:[%s1102_s1 + $0x68] sm:$0x8] %vm7_vm0, %v137_v43  }
  0x93   :  { %434 = vst.msk [vmem:[%s1102_s1 + $0xc] sm:$0x1] %vm7_vm0, %v149_v44   ;;  %435 = vst.msk [vmem:[%s1102_s1 + $0x2b] sm:$0x2] %vm7_vm0, %v149_v44  }
  0x94   :  { %436 = vst.msk [vmem:[%s1102_s1 + $0x4a] sm:$0x4] %vm7_vm0, %v149_v44   ;;  %437 = vst.msk [vmem:[%s1102_s1 + $0x69] sm:$0x8] %vm7_vm0, %v149_v44   ;;  %v161_v45 = vpop.permute.xlu0 %160  }
  0x95   :  { %v173_v46 = vpop.permute.xlu1 %172   ;;  %438 = vst.msk [vmem:[%s1102_s1 + $0xd] sm:$0x1] %vm7_vm0, %v161_v45   ;;  %439 = vst.msk [vmem:[%s1102_s1 + $0x2c] sm:$0x2] %vm7_vm0, %v161_v45  }
  0x96   :  { %440 = vst.msk [vmem:[%s1102_s1 + $0x4b] sm:$0x4] %vm7_vm0, %v161_v45   ;;  %441 = vst.msk [vmem:[%s1102_s1 + $0x6a] sm:$0x8] %vm7_vm0, %v161_v45  }
  0x97   :  { %442 = vst.msk [vmem:[%s1102_s1 + $0xe] sm:$0x1] %vm7_vm0, %v173_v46   ;;  %443 = vst.msk [vmem:[%s1102_s1 + $0x2d] sm:$0x2] %vm7_vm0, %v173_v46  }
  0x98   :  { %444 = vst.msk [vmem:[%s1102_s1 + $0x4c] sm:$0x4] %vm7_vm0, %v173_v46   ;;  %445 = vst.msk [vmem:[%s1102_s1 + $0x6b] sm:$0x8] %vm7_vm0, %v173_v46   ;;  %v185_v47 = vpop.permute.xlu0 %184  }
  0x99   :  { %v197_v48 = vpop.permute.xlu1 %196   ;;  %446 = vst.msk [vmem:[%s1102_s1 + $0xf] sm:$0x1] %vm7_vm0, %v185_v47   ;;  %447 = vst.msk [vmem:[%s1102_s1 + $0x2e] sm:$0x2] %vm7_vm0, %v185_v47  }
  0x9a   :  { %448 = vst.msk [vmem:[%s1102_s1 + $0x4d] sm:$0x4] %vm7_vm0, %v185_v47   ;;  %449 = vst.msk [vmem:[%s1102_s1 + $0x6c] sm:$0x8] %vm7_vm0, %v185_v47  }
  0x9b   :  { %450 = vst.msk [vmem:[%s1102_s1 + $0x10] sm:$0x1] %vm7_vm0, %v197_v48   ;;  %451 = vst.msk [vmem:[%s1102_s1 + $0x2f] sm:$0x2] %vm7_vm0, %v197_v48  }
  0x9c   :  { %452 = vst.msk [vmem:[%s1102_s1 + $0x4e] sm:$0x4] %vm7_vm0, %v197_v48   ;;  %453 = vst.msk [vmem:[%s1102_s1 + $0x6d] sm:$0x8] %vm7_vm0, %v197_v48   ;;  %v209_v49 = vpop.permute.xlu0 %208  }
  0x9d   :  { %v221_v50 = vpop.permute.xlu1 %220   ;;  %454 = vst.msk [vmem:[%s1102_s1 + $0x11] sm:$0x1] %vm7_vm0, %v209_v49   ;;  %455 = vst.msk [vmem:[%s1102_s1 + $0x30] sm:$0x2] %vm7_vm0, %v209_v49  }
  0x9e   :  { %456 = vst.msk [vmem:[%s1102_s1 + $0x4f] sm:$0x4] %vm7_vm0, %v209_v49   ;;  %457 = vst.msk [vmem:[%s1102_s1 + $0x6e] sm:$0x8] %vm7_vm0, %v209_v49  }
  0x9f   :  { %458 = vst.msk [vmem:[%s1102_s1 + $0x12] sm:$0x1] %vm7_vm0, %v221_v50   ;;  %459 = vst.msk [vmem:[%s1102_s1 + $0x31] sm:$0x2] %vm7_vm0, %v221_v50  }
  0xa0   :  { %460 = vst.msk [vmem:[%s1102_s1 + $0x50] sm:$0x4] %vm7_vm0, %v221_v50   ;;  %461 = vst.msk [vmem:[%s1102_s1 + $0x6f] sm:$0x8] %vm7_vm0, %v221_v50   ;;  %v233_v51 = vpop.permute.xlu0 %232  }
  0xa1   :  { %v245_v52 = vpop.permute.xlu1 %244   ;;  %462 = vst.msk [vmem:[%s1102_s1 + $0x13] sm:$0x1] %vm7_vm0, %v233_v51   ;;  %463 = vst.msk [vmem:[%s1102_s1 + $0x32] sm:$0x2] %vm7_vm0, %v233_v51  }
  0xa2   :  { %464 = vst.msk [vmem:[%s1102_s1 + $0x51] sm:$0x4] %vm7_vm0, %v233_v51   ;;  %465 = vst.msk [vmem:[%s1102_s1 + $0x70] sm:$0x8] %vm7_vm0, %v233_v51  }
  0xa3   :  { %466 = vst.msk [vmem:[%s1102_s1 + $0x14] sm:$0x1] %vm7_vm0, %v245_v52   ;;  %467 = vst.msk [vmem:[%s1102_s1 + $0x33] sm:$0x2] %vm7_vm0, %v245_v52  }
  0xa4   :  { %468 = vst.msk [vmem:[%s1102_s1 + $0x52] sm:$0x4] %vm7_vm0, %v245_v52   ;;  %469 = vst.msk [vmem:[%s1102_s1 + $0x71] sm:$0x8] %vm7_vm0, %v245_v52   ;;  %v257_v53 = vpop.permute.xlu0 %256  }
  0xa5   :  { %v269_v54 = vpop.permute.xlu1 %268   ;;  %470 = vst.msk [vmem:[%s1102_s1 + $0x15] sm:$0x1] %vm7_vm0, %v257_v53   ;;  %471 = vst.msk [vmem:[%s1102_s1 + $0x34] sm:$0x2] %vm7_vm0, %v257_v53  }
  0xa6   :  { %472 = vst.msk [vmem:[%s1102_s1 + $0x53] sm:$0x4] %vm7_vm0, %v257_v53   ;;  %473 = vst.msk [vmem:[%s1102_s1 + $0x72] sm:$0x8] %vm7_vm0, %v257_v53  }
  0xa7   :  { %474 = vst.msk [vmem:[%s1102_s1 + $0x16] sm:$0x1] %vm7_vm0, %v269_v54   ;;  %475 = vst.msk [vmem:[%s1102_s1 + $0x35] sm:$0x2] %vm7_vm0, %v269_v54  }
  0xa8   :  { %476 = vst.msk [vmem:[%s1102_s1 + $0x54] sm:$0x4] %vm7_vm0, %v269_v54   ;;  %477 = vst.msk [vmem:[%s1102_s1 + $0x73] sm:$0x8] %vm7_vm0, %v269_v54   ;;  %v281_v55 = vpop.permute.xlu0 %280  }
  0xa9   :  { %v293_v56 = vpop.permute.xlu1 %292   ;;  %478 = vst.msk [vmem:[%s1102_s1 + $0x17] sm:$0x1] %vm7_vm0, %v281_v55   ;;  %479 = vst.msk [vmem:[%s1102_s1 + $0x36] sm:$0x2] %vm7_vm0, %v281_v55  }
  0xaa   :  { %480 = vst.msk [vmem:[%s1102_s1 + $0x55] sm:$0x4] %vm7_vm0, %v281_v55   ;;  %481 = vst.msk [vmem:[%s1102_s1 + $0x74] sm:$0x8] %vm7_vm0, %v281_v55  }
  0xab   :  { %482 = vst.msk [vmem:[%s1102_s1 + $0x18] sm:$0x1] %vm7_vm0, %v293_v56   ;;  %483 = vst.msk [vmem:[%s1102_s1 + $0x37] sm:$0x2] %vm7_vm0, %v293_v56  }
  0xac   :  { %484 = vst.msk [vmem:[%s1102_s1 + $0x56] sm:$0x4] %vm7_vm0, %v293_v56   ;;  %485 = vst.msk [vmem:[%s1102_s1 + $0x75] sm:$0x8] %vm7_vm0, %v293_v56   ;;  %v305_v57 = vpop.permute.xlu0 %304  }
  0xad   :  { %v317_v58 = vpop.permute.xlu1 %316   ;;  %486 = vst.msk [vmem:[%s1102_s1 + $0x19] sm:$0x1] %vm7_vm0, %v305_v57   ;;  %487 = vst.msk [vmem:[%s1102_s1 + $0x38] sm:$0x2] %vm7_vm0, %v305_v57  }
  0xae   :  { %488 = vst.msk [vmem:[%s1102_s1 + $0x57] sm:$0x4] %vm7_vm0, %v305_v57   ;;  %489 = vst.msk [vmem:[%s1102_s1 + $0x76] sm:$0x8] %vm7_vm0, %v305_v57  }
  0xaf   :  { %490 = vst.msk [vmem:[%s1102_s1 + $0x1a] sm:$0x1] %vm7_vm0, %v317_v58   ;;  %491 = vst.msk [vmem:[%s1102_s1 + $0x39] sm:$0x2] %vm7_vm0, %v317_v58  }
  0xb0   :  { %492 = vst.msk [vmem:[%s1102_s1 + $0x58] sm:$0x4] %vm7_vm0, %v317_v58   ;;  %493 = vst.msk [vmem:[%s1102_s1 + $0x77] sm:$0x8] %vm7_vm0, %v317_v58   ;;  %v329_v59 = vpop.permute.xlu0 %328  }
  0xb1   :  { %v341_v60 = vpop.permute.xlu1 %340   ;;  %494 = vst.msk [vmem:[%s1102_s1 + $0x1b] sm:$0x1] %vm7_vm0, %v329_v59   ;;  %495 = vst.msk [vmem:[%s1102_s1 + $0x3a] sm:$0x2] %vm7_vm0, %v329_v59  }
  0xb2   :  { %496 = vst.msk [vmem:[%s1102_s1 + $0x59] sm:$0x4] %vm7_vm0, %v329_v59   ;;  %497 = vst.msk [vmem:[%s1102_s1 + $0x78] sm:$0x8] %vm7_vm0, %v329_v59  }
  0xb3   :  { %498 = vst.msk [vmem:[%s1102_s1 + $0x1c] sm:$0x1] %vm7_vm0, %v341_v60   ;;  %499 = vst.msk [vmem:[%s1102_s1 + $0x3b] sm:$0x2] %vm7_vm0, %v341_v60  }
  0xb4   :  { %500 = vst.msk [vmem:[%s1102_s1 + $0x5a] sm:$0x4] %vm7_vm0, %v341_v60   ;;  %501 = vst.msk [vmem:[%s1102_s1 + $0x79] sm:$0x8] %vm7_vm0, %v341_v60   ;;  %v353_v61 = vpop.permute.xlu0 %352  }
  0xb5   :  { %v365_v62 = vpop.permute.xlu1 %364   ;;  %502 = vst.msk [vmem:[%s1102_s1 + $0x1d] sm:$0x1] %vm7_vm0, %v353_v61   ;;  %503 = vst.msk [vmem:[%s1102_s1 + $0x3c] sm:$0x2] %vm7_vm0, %v353_v61  }
  0xb6   :  { %504 = vst.msk [vmem:[%s1102_s1 + $0x5b] sm:$0x4] %vm7_vm0, %v353_v61   ;;  %505 = vst.msk [vmem:[%s1102_s1 + $0x7a] sm:$0x8] %vm7_vm0, %v353_v61  }
  0xb7   :  { %506 = vst.msk [vmem:[%s1102_s1 + $0x1e] sm:$0x1] %vm7_vm0, %v365_v62   ;;  %507 = vst.msk [vmem:[%s1102_s1 + $0x3d] sm:$0x2] %vm7_vm0, %v365_v62  }
  0xb8   :  { %508 = vst.msk [vmem:[%s1102_s1 + $0x5c] sm:$0x4] %vm7_vm0, %v365_v62   ;;  %509 = vst.msk [vmem:[%s1102_s1 + $0x7b] sm:$0x8] %vm7_vm0, %v365_v62   ;;  %v377_v63 = vpop.permute.xlu0 %376  }
  0xb9   :  { %510 = vst.msk [vmem:[%s1102_s1 + $0x1f] sm:$0x1] %vm7_vm0, %v377_v63   ;;  %511 = vst.msk [vmem:[%s1102_s1 + $0x3e] sm:$0x2] %vm7_vm0, %v377_v63  }
  0xba   :  { %512 = vst.msk [vmem:[%s1102_s1 + $0x5d] sm:$0x4] %vm7_vm0, %v377_v63   ;;  %513 = vst.msk [vmem:[%s1102_s1 + $0x7c] sm:$0x8] %vm7_vm0, %v377_v63  }

// kernel: decompose_net_forward.18
= control target key start
LH: loop header
LB: loop body
LE: loop exit
PB: predicated region body
PF: predicated region fallthrough
CT: control target
= control target key end

     0   :  { %v36_v0 = vlaneseq  ;;  %s519_s29 = smov 1   ;;  %s520_s30 = smov 4   ;;  %v525_v23 = vmov 0   ;;  %vm199_vm0 = vcmask 130048   ;;  %vm291_vm1 = vcmask 261120   ;;  %s750_s1 = inlined_call_operand.vmem [shape: f32[9,32], index: 1, kind: input, shape index: {}]   ;;  %s751_s0 = inlined_call_operand.vmem [shape: f32[16,42], index: 0, kind: input, shape index: {}]   ;;  %s752_s2 = inlined_call_operand.vmem [shape: f32[32,144], index: 2, kind: input, shape index: {}]   ;;  %s753_s3 = inlined_call_operand.vmem [shape: f32[32,1], index: 3, kind: input, shape index: {}]   ;;  %s754_s5 = inlined_call_operand.vmem [shape: f32[32,1], index: 5, kind: input, shape index: {}]   ;;  %s755_s4 = inlined_call_operand.vmem [shape: f32[32,32], index: 4, kind: input, shape index: {}]   ;;  %s756_s7 = inlined_call_operand.vmem [shape: f32[32,1], index: 7, kind: input, shape index: {}]   ;;  %s757_s6 = inlined_call_operand.vmem [shape: f32[32,1], index: 6, kind: input, shape index: {}]   ;;  %s758_s8 = inlined_call_operand.vmem [shape: f32[32,32], index: 8, kind: output, shape index: {}]  }
   0x1   :  { %v34_v2 = vld [vmem:[%s750_s1] sm:$0xff]  ;;  %s521_s9 = smov 2   ;;  %s522_s10 = smov 5   ;;  %v31_v17 = vld [vmem:[%s751_s0 + $0x8] sm:$0xff]  ;;  %206 = vmatprep.subr.bf16.mxu0 %v525_v23  ;;  %510 = vset.pattern.permute.xlu1 %v525_v23  ;;  %v166_v61 = vld [vmem:[%s752_s2 + $0x18] sm:$0xff] }
   0x2   :  { %v37_v1 = vshrl.u32 %v36_v0, 7  ;;  %v30_v16 = vld [vmem:[%s751_s0] sm:$0xff]  ;;  %s523_s15 = smov 6   ;;  %s524_s16 = smov 8   ;;  %v475_v20 = vld [vmem:[%s750_s1 + $0x8] ss:$0 sm:$0xff]  ;;  %509 = vset.pattern.permute.xlu0 %v525_v23 }
   0x3   :  { %v32_v21 = vmax.f32 %v30_v16, 0.0  ;;  %v33_v22 = vmax.f32 %v31_v17, 0.0  ;;  %s526_s0 = smov 9   ;;  %s527_s19 = smov 10   ;;  %v164_v60 = vld [vmem:[%s752_s2 + $0x8] sm:$0xff]  ;;  %v175_v0 = vld [vmem:[%s753_s3] sm:$0xff] }
   0x4   :  { %v45_v3 = vsub.s32 1, %v37_v1  ;;  %v56_v4 = vsub.s32 2, %v37_v1  ;;  %v67_v5 = vsub.s32 3, %v37_v1  ;;  %v78_v6 = vsub.s32 4, %v37_v1  ;;  %s528_s1 = smov 127   ;;  %s529_s20 = smov 126  }
   0x5   :  { %v89_v11 = vsub.s32 5, %v37_v1  ;;  %v100_v12 = vsub.s32 6, %v37_v1  ;;  %v111_v15 = vsub.s32 7, %v37_v1  ;;  %v38_v18 = vsub.s32 0, %v37_v1  ;;  %s530_s21 = smov 124   ;;  %s531_s22 = smov 123  }
   0x6   :  { %v46_v7 = vrot.slane %v34_v2, %v45_v3  ;;  %v68_v8 = vrot.slane %v34_v2, %v67_v5  ;;  %v57_v9 = vrot.slane %v34_v2, %v56_v4  ;;  %v79_v10 = vrot.slane %v34_v2, %v78_v6  ;;  %s532_s23 = smov 122   ;;  %s533_s24 = smov 120   ;;  %v176_v63 = vld [vmem:[%s753_s3 + $0x8] sm:$0xff]  ;;  %v177_v1 = vld [vmem:[%s753_s3 + $0x10] sm:$0xff]  ;;  %v267_v3 = vld [vmem:[%s754_s5] sm:$0xff] }
   0x7   :  { %v90_v13 = vrot.slane %v34_v2, %v89_v11  ;;  %v101_v14 = vrot.slane %v34_v2, %v100_v12  ;;  %v112_v19 = vrot.slane %v34_v2, %v111_v15  ;;  %v39_v24 = vrot.slane %v34_v2, %v38_v18  ;;  %s534_s25 = smov 119   ;;  %v178_v2 = vld [vmem:[%s753_s3 + $0x18] sm:$0xff]  ;;  %v268_v4 = vld [vmem:[%s754_s5 + $0x8] sm:$0xff]  ;;  %v269_v5 = vld [vmem:[%s754_s5 + $0x10] sm:$0xff] }
   0x8   :  { %48 = vrot.lane.b32.xlu0 %v46_v7, %s519_s29  ;;  %70 = vrot.lane.b32.xlu1 %v68_v8, %s520_s30  ;;  %v172_v62 = vpack.c.bf16 %v166_v61, %v164_v60  ;;  %s535_s30 = smov 118   ;;  %v270_v6 = vld [vmem:[%s754_s5 + $0x18] sm:$0xff]  ;;  %v165_v15 = vld [vmem:[%s752_s2 + $0x10] sm:$0xff] }
   0x9   :  { %v40_v25 = vmul.f32 %v39_v24, %v32_v21  ;;  %v41_v26 = vmul.f32 %v39_v24, %v33_v22  ;;  %v168_v17 = vld [vmem:[%s752_s2 + $0x28] sm:$0xff]  ;;  %v170_v18 = vld [vmem:[%s752_s2 + $0x38] sm:$0xff]  ;;  %v259_v24 = vld [vmem:[%s755_s4] sm:$0xff] }
   0xa   :  { %476 = vmatprep.mubr.msk.bf16.mxu0 %vm199_vm0, %v172_v62 }
   0xb   :  { %v42_v27 = vpack.c.bf16 %v41_v26, %v40_v25  ;;  %v260_v25 = vld [vmem:[%s755_s4 + $0x8] sm:$0xff] }
   0xc   :  { %59 = vrot.lane.b32.xlu0 %v57_v9, %s521_s9  ;;  %81 = vrot.lane.b32.xlu1 %v79_v10, %s522_s10  ;;  %v263_v26 = vpack.c.bf16 %v260_v25, %v259_v24 }
   0xd   :  { %207 = vmatpush1.bf16.msra.mxu0 %v42_v27 }
   0xe   :  { %208 = vmatprep.subr.bf16.mxu0 %v525_v23  ;;  %488 = vmatprep.mubr.msk.bf16.mxu1 %vm291_vm1, %v263_v26 }
  0x10   :  { %92 = vrot.lane.b32.xlu0 %v90_v13, %s523_s15  ;;  %103 = vrot.lane.b32.xlu1 %v101_v14, %s524_s16  ;;  %v163_v14 = vld [vmem:[%s752_s2] sm:$0xff] }
  0x14   :  { %114 = vrot.lane.b32.xlu0 %v112_v19, %s526_s0  ;;  %125 = vrot.lane.b32.xlu1 %v475_v20, %s527_s19  ;;  %v171_v19 = vpack.c.bf16 %v165_v15, %v163_v14  ;;  %v174_v20 = vpack.c.bf16 %v170_v18, %v168_v17 }
  0x7a   :  { %v49_v28 = vpop.permute.xlu0 %48  ;;  %v71_v29 = vpop.permute.xlu1 %70 }
  0x7b   :  { %v51_v30 = vmul.f32 %v49_v28, %v32_v21  ;;  %v52_v31 = vmul.f32 %v49_v28, %v33_v22  ;;  %v73_v32 = vmul.f32 %v71_v29, %v32_v21  ;;  %v74_v33 = vmul.f32 %v71_v29, %v33_v22 }
  0x7d   :  { %v53_v34 = vpack.c.bf16 %v52_v31, %v51_v30  ;;  %v75_v36 = vpack.c.bf16 %v74_v33, %v73_v32 }
  0x7e   :  { %v60_v35 = vpop.permute.xlu0 %59  ;;  %v82_v37 = vpop.permute.xlu1 %81 }
  0x7f   :  { %v62_v38 = vmul.f32 %v60_v35, %v32_v21  ;;  %v63_v39 = vmul.f32 %v60_v35, %v33_v22  ;;  %132 = vrot.lane.b32.xlu0 %v53_v34, %s528_s1  ;;  %v84_v40 = vmul.f32 %v82_v37, %v32_v21  ;;  %v85_v41 = vmul.f32 %v82_v37, %v33_v22 }
  0x81   :  { %v64_v42 = vpack.c.bf16 %v63_v39, %v62_v38  ;;  %v86_v43 = vpack.c.bf16 %v85_v41, %v84_v40 }
  0x82   :  { %v93_v44 = vpop.permute.xlu0 %92  ;;  %v104_v45 = vpop.permute.xlu1 %103 }
  0x83   :  { %136 = vrot.lane.b32.xlu1 %v64_v42, %s529_s20  ;;  %140 = vrot.lane.b32.xlu0 %v75_v36, %s530_s21  ;;  %v95_v46 = vmul.f32 %v93_v44, %v32_v21  ;;  %v96_v47 = vmul.f32 %v93_v44, %v33_v22  ;;  %v106_v48 = vmul.f32 %v104_v45, %v32_v21 }
  0x84   :  { %v107_v49 = vmul.f32 %v104_v45, %v33_v22 }
  0x85   :  { %v97_v50 = vpack.c.bf16 %v96_v47, %v95_v46 }
  0x86   :  { %v108_v51 = vpack.c.bf16 %v107_v49, %v106_v48  ;;  %v115_v52 = vpop.permute.xlu0 %114  ;;  %v126_v53 = vpop.permute.xlu1 %125  ;;  %v261_v48 = vld [vmem:[%s755_s4 + $0x10] sm:$0xff]  ;;  %v262_v49 = vld [vmem:[%s755_s4 + $0x18] sm:$0xff] }
  0x87   :  { %144 = vrot.lane.b32.xlu1 %v86_v43, %s531_s22  ;;  %148 = vrot.lane.b32.xlu0 %v97_v50, %s532_s23  ;;  %v117_v54 = vmul.f32 %v115_v52, %v32_v21  ;;  %v118_v55 = vmul.f32 %v115_v52, %v33_v22  ;;  %v128_v56 = vmul.f32 %v126_v53, %v32_v21  ;;  %v167_v21 = vld [vmem:[%s752_s2 + $0x20] sm:$0xff] }
  0x88   :  { %v129_v57 = vmul.f32 %v126_v53, %v33_v22  ;;  %v169_v22 = vld [vmem:[%s752_s2 + $0x30] sm:$0xff] }
  0x89   :  { %v119_v58 = vpack.c.bf16 %v118_v55, %v117_v54 }
  0x8a   :  { %v130_v59 = vpack.c.bf16 %v129_v57, %v128_v56 }
  0x8b   :  { %152 = vrot.lane.b32.xlu1 %v108_v51, %s533_s24  ;;  %156 = vrot.lane.b32.xlu0 %v119_v58, %s534_s25  ;;  %v264_v51 = vpack.c.bf16 %v262_v49, %v261_v48  ;;  %v349_v49 = vld [vmem:[%s757_s6 + $0x10] sm:$0xff] }
  0x8f   :  { %160 = vrot.lane.b32.xlu1 %v130_v59, %s535_s30  ;;  %181 = vperm.xlu0 %509, %v175_v0  }
  0x93   :  { %186 = vperm.xlu1 %510, %v176_v63   ;;  %196 = vperm.xlu0 %509, %v178_v2  }
  0x97   :  { %191 = vperm.xlu1 %510, %v177_v1   ;;  %278 = vperm.xlu0 %509, %v268_v4  }
  0x9b   :  { %273 = vperm.xlu1 %510, %v267_v3   ;;  %288 = vperm.xlu0 %509, %v270_v6  }
  0x9f   :  { %283 = vperm.xlu1 %510, %v269_v5  }
  0xf1   :  { %v133_v7 = vpop.permute.xlu0 %132 }
  0xf2   :  { %209 = vmatpush1.bf16.msra.mxu0 %v133_v7 }
  0xf3   :  { %210 = vmatprep.subr.bf16.mxu0 %v525_v23 }
  0xf5   :  { %v137_v8 = vpop.permute.xlu1 %136  ;;  %v141_v9 = vpop.permute.xlu0 %140 }
  0xf6   :  { %211 = vmatpush1.bf16.msra.mxu0 %v137_v8 }
  0xf7   :  { %212 = vmatprep.subr.bf16.mxu0 %v525_v23 }
  0xf9   :  { %v145_v10 = vpop.permute.xlu1 %144  ;;  %v149_v11 = vpop.permute.xlu0 %148 }
  0xfa   :  { %213 = vmatpush1.bf16.msra.mxu0 %v141_v9 }
  0xfb   :  { %214 = vmatprep.subr.bf16.mxu0 %v525_v23 }
  0xfd   :  { %v153_v12 = vpop.permute.xlu1 %152  ;;  %v157_v13 = vpop.permute.xlu0 %156 }
  0xfe   :  { %215 = vmatpush1.bf16.msra.mxu0 %v145_v10 }
  0xff   :  { %216 = vmatprep.subr.bf16.mxu0 %v525_v23 }
 0x101   :  { %v161_v16 = vpop.permute.xlu1 %160 }
 0x102   :  { %217 = vmatpush1.bf16.msra.mxu0 %v149_v11 }
 0x103   :  { %218 = vmatprep.subr.bf16.mxu0 %v525_v23 }
 0x106   :  { %219 = vmatpush1.bf16.msra.mxu0 %v153_v12  ;;  %v351_v12 = vld [vmem:[%s756_s7] sm:$0xff] }
 0x107   :  { %220 = vmatprep.subr.bf16.mxu0 %v525_v23 }
 0x10a   :  { %221 = vmatpush1.bf16.msra.mxu0 %v157_v13  ;;  %v352_v13 = vld [vmem:[%s756_s7 + $0x8] sm:$0xff] }
 0x10b   :  { %222 = vmatprep.subr.bf16.mxu0 %v525_v23  ;;  %v173_v23 = vpack.c.bf16 %v169_v22, %v167_v21 }
 0x10e   :  { %223 = vmatpush1.bf16.msra.mxu0 %v161_v16  ;;  %v182_v27 = vpop.permute.xlu0 %181 }
 0x111   :  { %239 = vmatmul.mubr.bf16.vlgmr.msra.gmra.mrb[0].mxu0 %v171_v19 }
 0x112   :  { %477 = vmatprep.mubr.msk.bf16.mxu0 %vm199_vm0, %v174_v20  ;;  %v187_v31 = vpop.permute.xlu1 %186  ;;  %v197_v42 = vpop.permute.xlu0 %196 }
 0x116   :  { %v192_v38 = vpop.permute.xlu1 %191  ;;  %v279_v53 = vpop.permute.xlu0 %278 }
 0x119   :  { %247 = vmatmul.mubr.bf16.gmra.mrb[4].mxu0 %v173_v23 }
 0x11a   :  { %v274_v52 = vpop.permute.xlu1 %273  ;;  %v289_v60 = vpop.permute.xlu0 %288 }
 0x11e   :  { %v284_v54 = vpop.permute.xlu1 %283 }
 0x1e4   :  { %v240_v28 = vpop.f32.mrb[0].mxu0 }
 0x1e5   :  { %v241_v29 = vadd.f32 %v240_v28, %v182_v27  ;;  %v242_v30 = vpop.f32.mrb[1].mxu0 }
 0x1e6   :  { %v243_v32 = vpop.f32.mrb[2].mxu0 }
 0x1e7   :  { %v244_v33 = vadd.f32 %v243_v32, %v187_v31  ;;  %v245_v34 = vpop.f32.mrb[3].mxu0  ;;  %v255_v35 = vmax.f32 %v241_v29, 0.0 }
 0x1e9   :  { %v256_v36 = vmax.f32 %v244_v33, 0.0 }
 0x1eb   :  { %v265_v37 = vpack.c.bf16 %v256_v36, %v255_v35 }
 0x1ec   :  { %v248_v39 = vpop.f32.mrb[4].mxu0 }
 0x1ed   :  { %v249_v40 = vadd.f32 %v248_v39, %v192_v38  ;;  %v250_v41 = vpop.f32.mrb[5].mxu0  ;;  %484 = vmatprep.subr.bf16.mxu1 %v265_v37 }
 0x1ee   :  { %v251_v43 = vpop.f32.mrb[6].mxu0  ;;  %485 = vmatpush3.bf16.msra.mxu1 %v265_v37 }
 0x1ef   :  { %v252_v44 = vadd.f32 %v251_v43, %v197_v42  ;;  %v253_v45 = vpop.f32.mrb[7].mxu0  ;;  %v257_v46 = vmax.f32 %v249_v40, 0.0 }
 0x1f1   :  { %v258_v47 = vmax.f32 %v252_v44, 0.0 }
 0x1f3   :  { %v266_v50 = vpack.c.bf16 %v258_v47, %v257_v46  ;;  %v347_v46 = vld [vmem:[%s757_s6] sm:$0xff] }
 0x1f5   :  { %486 = vmatprep.subr.bf16.mxu1 %v266_v50 }
 0x1f6   :  { %487 = vmatpush3.bf16.msra.mxu1 %v266_v50  ;;  %v350_v50 = vld [vmem:[%s757_s6 + $0x18] sm:$0xff] }
 0x1f9   :  { %489 = vmatmul.mubr.msk.bf16.vlgmr.msra.gmra.mrb[0].mxu1 %vm291_vm1, %v264_v51 }
 0x2cc   :  { %v490_v55 = vpop.f32.mrb[0].mxu1 }
 0x2cd   :  { %v668_v56 = vadd.f32 %v490_v55, %v284_v54  ;;  %v332_v57 = vpop.f32.mrb[1].mxu1 }
 0x2ce   :  { %v670_v58 = vadd.f32 %v332_v57, %v274_v52  ;;  %v491_v59 = vpop.f32.mrb[2].mxu1  ;;  %v348_v57 = vld [vmem:[%s757_s6 + $0x8] sm:$0xff] }
 0x2cf   :  { %v335_v61 = vpop.f32.mrb[3].mxu1  ;;  %v361_v62 = vsel %vm291_vm1, %v668_v56, 0.0  ;;  %v674_v63 = vadd.f32 %v491_v59, %v289_v60  ;;  %v373_v7 = vmul.f32 %v668_v56, %v668_v56  ;;  %v354_v60 = vld [vmem:[%s756_s7 + $0x18] sm:$0xff] }
 0x2d0   :  { %v676_v0 = vadd.f32 %v335_v61, %v279_v53  ;;  %362 = vadd.xlane.f32.xlu0 %v361_v62  ;;  %v355_v1 = vsel %vm291_vm1, %v670_v58, 0.0  ;;  %v371_v3 = vmul.f32 %v670_v58, %v670_v58  ;;  %v353_v61 = vld [vmem:[%s756_s7 + $0x10] sm:$0xff] }
 0x2d1   :  { %356 = vadd.xlane.f32.xlu1 %v355_v1  ;;  %v364_v4 = vsel %vm291_vm1, %v674_v63, 0.0  ;;  %v374_v9 = vmul.f32 %v674_v63, %v674_v63  ;;  %v381_v10 = vsel %vm291_vm1, %v373_v7, 0.0 }
 0x2d2   :  { %v358_v2 = vsel %vm291_vm1, %v676_v0, 0.0  ;;  %v372_v5 = vmul.f32 %v676_v0, %v676_v0  ;;  %v375_v6 = vsel %vm291_vm1, %v371_v3, 0.0 }
 0x2d3   :  { %v384_v11 = vsel %vm291_vm1, %v374_v9, 0.0 }
 0x2d4   :  { %359 = vadd.xlane.f32.xlu0 %v358_v2  ;;  %v378_v8 = vsel %vm291_vm1, %v372_v5, 0.0 }
 0x2d5   :  { %365 = vadd.xlane.f32.xlu1 %v364_v4 }
 0x2d8   :  { %376 = vadd.xlane.f32.xlu0 %v375_v6 }
 0x2d9   :  { %379 = vadd.xlane.f32.xlu1 %v378_v8 }
 0x2dc   :  { %382 = vadd.xlane.f32.xlu0 %v381_v10 }
 0x2dd   :  { %385 = vadd.xlane.f32.xlu1 %v384_v11 }
 0x2ee   :  { %445 = vperm.xlu1 %510, %v351_v12  }
 0x2f2   :  { %450 = vperm.xlu0 %509, %v352_v13  }
 0x35d   :  { %v363_v14 = vpop.xlane.xlu0 %362 }
 0x35e   :  { %v357_v15 = vpop.xlane.xlu1 %356  ;;  %v704_v21 = vmul.f32 0.03125, %v363_v14 }
 0x35f   :  { %v367_v17 = vmul.f32 0.03125, %v357_v15 }
 0x360   :  { %v393_v31 = vmul.f32 %v704_v21, %v704_v21 }
 0x361   :  { %v360_v16 = vpop.xlane.xlu0 %359  ;;  %v391_v22 = vmul.f32 %v367_v17, %v367_v17  ;;  %v415_v1 = vsub.f32 %v670_v58, %v367_v17  ;;  %v417_v58 = vsub.f32 %v668_v56, %v704_v21 }
 0x362   :  { %v366_v18 = vpop.xlane.xlu1 %365  ;;  %v702_v19 = vmul.f32 0.03125, %v360_v16 }
 0x363   :  { %v370_v26 = vmul.f32 0.03125, %v366_v18 }
 0x364   :  { %v392_v25 = vmul.f32 %v702_v19, %v702_v19  ;;  %v416_v9 = vsub.f32 %v676_v0, %v702_v19 }
 0x365   :  { %v377_v20 = vpop.xlane.xlu0 %376  ;;  %v394_v35 = vmul.f32 %v370_v26, %v370_v26  ;;  %v418_v8 = vsub.f32 %v674_v63, %v370_v26 }
 0x366   :  { %v387_v23 = vmul.f32 0.03125, %v377_v20  ;;  %v380_v24 = vpop.xlane.xlu1 %379 }
 0x367   :  { %v388_v27 = vmul.f32 0.03125, %v380_v24 }
 0x368   :  { %v395_v28 = vsub.f32 %v387_v23, %v391_v22 }
 0x369   :  { %v396_v29 = vsub.f32 %v388_v27, %v392_v25  ;;  %v383_v30 = vpop.xlane.xlu0 %382 }
 0x36a   :  { %v399_v32 = vmax.f32 %v395_v28, 0.0  ;;  %v389_v33 = vmul.f32 0.03125, %v383_v30  ;;  %v386_v34 = vpop.xlane.xlu1 %385 }
 0x36b   :  { %v390_v36 = vmul.f32 0.03125, %v386_v34  ;;  %v400_v38 = vmax.f32 %v396_v29, 0.0 }
 0x36c   :  { %v403_v37 = vadd.f32 1e-05, %v399_v32  ;;  %v397_v39 = vsub.f32 %v389_v33, %v393_v31 }
 0x36d   :  { %v398_v40 = vsub.f32 %v390_v36, %v394_v35  ;;  %v404_v43 = vadd.f32 1e-05, %v400_v38 }
 0x36e   :  { %511 = vrsqrt.f32 %v403_v37  ;;  %v401_v41 = vmax.f32 %v397_v39, 0.0  ;;  %v446_v2 = vpop.permute.xlu1 %445 }
 0x36f   :  { %v402_v42 = vmax.f32 %v398_v40, 0.0 }
 0x370   :  { %v405_v44 = vadd.f32 1e-05, %v401_v41 }
 0x371   :  { %v406_v45 = vadd.f32 1e-05, %v402_v42  ;;  %v451_v62 = vpop.permute.xlu0 %450 }
 0x372   :  { %513 = vrsqrt.f32 %v405_v44 }
 0x373   :  { %515 = vrsqrt.f32 %v406_v45 }
 0x374   :  { %517 = vrsqrt.f32 %v404_v43 }
 0x378   :  { %v512_v47 = vpop.eup %511 }
 0x379   :  { %v411_v48 = vmul.f32 %v512_v47, %v347_v46 }
 0x37b   :  { %421 = vperm.xlu0 %509, %v411_v48  }
 0x37c   :  { %v514_v51 = vpop.eup %513 }
 0x37d   :  { %v516_v52 = vpop.eup %515  ;;  %v413_v53 = vmul.f32 %v514_v51, %v349_v49 }
 0x37e   :  { %v518_v54 = vpop.eup %517  ;;  %v414_v55 = vmul.f32 %v516_v52, %v350_v50 }
 0x37f   :  { %431 = vperm.xlu1 %510, %v413_v53   ;;  %v412_v59 = vmul.f32 %v518_v54, %v348_v57 }
 0x380   :  { %436 = vperm.xlu0 %509, %v414_v55  }
 0x383   :  { %426 = vperm.xlu1 %510, %v412_v59  }
 0x384   :  { %460 = vperm.xlu0 %509, %v354_v60  }
 0x387   :  { %455 = vperm.xlu1 %510, %v353_v61  }
 0x3fa   :  { %v422_v3 = vpop.permute.xlu0 %421 }
 0x3fb   :  { %v439_v4 = vmul.f32 %v422_v3, %v415_v1 }
 0x3fd   :  { %v463_v5 = vadd.f32 %v446_v2, %v439_v4 }
 0x3fe   :  { %v432_v6 = vpop.permute.xlu1 %431 }
 0x3ff   :  { %467 = vst.msk [vmem:[%s758_s8] sm:$0xff] %vm291_vm1, %v463_v5  ;;  %v437_v7 = vpop.permute.xlu0 %436  ;;  %v441_v15 = vmul.f32 %v432_v6, %v417_v58 }
 0x400   :  { %v442_v10 = vmul.f32 %v437_v7, %v418_v8 }
 0x402   :  { %v427_v11 = vpop.permute.xlu1 %426 }
 0x403   :  { %v440_v12 = vmul.f32 %v427_v11, %v416_v9  ;;  %v461_v13 = vpop.permute.xlu0 %460 }
 0x404   :  { %v466_v14 = vadd.f32 %v461_v13, %v442_v10 }
 0x405   :  { %v464_v16 = vadd.f32 %v451_v62, %v440_v12 }
 0x406   :  { %470 = vst.msk [vmem:[%s758_s8 + $0x18] sm:$0xff] %vm291_vm1, %v466_v14  ;;  %v456_v17 = vpop.permute.xlu1 %455 }
 0x407   :  { %468 = vst.msk [vmem:[%s758_s8 + $0x8] sm:$0xff] %vm291_vm1, %v464_v16  ;;  %v465_v63 = vadd.f32 %v456_v17, %v441_v15 }
 0x409   :  { %469 = vst.msk [vmem:[%s758_s8 + $0x10] sm:$0xff] %vm291_vm1, %v465_v63 }

// kernel: decompose_net_forward.19
= control target key start
LH: loop header
LB: loop body
LE: loop exit
PB: predicated region body
PF: predicated region fallthrough
CT: control target
= control target key end

     0   :  { %v24_v0 = vlaneseq  ;;  %s755_s17 = smov 5   ;;  %s756_s18 = smov 1   ;;  %vm378_vm0 = vcmask 261120   ;;  %s1152_s1 = inlined_call_operand.vmem [shape: f32[9,32], index: 1, kind: input, shape index: {}]   ;;  %s1153_s0 = inlined_call_operand.vmem [shape: f32[32,42], index: 0, kind: input, shape index: {}]   ;;  %s1154_s2 = inlined_call_operand.vmem [shape: f32[128,288], index: 2, kind: input, shape index: {}]   ;;  %s1155_s3 = inlined_call_operand.vmem [shape: f32[128,1], index: 3, kind: input, shape index: {}]   ;;  %s1156_s4 = inlined_call_operand.vmem [shape: f32[128,32], index: 4, kind: output, shape index: {}]  }
   0x1   :  { %v22_v2 = vld [vmem:[%s1152_s1] sm:$0xff]  ;;  %s757_s19 = smov 6   ;;  %s758_s20 = smov 8   ;;  %v617_v17 = vld [vmem:[%s1152_s1 + $0x8] ss:$0 sm:$0xff]  ;;  %v820_v25 = vld [vmem:[%s1153_s0 + $0x10] sm:$0xff] }
   0x2   :  { %v25_v1 = vshrl.u32 %v24_v0, 7  ;;  %s759_s21 = smov 2   ;;  %s760_s22 = smov 9   ;;  %v806_v20 = vld [vmem:[%s1153_s0] sm:$0xff]  ;;  %v811_v21 = vld [vmem:[%s1153_s0 + $0x8] sm:$0xff]  ;;  %v825_v26 = vld [vmem:[%s1153_s0 + $0x18] sm:$0xff] }
   0x3   :  { %s761_s25 = smov 4   ;;  %s762_s26 = smov 10  }
   0x4   :  { %v78_v3 = vsub.s32 4, %v25_v1  ;;  %v92_v4 = vsub.s32 5, %v25_v1  ;;  %v36_v5 = vsub.s32 1, %v25_v1  ;;  %v106_v6 = vsub.s32 6, %v25_v1  ;;  %s763_s0 = smov 123   ;;  %s764_s8 = smov 127  }
   0x5   :  { %v50_v11 = vsub.s32 2, %v25_v1  ;;  %v120_v12 = vsub.s32 7, %v25_v1  ;;  %v64_v15 = vsub.s32 3, %v25_v1  ;;  %v26_v18 = vsub.s32 0, %v25_v1  ;;  %s765_s9 = smov 122   ;;  %s766_s10 = smov 126  }
   0x6   :  { %v79_v7 = vrot.slane %v22_v2, %v78_v3  ;;  %v37_v8 = vrot.slane %v22_v2, %v36_v5  ;;  %v93_v9 = vrot.slane %v22_v2, %v92_v4  ;;  %v107_v10 = vrot.slane %v22_v2, %v106_v6  ;;  %s767_s11 = smov 120  }
   0x7   :  { %v51_v13 = vrot.slane %v22_v2, %v50_v11  ;;  %v121_v14 = vrot.slane %v22_v2, %v120_v12  ;;  %v65_v16 = vrot.slane %v22_v2, %v64_v15  ;;  %v27_v19 = vrot.slane %v22_v2, %v26_v18  ;;  %v214_v11 = vld [vmem:[%s1154_s2 + $0x20] sm:$0xff]  ;;  %v247_v12 = vld [vmem:[%s1154_s2 + $0x128] sm:$0xff] }
   0x8   :  { %81 = vrot.lane.b32.xlu0 %v79_v7, %s755_s17  ;;  %39 = vrot.lane.b32.xlu1 %v37_v8, %s756_s18 }
   0x9   :  { %v28_v22 = vmul.f32 %v27_v19, %v806_v20  ;;  %v29_v23 = vmul.f32 %v27_v19, %v811_v21  ;;  %v30_v27 = vmul.f32 %v27_v19, %v820_v25  ;;  %v31_v28 = vmul.f32 %v27_v19, %v825_v26 }
   0xb   :  { %v815_v24 = vpack.c.bf16 %v29_v23, %v28_v22  ;;  %v829_v29 = vpack.c.bf16 %v31_v28, %v30_v27 }
   0xc   :  { %95 = vrot.lane.b32.xlu0 %v93_v9, %s757_s19  ;;  %109 = vrot.lane.b32.xlu1 %v107_v10, %s758_s20  ;;  %v211_v10 = vld [vmem:[%s1154_s2 + $0x8] sm:$0xff]  ;;  %s768_s20 = smov 124  }
  0x10   :  { %53 = vrot.lane.b32.xlu0 %v51_v13, %s759_s21  ;;  %123 = vrot.lane.b32.xlu1 %v121_v14, %s760_s22  ;;  %s769_s21 = smov 119   ;;  %s770_s22 = smov 118  }
  0x14   :  { %67 = vrot.lane.b32.xlu0 %v65_v16, %s761_s25  ;;  %137 = vrot.lane.b32.xlu1 %v617_v17, %s762_s26  ;;  %v259_v16 = vpack.c.bf16 %v214_v11, %v211_v10  ;;  %v250_v17 = vld [vmem:[%s1154_s2 + $0x140] sm:$0xff]  ;;  %v219_v10 = vld [vmem:[%s1154_s2 + $0x48] sm:$0xff] }
  0x15   :  { %v277_v19 = vpack.c.bf16 %v250_v17, %v247_v12  ;;  %v252_v11 = vld [vmem:[%s1154_s2 + $0x150] sm:$0xff]  ;;  %v255_v12 = vld [vmem:[%s1154_s2 + $0x168] sm:$0xff] }
  0x16   :  { %435 = vmatprep.mubr.bf16.mxu0 %v259_v16  ;;  %v215_v16 = vld [vmem:[%s1154_s2 + $0x28] sm:$0xff] }
  0x17   :  { %483 = vmatprep.mubr.bf16.mxu1 %v277_v19 }
  0x7a   :  { %v82_v30 = vpop.permute.xlu0 %81  ;;  %v40_v31 = vpop.permute.xlu1 %39 }
  0x7b   :  { %v84_v32 = vmul.f32 %v82_v30, %v806_v20  ;;  %v85_v33 = vmul.f32 %v82_v30, %v811_v21  ;;  %v86_v34 = vmul.f32 %v82_v30, %v820_v25  ;;  %v87_v35 = vmul.f32 %v82_v30, %v825_v26 }
  0x7c   :  { %v42_v36 = vmul.f32 %v40_v31, %v806_v20  ;;  %v43_v37 = vmul.f32 %v40_v31, %v811_v21  ;;  %v44_v41 = vmul.f32 %v40_v31, %v820_v25  ;;  %v45_v44 = vmul.f32 %v40_v31, %v825_v26 }
  0x7d   :  { %v89_v38 = vpack.c.bf16 %v87_v35, %v86_v34  ;;  %v88_v39 = vpack.c.bf16 %v85_v33, %v84_v32  ;;  %v771_v34 = vmov 0   ;;  %v287_v35 = vld [vmem:[%s1155_s3 + $0x28] sm:$0xff] }
  0x7e   :  { %v96_v40 = vpop.permute.xlu0 %95  ;;  %v46_v45 = vpack.c.bf16 %v43_v37, %v42_v36  ;;  %v110_v49 = vpop.permute.xlu1 %109  ;;  %v47_v53 = vpack.c.bf16 %v45_v44, %v44_v41  ;;  %754 = vset.pattern.permute.xlu1 %v771_v34  ;;  %753 = vset.pattern.permute.xlu0 %v771_v34  ;;  %v286_v36 = vld [vmem:[%s1155_s3 + $0x20] sm:$0xff]  ;;  %v289_v37 = vld [vmem:[%s1155_s3 + $0x38] sm:$0xff]  ;;  %v227_v34 = vld [vmem:[%s1154_s2 + $0x88] sm:$0xff] }
  0x7f   :  { %v98_v42 = vmul.f32 %v96_v40, %v806_v20  ;;  %v99_v43 = vmul.f32 %v96_v40, %v811_v21  ;;  %174 = vrot.lane.b32.xlu1 %v89_v38, %s763_s0  ;;  %v100_v46 = vmul.f32 %v96_v40, %v820_v25  ;;  %v101_v47 = vmul.f32 %v96_v40, %v825_v26  ;;  %v288_v38 = vld [vmem:[%s1155_s3 + $0x30] sm:$0xff]  ;;  %v290_v40 = vld [vmem:[%s1155_s3 + $0x40] sm:$0xff]  ;;  %v293_v41 = vld [vmem:[%s1155_s3 + $0x58] sm:$0xff] }
  0x80   :  { %172 = vrot.lane.b32.xlu0 %v88_v39, %s763_s0  ;;  %v112_v54 = vmul.f32 %v110_v49, %v806_v20  ;;  %v113_v55 = vmul.f32 %v110_v49, %v811_v21  ;;  %v114_v60 = vmul.f32 %v110_v49, %v820_v25  ;;  %v115_v61 = vmul.f32 %v110_v49, %v825_v26  ;;  %v291_v39 = vld [vmem:[%s1155_s3 + $0x48] sm:$0xff]  ;;  %v294_v44 = vld [vmem:[%s1155_s3 + $0x60] sm:$0xff] }
  0x81   :  { %v102_v48 = vpack.c.bf16 %v99_v43, %v98_v42  ;;  %v103_v56 = vpack.c.bf16 %v101_v47, %v100_v46  ;;  %v292_v42 = vld [vmem:[%s1155_s3 + $0x50] sm:$0xff]  ;;  %v295_v43 = vld [vmem:[%s1155_s3 + $0x68] sm:$0xff] }
  0x82   :  { %v54_v50 = vpop.permute.xlu0 %53  ;;  %v116_v62 = vpack.c.bf16 %v113_v55, %v112_v54  ;;  %v124_v0 = vpop.permute.xlu1 %123  ;;  %v117_v6 = vpack.c.bf16 %v115_v61, %v114_v60  ;;  %v296_v46 = vld [vmem:[%s1155_s3 + $0x70] sm:$0xff]  ;;  %v246_v60 = vld [vmem:[%s1154_s2 + $0x120] sm:$0xff]  ;;  %v249_v61 = vld [vmem:[%s1154_s2 + $0x138] sm:$0xff] }
  0x83   :  { %148 = vrot.lane.b32.xlu1 %v46_v45, %s764_s8  ;;  %v56_v51 = vmul.f32 %v54_v50, %v806_v20  ;;  %v57_v52 = vmul.f32 %v54_v50, %v811_v21  ;;  %v58_v57 = vmul.f32 %v54_v50, %v820_v25  ;;  %v59_v58 = vmul.f32 %v54_v50, %v825_v26  ;;  %v297_v45 = vld [vmem:[%s1155_s3 + $0x78] sm:$0xff] }
  0x84   :  { %180 = vrot.lane.b32.xlu0 %v102_v48, %s765_s9  ;;  %v126_v4 = vmul.f32 %v124_v0, %v806_v20  ;;  %v127_v5 = vmul.f32 %v124_v0, %v811_v21  ;;  %v128_v13 = vmul.f32 %v124_v0, %v820_v25  ;;  %v129_v14 = vmul.f32 %v124_v0, %v825_v26 }
  0x85   :  { %v60_v59 = vpack.c.bf16 %v57_v52, %v56_v51  ;;  %v61_v3 = vpack.c.bf16 %v59_v58, %v58_v57  ;;  %v210_v58 = vld [vmem:[%s1154_s2] sm:$0xff] }
  0x86   :  { %v68_v63 = vpop.permute.xlu0 %67  ;;  %v130_v15 = vpack.c.bf16 %v127_v5, %v126_v4  ;;  %v138_v18 = vpop.permute.xlu1 %137  ;;  %v131_v28 = vpack.c.bf16 %v129_v14, %v128_v13  ;;  %v276_v5 = vpack.c.bf16 %v249_v61, %v246_v60  ;;  %v223_v13 = vld [vmem:[%s1154_s2 + $0x68] sm:$0xff]  ;;  %v226_v14 = vld [vmem:[%s1154_s2 + $0x80] sm:$0xff]  ;;  %v257_v60 = vld [vmem:[%s1154_s2 + $0x178] sm:$0xff] }
  0x87   :  { %150 = vrot.lane.b32.xlu1 %v47_v53, %s764_s8  ;;  %v70_v1 = vmul.f32 %v68_v63, %v806_v20  ;;  %v71_v2 = vmul.f32 %v68_v63, %v811_v21  ;;  %v72_v7 = vmul.f32 %v68_v63, %v820_v25  ;;  %v73_v8 = vmul.f32 %v68_v63, %v825_v26  ;;  %v220_v63 = vld [vmem:[%s1154_s2 + $0x50] sm:$0xff] }
  0x88   :  { %182 = vrot.lane.b32.xlu0 %v103_v56, %s765_s9  ;;  %v142_v23 = vmul.f32 %v138_v18, %v820_v25  ;;  %v143_v27 = vmul.f32 %v138_v18, %v825_v26  ;;  %v140_v30 = vmul.f32 %v138_v18, %v806_v20  ;;  %v141_v31 = vmul.f32 %v138_v18, %v811_v21  ;;  %v282_v25 = vld [vmem:[%s1155_s3] sm:$0xff]  ;;  %v283_v20 = vld [vmem:[%s1155_s3 + $0x8] sm:$0xff]  ;;  %v285_v21 = vld [vmem:[%s1155_s3 + $0x18] sm:$0xff] }
  0x89   :  { %v74_v9 = vpack.c.bf16 %v71_v2, %v70_v1  ;;  %v75_v22 = vpack.c.bf16 %v73_v8, %v72_v7  ;;  %v284_v26 = vld [vmem:[%s1155_s3 + $0x10] sm:$0xff]  ;;  %v253_v2 = vld [vmem:[%s1154_s2 + $0x158] sm:$0xff]  ;;  %v279_v18 = vpack.c.bf16 %v255_v12, %v252_v11  ;;  %v265_v19 = vpack.c.bf16 %v226_v14, %v223_v13 }
  0x8a   :  { %v145_v32 = vpack.c.bf16 %v143_v27, %v142_v23  ;;  %v144_v33 = vpack.c.bf16 %v141_v31, %v140_v30  ;;  %v222_v23 = vld [vmem:[%s1154_s2 + $0x60] sm:$0xff]  ;;  %v225_v27 = vld [vmem:[%s1154_s2 + $0x78] sm:$0xff] }
  0x8b   :  { %156 = vrot.lane.b32.xlu1 %v60_v59, %s766_s10  ;;  %v213_v59 = vld [vmem:[%s1154_s2 + $0x18] sm:$0xff] }
  0x8c   :  { %188 = vrot.lane.b32.xlu0 %v116_v62, %s767_s11  ;;  %v217_v62 = vld [vmem:[%s1154_s2 + $0x38] sm:$0xff]  ;;  %v258_v4 = vpack.c.bf16 %v213_v59, %v210_v58  ;;  %v243_v58 = vld [vmem:[%s1154_s2 + $0x108] sm:$0xff]  ;;  %v254_v59 = vld [vmem:[%s1154_s2 + $0x160] sm:$0xff] }
  0x8d   :  { %v221_v30 = vld [vmem:[%s1154_s2 + $0x58] sm:$0xff] }
  0x8e   :  { %v229_v31 = vld [vmem:[%s1154_s2 + $0x98] sm:$0xff] }
  0x8f   :  { %158 = vrot.lane.b32.xlu1 %v61_v3, %s766_s10  ;;  %v256_v3 = vld [vmem:[%s1154_s2 + $0x170] sm:$0xff] }
  0x90   :  { %190 = vrot.lane.b32.xlu0 %v117_v6, %s767_s11  ;;  %v262_v6 = vpack.c.bf16 %v220_v63, %v217_v62  ;;  %v280_v7 = vpack.c.bf16 %v256_v3, %v253_v2  ;;  %v281_v62 = vpack.c.bf16 %v257_v60, %v254_v59 }
  0x93   :  { %164 = vrot.lane.b32.xlu1 %v74_v9, %s768_s20  ;;  %v216_v9 = vld [vmem:[%s1154_s2 + $0x30] sm:$0xff] }
  0x94   :  { %196 = vrot.lane.b32.xlu0 %v130_v15, %s769_s21  ;;  %v212_v15 = vld [vmem:[%s1154_s2 + $0x10] sm:$0xff]  ;;  %v261_v17 = vpack.c.bf16 %v219_v10, %v216_v9 }
  0x97   :  { %166 = vrot.lane.b32.xlu1 %v75_v22, %s768_s20  ;;  %v260_v22 = vpack.c.bf16 %v215_v16, %v212_v15 }
  0x98   :  { %198 = vrot.lane.b32.xlu0 %v131_v28, %s769_s21  ;;  %v218_v28 = vld [vmem:[%s1154_s2 + $0x40] sm:$0xff] }
  0x9b   :  { %206 = vrot.lane.b32.xlu1 %v145_v32, %s770_s22  ;;  %v232_v32 = vld [vmem:[%s1154_s2 + $0xb0] sm:$0xff] }
  0x9c   :  { %204 = vrot.lane.b32.xlu0 %v144_v33, %s770_s22  ;;  %v224_v33 = vld [vmem:[%s1154_s2 + $0x70] sm:$0xff] }
  0x9f   :  { %305 = vperm.xlu1 %754, %v283_v20   ;;  %v263_v20 = vpack.c.bf16 %v221_v30, %v218_v28 }
  0xa0   :  { %300 = vperm.xlu0 %753, %v282_v25   ;;  %v264_v25 = vpack.c.bf16 %v225_v27, %v222_v23 }
  0xa3   :  { %310 = vperm.xlu1 %754, %v284_v26   ;;  %v266_v26 = vpack.c.bf16 %v227_v34, %v224_v33 }
  0xa4   :  { %315 = vperm.xlu0 %753, %v285_v21   ;;  %v268_v21 = vpack.c.bf16 %v232_v32, %v229_v31 }
  0xa7   :  { %320 = vperm.xlu1 %754, %v286_v36   ;;  %v231_v36 = vld [vmem:[%s1154_s2 + $0xa8] sm:$0xff] }
  0xa8   :  { %325 = vperm.xlu0 %753, %v287_v35   ;;  %v228_v35 = vld [vmem:[%s1154_s2 + $0x90] sm:$0xff] }
  0xab   :  { %330 = vperm.xlu1 %754, %v288_v38   ;;  %v233_v38 = vld [vmem:[%s1154_s2 + $0xb8] sm:$0xff] }
  0xac   :  { %335 = vperm.xlu0 %753, %v289_v37   ;;  %v230_v37 = vld [vmem:[%s1154_s2 + $0xa0] sm:$0xff] }
  0xaf   :  { %340 = vperm.xlu1 %754, %v290_v40   ;;  %v238_v40 = vld [vmem:[%s1154_s2 + $0xe0] sm:$0xff] }
  0xb0   :  { %345 = vperm.xlu0 %753, %v291_v39   ;;  %v235_v39 = vld [vmem:[%s1154_s2 + $0xc8] sm:$0xff] }
  0xb3   :  { %350 = vperm.xlu1 %754, %v292_v42   ;;  %v239_v42 = vld [vmem:[%s1154_s2 + $0xe8] sm:$0xff] }
  0xb4   :  { %355 = vperm.xlu0 %753, %v293_v41   ;;  %v236_v41 = vld [vmem:[%s1154_s2 + $0xd0] sm:$0xff] }
  0xb7   :  { %360 = vperm.xlu1 %754, %v294_v44   ;;  %v269_v44 = vpack.c.bf16 %v233_v38, %v230_v37 }
  0xb8   :  { %365 = vperm.xlu0 %753, %v295_v43   ;;  %v267_v43 = vpack.c.bf16 %v231_v36, %v228_v35 }
  0xbb   :  { %370 = vperm.xlu1 %754, %v296_v46   ;;  %v272_v46 = vpack.c.bf16 %v239_v42, %v236_v41 }
  0xbc   :  { %375 = vperm.xlu0 %753, %v297_v45   ;;  %v271_v45 = vpack.c.bf16 %v238_v40, %v235_v39 }
  0xf1   :  { %v175_v47 = vpop.permute.xlu1 %174 }
  0xf2   :  { %v173_v48 = vpop.permute.xlu0 %172 }
  0xf3   :  { %626 = vmatprep.subr.bf16.mxu0 %v173_v48  ;;  %720 = vmatprep.subr.bf16.mxu1 %v173_v48  ;;  %v237_v48 = vld [vmem:[%s1154_s2 + $0xd8] sm:$0xff] }
  0xf4   :  { %627 = vmatpush3.bf16.msra.mxu0 %v815_v24  ;;  %728 = vmatpush3.bf16.msra.mxu1 %v815_v24 }
  0xf5   :  { %628 = vmatprep.subr.bf16.mxu0 %v175_v47  ;;  %721 = vmatprep.subr.bf16.mxu1 %v175_v47  ;;  %v149_v49 = vpop.permute.xlu1 %148  ;;  %v234_v47 = vld [vmem:[%s1154_s2 + $0xc0] sm:$0xff] }
  0xf6   :  { %v181_v50 = vpop.permute.xlu0 %180 }
  0xf8   :  { %629 = vmatpush3.bf16.msra.mxu0 %v829_v29  ;;  %729 = vmatpush3.bf16.msra.mxu1 %v829_v29 }
  0xf9   :  { %v151_v51 = vpop.permute.xlu1 %150  ;;  %630 = vmatprep.subr.bf16.mxu0 %v181_v50  ;;  %722 = vmatprep.subr.bf16.mxu1 %v181_v50  ;;  %v245_v50 = vld [vmem:[%s1154_s2 + $0x118] sm:$0xff] }
  0xfa   :  { %v183_v52 = vpop.permute.xlu0 %182 }
  0xfc   :  { %631 = vmatpush3.bf16.msra.mxu0 %v149_v49  ;;  %730 = vmatpush3.bf16.msra.mxu1 %v149_v49  ;;  %v242_v49 = vld [vmem:[%s1154_s2 + $0x100] sm:$0xff] }
  0xfd   :  { %632 = vmatprep.subr.bf16.mxu0 %v183_v52  ;;  %723 = vmatprep.subr.bf16.mxu1 %v183_v52  ;;  %v157_v53 = vpop.permute.xlu1 %156  ;;  %v244_v52 = vld [vmem:[%s1154_s2 + $0x110] sm:$0xff] }
  0xfe   :  { %v189_v54 = vpop.permute.xlu0 %188 }
 0x100   :  { %633 = vmatpush3.bf16.msra.mxu0 %v151_v51  ;;  %731 = vmatpush3.bf16.msra.mxu1 %v151_v51  ;;  %v241_v51 = vld [vmem:[%s1154_s2 + $0xf8] sm:$0xff] }
 0x101   :  { %634 = vmatprep.subr.bf16.mxu0 %v189_v54  ;;  %724 = vmatprep.subr.bf16.mxu1 %v189_v54  ;;  %v159_v55 = vpop.permute.xlu1 %158  ;;  %v251_v54 = vld [vmem:[%s1154_s2 + $0x148] sm:$0xff] }
 0x102   :  { %v191_v24 = vpop.permute.xlu0 %190 }
 0x104   :  { %635 = vmatpush3.bf16.msra.mxu0 %v157_v53  ;;  %732 = vmatpush3.bf16.msra.mxu1 %v157_v53  ;;  %v248_v53 = vld [vmem:[%s1154_s2 + $0x130] sm:$0xff] }
 0x105   :  { %636 = vmatprep.subr.bf16.mxu0 %v191_v24  ;;  %725 = vmatprep.subr.bf16.mxu1 %v191_v24  ;;  %v165_v56 = vpop.permute.xlu1 %164  ;;  %v270_v24 = vpack.c.bf16 %v237_v48, %v234_v47 }
 0x106   :  { %v197_v29 = vpop.permute.xlu0 %196 }
 0x108   :  { %637 = vmatpush3.bf16.msra.mxu0 %v159_v55  ;;  %733 = vmatpush3.bf16.msra.mxu1 %v159_v55  ;;  %v275_v55 = vpack.c.bf16 %v245_v50, %v242_v49 }
 0x109   :  { %638 = vmatprep.subr.bf16.mxu0 %v197_v29  ;;  %726 = vmatprep.subr.bf16.mxu1 %v197_v29  ;;  %v167_v0 = vpop.permute.xlu1 %166  ;;  %v274_v29 = vpack.c.bf16 %v244_v52, %v241_v51 }
 0x10a   :  { %v199_v57 = vpop.permute.xlu0 %198 }
 0x10c   :  { %639 = vmatpush3.bf16.msra.mxu0 %v165_v56  ;;  %734 = vmatpush3.bf16.msra.mxu1 %v165_v56  ;;  %v278_v56 = vpack.c.bf16 %v251_v54, %v248_v53 }
 0x10d   :  { %640 = vmatprep.subr.bf16.mxu0 %v199_v57  ;;  %727 = vmatprep.subr.bf16.mxu1 %v199_v57  ;;  %v207_v8 = vpop.permute.xlu1 %206  ;;  %v240_v57 = vld [vmem:[%s1154_s2 + $0xf0] sm:$0xff] }
 0x10e   :  { %v205_v1 = vpop.permute.xlu0 %204  ;;  %v273_v61 = vpack.c.bf16 %v243_v58, %v240_v57 }
 0x110   :  { %641 = vmatpush3.bf16.msra.mxu0 %v167_v0  ;;  %735 = vmatpush3.bf16.msra.mxu1 %v167_v0 }
 0x111   :  { %700 = vmatprep.subr.bf16.mxu1 %v205_v1 }
 0x113   :  { %436 = vmatmul.mubr.bf16.vlgmr.msra.gmra.mrb[0].mxu0 %v258_v4  ;;  %484 = vmatmul.mubr.bf16.vlgmr.msra.gmra.mrb[0].mxu1 %v276_v5 }
 0x114   :  { %701 = vmatpush3.bf16.msra.mxu1 %v205_v1  ;;  %443 = vmatprep.mubr.bf16.mxu0 %v262_v6 }
 0x115   :  { %702 = vmatprep.subr.bf16.mxu1 %v207_v8  ;;  %491 = vmatprep.mubr.bf16.mxu1 %v280_v7 }
 0x118   :  { %703 = vmatpush3.bf16.msra.mxu1 %v207_v8 }
 0x11b   :  { %444 = vmatmul.mubr.bf16.gmra.mrb[4].mxu0 %v261_v17  ;;  %492 = vmatmul.mubr.bf16.gmra.mrb[4].mxu1 %v279_v18 }
 0x11c   :  { %451 = vmatprep.mubr.bf16.mxu0 %v265_v19  ;;  %704 = vmatprep.mubr.msk.bf16.mxu1 %vm378_vm0, %v260_v22 }
 0x11e   :  { %v306_v0 = vpop.permute.xlu1 %305 }
 0x11f   :  { %v301_v63 = vpop.permute.xlu0 %300 }
 0x122   :  { %v311_v2 = vpop.permute.xlu1 %310 }
 0x123   :  { %452 = vmatmul.mubr.bf16.gmra.mrb[8].mxu0 %v264_v25  ;;  %705 = vmatmul.mubr.msk.bf16.vlgmr.msra.gmra.mrb[8].mxu1 %vm378_vm0, %v263_v20  ;;  %v316_v1 = vpop.permute.xlu0 %315 }
 0x124   :  { %459 = vmatprep.mubr.bf16.mxu0 %v268_v21  ;;  %708 = vmatprep.mubr.msk.bf16.mxu1 %vm378_vm0, %v266_v26 }
 0x126   :  { %v321_v4 = vpop.permute.xlu1 %320 }
 0x127   :  { %v1067_v3 = vpop.permute.xlu0 %325 }
 0x12a   :  { %v331_v18 = vpop.permute.xlu1 %330 }
 0x12b   :  { %460 = vmatmul.mubr.bf16.gmra.mrb[12].mxu0 %v267_v43  ;;  %709 = vmatmul.mubr.msk.bf16.gmra.mrb[12].mxu1 %vm378_vm0, %v269_v44  ;;  %v336_v17 = vpop.permute.xlu0 %335 }
 0x12c   :  { %467 = vmatprep.mubr.bf16.mxu0 %v271_v45  ;;  %712 = vmatprep.mubr.msk.bf16.mxu1 %vm378_vm0, %v272_v46 }
 0x12e   :  { %v341_v26 = vpop.permute.xlu1 %340 }
 0x12f   :  { %v1077_v21 = vpop.permute.xlu0 %345 }
 0x132   :  { %v351_v54 = vpop.permute.xlu1 %350 }
 0x133   :  { %468 = vmatmul.mubr.bf16.gmra.mrb[16].mxu0 %v270_v24  ;;  %713 = vmatmul.mubr.msk.bf16.gmra.mrb[16].mxu1 %vm378_vm0, %v275_v55  ;;  %v1095_v53 = vpop.permute.xlu0 %355 }
 0x134   :  { %475 = vmatprep.mubr.bf16.mxu0 %v274_v29  ;;  %716 = vmatprep.mubr.msk.bf16.mxu1 %vm378_vm0, %v278_v56 }
 0x13b   :  { %476 = vmatmul.mubr.bf16.gmra.mrb[20].mxu0 %v273_v61  ;;  %717 = vmatmul.mubr.msk.bf16.gmra.mrb[20].mxu1 %vm378_vm0, %v281_v62 }
 0x1e6   :  { %v642_v5 = vpop.f32.mrb[0].mxu0  ;;  %v678_v6 = vpop.f32.mrb[0].mxu1 }
 0x1e7   :  { %v643_v7 = vpop.f32.mrb[1].mxu0  ;;  %v679_v8 = vpop.f32.mrb[1].mxu1 }
 0x1e8   :  { %v644_v9 = vadd.f32 %v643_v7, %v642_v5  ;;  %v645_v10 = vpop.f32.mrb[2].mxu0  ;;  %v1069_v11 = vadd.f32 %v679_v8, %v678_v6  ;;  %v681_v12 = vpop.f32.mrb[2].mxu1 }
 0x1e9   :  { %v646_v13 = vpop.f32.mrb[3].mxu0  ;;  %v682_v14 = vpop.f32.mrb[3].mxu1 }
 0x1ea   :  { %v647_v15 = vadd.f32 %v646_v13, %v645_v10  ;;  %v1071_v16 = vadd.f32 %v682_v14, %v681_v12  ;;  %v438_v38 = vadd.f32 %v644_v9, %v301_v63  ;;  %v366_v7 = vpop.permute.xlu0 %365  ;;  %v361_v8 = vpop.permute.xlu1 %360 }
 0x1ec   :  { %v441_v47 = vadd.f32 %v647_v15, %v306_v0 }
 0x1ee   :  { %v648_v19 = vpop.f32.mrb[4].mxu0  ;;  %v684_v22 = vpop.f32.mrb[4].mxu1 }
 0x1ef   :  { %v649_v23 = vpop.f32.mrb[5].mxu0  ;;  %v685_v27 = vpop.f32.mrb[5].mxu1 }
 0x1f0   :  { %v650_v28 = vadd.f32 %v649_v23, %v648_v19  ;;  %v651_v30 = vpop.f32.mrb[6].mxu0  ;;  %v1073_v31 = vadd.f32 %v685_v27, %v684_v22  ;;  %v687_v32 = vpop.f32.mrb[6].mxu1 }
 0x1f1   :  { %v652_v33 = vpop.f32.mrb[7].mxu0  ;;  %v688_v34 = vpop.f32.mrb[7].mxu1 }
 0x1f2   :  { %v653_v25 = vadd.f32 %v652_v33, %v651_v30  ;;  %v1075_v20 = vadd.f32 %v688_v34, %v687_v32  ;;  %v446_v35 = vadd.f32 %v650_v28, %v311_v2  ;;  %v371_v22 = vpop.permute.xlu1 %370  ;;  %v376_v28 = vpop.permute.xlu0 %375  ;;  %v486_v34 = vadd.f32 %v1069_v11, %v361_v8 }
 0x1f3   :  { %v494_v33 = vadd.f32 %v1073_v31, %v371_v22 }
 0x1f4   :  { %v449_v42 = vadd.f32 %v653_v25, %v316_v1 }
 0x1f6   :  { %v654_v36 = vpop.f32.mrb[8].mxu0  ;;  %v706_v37 = vpop.f32.mrb[8].mxu1 }
 0x1f7   :  { %v543_v39 = vadd.f32 %v706_v37, %v446_v35  ;;  %v655_v40 = vpop.f32.mrb[9].mxu0  ;;  %v534_v41 = vpop.f32.mrb[9].mxu1  ;;  %v497_v37 = vadd.f32 %v1075_v20, %v376_v28 }
 0x1f8   :  { %v656_v43 = vadd.f32 %v655_v40, %v654_v36  ;;  %v535_v44 = vadd.f32 %v534_v41, %v438_v38  ;;  %v657_v45 = vpop.f32.mrb[10].mxu0  ;;  %v707_v46 = vpop.f32.mrb[10].mxu1  ;;  %v489_v40 = vadd.f32 %v1071_v16, %v366_v7 }
 0x1f9   :  { %599 = vst.msk [vmem:[%s1156_s4 + $0x10] sm:$0xff] %vm378_vm0, %v543_v39  ;;  %v546_v48 = vadd.f32 %v707_v46, %v449_v42  ;;  %v658_v49 = vpop.f32.mrb[11].mxu0  ;;  %v537_v50 = vpop.f32.mrb[11].mxu1 }
 0x1fa   :  { %597 = vst.msk [vmem:[%s1156_s4] sm:$0xff] %vm378_vm0, %v535_v44  ;;  %v659_v51 = vadd.f32 %v658_v49, %v657_v45  ;;  %v538_v52 = vadd.f32 %v537_v50, %v441_v47  ;;  %v454_v29 = vadd.f32 %v656_v43, %v321_v4 }
 0x1fb   :  { %600 = vst.msk [vmem:[%s1156_s4 + $0x18] sm:$0xff] %vm378_vm0, %v546_v48 }
 0x1fc   :  { %598 = vst.msk [vmem:[%s1156_s4 + $0x8] sm:$0xff] %vm378_vm0, %v538_v52  ;;  %v457_v62 = vadd.f32 %v659_v51, %v1067_v3 }
 0x1fe   :  { %v660_v24 = vpop.f32.mrb[12].mxu0  ;;  %v710_v55 = vpop.f32.mrb[12].mxu1 }
 0x1ff   :  { %v661_v56 = vpop.f32.mrb[13].mxu0  ;;  %v550_v57 = vpop.f32.mrb[13].mxu1 }
 0x200   :  { %v662_v58 = vadd.f32 %v661_v56, %v660_v24  ;;  %v551_v59 = vadd.f32 %v550_v57, %v454_v29  ;;  %v663_v60 = vpop.f32.mrb[14].mxu0  ;;  %v711_v61 = vpop.f32.mrb[14].mxu1 }
 0x201   :  { %v664_v63 = vpop.f32.mrb[15].mxu0  ;;  %v553_v0 = vpop.f32.mrb[15].mxu1 }
 0x202   :  { %v462_v1 = vadd.f32 %v662_v58, %v331_v18  ;;  %601 = vst.msk [vmem:[%s1156_s4 + $0x20] sm:$0xff] %vm378_vm0, %v551_v59  ;;  %v665_v2 = vadd.f32 %v664_v63, %v663_v60  ;;  %v554_v5 = vadd.f32 %v553_v0, %v457_v62 }
 0x204   :  { %v559_v6 = vadd.f32 %v710_v55, %v462_v1  ;;  %v465_v4 = vadd.f32 %v665_v2, %v336_v17  ;;  %602 = vst.msk [vmem:[%s1156_s4 + $0x28] sm:$0xff] %vm378_vm0, %v554_v5 }
 0x206   :  { %603 = vst.msk [vmem:[%s1156_s4 + $0x30] sm:$0xff] %vm378_vm0, %v559_v6  ;;  %v562_v3 = vadd.f32 %v711_v61, %v465_v4  ;;  %v666_v9 = vpop.f32.mrb[16].mxu0  ;;  %v714_v10 = vpop.f32.mrb[16].mxu1 }
 0x207   :  { %v667_v12 = vpop.f32.mrb[17].mxu0  ;;  %v566_v13 = vpop.f32.mrb[17].mxu1 }
 0x208   :  { %604 = vst.msk [vmem:[%s1156_s4 + $0x38] sm:$0xff] %vm378_vm0, %v562_v3  ;;  %v668_v14 = vadd.f32 %v667_v12, %v666_v9  ;;  %v669_v15 = vpop.f32.mrb[18].mxu0  ;;  %v715_v17 = vpop.f32.mrb[18].mxu1 }
 0x209   :  { %v670_v18 = vpop.f32.mrb[19].mxu0  ;;  %v569_v19 = vpop.f32.mrb[19].mxu1 }
 0x20a   :  { %v470_v23 = vadd.f32 %v668_v14, %v341_v26  ;;  %v671_v27 = vadd.f32 %v670_v18, %v669_v15 }
 0x20c   :  { %v567_v30 = vadd.f32 %v566_v13, %v470_v23  ;;  %v473_v32 = vadd.f32 %v671_v27, %v1077_v21 }
 0x20e   :  { %605 = vst.msk [vmem:[%s1156_s4 + $0x40] sm:$0xff] %vm378_vm0, %v567_v30  ;;  %v570_v25 = vadd.f32 %v569_v19, %v473_v32  ;;  %v672_v35 = vpop.f32.mrb[20].mxu0  ;;  %v718_v36 = vpop.f32.mrb[20].mxu1 }
 0x20f   :  { %v591_v26 = vadd.f32 %v718_v36, %v494_v33  ;;  %v673_v38 = vpop.f32.mrb[21].mxu0  ;;  %v582_v39 = vpop.f32.mrb[21].mxu1 }
 0x210   :  { %606 = vst.msk [vmem:[%s1156_s4 + $0x48] sm:$0xff] %vm378_vm0, %v570_v25  ;;  %v674_v11 = vadd.f32 %v673_v38, %v672_v35  ;;  %v583_v31 = vadd.f32 %v582_v39, %v486_v34  ;;  %v675_v21 = vpop.f32.mrb[22].mxu0  ;;  %v719_v41 = vpop.f32.mrb[22].mxu1 }
 0x211   :  { %611 = vst.msk [vmem:[%s1156_s4 + $0x70] sm:$0xff] %vm378_vm0, %v591_v26  ;;  %v594_v20 = vadd.f32 %v719_v41, %v497_v37  ;;  %v676_v42 = vpop.f32.mrb[23].mxu0  ;;  %v585_v43 = vpop.f32.mrb[23].mxu1 }
 0x212   :  { %v478_v44 = vadd.f32 %v674_v11, %v351_v54  ;;  %609 = vst.msk [vmem:[%s1156_s4 + $0x60] sm:$0xff] %vm378_vm0, %v583_v31  ;;  %v677_v16 = vadd.f32 %v676_v42, %v675_v21  ;;  %v586_v45 = vadd.f32 %v585_v43, %v489_v40 }
 0x213   :  { %612 = vst.msk [vmem:[%s1156_s4 + $0x78] sm:$0xff] %vm378_vm0, %v594_v20 }
 0x214   :  { %v575_v46 = vadd.f32 %v714_v10, %v478_v44  ;;  %v481_v47 = vadd.f32 %v677_v16, %v1095_v53  ;;  %610 = vst.msk [vmem:[%s1156_s4 + $0x68] sm:$0xff] %vm378_vm0, %v586_v45 }
 0x216   :  { %607 = vst.msk [vmem:[%s1156_s4 + $0x50] sm:$0xff] %vm378_vm0, %v575_v46  ;;  %v578_v48 = vadd.f32 %v715_v17, %v481_v47 }
 0x218   :  { %608 = vst.msk [vmem:[%s1156_s4 + $0x58] sm:$0xff] %vm378_vm0, %v578_v48 }

// kernel: decompose_net_forward.21
= control target key start
LH: loop header
LB: loop body
LE: loop exit
PB: predicated region body
PF: predicated region fallthrough
CT: control target
= control target key end

     0   :  { %v253_v0 = vmov 0.0|0.0   ;;  %vm254_vm0 = vmmov 0   ;;  %v255_v3 = vmov 0.0   ;;  %v256_v5 = vmov 0   ;;  %s317_s0 = inlined_call_operand.vmem [shape: f32[16,128], index: 0, kind: input, shape index: {}]   ;;  %s318_s3 = inlined_call_operand.vmem [shape: f32[8,1], index: 3, kind: input, shape index: {}]   ;;  %s319_s1 = inlined_call_operand.vmem [shape: f32[8,16], index: 1, kind: input, shape index: {}]   ;;  %s320_s2 = inlined_call_operand.vmem [shape: f32[16,8], index: 2, kind: input, shape index: {}]   ;;  %s321_s5 = inlined_call_operand.vmem [shape: s32[1,128], index: 5, kind: output, shape index: {1}]   ;;  %s322_s4 = inlined_call_operand.vmem [shape: f32[16,128], index: 4, kind: output, shape index: {0}]  }
   0x1   :  { %244 = vmatprep.subr.bf16.mxu0 %v253_v0  ;;  %v19_v1 = vld [vmem:[%s317_s0] sm:$0xff]  ;;  %v20_v2 = vld [vmem:[%s317_s0 + $0x8] sm:$0xff]  ;;  %236 = vmatprep.mubr.msk.f32.mxu0 %vm254_vm0, %v255_v3  ;;  %vm25_vm1 = vcmask 130048   ;;  %vm128_vm2 = vcmask 64512   ;;  %v106_v17 = vlaneseq  ;;  %v257_v30 = vmov 1.0  }
   0x2   :  { %v245_v4 = vpack.c.bf16 %v20_v2, %v19_v1  ;;  %252 = vset.pattern.permute.xlu0 %v256_v5  ;;  %v24_v6 = vld [vmem:[%s318_s3] sm:$0xff]  ;;  %v23_v29 = vld [vmem:[%s320_s2 + $0x8] sm:$0xff] }
   0x3   :  { %102 = vperm.xlu0 %252, %v24_v6   ;;  %v21_v7 = vld [vmem:[%s319_s1] sm:$0xff]  ;;  %v107_v20 = vshrl.u32 %v106_v17, 7 }
   0x4   :  { %246 = vmatpush3.bf16.msra.mxu0 %v245_v4  ;;  %v22_v8 = vld [vmem:[%s320_s2] sm:$0xff] }
   0x5   :  { %241 = vmatprep.mubr.msk.f32.mxu1 %vm128_vm2, %v22_v8 }
   0x7   :  { %237 = vmatmul.mubr.msk.f32.vlgmr.msra.gmra.mrb[0].mxu0 %vm25_vm1, %v21_v7 }
  0x82   :  { %v103_v10 = vpop.permute.xlu0 %102 }
  0xda   :  { %v95_v9 = vpop.f32.mrb[0].mxu0 }
  0xdb   :  { %v99_v11 = vmul.f32 2.0, %v95_v9  ;;  %v238_v12 = vpop.f32.mrb[1].mxu0 }
  0xdd   :  { %v105_v13 = vsub.f32 %v103_v10, %v99_v11 }
  0xdf   :  { %v108_v14 = vrot.slane %v105_v13, 4 }
  0xe1   :  { %v109_v15 = vmin.f32 %v105_v13, %v108_v14 }
  0xe3   :  { %v110_v16 = vrot.slane %v109_v15, 2 }
  0xe5   :  { %v111_v18 = vmin.f32 %v109_v15, %v110_v16 }
  0xe7   :  { %v112_v19 = vrot.slane %v111_v18, 1 }
  0xe9   :  { %v113_v21 = vmin.f32 %v111_v18, %v112_v19 }
  0xeb   :  { %vm114_vm3 = vcmp.le.f32.partialorder %v105_v13, %v113_v21 }
  0xec   :  { %v115_v22 = vsel %vm114_vm3, %v107_v20, 8 }
  0xed   :  { %v116_v23 = vrot.slane %v115_v22, 4 }
  0xef   :  { %vm117_vm4 = vcmp.lt.s32.totalorder %v115_v22, %v116_v23 }
  0xf0   :  { %v118_v24 = vsel %vm117_vm4, %v115_v22, %v116_v23 }
  0xf1   :  { %v119_v25 = vrot.slane %v118_v24, 2 }
  0xf3   :  { %vm120_vm5 = vcmp.lt.s32.totalorder %v118_v24, %v119_v25 }
  0xf4   :  { %v121_v26 = vsel %vm120_vm5, %v118_v24, %v119_v25 }
  0xf5   :  { %v122_v27 = vrot.slane %v121_v26, 1 }
  0xf7   :  { %vm123_vm6 = vcmp.lt.s32.totalorder %v121_v26, %v122_v27 }
  0xf8   :  { %v124_v28 = vsel %vm123_vm6, %v121_v26, %v122_v27 }
  0xf9   :  { %vm125_vm7 = vcmp.eq.s32.totalorder %v107_v20, %v124_v28  ;;  %212 = vst [vmem:[%s321_s5] sm:$0x1] %v124_v28 }
  0xfa   :  { %239 = vmatprep.subr.msk.mxu1 %vm125_vm7, %v257_v30 }
  0xfb   :  { %240 = vmatpush3.msk.msra.mxu1 %vm125_vm7, %v257_v30 }
  0xfc   :  { %242 = vmatmul.mubr.msk.f32.vlgmr.msra.gmra.mrb[0].mxu1 %vm128_vm2, %v23_v29 }
 0x1cf   :  { %v243_v31 = vpop.f32.mrb[0].mxu1 }
 0x1d0   :  { %211 = vst [vmem:[%s322_s4 + $0x8] sm:$0xff] %v243_v31  ;;  %v201_v32 = vpop.f32.mrb[1].mxu1 }
 0x1d1   :  { %210 = vst [vmem:[%s322_s4] sm:$0xff] %v201_v32 }

// kernel: decompose_net_forward.20
= control target key start
LH: loop header
LB: loop body
LE: loop exit
PB: predicated region body
PF: predicated region fallthrough
CT: control target
= control target key end

     0   :  { %s796_s9 = smov 119   ;;  %vm70_vm0 = vcmask 973824   ;;  %v797_v40 = vmov 0   ;;  %s798_s10 = smov 1   ;;  %vm813_vm1 = vmmov 0   ;;  %vm491_vm2 = vcmask 965632   ;;  %s1332_s0 = inlined_call_operand.vmem [shape: f32[32,146], index: 0, kind: input, shape index: {}]   ;;  %s1333_s6 = inlined_call_operand.vmem [shape: f32[32,1], index: 6, kind: input, shape index: {}]   ;;  %s1334_s1 = inlined_call_operand.vmem [shape: f32[9,128], index: 1, kind: input, shape index: {}]   ;;  %s1335_s7 = inlined_call_operand.vmem [shape: f32[32,1], index: 7, kind: input, shape index: {}]   ;;  %s1336_s2 = inlined_call_operand.vmem [shape: f32[16,288], index: 2, kind: input, shape index: {}]   ;;  %s1337_s3 = inlined_call_operand.vmem [shape: f32[16,1], index: 3, kind: input, shape index: {}]   ;;  %s1338_s5 = inlined_call_operand.vmem [shape: f32[16,1], index: 5, kind: input, shape index: {}]   ;;  %s1339_s4 = inlined_call_operand.vmem [shape: f32[16,16], index: 4, kind: input, shape index: {}]   ;;  %s1340_s8 = inlined_call_operand.vmem [shape: f32[16,128], index: 8, kind: output, shape index: {}]  }
   0x1   :  { %v863_v0 = vld [vmem:[%s1332_s0 + $0x10] sm:$0xff]  ;;  %v868_v1 = vld [vmem:[%s1332_s0] sm:$0xff]  ;;  %v877_v2 = vld [vmem:[%s1332_s0 + $0x18] sm:$0xff]  ;;  %786 = vset.pattern.permute.xlu1 %v797_v40  ;;  %787 = vset.pattern.permute.xlu0 %v797_v40  ;;  %s799_s15 = smov 2   ;;  %s800_s18 = smov 8   ;;  %vm423_vm3 = vcmask 1039360  }
   0x2   :  { %58 = vrot.lane.b32.xlu1 %v863_v0, %s796_s9  ;;  %54 = vrot.lane.b32.xlu0 %v868_v1, %s796_s9  ;;  %v882_v3 = vld [vmem:[%s1332_s0 + $0x8] sm:$0xff]  ;;  %v91_v5 = vmul.f32 %v868_v1, %v868_v1  ;;  %v94_v6 = vmul.f32 %v877_v2, %v877_v2  ;;  %v93_v7 = vmul.f32 %v863_v0, %v863_v0  ;;  %v908_v9 = vld [vmem:[%s1332_s0 + $0x20] sm:$0xff]  ;;  %s801_s21 = smov 9   ;;  %s805_s24 = smov 18   ;;  %vm508_vm4 = vcmask 916480  }
   0x3   :  { %v92_v4 = vmul.f32 %v882_v3, %v882_v3  ;;  %v903_v8 = vld [vmem:[%s1332_s0 + $0x28] sm:$0xff]  ;;  %v917_v10 = vld [vmem:[%s1332_s0 + $0x38] sm:$0xff]  ;;  %v922_v11 = vld [vmem:[%s1332_s0 + $0x30] sm:$0xff]  ;;  %v95_v13 = vmul.f32 %v908_v9, %v908_v9  ;;  %s803_s0 = smov 16   ;;  %s808_s25 = smov 112   ;;  %vm440_vm5 = vcmask 1031168  }
   0x4   :  { %v96_v12 = vmul.f32 %v903_v8, %v903_v8  ;;  %v98_v14 = vmul.f32 %v917_v10, %v917_v10  ;;  %v97_v15 = vmul.f32 %v922_v11, %v922_v11  ;;  %s809_s26 = smov 126   ;;  %s810_s27 = smov 111   ;;  %vm525_vm6 = vcmask 908288  }
   0x5   :  { %s811_s11 = smov 120   ;;  %s814_s12 = smov 110   ;;  %vm457_vm7 = vcmask 982016   ;;  %vm542_vm8 = vcmask 900096   ;;  %vm568_vm9 = vcmask 261120   ;;  %vm672_vm10 = vcmask 130048  }
   0x6   :  { %60 = vrot.lane.b32.xlu1 %v877_v2, %s796_s9  ;;  %56 = vrot.lane.b32.xlu0 %v882_v3, %s796_s9 }
   0xa   :  { %109 = vrot.lane.b32.xlu1 %v92_v4, %s796_s9  ;;  %107 = vrot.lane.b32.xlu0 %v91_v5, %s796_s9 }
   0xe   :  { %113 = vrot.lane.b32.xlu1 %v94_v6, %s796_s9  ;;  %111 = vrot.lane.b32.xlu0 %v93_v7, %s796_s9 }
  0x12   :  { %64 = vrot.lane.b32.xlu1 %v903_v8, %s796_s9  ;;  %62 = vrot.lane.b32.xlu0 %v908_v9, %s796_s9 }
  0x16   :  { %68 = vrot.lane.b32.xlu1 %v917_v10, %s796_s9  ;;  %66 = vrot.lane.b32.xlu0 %v922_v11, %s796_s9 }
  0x1a   :  { %117 = vrot.lane.b32.xlu1 %v96_v12, %s796_s9  ;;  %115 = vrot.lane.b32.xlu0 %v95_v13, %s796_s9  ;;  %v241_v12 = vlaneseq }
  0x1e   :  { %121 = vrot.lane.b32.xlu1 %v98_v14, %s796_s9  ;;  %119 = vrot.lane.b32.xlu0 %v97_v15, %s796_s9  ;;  %v38_v15 = vld [vmem:[%s1333_s6] sm:$0xff] }
  0x74   :  { %v59_v16 = vpop.permute.xlu1 %58  ;;  %v55_v17 = vpop.permute.xlu0 %54 }
  0x78   :  { %v61_v18 = vpop.permute.xlu1 %60  ;;  %v57_v19 = vpop.permute.xlu0 %56 }
  0x79   :  { %v72_v20 = vsel %vm70_vm0, %v59_v16, %v61_v18  ;;  %v71_v21 = vsel %vm70_vm0, %v55_v17, %v57_v19  ;;  %v967_v16 = vshrl.u32 %v241_v12, 7 }
  0x7a   :  { %81 = vadd.xlane.f32.xlu1 %v72_v20  ;;  %79 = vadd.xlane.f32.xlu0 %v71_v21  ;;  %v39_v21 = vld [vmem:[%s1333_s6 + $0x8] sm:$0xff] }
  0x7c   :  { %v110_v22 = vpop.permute.xlu1 %109  ;;  %v108_v23 = vpop.permute.xlu0 %107 }
  0x7d   :  { %v123_v34 = vsel %vm70_vm0, %v108_v23, %v110_v22  ;;  %v253_v22 = vsub.s32 1, %v967_v16 }
  0x80   :  { %v114_v24 = vpop.permute.xlu1 %113  ;;  %v112_v25 = vpop.permute.xlu0 %111 }
  0x81   :  { %v124_v38 = vsel %vm70_vm0, %v112_v25, %v114_v24  ;;  %v976_v24 = vld [vmem:[%s1334_s1] sm:$0xff] }
  0x84   :  { %v65_v26 = vpop.permute.xlu1 %64  ;;  %v63_v27 = vpop.permute.xlu0 %62 }
  0x85   :  { %v73_v28 = vsel %vm70_vm0, %v63_v27, %v65_v26  ;;  %v42_v26 = vld [vmem:[%s1335_s7] sm:$0xff] }
  0x86   :  { %83 = vadd.xlane.f32.xlu1 %v73_v28  ;;  %v254_v28 = vrot.slane %v976_v24, %v253_v22 }
  0x88   :  { %v69_v29 = vpop.permute.xlu1 %68  ;;  %v67_v30 = vpop.permute.xlu0 %66 }
  0x89   :  { %v74_v31 = vsel %vm70_vm0, %v67_v30, %v69_v29  ;;  %v273_v29 = vsub.s32 2, %v967_v16  ;;  %v43_v30 = vld [vmem:[%s1335_s7 + $0x8] sm:$0xff] }
  0x8a   :  { %85 = vadd.xlane.f32.xlu0 %v74_v31 }
  0x8b   :  { %v274_v31 = vrot.slane %v976_v24, %v273_v29 }
  0x8c   :  { %v118_v32 = vpop.permute.xlu1 %117  ;;  %v116_v33 = vpop.permute.xlu0 %115 }
  0x8d   :  { %v125_v35 = vsel %vm70_vm0, %v116_v33, %v118_v32  ;;  %v293_v32 = vsub.s32 3, %v967_v16  ;;  %v44_v33 = vld [vmem:[%s1335_s7 + $0x10] sm:$0xff] }
  0x8e   :  { %131 = vadd.xlane.f32.xlu0 %v123_v34  ;;  %135 = vadd.xlane.f32.xlu1 %v125_v35  ;;  %v40_v35 = vld [vmem:[%s1333_s6 + $0x10] sm:$0xff] }
  0x90   :  { %v122_v36 = vpop.permute.xlu1 %121  ;;  %v120_v37 = vpop.permute.xlu0 %119 }
  0x91   :  { %v126_v39 = vsel %vm70_vm0, %v120_v37, %v122_v36  ;;  %v294_v36 = vrot.slane %v976_v24, %v293_v32 }
  0x92   :  { %133 = vadd.xlane.f32.xlu0 %v124_v38 }
  0x96   :  { %137 = vadd.xlane.f32.xlu0 %v126_v39  ;;  %v41_v39 = vld [vmem:[%s1333_s6 + $0x18] sm:$0xff]  ;;  %s802_s6 = smov 10  }
 0x107   :  { %v80_v41 = vpop.xlane.xlu0 %79  ;;  %v82_v43 = vpop.xlane.xlu1 %81 }
 0x108   :  { %v948_v44 = vmul.f32 0.0078125, %v80_v41  ;;  %v950_v46 = vmul.f32 0.0078125, %v82_v43  ;;  %v313_v41 = vsub.s32 4, %v967_v16 }
 0x10a   :  { %v143_v48 = vmul.f32 %v948_v44, %v948_v44  ;;  %v144_v54 = vmul.f32 %v950_v46, %v950_v46  ;;  %v314_v43 = vrot.slane %v976_v24, %v313_v41 }
 0x113   :  { %v84_v47 = vpop.xlane.xlu1 %83 }
 0x114   :  { %v956_v56 = vmul.f32 0.0078125, %v84_v47 }
 0x116   :  { %v145_v63 = vmul.f32 %v956_v56, %v956_v56 }
 0x117   :  { %v86_v42 = vpop.xlane.xlu0 %85 }
 0x118   :  { %v958_v62 = vmul.f32 0.0078125, %v86_v42  ;;  %v45_v42 = vld [vmem:[%s1335_s7 + $0x18] sm:$0xff]  ;;  %s804_s7 = smov 17  }
 0x11a   :  { %v146_v7 = vmul.f32 %v958_v62, %v958_v62 }
 0x11b   :  { %v132_v45 = vpop.xlane.xlu0 %131  ;;  %v136_v52 = vpop.xlane.xlu1 %135 }
 0x11c   :  { %v139_v49 = vmul.f32 0.0078125, %v132_v45  ;;  %v141_v59 = vmul.f32 0.0078125, %v136_v52  ;;  %v333_v45 = vsub.s32 5, %v967_v16  ;;  %v723_v52 = vld [vmem:[%s1334_s1 + $0x8] ss:$0 sm:$0xff]  ;;  %s806_s1 = smov 118  }
 0x11e   :  { %v147_v50 = vsub.f32 %v139_v49, %v143_v48  ;;  %v149_v5 = vsub.f32 %v141_v59, %v145_v63  ;;  %v334_v47 = vrot.slane %v976_v24, %v333_v45  ;;  %v353_v48 = vsub.s32 6, %v967_v16 }
 0x11f   :  { %v134_v51 = vpop.xlane.xlu0 %133 }
 0x120   :  { %v151_v53 = vmax.f32 %v147_v50, 0.0  ;;  %v140_v55 = vmul.f32 0.0078125, %v134_v51  ;;  %v153_v13 = vmax.f32 %v149_v5, 0.0  ;;  %v354_v49 = vrot.slane %v976_v24, %v353_v48 }
 0x121   :  { %v373_v50 = vsub.s32 7, %v967_v16  ;;  %v170_v5 = vsub.f32 %v877_v2, %v950_v46  ;;  %v174_v48 = vsub.f32 %v917_v10, %v958_v62 }
 0x122   :  { %v155_v57 = vadd.f32 1e-05, %v151_v53  ;;  %v148_v58 = vsub.f32 %v140_v55, %v144_v54  ;;  %v157_v18 = vadd.f32 1e-05, %v153_v13  ;;  %v167_v54 = vsub.f32 %v868_v1, %v948_v44 }
 0x123   :  { %v138_v61 = vpop.xlane.xlu0 %137  ;;  %v374_v51 = vrot.slane %v976_v24, %v373_v50  ;;  %v168_v55 = vsub.f32 %v882_v3, %v948_v44 }
 0x124   :  { %v152_v60 = vmax.f32 %v148_v58, 0.0  ;;  %788 = vrsqrt.f32 %v155_v57  ;;  %v142_v6 = vmul.f32 0.0078125, %v138_v61 }
 0x126   :  { %v156_v4 = vadd.f32 1e-05, %v152_v60  ;;  %v150_v14 = vsub.f32 %v142_v6, %v146_v7  ;;  %v243_v6 = vsub.s32 0, %v967_v16 }
 0x128   :  { %790 = vrsqrt.f32 %v156_v4  ;;  %v154_v19 = vmax.f32 %v150_v14, 0.0  ;;  %v169_v4 = vsub.f32 %v863_v0, %v950_v46 }
 0x129   :  { %792 = vrsqrt.f32 %v157_v18 }
 0x12a   :  { %v158_v25 = vadd.f32 1e-05, %v154_v19 }
 0x12c   :  { %794 = vrsqrt.f32 %v158_v25 }
 0x12e   :  { %v789_v17 = vpop.eup %788 }
 0x12f   :  { %v163_v20 = vmul.f32 %v789_v17, %v38_v15  ;;  %v1028_v17 = vrot.slane %v976_v24, %v243_v6 }
 0x131   :  { %177 = vperm.xlu1 %786, %v163_v20  }
 0x132   :  { %v791_v23 = vpop.eup %790 }
 0x133   :  { %v164_v27 = vmul.f32 %v791_v23, %v39_v21  ;;  %v793_v34 = vpop.eup %792 }
 0x134   :  { %v165_v37 = vmul.f32 %v793_v34, %v40_v35 }
 0x135   :  { %182 = vperm.xlu0 %787, %v164_v27   ;;  %205 = vperm.xlu1 %786, %v42_v26   ;;  %v171_v26 = vsub.f32 %v908_v9, %v956_v56  ;;  %v172_v27 = vsub.f32 %v903_v8, %v956_v56 }
 0x136   :  { %v795_v38 = vpop.eup %794 }
 0x137   :  { %v166_v40 = vmul.f32 %v795_v38, %v41_v39 }
 0x139   :  { %256 = vrot.lane.b32.xlu0 %v254_v28, %s798_s10  ;;  %210 = vperm.xlu1 %786, %v43_v30  }
 0x13d   :  { %276 = vrot.lane.b32.xlu0 %v274_v31, %s799_s15  ;;  %215 = vperm.xlu1 %786, %v44_v33  }
 0x141   :  { %296 = vrot.lane.b32.xlu0 %v294_v36, %s800_s18  ;;  %187 = vperm.xlu1 %786, %v165_v37  }
 0x145   :  { %192 = vperm.xlu1 %786, %v166_v40  }
 0x149   :  { %220 = vperm.xlu1 %786, %v45_v42  }
 0x14d   :  { %316 = vrot.lane.b32.xlu1 %v314_v43, %s801_s21 }
 0x151   :  { %336 = vrot.lane.b32.xlu1 %v334_v47, %s802_s6  ;;  %v173_v47 = vsub.f32 %v922_v11, %v958_v62 }
 0x155   :  { %356 = vrot.lane.b32.xlu1 %v354_v49, %s803_s0 }
 0x159   :  { %376 = vrot.lane.b32.xlu1 %v374_v51, %s804_s7 }
 0x15d   :  { %396 = vrot.lane.b32.xlu1 %v723_v52, %s805_s24 }
 0x1b0   :  { %v178_v53 = vpop.permute.xlu1 %177 }
 0x1b1   :  { %v195_v57 = vmul.f32 %v178_v53, %v167_v54  ;;  %v196_v58 = vmul.f32 %v178_v53, %v168_v55 }
 0x1b4   :  { %v183_v59 = vpop.permute.xlu0 %182  ;;  %v206_v60 = vpop.permute.xlu1 %205 }
 0x1b5   :  { %v223_v61 = vadd.f32 %v206_v60, %v195_v57  ;;  %v224_v63 = vadd.f32 %v206_v60, %v196_v58  ;;  %v197_v7 = vmul.f32 %v183_v59, %v169_v4  ;;  %v198_v12 = vmul.f32 %v183_v59, %v170_v5 }
 0x1b7   :  { %v1023_v13 = vmax.f32 %v223_v61, 0.0  ;;  %v1025_v3 = vmax.f32 %v224_v63, 0.0 }
 0x1b8   :  { %v1021_v1 = vpop.permute.xlu0 %256  ;;  %v211_v44 = vpop.permute.xlu1 %210 }
 0x1b9   :  { %v225_v14 = vadd.f32 %v211_v44, %v197_v7  ;;  %v226_v15 = vadd.f32 %v211_v44, %v198_v12  ;;  %v1038_v16 = vmul.f32 %v1021_v1, %v1025_v3  ;;  %v1042_v19 = vmul.f32 %v1021_v1, %v1023_v13 }
 0x1ba   :  { %v1074_v28 = vmul.f32 %v1028_v17, %v1023_v13 }
 0x1bb   :  { %v1030_v0 = vmax.f32 %v225_v14, 0.0  ;;  %v1032_v18 = vmax.f32 %v226_v15, 0.0 }
 0x1bc   :  { %v1034_v2 = vpop.permute.xlu0 %276  ;;  %v216_v46 = vpop.permute.xlu1 %215 }
 0x1bd   :  { %v1046_v20 = vmul.f32 %v1034_v2, %v1025_v3  ;;  %v1050_v21 = vmul.f32 %v1034_v2, %v1023_v13  ;;  %v1054_v22 = vmul.f32 %v1021_v1, %v1032_v18  ;;  %v1058_v23 = vmul.f32 %v1021_v1, %v1030_v0 }
 0x1be   :  { %v1062_v24 = vmul.f32 %v1034_v2, %v1032_v18  ;;  %v1066_v25 = vmul.f32 %v1034_v2, %v1030_v0  ;;  %v1078_v29 = vmul.f32 %v1028_v17, %v1030_v0 }
 0x1bf   :  { %v268_v31 = vpack.c.bf16 %v1054_v22, %v1038_v16  ;;  %v267_v32 = vpack.c.bf16 %v1058_v23, %v1042_v19 }
 0x1c0   :  { %v1080_v30 = vpop.permute.xlu0 %296  ;;  %v288_v9 = vpack.c.bf16 %v1062_v24, %v1046_v20  ;;  %v287_v8 = vpack.c.bf16 %v1066_v25, %v1050_v21  ;;  %v188_v56 = vpop.permute.xlu1 %187  ;;  %v812_v20 = vmov 0.0   ;;  %v557_v21 = vld [vmem:[%s1337_s3 + $0x8] sm:$0xff]  ;;  %v556_v24 = vld [vmem:[%s1337_s3] sm:$0xff] }
 0x1c1   :  { %v1092_v33 = vmul.f32 %v1080_v30, %v1025_v3  ;;  %v1096_v34 = vmul.f32 %v1080_v30, %v1032_v18  ;;  %v1100_v35 = vmul.f32 %v1080_v30, %v1023_v13  ;;  %v1104_v36 = vmul.f32 %v1080_v30, %v1030_v0  ;;  %753 = vmatprep.subr.bf16.mxu1 %v812_v20  ;;  %v661_v25 = vld [vmem:[%s1338_s5 + $0x8] sm:$0xff] }
 0x1c2   :  { %v199_v37 = vmul.f32 %v188_v56, %v171_v26  ;;  %v200_v38 = vmul.f32 %v188_v56, %v172_v27  ;;  %757 = vmatprep.mubr.msk.bf16.mxu1 %vm813_vm1, %v812_v20 }
 0x1c3   :  { %v308_v40 = vpack.c.bf16 %v1096_v34, %v1092_v33  ;;  %v307_v41 = vpack.c.bf16 %v1104_v36, %v1100_v35  ;;  %v1341_v33 = vpack.c.bf16 %v1078_v29, %v1074_v28 }
 0x1c4   :  { %v227_v42 = vadd.f32 %v216_v46, %v199_v37  ;;  %v228_v43 = vadd.f32 %v216_v46, %v200_v38  ;;  %v193_v45 = vpop.permute.xlu1 %192 }
 0x1c5   :  { %v201_v51 = vmul.f32 %v193_v45, %v173_v47  ;;  %v202_v52 = vmul.f32 %v193_v45, %v174_v48 }
 0x1c6   :  { %v1116_v49 = vmax.f32 %v228_v43, 0.0  ;;  %v1118_v50 = vmax.f32 %v227_v42, 0.0 }
 0x1c8   :  { %v221_v53 = vpop.permute.xlu1 %220  ;;  %v1122_v57 = vmul.f32 %v1021_v1, %v1116_v49  ;;  %v1130_v10 = vmul.f32 %v1021_v1, %v1118_v50  ;;  %v1134_v11 = vmul.f32 %v1034_v2, %v1116_v49  ;;  %v1138_v60 = vmul.f32 %v1034_v2, %v1118_v50 }
 0x1c9   :  { %v229_v54 = vadd.f32 %v221_v53, %v201_v51  ;;  %v230_v55 = vadd.f32 %v221_v53, %v202_v52  ;;  %v1142_v61 = vmul.f32 %v1080_v30, %v1116_v49  ;;  %v1146_v63 = vmul.f32 %v1080_v30, %v1118_v50 }
 0x1ca   :  { %v1150_v4 = vmul.f32 %v1028_v17, %v1118_v50 }
 0x1cb   :  { %v1124_v58 = vmax.f32 %v229_v54, 0.0  ;;  %v1126_v59 = vmax.f32 %v230_v55, 0.0 }
 0x1cc   :  { %v317_v62 = vpop.permute.xlu1 %316 }
 0x1cd   :  { %v320_v5 = vmul.f32 %v317_v62, %v1025_v3  ;;  %v322_v6 = vmul.f32 %v317_v62, %v1032_v18  ;;  %v319_v7 = vmul.f32 %v317_v62, %v1023_v13  ;;  %v321_v12 = vmul.f32 %v317_v62, %v1030_v0 }
 0x1ce   :  { %v324_v44 = vmul.f32 %v317_v62, %v1116_v49  ;;  %v326_v14 = vmul.f32 %v317_v62, %v1126_v59  ;;  %v323_v15 = vmul.f32 %v317_v62, %v1118_v50  ;;  %v325_v46 = vmul.f32 %v317_v62, %v1124_v58 }
 0x1cf   :  { %v328_v26 = vpack.c.bf16 %v322_v6, %v320_v5  ;;  %v327_v27 = vpack.c.bf16 %v321_v12, %v319_v7  ;;  %v1162_v56 = vmul.f32 %v1021_v1, %v1126_v59  ;;  %v1166_v37 = vmul.f32 %v1021_v1, %v1124_v58 }
 0x1d0   :  { %v337_v38 = vpop.permute.xlu1 %336  ;;  %v330_v42 = vpack.c.bf16 %v326_v14, %v324_v44  ;;  %v329_v43 = vpack.c.bf16 %v325_v46, %v323_v15  ;;  %v1170_v45 = vmul.f32 %v1034_v2, %v1126_v59  ;;  %v1174_v47 = vmul.f32 %v1034_v2, %v1124_v58 }
 0x1d1   :  { %468 = vrot.lane.b32.xlu1 %v328_v26, %s796_s9  ;;  %466 = vrot.lane.b32.xlu0 %v327_v27, %s796_s9  ;;  %v340_v48 = vmul.f32 %v337_v38, %v1025_v3  ;;  %v342_v1 = vmul.f32 %v337_v38, %v1032_v18  ;;  %v339_v51 = vmul.f32 %v337_v38, %v1023_v13 }
 0x1d2   :  { %v341_v52 = vmul.f32 %v337_v38, %v1030_v0  ;;  %v1183_v53 = vmul.f32 %v337_v38, %v1116_v49  ;;  %v1186_v54 = vmul.f32 %v337_v38, %v1126_v59  ;;  %v1189_v2 = vmul.f32 %v337_v38, %v1118_v50 }
 0x1d3   :  { %v348_v55 = vpack.c.bf16 %v342_v1, %v340_v48  ;;  %v345_v62 = vmul.f32 %v337_v38, %v1124_v58  ;;  %v270_v5 = vpack.c.bf16 %v1162_v56, %v1122_v57  ;;  %v269_v6 = vpack.c.bf16 %v1166_v37, %v1130_v10 }
 0x1d4   :  { %v357_v7 = vpop.permute.xlu1 %356  ;;  %v347_v12 = vpack.c.bf16 %v341_v52, %v339_v51  ;;  %v350_v44 = vpack.c.bf16 %v1186_v54, %v1183_v53  ;;  %v290_v14 = vpack.c.bf16 %v1170_v45, %v1134_v11  ;;  %v289_v15 = vpack.c.bf16 %v1174_v47, %v1138_v60 }
 0x1d5   :  { %472 = vrot.lane.b32.xlu1 %v330_v42, %s796_s9  ;;  %470 = vrot.lane.b32.xlu0 %v329_v43, %s796_s9  ;;  %v349_v57 = vpack.c.bf16 %v345_v62, %v1189_v2  ;;  %v360_v46 = vmul.f32 %v357_v7, %v1025_v3  ;;  %v362_v10 = vmul.f32 %v357_v7, %v1032_v18  ;;  %s807_s9 = smov 127  }
 0x1d6   :  { %v359_v26 = vmul.f32 %v357_v7, %v1023_v13  ;;  %v361_v27 = vmul.f32 %v357_v7, %v1030_v0  ;;  %v364_v56 = vmul.f32 %v357_v7, %v1116_v49  ;;  %v366_v37 = vmul.f32 %v357_v7, %v1126_v59 }
 0x1d7   :  { %v368_v38 = vpack.c.bf16 %v362_v10, %v360_v46  ;;  %v363_v48 = vmul.f32 %v357_v7, %v1118_v50  ;;  %v365_v42 = vmul.f32 %v357_v7, %v1124_v58  ;;  %v1215_v43 = vmul.f32 %v1080_v30, %v1126_v59 }
 0x1d8   :  { %v377_v1 = vpop.permute.xlu1 %376  ;;  %v367_v51 = vpack.c.bf16 %v361_v27, %v359_v26  ;;  %v370_v52 = vpack.c.bf16 %v366_v37, %v364_v56  ;;  %v1219_v53 = vmul.f32 %v1080_v30, %v1124_v58  ;;  %v1223_v54 = vmul.f32 %v1028_v17, %v1124_v58 }
 0x1d9   :  { %485 = vrot.lane.b32.xlu1 %v348_v55, %s806_s1  ;;  %483 = vrot.lane.b32.xlu0 %v347_v12, %s806_s1  ;;  %v369_v2 = vpack.c.bf16 %v365_v42, %v363_v48  ;;  %v380_v62 = vmul.f32 %v377_v1, %v1025_v3  ;;  %v382_v7 = vmul.f32 %v377_v1, %v1032_v18 }
 0x1da   :  { %v379_v46 = vmul.f32 %v377_v1, %v1023_v13  ;;  %v381_v10 = vmul.f32 %v377_v1, %v1030_v0  ;;  %v384_v30 = vmul.f32 %v377_v1, %v1116_v49  ;;  %v386_v26 = vmul.f32 %v377_v1, %v1126_v59 }
 0x1db   :  { %v388_v17 = vpack.c.bf16 %v382_v7, %v380_v62  ;;  %v383_v27 = vmul.f32 %v377_v1, %v1118_v50  ;;  %v385_v55 = vmul.f32 %v377_v1, %v1124_v58  ;;  %v310_v12 = vpack.c.bf16 %v1215_v43, %v1142_v61 }
 0x1dc   :  { %v397_v56 = vpop.permute.xlu1 %396  ;;  %v387_v37 = vpack.c.bf16 %v381_v10, %v379_v46  ;;  %v390_v48 = vpack.c.bf16 %v386_v26, %v384_v30  ;;  %v309_v42 = vpack.c.bf16 %v1219_v53, %v1146_v63  ;;  %v250_v39 = vpack.c.bf16 %v1223_v54, %v1150_v4 }
 0x1dd   :  { %417 = vrot.lane.b32.xlu1 %v268_v31, %s807_s9  ;;  %415 = vrot.lane.b32.xlu0 %v267_v32, %s807_s9  ;;  %v389_v1 = vpack.c.bf16 %v385_v55, %v383_v27  ;;  %v400_v61 = vmul.f32 %v397_v56, %v1025_v3  ;;  %v402_v43 = vmul.f32 %v397_v56, %v1032_v18  ;;  %v660_v31 = vld [vmem:[%s1338_s5] sm:$0xff] }
 0x1de   :  { %v399_v62 = vmul.f32 %v397_v56, %v1023_v13  ;;  %v401_v63 = vmul.f32 %v397_v56, %v1030_v0  ;;  %v404_v53 = vmul.f32 %v397_v56, %v1116_v49  ;;  %v406_v7 = vmul.f32 %v397_v56, %v1126_v59  ;;  %v548_v13 = vld [vmem:[%s1336_s2 + $0x8] sm:$0xff]  ;;  %v551_v0 = vld [vmem:[%s1336_s2 + $0x20] sm:$0xff] }
 0x1df   :  { %v408_v46 = vpack.c.bf16 %v402_v43, %v400_v61  ;;  %v403_v16 = vmul.f32 %v397_v56, %v1118_v50  ;;  %v405_v22 = vmul.f32 %v397_v56, %v1124_v58  ;;  %v554_v18 = vpack.c.bf16 %v551_v0, %v548_v13 }
 0x1e0   :  { %v407_v19 = vpack.c.bf16 %v401_v63, %v399_v62  ;;  %v410_v23 = vpack.c.bf16 %v406_v7, %v404_v53  ;;  %v549_v7 = vld [vmem:[%s1336_s2 + $0x10] sm:$0xff] }
 0x1e1   :  { %489 = vrot.lane.b32.xlu1 %v350_v44, %s806_s1  ;;  %487 = vrot.lane.b32.xlu0 %v349_v57, %s806_s1  ;;  %v409_v3 = vpack.c.bf16 %v405_v22, %v403_v16 }
 0x1e2   :  { %604 = vmatprep.mubr.bf16.mxu0 %v554_v18 }
 0x1e5   :  { %421 = vrot.lane.b32.xlu1 %v270_v5, %s807_s9  ;;  %419 = vrot.lane.b32.xlu0 %v269_v6, %s807_s9 }
 0x1e9   :  { %502 = vrot.lane.b32.xlu1 %v368_v38, %s808_s25  ;;  %500 = vrot.lane.b32.xlu0 %v367_v51, %s808_s25 }
 0x1ed   :  { %434 = vrot.lane.b32.xlu1 %v288_v9, %s809_s26  ;;  %432 = vrot.lane.b32.xlu0 %v287_v8, %s809_s26 }
 0x1f1   :  { %506 = vrot.lane.b32.xlu1 %v370_v52, %s808_s25  ;;  %504 = vrot.lane.b32.xlu0 %v369_v2, %s808_s25 }
 0x1f5   :  { %438 = vrot.lane.b32.xlu1 %v290_v14, %s809_s26  ;;  %436 = vrot.lane.b32.xlu0 %v289_v15, %s809_s26 }
 0x1f9   :  { %519 = vrot.lane.b32.xlu1 %v388_v17, %s810_s27  ;;  %517 = vrot.lane.b32.xlu0 %v387_v37, %s810_s27  ;;  %v547_v37 = vld [vmem:[%s1336_s2] sm:$0xff] }
 0x1fd   :  { %451 = vrot.lane.b32.xlu1 %v308_v40, %s811_s11  ;;  %449 = vrot.lane.b32.xlu0 %v307_v41, %s811_s11 }
 0x201   :  { %523 = vrot.lane.b32.xlu1 %v390_v48, %s810_s27  ;;  %521 = vrot.lane.b32.xlu0 %v389_v1, %s810_s27  ;;  %v550_v48 = vld [vmem:[%s1336_s2 + $0x18] sm:$0xff] }
 0x202   :  { %v553_v43 = vpack.c.bf16 %v550_v48, %v547_v37 }
 0x205   :  { %455 = vrot.lane.b32.xlu1 %v310_v12, %s811_s11  ;;  %453 = vrot.lane.b32.xlu0 %v309_v42, %s811_s11 }
 0x209   :  { %536 = vrot.lane.b32.xlu1 %v408_v46, %s814_s12  ;;  %534 = vrot.lane.b32.xlu0 %v407_v19, %s814_s12  ;;  %v552_v46 = vld [vmem:[%s1336_s2 + $0x28] sm:$0xff] }
 0x20d   :  { %540 = vrot.lane.b32.xlu1 %v410_v23, %s814_s12  ;;  %538 = vrot.lane.b32.xlu0 %v409_v3, %s814_s12  ;;  %v555_v23 = vpack.c.bf16 %v552_v46, %v549_v7 }
 0x211   :  { %565 = vperm.xlu1 %786, %v557_v21   ;;  %560 = vperm.xlu0 %787, %v556_v24  }
 0x215   :  { %669 = vperm.xlu1 %786, %v661_v25   ;;  %664 = vperm.xlu0 %787, %v660_v31  }
 0x243   :  { %v469_v32 = vpop.permute.xlu1 %468  ;;  %v467_v9 = vpop.permute.xlu0 %466 }
 0x244   :  { %v475_v8 = vsel %vm70_vm0, %v467_v9, %v469_v32 }
 0x245   :  { %726 = vmatprep.subr.bf16.mxu0 %v475_v8 }
 0x246   :  { %727 = vmatpush3.bf16.msra.mxu0 %v1341_v33 }
 0x247   :  { %v473_v34 = vpop.permute.xlu1 %472  ;;  %v471_v35 = vpop.permute.xlu0 %470 }
 0x248   :  { %v476_v36 = vsel %vm70_vm0, %v471_v35, %v473_v34 }
 0x249   :  { %728 = vmatprep.subr.bf16.mxu0 %v476_v36 }
 0x24a   :  { %729 = vmatpush3.bf16.msra.mxu0 %v250_v39 }
 0x24b   :  { %v486_v40 = vpop.permute.xlu1 %485  ;;  %v484_v41 = vpop.permute.xlu0 %483 }
 0x24c   :  { %v492_v49 = vsel %vm491_vm2, %v484_v41, %v486_v40 }
 0x24d   :  { %730 = vmatprep.subr.bf16.mxu0 %v492_v49 }
 0x24f   :  { %v418_v50 = vpop.permute.xlu1 %417  ;;  %v416_v58 = vpop.permute.xlu0 %415 }
 0x250   :  { %v424_v59 = vsel %vm423_vm3, %v416_v58, %v418_v50  ;;  %v657_v50 = vld [vmem:[%s1339_s4 + $0x8] sm:$0xff] }
 0x251   :  { %731 = vmatpush3.bf16.msra.mxu0 %v424_v59 }
 0x253   :  { %v490_v28 = vpop.permute.xlu1 %489  ;;  %v488_v29 = vpop.permute.xlu0 %487 }
 0x254   :  { %v493_v11 = vsel %vm491_vm2, %v488_v29, %v490_v28 }
 0x255   :  { %732 = vmatprep.subr.bf16.mxu0 %v493_v11 }
 0x257   :  { %v422_v60 = vpop.permute.xlu1 %421  ;;  %v420_v45 = vpop.permute.xlu0 %419 }
 0x258   :  { %v425_v47 = vsel %vm423_vm3, %v420_v45, %v422_v60 }
 0x259   :  { %733 = vmatpush3.bf16.msra.mxu0 %v425_v47 }
 0x25b   :  { %v503_v4 = vpop.permute.xlu1 %502  ;;  %v501_v39 = vpop.permute.xlu0 %500 }
 0x25c   :  { %v509_v5 = vsel %vm508_vm4, %v501_v39, %v503_v4 }
 0x25d   :  { %734 = vmatprep.subr.bf16.mxu0 %v509_v5 }
 0x25f   :  { %v435_v6 = vpop.permute.xlu1 %434  ;;  %v433_v44 = vpop.permute.xlu0 %432 }
 0x260   :  { %v441_v14 = vsel %vm440_vm5, %v433_v44, %v435_v6 }
 0x261   :  { %735 = vmatpush3.bf16.msra.mxu0 %v441_v14 }
 0x263   :  { %v507_v15 = vpop.permute.xlu1 %506  ;;  %v505_v57 = vpop.permute.xlu0 %504 }
 0x264   :  { %v510_v38 = vsel %vm508_vm4, %v505_v57, %v507_v15 }
 0x265   :  { %736 = vmatprep.subr.bf16.mxu0 %v510_v38 }
 0x267   :  { %v439_v51 = vpop.permute.xlu1 %438  ;;  %v437_v52 = vpop.permute.xlu0 %436 }
 0x268   :  { %v442_v54 = vsel %vm440_vm5, %v437_v52, %v439_v51 }
 0x269   :  { %737 = vmatpush3.bf16.msra.mxu0 %v442_v54 }
 0x26b   :  { %v520_v2 = vpop.permute.xlu1 %519  ;;  %v518_v10 = vpop.permute.xlu0 %517 }
 0x26c   :  { %v526_v30 = vsel %vm525_vm6, %v518_v10, %v520_v2 }
 0x26d   :  { %738 = vmatprep.subr.bf16.mxu0 %v526_v30 }
 0x26f   :  { %v452_v26 = vpop.permute.xlu1 %451  ;;  %v450_v17 = vpop.permute.xlu0 %449 }
 0x270   :  { %v458_v27 = vsel %vm457_vm7, %v450_v17, %v452_v26 }
 0x271   :  { %739 = vmatpush3.bf16.msra.mxu0 %v458_v27 }
 0x273   :  { %v524_v55 = vpop.permute.xlu1 %523  ;;  %v522_v12 = vpop.permute.xlu0 %521 }
 0x274   :  { %v527_v56 = vsel %vm525_vm6, %v522_v12, %v524_v55 }
 0x275   :  { %740 = vmatprep.subr.bf16.mxu0 %v527_v56 }
 0x277   :  { %v456_v42 = vpop.permute.xlu1 %455  ;;  %v454_v1 = vpop.permute.xlu0 %453 }
 0x278   :  { %v459_v61 = vsel %vm457_vm7, %v454_v1, %v456_v42 }
 0x279   :  { %741 = vmatpush3.bf16.msra.mxu0 %v459_v61 }
 0x27b   :  { %v537_v62 = vpop.permute.xlu1 %536  ;;  %v535_v63 = vpop.permute.xlu0 %534 }
 0x27c   :  { %605 = vmatmul.mubr.bf16.vlgmr.msra.gmra.mrb[0].mxu0 %v553_v43  ;;  %v543_v53 = vsel %vm542_vm8, %v535_v63, %v537_v62 }
 0x27d   :  { %754 = vmatpush3.bf16.msra.mxu1 %v543_v53 }
 0x27e   :  { %755 = vmatprep.subr.bf16.mxu1 %v812_v20 }
 0x27f   :  { %v541_v16 = vpop.permute.xlu1 %540  ;;  %v539_v22 = vpop.permute.xlu0 %538 }
 0x280   :  { %v544_v19 = vsel %vm542_vm8, %v539_v22, %v541_v16 }
 0x281   :  { %756 = vmatpush3.bf16.msra.mxu1 %v544_v19 }
 0x282   :  { %761 = vmatprep.subr.bf16.mxu1 %v812_v20 }
 0x284   :  { %758 = vmatmul.mubr.msk.bf16.vlgmr.msra.gmra.mrb[0].mxu1 %vm568_vm9, %v555_v23 }
 0x285   :  { %763 = vmatprep.mubr.msk.bf16.mxu1 %vm813_vm1, %v812_v20  ;;  %v656_v20 = vld [vmem:[%s1339_s4] sm:$0xff] }
 0x286   :  { %v658_v59 = vpack.c.bf16 %v657_v50, %v656_v20 }
 0x290   :  { %v561_v25 = vpop.permute.xlu0 %560  ;;  %v566_v32 = vpop.permute.xlu1 %565 }
 0x294   :  { %v665_v28 = vpop.permute.xlu0 %664  ;;  %v670_v45 = vpop.permute.xlu1 %669 }
 0x34f   :  { %v742_v3 = vpop.f32.mrb[0].mxu0 }
 0x350   :  { %v743_v13 = vpop.f32.mrb[1].mxu0 }
 0x351   :  { %v744_v0 = vadd.f32 %v743_v13, %v742_v3  ;;  %v745_v18 = vpop.f32.mrb[2].mxu0 }
 0x352   :  { %v746_v21 = vpop.f32.mrb[3].mxu0 }
 0x353   :  { %v747_v24 = vadd.f32 %v746_v21, %v745_v18  ;;  %v607_v31 = vadd.f32 %v744_v0, %v561_v25 }
 0x355   :  { %v610_v34 = vadd.f32 %v747_v24, %v566_v32 }
 0x357   :  { %v647_v9 = vpop.f32.mrb[0].mxu1 }
 0x358   :  { %v648_v8 = vadd.f32 %v647_v9, %v607_v31  ;;  %v759_v33 = vpop.f32.mrb[1].mxu1 }
 0x359   :  { %v650_v35 = vpop.f32.mrb[2].mxu1 }
 0x35a   :  { %v651_v36 = vadd.f32 %v650_v35, %v610_v34  ;;  %v760_v40 = vpop.f32.mrb[3].mxu1  ;;  %v654_v41 = vmax.f32 %v648_v8, 0.0 }
 0x35c   :  { %v655_v49 = vmax.f32 %v651_v36, 0.0 }
 0x35e   :  { %v659_v58 = vpack.c.bf16 %v655_v49, %v654_v41 }
 0x360   :  { %762 = vmatpush3.bf16.msra.mxu1 %v659_v58 }
 0x363   :  { %764 = vmatmul.mubr.msk.bf16.vlgmr.msra.gmra.mrb[4].mxu1 %vm672_vm10, %v658_v59 }
 0x436   :  { %v710_v29 = vpop.f32.mrb[4].mxu1 }
 0x437   :  { %v711_v11 = vadd.f32 %v710_v29, %v665_v28  ;;  %v765_v60 = vpop.f32.mrb[5].mxu1 }
 0x438   :  { %v713_v47 = vpop.f32.mrb[6].mxu1 }
 0x439   :  { %717 = vst [vmem:[%s1340_s8] sm:$0xff] %v711_v11  ;;  %v714_v4 = vadd.f32 %v713_v47, %v670_v45  ;;  %v766_v39 = vpop.f32.mrb[7].mxu1 }
 0x43b   :  { %718 = vst [vmem:[%s1340_s8 + $0x8] sm:$0xff] %v714_v4 }

// kernel: tile.2
= control target key start
LH: loop header
LB: loop body
LE: loop exit
PB: predicated region body
PF: predicated region fallthrough
CT: control target
= control target key end

     0   :  { %vm7_vm0 = vcmask 7168   ;;  %s26_s10 = smov 126   ;;  %s49_s0 = inlined_call_operand.vmem [shape: f32[4,3], index: 0, kind: input, shape index: {}]   ;;  %s50_s1 = inlined_call_operand.vmem [shape: f32[12,1], index: 1, kind: output, shape index: {}]  }
   0x1   :  { %v4_v0 = vld [vmem:[%s49_s0] sm:$0xf]  ;;  %s25_s0 = smov 127  }
   0x2   :  { %5 = vst [vmem:[#allocation0] sm:$0xf] %v4_v0 }
   0x9   :  { %v9_v1 = vld [vmem:[#allocation0] sm:$0xf]  }
   0xa   :  { %v6_v2 = vld [vmem:[#allocation0] sm:$0xf]   ;;  %10 = vrot.lane.b32.xlu0 %v9_v1, %s25_s0 }
   0xb   :  { %8 = vst.msk [vmem:[%s50_s1] ss:$3 sm:$0xf] %vm7_vm0, %v6_v2   ;;  %v15_v3 = vld [vmem:[#allocation0] sm:$0xf]  }
   0xe   :  { %16 = vrot.lane.b32.xlu0 %v15_v3, %s26_s10 }
  0x7c   :  { %v11_v4 = vpop.permute.xlu0 %10  }
  0x7d   :  { %21 = vst.msk [vmem:[%s50_s1 + $0x1] ss:$3 sm:$0xf] %vm7_vm0, %v11_v4  }
  0x80   :  { %v17_v5 = vpop.permute.xlu0 %16  }
  0x81   :  { %22 = vst.msk [vmem:[%s50_s1 + $0x2] ss:$3 sm:$0xf] %vm7_vm0, %v17_v5  }

// kernel: tile.28
= control target key start
LH: loop header
LB: loop body
LE: loop exit
PB: predicated region body
PF: predicated region fallthrough
CT: control target
= control target key end

     0   :  { %s22_s0 = inlined_call_operand.vmem [shape: f32[3], index: 0, kind: input, shape index: {}]   ;;  %s23_s1 = inlined_call_operand.vmem [shape: f32[4,3], index: 1, kind: output, shape index: {}]  }
   0x1   :  { %v4_v0 = vld [vmem:[%s22_s0] ss:$0 sm:$0xff] }
   0x2   :  { %5 = vst [vmem:[%s23_s1] sm:$0xf] %v4_v0 }

// kernel: decompose_net_forward.23
= control target key start
LH: loop header
LB: loop body
LE: loop exit
PB: predicated region body
PF: predicated region fallthrough
CT: control target
= control target key end

     0   :  { %v24_v0 = vlaneseq  ;;  %s547_s17 = smov 1   ;;  %s548_s18 = smov 8   ;;  %v555_v19 = vmov 0   ;;  %vm359_vm0 = vcmask 130048   ;;  %vm149_vm1 = vcmask 1039360   ;;  %s872_s1 = inlined_call_operand.vmem [shape: f32[9,128], index: 1, kind: input, shape index: {}]   ;;  %s873_s0 = inlined_call_operand.vmem [shape: f32[16,146], index: 0, kind: input, shape index: {}]   ;;  %s874_s2 = inlined_call_operand.vmem [shape: f32[128,144], index: 2, kind: input, shape index: {}]   ;;  %s875_s3 = inlined_call_operand.vmem [shape: f32[128,1], index: 3, kind: input, shape index: {}]   ;;  %s876_s4 = inlined_call_operand.vmem [shape: f32[128,128], index: 4, kind: output, shape index: {}]  }
   0x1   :  { %v22_v2 = vld [vmem:[%s872_s1] sm:$0xff]  ;;  %s549_s19 = smov 2   ;;  %s550_s20 = smov 9   ;;  %v501_v17 = vld [vmem:[%s872_s1 + $0x8] ss:$0 sm:$0xff]  ;;  %384 = vmatprep.subr.bf16.mxu0 %v555_v19  ;;  %510 = vmatprep.subr.bf16.mxu1 %v555_v19  ;;  %v607_v22 = vld [vmem:[%s873_s0 + $0x10] sm:$0xff] }
   0x2   :  { %v25_v1 = vshrl.u32 %v24_v0, 7  ;;  %s551_s21 = smov 10   ;;  %s552_s22 = smov 16   ;;  %546 = vset.pattern.permute.xlu1 %v555_v19  ;;  %545 = vset.pattern.permute.xlu0 %v555_v19  ;;  %v602_v21 = vld [vmem:[%s873_s0] sm:$0xff]  ;;  %v616_v26 = vld [vmem:[%s873_s0 + $0x8] sm:$0xff]  ;;  %v621_v27 = vld [vmem:[%s873_s0 + $0x18] sm:$0xff] }
   0x3   :  { %s553_s25 = smov 17   ;;  %s554_s26 = smov 18   ;;  %vm158_vm2 = vcmask 1031168   ;;  %vm167_vm3 = vcmask 982016   ;;  %vm176_vm4 = vcmask 973824   ;;  %vm185_vm5 = vcmask 965632  }
   0x4   :  { %v33_v3 = vsub.s32 1, %v25_v1  ;;  %v47_v4 = vsub.s32 2, %v25_v1  ;;  %v61_v5 = vsub.s32 3, %v25_v1  ;;  %v75_v6 = vsub.s32 4, %v25_v1  ;;  %s556_s0 = smov 127   ;;  %s557_s8 = smov 126  }
   0x5   :  { %v89_v11 = vsub.s32 5, %v25_v1  ;;  %v103_v12 = vsub.s32 6, %v25_v1  ;;  %v117_v15 = vsub.s32 7, %v25_v1  ;;  %v26_v18 = vsub.s32 0, %v25_v1  ;;  %s558_s9 = smov 120   ;;  %s559_s10 = smov 119  }
   0x6   :  { %v34_v7 = vrot.slane %v22_v2, %v33_v3  ;;  %v62_v8 = vrot.slane %v22_v2, %v61_v5  ;;  %v48_v9 = vrot.slane %v22_v2, %v47_v4  ;;  %v76_v10 = vrot.slane %v22_v2, %v75_v6  ;;  %s560_s11 = smov 118  }
   0x7   :  { %v90_v13 = vrot.slane %v22_v2, %v89_v11  ;;  %v104_v14 = vrot.slane %v22_v2, %v103_v12  ;;  %v118_v16 = vrot.slane %v22_v2, %v117_v15  ;;  %v27_v20 = vrot.slane %v22_v2, %v26_v18  ;;  %v232_v11 = vld [vmem:[%s874_s2 + $0x88] sm:$0xff] }
   0x8   :  { %36 = vrot.lane.b32.xlu0 %v34_v7, %s547_s17  ;;  %64 = vrot.lane.b32.xlu1 %v62_v8, %s548_s18  ;;  %vm194_vm6 = vcmask 916480   ;;  %vm203_vm7 = vcmask 908288   ;;  %vm212_vm8 = vcmask 900096  }
   0x9   :  { %v28_v23 = vmul.f32 %v27_v20, %v602_v21  ;;  %v29_v24 = vmul.f32 %v27_v20, %v607_v22 }
   0xb   :  { %v30_v25 = vpack.c.bf16 %v29_v24, %v28_v23 }
   0xc   :  { %50 = vrot.lane.b32.xlu0 %v48_v9, %s549_s19  ;;  %78 = vrot.lane.b32.xlu1 %v76_v10, %s550_s20  ;;  %v216_v9 = vld [vmem:[%s874_s2 + $0x8] sm:$0xff]  ;;  %v218_v10 = vld [vmem:[%s874_s2 + $0x18] sm:$0xff]  ;;  %s561_s20 = smov 112  }
   0xd   :  { %385 = vmatpush1.bf16.msra.mxu0 %v30_v25  ;;  %519 = vmatpush1.bf16.msra.mxu1 %v30_v25  ;;  %v248_v15 = vpack.c.bf16 %v218_v10, %v216_v9 }
   0xe   :  { %386 = vmatprep.subr.bf16.mxu0 %v555_v19  ;;  %511 = vmatprep.subr.bf16.mxu1 %v555_v19 }
   0xf   :  { %502 = vmatprep.mubr.msk.bf16.mxu0 %vm359_vm0, %v248_v15  ;;  %v221_v15 = vld [vmem:[%s874_s2 + $0x30] sm:$0xff] }
  0x10   :  { %92 = vrot.lane.b32.xlu0 %v90_v13, %s551_s21  ;;  %106 = vrot.lane.b32.xlu1 %v104_v14, %s552_s22  ;;  %s562_s21 = smov 111   ;;  %s563_s22 = smov 110  }
  0x14   :  { %120 = vrot.lane.b32.xlu0 %v118_v16, %s553_s25  ;;  %134 = vrot.lane.b32.xlu1 %v501_v17, %s554_s26  ;;  %v234_v16 = vld [vmem:[%s874_s2 + $0x98] sm:$0xff] }
  0x15   :  { %v256_v17 = vpack.c.bf16 %v234_v16, %v232_v11  ;;  %v235_v16 = vld [vmem:[%s874_s2 + $0xa0] sm:$0xff] }
  0x17   :  { %506 = vmatprep.mubr.msk.bf16.mxu1 %vm359_vm0, %v256_v17  ;;  %v237_v17 = vld [vmem:[%s874_s2 + $0xb0] sm:$0xff] }
  0x7a   :  { %v37_v28 = vpop.permute.xlu0 %36  ;;  %v65_v29 = vpop.permute.xlu1 %64 }
  0x7b   :  { %v39_v30 = vmul.f32 %v37_v28, %v602_v21  ;;  %v40_v31 = vmul.f32 %v37_v28, %v616_v26  ;;  %v41_v32 = vmul.f32 %v37_v28, %v607_v22  ;;  %v42_v33 = vmul.f32 %v37_v28, %v621_v27 }
  0x7c   :  { %v68_v37 = vmul.f32 %v65_v29, %v616_v26  ;;  %v70_v38 = vmul.f32 %v65_v29, %v621_v27  ;;  %v67_v43 = vmul.f32 %v65_v29, %v602_v21  ;;  %v69_v44 = vmul.f32 %v65_v29, %v607_v22 }
  0x7d   :  { %v44_v34 = vpack.c.bf16 %v42_v33, %v40_v31  ;;  %v43_v35 = vpack.c.bf16 %v41_v32, %v39_v30  ;;  %v267_v31 = vld [vmem:[%s875_s3 + $0x20] sm:$0xff]  ;;  %v268_v32 = vld [vmem:[%s875_s3 + $0x28] sm:$0xff]  ;;  %v269_v33 = vld [vmem:[%s875_s3 + $0x30] sm:$0xff] }
  0x7e   :  { %v51_v36 = vpop.permute.xlu0 %50  ;;  %v79_v45 = vpop.permute.xlu1 %78  ;;  %v72_v50 = vpack.c.bf16 %v70_v38, %v68_v37  ;;  %v71_v53 = vpack.c.bf16 %v69_v44, %v67_v43  ;;  %v273_v37 = vld [vmem:[%s875_s3 + $0x50] sm:$0xff]  ;;  %v274_v38 = vld [vmem:[%s875_s3 + $0x58] sm:$0xff] }
  0x7f   :  { %v53_v39 = vmul.f32 %v51_v36, %v602_v21  ;;  %v54_v40 = vmul.f32 %v51_v36, %v616_v26  ;;  %v55_v41 = vmul.f32 %v51_v36, %v607_v22  ;;  %v56_v42 = vmul.f32 %v51_v36, %v621_v27  ;;  %147 = vrot.lane.b32.xlu1 %v44_v34, %s556_s0  ;;  %v270_v34 = vld [vmem:[%s875_s3 + $0x38] sm:$0xff]  ;;  %v272_v36 = vld [vmem:[%s875_s3 + $0x48] sm:$0xff] }
  0x80   :  { %145 = vrot.lane.b32.xlu0 %v43_v35, %s556_s0  ;;  %v82_v48 = vmul.f32 %v79_v45, %v616_v26  ;;  %v84_v49 = vmul.f32 %v79_v45, %v621_v27  ;;  %v81_v51 = vmul.f32 %v79_v45, %v602_v21  ;;  %v83_v52 = vmul.f32 %v79_v45, %v607_v22  ;;  %v271_v35 = vld [vmem:[%s875_s3 + $0x40] sm:$0xff] }
  0x81   :  { %v58_v46 = vpack.c.bf16 %v56_v42, %v54_v40  ;;  %v57_v47 = vpack.c.bf16 %v55_v41, %v53_v39  ;;  %v275_v39 = vld [vmem:[%s875_s3 + $0x60] sm:$0xff]  ;;  %v276_v40 = vld [vmem:[%s875_s3 + $0x68] sm:$0xff]  ;;  %v277_v41 = vld [vmem:[%s875_s3 + $0x70] sm:$0xff] }
  0x82   :  { %v93_v54 = vpop.permute.xlu0 %92  ;;  %v86_v57 = vpack.c.bf16 %v84_v49, %v82_v48  ;;  %v107_v58 = vpop.permute.xlu1 %106  ;;  %v85_v61 = vpack.c.bf16 %v83_v52, %v81_v51  ;;  %v278_v42 = vld [vmem:[%s875_s3 + $0x78] sm:$0xff] }
  0x83   :  { %156 = vrot.lane.b32.xlu1 %v58_v46, %s557_s8  ;;  %v96_v55 = vmul.f32 %v93_v54, %v616_v26  ;;  %v98_v56 = vmul.f32 %v93_v54, %v621_v27  ;;  %v95_v59 = vmul.f32 %v93_v54, %v602_v21  ;;  %v97_v60 = vmul.f32 %v93_v54, %v607_v22 }
  0x84   :  { %154 = vrot.lane.b32.xlu0 %v57_v47, %s557_s8  ;;  %v109_v62 = vmul.f32 %v107_v58, %v602_v21  ;;  %v110_v63 = vmul.f32 %v107_v58, %v616_v26  ;;  %v111_v0 = vmul.f32 %v107_v58, %v607_v22  ;;  %v112_v1 = vmul.f32 %v107_v58, %v621_v27 }
  0x85   :  { %v100_v2 = vpack.c.bf16 %v98_v56, %v96_v55  ;;  %v99_v3 = vpack.c.bf16 %v97_v60, %v95_v59 }
  0x86   :  { %v121_v4 = vpop.permute.xlu0 %120  ;;  %v114_v7 = vpack.c.bf16 %v112_v1, %v110_v63  ;;  %v113_v8 = vpack.c.bf16 %v111_v0, %v109_v62  ;;  %v135_v14 = vpop.permute.xlu1 %134  ;;  %v215_v0 = vld [vmem:[%s874_s2] sm:$0xff]  ;;  %v217_v1 = vld [vmem:[%s874_s2 + $0x10] sm:$0xff] }
  0x87   :  { %165 = vrot.lane.b32.xlu1 %v72_v50, %s558_s9  ;;  %v124_v5 = vmul.f32 %v121_v4, %v616_v26  ;;  %v126_v6 = vmul.f32 %v121_v4, %v621_v27  ;;  %v123_v12 = vmul.f32 %v121_v4, %v602_v21  ;;  %v125_v13 = vmul.f32 %v121_v4, %v607_v22  ;;  %v220_v4 = vld [vmem:[%s874_s2 + $0x28] sm:$0xff] }
  0x88   :  { %163 = vrot.lane.b32.xlu0 %v71_v53, %s558_s9  ;;  %v138_v18 = vmul.f32 %v135_v14, %v616_v26  ;;  %v140_v20 = vmul.f32 %v135_v14, %v621_v27  ;;  %v137_v24 = vmul.f32 %v135_v14, %v602_v21  ;;  %v139_v25 = vmul.f32 %v135_v14, %v607_v22  ;;  %v264_v26 = vld [vmem:[%s875_s3 + $0x8] sm:$0xff]  ;;  %v263_v27 = vld [vmem:[%s875_s3] sm:$0xff]  ;;  %v265_v21 = vld [vmem:[%s875_s3 + $0x10] sm:$0xff] }
  0x89   :  { %v128_v23 = vpack.c.bf16 %v126_v6, %v124_v5  ;;  %v127_v28 = vpack.c.bf16 %v125_v13, %v123_v12  ;;  %v266_v22 = vld [vmem:[%s875_s3 + $0x18] sm:$0xff]  ;;  %v247_v11 = vpack.c.bf16 %v217_v1, %v215_v0  ;;  %v219_v14 = vld [vmem:[%s874_s2 + $0x20] sm:$0xff] }
  0x8a   :  { %v142_v29 = vpack.c.bf16 %v140_v20, %v138_v18  ;;  %v141_v30 = vpack.c.bf16 %v139_v25, %v137_v24  ;;  %v222_v6 = vld [vmem:[%s874_s2 + $0x38] sm:$0xff]  ;;  %v224_v18 = vld [vmem:[%s874_s2 + $0x48] sm:$0xff]  ;;  %v249_v25 = vpack.c.bf16 %v221_v15, %v219_v14 }
  0x8b   :  { %174 = vrot.lane.b32.xlu1 %v86_v57, %s559_s10  ;;  %v250_v13 = vpack.c.bf16 %v222_v6, %v220_v4  ;;  %v226_v20 = vld [vmem:[%s874_s2 + $0x58] sm:$0xff] }
  0x8c   :  { %172 = vrot.lane.b32.xlu0 %v85_v61, %s559_s10  ;;  %v242_v24 = vld [vmem:[%s874_s2 + $0xd8] sm:$0xff] }
  0x8f   :  { %183 = vrot.lane.b32.xlu1 %v100_v2, %s560_s11  ;;  %v231_v2 = vld [vmem:[%s874_s2 + $0x80] sm:$0xff] }
  0x90   :  { %181 = vrot.lane.b32.xlu0 %v99_v3, %s560_s11  ;;  %v233_v3 = vld [vmem:[%s874_s2 + $0x90] sm:$0xff] }
  0x91   :  { %v255_v12 = vpack.c.bf16 %v233_v3, %v231_v2 }
  0x93   :  { %192 = vrot.lane.b32.xlu1 %v114_v7, %s561_s20  ;;  %v236_v7 = vld [vmem:[%s874_s2 + $0xa8] sm:$0xff] }
  0x94   :  { %190 = vrot.lane.b32.xlu0 %v113_v8, %s561_s20  ;;  %v238_v8 = vld [vmem:[%s874_s2 + $0xb8] sm:$0xff] }
  0x97   :  { %201 = vrot.lane.b32.xlu1 %v128_v23, %s562_s21  ;;  %v240_v23 = vld [vmem:[%s874_s2 + $0xc8] sm:$0xff] }
  0x98   :  { %199 = vrot.lane.b32.xlu0 %v127_v28, %s562_s21  ;;  %v257_v28 = vpack.c.bf16 %v237_v17, %v235_v16 }
  0x9b   :  { %210 = vrot.lane.b32.xlu1 %v142_v29, %s563_s22  ;;  %v252_v29 = vpack.c.bf16 %v226_v20, %v224_v18 }
  0x9c   :  { %208 = vrot.lane.b32.xlu0 %v141_v30, %s563_s22  ;;  %v260_v30 = vpack.c.bf16 %v242_v24, %v240_v23 }
  0x9f   :  { %286 = vperm.xlu1 %546, %v264_v26   ;;  %v223_v26 = vld [vmem:[%s874_s2 + $0x40] sm:$0xff] }
  0xa0   :  { %281 = vperm.xlu0 %545, %v263_v27   ;;  %v225_v27 = vld [vmem:[%s874_s2 + $0x50] sm:$0xff] }
  0xa3   :  { %291 = vperm.xlu1 %546, %v265_v21   ;;  %v239_v21 = vld [vmem:[%s874_s2 + $0xc0] sm:$0xff] }
  0xa4   :  { %296 = vperm.xlu0 %545, %v266_v22   ;;  %v241_v22 = vld [vmem:[%s874_s2 + $0xd0] sm:$0xff] }
  0xa7   :  { %301 = vperm.xlu1 %546, %v267_v31   ;;  %v228_v31 = vld [vmem:[%s874_s2 + $0x68] sm:$0xff] }
  0xa8   :  { %306 = vperm.xlu0 %545, %v268_v32   ;;  %v230_v32 = vld [vmem:[%s874_s2 + $0x78] sm:$0xff] }
  0xab   :  { %311 = vperm.xlu1 %546, %v269_v33   ;;  %v244_v33 = vld [vmem:[%s874_s2 + $0xe8] sm:$0xff] }
  0xac   :  { %316 = vperm.xlu0 %545, %v270_v34   ;;  %v246_v34 = vld [vmem:[%s874_s2 + $0xf8] sm:$0xff] }
  0xaf   :  { %321 = vperm.xlu1 %546, %v271_v35   ;;  %v251_v35 = vpack.c.bf16 %v225_v27, %v223_v26 }
  0xb0   :  { %326 = vperm.xlu0 %545, %v272_v36   ;;  %v259_v36 = vpack.c.bf16 %v241_v22, %v239_v21 }
  0xb3   :  { %331 = vperm.xlu1 %546, %v273_v37   ;;  %v254_v37 = vpack.c.bf16 %v230_v32, %v228_v31 }
  0xb4   :  { %336 = vperm.xlu0 %545, %v274_v38   ;;  %v262_v38 = vpack.c.bf16 %v246_v34, %v244_v33 }
  0xb7   :  { %341 = vperm.xlu1 %546, %v275_v39   ;;  %v227_v39 = vld [vmem:[%s874_s2 + $0x60] sm:$0xff] }
  0xb8   :  { %346 = vperm.xlu0 %545, %v276_v40   ;;  %v229_v40 = vld [vmem:[%s874_s2 + $0x70] sm:$0xff] }
  0xbb   :  { %351 = vperm.xlu1 %546, %v277_v41   ;;  %v243_v41 = vld [vmem:[%s874_s2 + $0xe0] sm:$0xff] }
  0xbc   :  { %356 = vperm.xlu0 %545, %v278_v42   ;;  %v245_v42 = vld [vmem:[%s874_s2 + $0xf0] sm:$0xff] }
  0xf1   :  { %v148_v43 = vpop.permute.xlu1 %147 }
  0xf2   :  { %v146_v44 = vpop.permute.xlu0 %145 }
  0xf3   :  { %v150_v45 = vsel %vm149_vm1, %v146_v44, %v148_v43  ;;  %v253_v43 = vpack.c.bf16 %v229_v40, %v227_v39  ;;  %v261_v44 = vpack.c.bf16 %v245_v42, %v243_v41 }
  0xf4   :  { %387 = vmatpush1.bf16.msra.mxu0 %v150_v45  ;;  %520 = vmatpush1.bf16.msra.mxu1 %v150_v45 }
  0xf5   :  { %v157_v46 = vpop.permute.xlu1 %156  ;;  %388 = vmatprep.subr.bf16.mxu0 %v555_v19  ;;  %512 = vmatprep.subr.bf16.mxu1 %v555_v19 }
  0xf6   :  { %v155_v47 = vpop.permute.xlu0 %154 }
  0xf7   :  { %v159_v48 = vsel %vm158_vm2, %v155_v47, %v157_v46 }
  0xf8   :  { %389 = vmatpush1.bf16.msra.mxu0 %v159_v48  ;;  %521 = vmatpush1.bf16.msra.mxu1 %v159_v48 }
  0xf9   :  { %v166_v49 = vpop.permute.xlu1 %165  ;;  %390 = vmatprep.subr.bf16.mxu0 %v555_v19  ;;  %513 = vmatprep.subr.bf16.mxu1 %v555_v19 }
  0xfa   :  { %v164_v50 = vpop.permute.xlu0 %163 }
  0xfb   :  { %v168_v51 = vsel %vm167_vm3, %v164_v50, %v166_v49 }
  0xfc   :  { %391 = vmatpush1.bf16.msra.mxu0 %v168_v51  ;;  %522 = vmatpush1.bf16.msra.mxu1 %v168_v51 }
  0xfd   :  { %v175_v52 = vpop.permute.xlu1 %174  ;;  %392 = vmatprep.subr.bf16.mxu0 %v555_v19  ;;  %514 = vmatprep.subr.bf16.mxu1 %v555_v19 }
  0xfe   :  { %v173_v53 = vpop.permute.xlu0 %172 }
  0xff   :  { %v177_v54 = vsel %vm176_vm4, %v173_v53, %v175_v52 }
 0x100   :  { %393 = vmatpush1.bf16.msra.mxu0 %v177_v54  ;;  %523 = vmatpush1.bf16.msra.mxu1 %v177_v54 }
 0x101   :  { %v184_v55 = vpop.permute.xlu1 %183  ;;  %394 = vmatprep.subr.bf16.mxu0 %v555_v19  ;;  %515 = vmatprep.subr.bf16.mxu1 %v555_v19 }
 0x102   :  { %v182_v56 = vpop.permute.xlu0 %181 }
 0x103   :  { %v186_v57 = vsel %vm185_vm5, %v182_v56, %v184_v55 }
 0x104   :  { %395 = vmatpush1.bf16.msra.mxu0 %v186_v57  ;;  %524 = vmatpush1.bf16.msra.mxu1 %v186_v57 }
 0x105   :  { %v193_v58 = vpop.permute.xlu1 %192  ;;  %396 = vmatprep.subr.bf16.mxu0 %v555_v19  ;;  %516 = vmatprep.subr.bf16.mxu1 %v555_v19 }
 0x106   :  { %v191_v59 = vpop.permute.xlu0 %190 }
 0x107   :  { %v195_v60 = vsel %vm194_vm6, %v191_v59, %v193_v58 }
 0x108   :  { %397 = vmatpush1.bf16.msra.mxu0 %v195_v60  ;;  %525 = vmatpush1.bf16.msra.mxu1 %v195_v60 }
 0x109   :  { %v202_v61 = vpop.permute.xlu1 %201  ;;  %398 = vmatprep.subr.bf16.mxu0 %v555_v19  ;;  %517 = vmatprep.subr.bf16.mxu1 %v555_v19 }
 0x10a   :  { %v200_v62 = vpop.permute.xlu0 %199 }
 0x10b   :  { %v204_v63 = vsel %vm203_vm7, %v200_v62, %v202_v61 }
 0x10c   :  { %399 = vmatpush1.bf16.msra.mxu0 %v204_v63  ;;  %526 = vmatpush1.bf16.msra.mxu1 %v204_v63 }
 0x10d   :  { %v211_v5 = vpop.permute.xlu1 %210  ;;  %400 = vmatprep.subr.bf16.mxu0 %v555_v19  ;;  %518 = vmatprep.subr.bf16.mxu1 %v555_v19  ;;  %v258_v19 = vpack.c.bf16 %v238_v8, %v236_v7 }
 0x10e   :  { %v209_v9 = vpop.permute.xlu0 %208 }
 0x10f   :  { %v213_v10 = vsel %vm212_vm8, %v209_v9, %v211_v5 }
 0x110   :  { %401 = vmatpush1.bf16.msra.mxu0 %v213_v10  ;;  %527 = vmatpush1.bf16.msra.mxu1 %v213_v10 }
 0x113   :  { %417 = vmatmul.mubr.bf16.vlgmr.msra.gmra.mrb[0].mxu0 %v247_v11  ;;  %449 = vmatmul.mubr.bf16.vlgmr.msra.gmra.mrb[0].mxu1 %v255_v12 }
 0x114   :  { %503 = vmatprep.mubr.msk.bf16.mxu0 %vm359_vm0, %v250_v13  ;;  %507 = vmatprep.mubr.msk.bf16.mxu1 %vm359_vm0, %v258_v19 }
 0x11b   :  { %425 = vmatmul.mubr.bf16.gmra.mrb[4].mxu0 %v249_v25  ;;  %457 = vmatmul.mubr.bf16.gmra.mrb[4].mxu1 %v257_v28 }
 0x11c   :  { %504 = vmatprep.mubr.msk.bf16.mxu0 %vm359_vm0, %v252_v29  ;;  %508 = vmatprep.mubr.msk.bf16.mxu1 %vm359_vm0, %v260_v30 }
 0x11e   :  { %v287_v45 = vpop.permute.xlu1 %286 }
 0x11f   :  { %v282_v46 = vpop.permute.xlu0 %281 }
 0x122   :  { %v292_v47 = vpop.permute.xlu1 %291 }
 0x123   :  { %433 = vmatmul.mubr.bf16.gmra.mrb[8].mxu0 %v251_v35  ;;  %465 = vmatmul.mubr.bf16.gmra.mrb[8].mxu1 %v259_v36  ;;  %v297_v48 = vpop.permute.xlu0 %296 }
 0x124   :  { %505 = vmatprep.mubr.msk.bf16.mxu0 %vm359_vm0, %v254_v37  ;;  %509 = vmatprep.mubr.msk.bf16.mxu1 %vm359_vm0, %v262_v38 }
 0x126   :  { %v302_v49 = vpop.permute.xlu1 %301 }
 0x127   :  { %v307_v50 = vpop.permute.xlu0 %306 }
 0x12a   :  { %v312_v51 = vpop.permute.xlu1 %311 }
 0x12b   :  { %441 = vmatmul.mubr.bf16.gmra.mrb[12].mxu0 %v253_v43  ;;  %473 = vmatmul.mubr.bf16.gmra.mrb[12].mxu1 %v261_v44  ;;  %v821_v52 = vpop.permute.xlu0 %316 }
 0x12e   :  { %v322_v53 = vpop.permute.xlu1 %321 }
 0x12f   :  { %v327_v54 = vpop.permute.xlu0 %326 }
 0x132   :  { %v332_v3 = vpop.permute.xlu1 %331 }
 0x133   :  { %v337_v4 = vpop.permute.xlu0 %336 }
 0x136   :  { %v342_v16 = vpop.permute.xlu1 %341 }
 0x137   :  { %v347_v17 = vpop.permute.xlu0 %346 }
 0x13a   :  { %v352_v31 = vpop.permute.xlu1 %351 }
 0x13b   :  { %v357_v32 = vpop.permute.xlu0 %356 }
 0x1e6   :  { %v418_v55 = vpop.f32.mrb[0].mxu0  ;;  %v450_v56 = vpop.f32.mrb[0].mxu1 }
 0x1e7   :  { %v419_v57 = vadd.f32 %v418_v55, %v282_v46  ;;  %v451_v58 = vadd.f32 %v450_v56, %v322_v53  ;;  %v420_v59 = vpop.f32.mrb[1].mxu0  ;;  %v452_v60 = vpop.f32.mrb[1].mxu1 }
 0x1e8   :  { %v421_v61 = vpop.f32.mrb[2].mxu0  ;;  %v453_v62 = vpop.f32.mrb[2].mxu1 }
 0x1e9   :  { %481 = vst [vmem:[%s876_s4] sm:$0xff] %v419_v57  ;;  %489 = vst [vmem:[%s876_s4 + $0x40] sm:$0xff] %v451_v58  ;;  %v422_v63 = vadd.f32 %v421_v61, %v287_v45  ;;  %v454_v0 = vadd.f32 %v453_v62, %v327_v54  ;;  %v423_v1 = vpop.f32.mrb[3].mxu0  ;;  %v455_v2 = vpop.f32.mrb[3].mxu1 }
 0x1eb   :  { %482 = vst [vmem:[%s876_s4 + $0x8] sm:$0xff] %v422_v63  ;;  %490 = vst [vmem:[%s876_s4 + $0x48] sm:$0xff] %v454_v0 }
 0x1ee   :  { %v426_v5 = vpop.f32.mrb[4].mxu0  ;;  %v458_v6 = vpop.f32.mrb[4].mxu1 }
 0x1ef   :  { %v427_v7 = vadd.f32 %v426_v5, %v292_v47  ;;  %v459_v8 = vadd.f32 %v458_v6, %v332_v3  ;;  %v428_v9 = vpop.f32.mrb[5].mxu0  ;;  %v460_v10 = vpop.f32.mrb[5].mxu1 }
 0x1f0   :  { %v429_v11 = vpop.f32.mrb[6].mxu0  ;;  %v461_v12 = vpop.f32.mrb[6].mxu1 }
 0x1f1   :  { %483 = vst [vmem:[%s876_s4 + $0x10] sm:$0xff] %v427_v7  ;;  %491 = vst [vmem:[%s876_s4 + $0x50] sm:$0xff] %v459_v8  ;;  %v430_v13 = vadd.f32 %v429_v11, %v297_v48  ;;  %v462_v19 = vadd.f32 %v461_v12, %v337_v4  ;;  %v431_v14 = vpop.f32.mrb[7].mxu0  ;;  %v463_v15 = vpop.f32.mrb[7].mxu1 }
 0x1f3   :  { %484 = vst [vmem:[%s876_s4 + $0x18] sm:$0xff] %v430_v13  ;;  %492 = vst [vmem:[%s876_s4 + $0x58] sm:$0xff] %v462_v19 }
 0x1f6   :  { %v434_v18 = vpop.f32.mrb[8].mxu0  ;;  %v466_v20 = vpop.f32.mrb[8].mxu1 }
 0x1f7   :  { %v435_v23 = vadd.f32 %v434_v18, %v302_v49  ;;  %v467_v24 = vadd.f32 %v466_v20, %v342_v16  ;;  %v436_v25 = vpop.f32.mrb[9].mxu0  ;;  %v468_v28 = vpop.f32.mrb[9].mxu1 }
 0x1f8   :  { %v437_v29 = vpop.f32.mrb[10].mxu0  ;;  %v469_v30 = vpop.f32.mrb[10].mxu1 }
 0x1f9   :  { %485 = vst [vmem:[%s876_s4 + $0x20] sm:$0xff] %v435_v23  ;;  %493 = vst [vmem:[%s876_s4 + $0x60] sm:$0xff] %v467_v24  ;;  %v438_v26 = vadd.f32 %v437_v29, %v307_v50  ;;  %v470_v27 = vadd.f32 %v469_v30, %v347_v17  ;;  %v439_v21 = vpop.f32.mrb[11].mxu0  ;;  %v471_v22 = vpop.f32.mrb[11].mxu1 }
 0x1fb   :  { %486 = vst [vmem:[%s876_s4 + $0x28] sm:$0xff] %v438_v26  ;;  %494 = vst [vmem:[%s876_s4 + $0x68] sm:$0xff] %v470_v27 }
 0x1fe   :  { %v442_v33 = vpop.f32.mrb[12].mxu0  ;;  %v474_v34 = vpop.f32.mrb[12].mxu1 }
 0x1ff   :  { %v443_v35 = vadd.f32 %v442_v33, %v312_v51  ;;  %v475_v36 = vadd.f32 %v474_v34, %v352_v31  ;;  %v444_v37 = vpop.f32.mrb[13].mxu0  ;;  %v476_v38 = vpop.f32.mrb[13].mxu1 }
 0x200   :  { %v445_v39 = vpop.f32.mrb[14].mxu0  ;;  %v477_v40 = vpop.f32.mrb[14].mxu1 }
 0x201   :  { %487 = vst [vmem:[%s876_s4 + $0x30] sm:$0xff] %v443_v35  ;;  %495 = vst [vmem:[%s876_s4 + $0x70] sm:$0xff] %v475_v36  ;;  %v446_v41 = vadd.f32 %v445_v39, %v821_v52  ;;  %v478_v42 = vadd.f32 %v477_v40, %v357_v32  ;;  %v447_v43 = vpop.f32.mrb[15].mxu0  ;;  %v479_v44 = vpop.f32.mrb[15].mxu1 }
 0x203   :  { %488 = vst [vmem:[%s876_s4 + $0x38] sm:$0xff] %v446_v41  ;;  %496 = vst [vmem:[%s876_s4 + $0x78] sm:$0xff] %v478_v42 }

// kernel: decompose_net_forward.25
= control target key start
LH: loop header
LB: loop body
LE: loop exit
PB: predicated region body
PF: predicated region fallthrough
CT: control target
= control target key end

     0   :  { %vm42_vm0 = vcmask 261120   ;;  %v716_v30 = vmov 0.0|0.0   ;;  %vm324_vm1 = vcmask 523264   ;;  %vm498_vm2 = vcmask 130048   ;;  %s1001_s1 = inlined_call_operand.vmem [shape: f32[32,16], index: 1, kind: input, shape index: {}]   ;;  %s1002_s0 = inlined_call_operand.vmem [shape: f32[192,32], index: 0, kind: input, shape index: {}]   ;;  %s1003_s2 = inlined_call_operand.vmem [shape: f32[96,192], index: 2, kind: input, shape index: {}]   ;;  %s1004_s3 = inlined_call_operand.vmem [shape: f32[96,16], index: 3, kind: output, shape index: {}]  }
   0x1   :  { %v38_v0 = vld [vmem:[%s1001_s1] sm:$0xff]  ;;  %v39_v1 = vld [vmem:[%s1001_s1 + $0x8] sm:$0xff]  ;;  %v40_v2 = vld [vmem:[%s1001_s1 + $0x10] sm:$0xff]  ;;  %667 = vmatprep.subr.bf16.mxu1 %v716_v30 }
   0x2   :  { %v623_v3 = vpack.c.bf16 %v39_v1, %v38_v0  ;;  %v41_v4 = vld [vmem:[%s1001_s1 + $0x18] sm:$0xff]  ;;  %v14_v5 = vld [vmem:[%s1002_s0] sm:$0xff]  ;;  %v15_v7 = vld [vmem:[%s1002_s0 + $0x8] sm:$0xff] }
   0x3   :  { %v627_v6 = vpack.c.bf16 %v41_v4, %v40_v2  ;;  %587 = vmatprep.mubr.msk.f32.mxu0 %vm42_vm0, %v14_v5  ;;  %v16_v8 = vld [vmem:[%s1002_s0 + $0x10] sm:$0xff]  ;;  %v17_v9 = vld [vmem:[%s1002_s0 + $0x18] sm:$0xff]  ;;  %v18_v10 = vld [vmem:[%s1002_s0 + $0x20] sm:$0xff] }
   0x4   :  { %624 = vmatprep.subr.bf16.mxu0 %v623_v3  ;;  %v19_v11 = vld [vmem:[%s1002_s0 + $0x28] sm:$0xff]  ;;  %v20_v12 = vld [vmem:[%s1002_s0 + $0x30] sm:$0xff]  ;;  %v21_v13 = vld [vmem:[%s1002_s0 + $0x38] sm:$0xff] }
   0x5   :  { %626 = vmatpush3.bf16.msra.mxu0 %v623_v3  ;;  %v22_v14 = vld [vmem:[%s1002_s0 + $0x40] sm:$0xff]  ;;  %v23_v15 = vld [vmem:[%s1002_s0 + $0x48] sm:$0xff]  ;;  %v24_v16 = vld [vmem:[%s1002_s0 + $0x50] sm:$0xff] }
   0x6   :  { %628 = vmatprep.subr.bf16.mxu0 %v627_v6  ;;  %v25_v17 = vld [vmem:[%s1002_s0 + $0x58] sm:$0xff]  ;;  %v26_v18 = vld [vmem:[%s1002_s0 + $0x60] sm:$0xff]  ;;  %v27_v19 = vld [vmem:[%s1002_s0 + $0x68] sm:$0xff] }
   0x7   :  { %v28_v20 = vld [vmem:[%s1002_s0 + $0x70] sm:$0xff]  ;;  %v29_v21 = vld [vmem:[%s1002_s0 + $0x78] sm:$0xff]  ;;  %v30_v22 = vld [vmem:[%s1002_s0 + $0x80] sm:$0xff] }
   0x8   :  { %v31_v23 = vld [vmem:[%s1002_s0 + $0x88] sm:$0xff]  ;;  %v32_v24 = vld [vmem:[%s1002_s0 + $0x90] sm:$0xff]  ;;  %v33_v25 = vld [vmem:[%s1002_s0 + $0x98] sm:$0xff] }
   0x9   :  { %630 = vmatpush3.bf16.msra.mxu0 %v627_v6  ;;  %v34_v26 = vld [vmem:[%s1002_s0 + $0xa0] sm:$0xff]  ;;  %v35_v27 = vld [vmem:[%s1002_s0 + $0xa8] sm:$0xff]  ;;  %v36_v28 = vld [vmem:[%s1002_s0 + $0xb0] sm:$0xff] }
   0xa   :  { %v37_v29 = vld [vmem:[%s1002_s0 + $0xb8] sm:$0xff]  ;;  %631 = vmatprep.subr.bf16.mxu0 %v716_v30  ;;  %v301_v32 = vld [vmem:[%s1003_s2 + $0x8] sm:$0xff]  ;;  %v310_v5 = vld [vmem:[%s1003_s2 + $0x50] sm:$0xff] }
   0xb   :  { %v311_v31 = vld [vmem:[%s1003_s2 + $0x58] sm:$0xff]  ;;  %v300_v6 = vld [vmem:[%s1003_s2] sm:$0xff] }
   0xc   :  { %588 = vmatmul.mubr.msk.f32.vlgmr.msra.gmra.mrb[0].mxu0 %vm42_vm0, %v15_v7  ;;  %544 = vmatprep.mubr.msk.f32.mxu1 %vm324_vm1, %v311_v31  ;;  %v313_v7 = vld [vmem:[%s1003_s2 + $0x68] sm:$0xff] }
   0xd   :  { %590 = vmatprep.mubr.msk.f32.mxu0 %vm42_vm0, %v16_v8  ;;  %v303_v8 = vld [vmem:[%s1003_s2 + $0x18] sm:$0xff] }
  0x10   :  { %591 = vmatmul.mubr.msk.f32.gmra.mrb[2].mxu0 %vm42_vm0, %v17_v9  ;;  %v312_v9 = vld [vmem:[%s1003_s2 + $0x60] sm:$0xff] }
  0x11   :  { %593 = vmatprep.mubr.msk.f32.mxu0 %vm42_vm0, %v18_v10  ;;  %v302_v10 = vld [vmem:[%s1003_s2 + $0x10] sm:$0xff] }
  0x14   :  { %594 = vmatmul.mubr.msk.f32.gmra.mrb[4].mxu0 %vm42_vm0, %v19_v11  ;;  %v315_v11 = vld [vmem:[%s1003_s2 + $0x78] sm:$0xff] }
  0x15   :  { %596 = vmatprep.mubr.msk.f32.mxu0 %vm42_vm0, %v20_v12  ;;  %v305_v12 = vld [vmem:[%s1003_s2 + $0x28] sm:$0xff] }
  0x18   :  { %597 = vmatmul.mubr.msk.f32.gmra.mrb[6].mxu0 %vm42_vm0, %v21_v13  ;;  %v314_v13 = vld [vmem:[%s1003_s2 + $0x70] sm:$0xff] }
  0x19   :  { %599 = vmatprep.mubr.msk.f32.mxu0 %vm42_vm0, %v22_v14  ;;  %v304_v14 = vld [vmem:[%s1003_s2 + $0x20] sm:$0xff] }
  0x1c   :  { %600 = vmatmul.mubr.msk.f32.gmra.mrb[8].mxu0 %vm42_vm0, %v23_v15  ;;  %v317_v15 = vld [vmem:[%s1003_s2 + $0x88] sm:$0xff] }
  0x1d   :  { %602 = vmatprep.mubr.msk.f32.mxu0 %vm42_vm0, %v24_v16  ;;  %v307_v16 = vld [vmem:[%s1003_s2 + $0x38] sm:$0xff] }
  0x20   :  { %603 = vmatmul.mubr.msk.f32.gmra.mrb[10].mxu0 %vm42_vm0, %v25_v17  ;;  %v316_v17 = vld [vmem:[%s1003_s2 + $0x80] sm:$0xff] }
  0x21   :  { %605 = vmatprep.mubr.msk.f32.mxu0 %vm42_vm0, %v26_v18  ;;  %v306_v18 = vld [vmem:[%s1003_s2 + $0x30] sm:$0xff] }
  0x24   :  { %606 = vmatmul.mubr.msk.f32.gmra.mrb[12].mxu0 %vm42_vm0, %v27_v19  ;;  %v319_v19 = vld [vmem:[%s1003_s2 + $0x98] sm:$0xff] }
  0x25   :  { %608 = vmatprep.mubr.msk.f32.mxu0 %vm42_vm0, %v28_v20  ;;  %v309_v20 = vld [vmem:[%s1003_s2 + $0x48] sm:$0xff] }
  0x28   :  { %609 = vmatmul.mubr.msk.f32.gmra.mrb[14].mxu0 %vm42_vm0, %v29_v21  ;;  %v318_v21 = vld [vmem:[%s1003_s2 + $0x90] sm:$0xff] }
  0x29   :  { %611 = vmatprep.mubr.msk.f32.mxu0 %vm42_vm0, %v30_v22  ;;  %v308_v22 = vld [vmem:[%s1003_s2 + $0x40] sm:$0xff] }
  0x2c   :  { %612 = vmatmul.mubr.msk.f32.gmra.mrb[16].mxu0 %vm42_vm0, %v31_v23  ;;  %v321_v23 = vld [vmem:[%s1003_s2 + $0xa8] sm:$0xff] }
  0x2d   :  { %614 = vmatprep.mubr.msk.f32.mxu0 %vm42_vm0, %v32_v24  ;;  %v320_v24 = vld [vmem:[%s1003_s2 + $0xa0] sm:$0xff] }
  0x30   :  { %615 = vmatmul.mubr.msk.f32.gmra.mrb[18].mxu0 %vm42_vm0, %v33_v25  ;;  %v323_v25 = vld [vmem:[%s1003_s2 + $0xb8] sm:$0xff] }
  0x31   :  { %617 = vmatprep.mubr.msk.f32.mxu0 %vm42_vm0, %v34_v26  ;;  %v322_v26 = vld [vmem:[%s1003_s2 + $0xb0] sm:$0xff] }
  0x34   :  { %618 = vmatmul.mubr.msk.f32.gmra.mrb[20].mxu0 %vm42_vm0, %v35_v27 }
  0x35   :  { %620 = vmatprep.mubr.msk.f32.mxu0 %vm42_vm0, %v36_v28 }
  0x38   :  { %621 = vmatmul.mubr.msk.f32.gmra.mrb[22].mxu0 %vm42_vm0, %v37_v29 }
  0x39   :  { %539 = vmatprep.mubr.msk.f32.mxu0 %vm324_vm1, %v301_v32 }
  0xdf   :  { %v589_v33 = vpop.f32.mrb[0].mxu0 }
  0xe0   :  { %v181_v34 = vpop.f32.mrb[1].mxu0 }
  0xe1   :  { %v632_v35 = vpack.c.bf16 %v589_v33, %v181_v34 }
  0xe3   :  { %v592_v36 = vpop.f32.mrb[2].mxu0  ;;  %633 = vmatpush1.bf16.msra.mxu0 %v632_v35  ;;  %679 = vmatpush1.bf16.msra.mxu1 %v632_v35 }
  0xe4   :  { %v191_v37 = vpop.f32.mrb[3].mxu0  ;;  %634 = vmatprep.subr.bf16.mxu0 %v716_v30  ;;  %668 = vmatprep.subr.bf16.mxu1 %v716_v30 }
  0xe5   :  { %v635_v38 = vpack.c.bf16 %v592_v36, %v191_v37 }
  0xe7   :  { %v595_v39 = vpop.f32.mrb[4].mxu0  ;;  %636 = vmatpush1.bf16.msra.mxu0 %v635_v38  ;;  %680 = vmatpush1.bf16.msra.mxu1 %v635_v38 }
  0xe8   :  { %v201_v40 = vpop.f32.mrb[5].mxu0  ;;  %637 = vmatprep.subr.bf16.mxu0 %v716_v30  ;;  %669 = vmatprep.subr.bf16.mxu1 %v716_v30 }
  0xe9   :  { %v638_v41 = vpack.c.bf16 %v595_v39, %v201_v40 }
  0xeb   :  { %v598_v42 = vpop.f32.mrb[6].mxu0  ;;  %639 = vmatpush1.bf16.msra.mxu0 %v638_v41  ;;  %681 = vmatpush1.bf16.msra.mxu1 %v638_v41 }
  0xec   :  { %v211_v43 = vpop.f32.mrb[7].mxu0  ;;  %640 = vmatprep.subr.bf16.mxu0 %v716_v30  ;;  %670 = vmatprep.subr.bf16.mxu1 %v716_v30 }
  0xed   :  { %v641_v44 = vpack.c.bf16 %v598_v42, %v211_v43 }
  0xef   :  { %v601_v45 = vpop.f32.mrb[8].mxu0  ;;  %642 = vmatpush1.bf16.msra.mxu0 %v641_v44  ;;  %682 = vmatpush1.bf16.msra.mxu1 %v641_v44 }
  0xf0   :  { %v221_v46 = vpop.f32.mrb[9].mxu0  ;;  %643 = vmatprep.subr.bf16.mxu0 %v716_v30  ;;  %671 = vmatprep.subr.bf16.mxu1 %v716_v30 }
  0xf1   :  { %v644_v47 = vpack.c.bf16 %v601_v45, %v221_v46 }
  0xf3   :  { %v604_v48 = vpop.f32.mrb[10].mxu0  ;;  %645 = vmatpush1.bf16.msra.mxu0 %v644_v47  ;;  %683 = vmatpush1.bf16.msra.mxu1 %v644_v47 }
  0xf4   :  { %v231_v49 = vpop.f32.mrb[11].mxu0  ;;  %646 = vmatprep.subr.bf16.mxu0 %v716_v30  ;;  %672 = vmatprep.subr.bf16.mxu1 %v716_v30 }
  0xf5   :  { %v647_v50 = vpack.c.bf16 %v604_v48, %v231_v49 }
  0xf7   :  { %v607_v51 = vpop.f32.mrb[12].mxu0  ;;  %648 = vmatpush1.bf16.msra.mxu0 %v647_v50  ;;  %684 = vmatpush1.bf16.msra.mxu1 %v647_v50 }
  0xf8   :  { %v241_v52 = vpop.f32.mrb[13].mxu0  ;;  %649 = vmatprep.subr.bf16.mxu0 %v716_v30  ;;  %673 = vmatprep.subr.bf16.mxu1 %v716_v30 }
  0xf9   :  { %v650_v53 = vpack.c.bf16 %v607_v51, %v241_v52 }
  0xfb   :  { %v610_v54 = vpop.f32.mrb[14].mxu0  ;;  %651 = vmatpush1.bf16.msra.mxu0 %v650_v53  ;;  %685 = vmatpush1.bf16.msra.mxu1 %v650_v53 }
  0xfc   :  { %v251_v55 = vpop.f32.mrb[15].mxu0  ;;  %652 = vmatprep.subr.bf16.mxu0 %v716_v30  ;;  %674 = vmatprep.subr.bf16.mxu1 %v716_v30 }
  0xfd   :  { %v653_v56 = vpack.c.bf16 %v610_v54, %v251_v55 }
  0xff   :  { %v613_v57 = vpop.f32.mrb[16].mxu0  ;;  %654 = vmatpush1.bf16.msra.mxu0 %v653_v56  ;;  %686 = vmatpush1.bf16.msra.mxu1 %v653_v56 }
 0x100   :  { %v261_v58 = vpop.f32.mrb[17].mxu0  ;;  %655 = vmatprep.subr.bf16.mxu0 %v716_v30  ;;  %675 = vmatprep.subr.bf16.mxu1 %v716_v30 }
 0x101   :  { %v656_v59 = vpack.c.bf16 %v613_v57, %v261_v58 }
 0x103   :  { %v616_v60 = vpop.f32.mrb[18].mxu0  ;;  %657 = vmatpush1.bf16.msra.mxu0 %v656_v59  ;;  %687 = vmatpush1.bf16.msra.mxu1 %v656_v59 }
 0x104   :  { %v271_v61 = vpop.f32.mrb[19].mxu0  ;;  %658 = vmatprep.subr.bf16.mxu0 %v716_v30  ;;  %676 = vmatprep.subr.bf16.mxu1 %v716_v30 }
 0x105   :  { %v659_v62 = vpack.c.bf16 %v616_v60, %v271_v61 }
 0x107   :  { %v619_v63 = vpop.f32.mrb[20].mxu0  ;;  %660 = vmatpush1.bf16.msra.mxu0 %v659_v62  ;;  %688 = vmatpush1.bf16.msra.mxu1 %v659_v62 }
 0x108   :  { %v281_v0 = vpop.f32.mrb[21].mxu0  ;;  %661 = vmatprep.subr.bf16.mxu0 %v716_v30  ;;  %677 = vmatprep.subr.bf16.mxu1 %v716_v30 }
 0x109   :  { %v662_v1 = vpack.c.bf16 %v619_v63, %v281_v0 }
 0x10b   :  { %v622_v2 = vpop.f32.mrb[22].mxu0  ;;  %663 = vmatpush1.bf16.msra.mxu0 %v662_v1  ;;  %689 = vmatpush1.bf16.msra.mxu1 %v662_v1 }
 0x10c   :  { %v291_v3 = vpop.f32.mrb[23].mxu0  ;;  %664 = vmatprep.subr.bf16.mxu0 %v716_v30  ;;  %678 = vmatprep.subr.bf16.mxu1 %v716_v30 }
 0x10d   :  { %v665_v4 = vpack.c.bf16 %v622_v2, %v291_v3 }
 0x10f   :  { %666 = vmatpush1.bf16.msra.mxu0 %v665_v4  ;;  %690 = vmatpush1.bf16.msra.mxu1 %v665_v4 }
 0x112   :  { %451 = vmatmul.mubr.f32.vlgmr.msra.gmra.mrb[0].mxu1 %v310_v5  ;;  %426 = vmatmul.mubr.f32.vlgmr.msra.gmra.mrb[24].mxu0 %v300_v6 }
 0x113   :  { %545 = vmatprep.mubr.msk.f32.mxu1 %vm324_vm1, %v313_v7  ;;  %540 = vmatprep.mubr.msk.f32.mxu0 %vm324_vm1, %v303_v8 }
 0x116   :  { %456 = vmatmul.mubr.f32.gmra.mrb[2].mxu1 %v312_v9  ;;  %431 = vmatmul.mubr.f32.gmra.mrb[26].mxu0 %v302_v10 }
 0x117   :  { %546 = vmatprep.mubr.msk.f32.mxu1 %vm324_vm1, %v315_v11  ;;  %541 = vmatprep.mubr.msk.f32.mxu0 %vm324_vm1, %v305_v12 }
 0x11a   :  { %461 = vmatmul.mubr.f32.gmra.mrb[4].mxu1 %v314_v13  ;;  %436 = vmatmul.mubr.f32.gmra.mrb[28].mxu0 %v304_v14 }
 0x11b   :  { %547 = vmatprep.mubr.msk.f32.mxu1 %vm324_vm1, %v317_v15  ;;  %542 = vmatprep.mubr.msk.f32.mxu0 %vm324_vm1, %v307_v16 }
 0x11e   :  { %466 = vmatmul.mubr.f32.gmra.mrb[6].mxu1 %v316_v17  ;;  %441 = vmatmul.mubr.f32.gmra.mrb[30].mxu0 %v306_v18 }
 0x11f   :  { %548 = vmatprep.mubr.msk.f32.mxu1 %vm324_vm1, %v319_v19  ;;  %543 = vmatprep.mubr.msk.f32.mxu0 %vm324_vm1, %v309_v20 }
 0x122   :  { %471 = vmatmul.mubr.f32.gmra.mrb[8].mxu1 %v318_v21  ;;  %446 = vmatmul.mubr.f32.gmra.mrb[32].mxu0 %v308_v22 }
 0x123   :  { %549 = vmatprep.mubr.msk.f32.mxu1 %vm324_vm1, %v321_v23 }
 0x126   :  { %476 = vmatmul.mubr.f32.gmra.mrb[10].mxu1 %v320_v24 }
 0x127   :  { %550 = vmatprep.mubr.msk.f32.mxu1 %vm324_vm1, %v323_v25 }
 0x12a   :  { %481 = vmatmul.mubr.f32.gmra.mrb[12].mxu1 %v322_v26 }
 0x1e5   :  { %v452_v27 = vpop.f32.mrb[0].mxu1  ;;  %v427_v28 = vpop.f32.mrb[24].mxu0 }
 0x1e6   :  { %692 = vtanh.f32 %v452_v27  ;;  %v454_v29 = vpop.f32.mrb[1].mxu1  ;;  %v429_v30 = vpop.f32.mrb[25].mxu0 }
 0x1e7   :  { %694 = vtanh.f32 %v427_v28 }
 0x1e9   :  { %v457_v31 = vpop.f32.mrb[2].mxu1  ;;  %v432_v32 = vpop.f32.mrb[26].mxu0 }
 0x1ea   :  { %696 = vtanh.f32 %v457_v31  ;;  %v459_v33 = vpop.f32.mrb[3].mxu1  ;;  %v434_v34 = vpop.f32.mrb[27].mxu0 }
 0x1eb   :  { %698 = vtanh.f32 %v432_v32 }
 0x1ed   :  { %v462_v35 = vpop.f32.mrb[4].mxu1  ;;  %v437_v36 = vpop.f32.mrb[28].mxu0 }
 0x1ee   :  { %700 = vtanh.f32 %v462_v35  ;;  %v464_v37 = vpop.f32.mrb[5].mxu1  ;;  %v439_v38 = vpop.f32.mrb[29].mxu0 }
 0x1ef   :  { %702 = vtanh.f32 %v437_v36 }
 0x1f0   :  { %v693_v39 = vpop.eup %692 }
 0x1f1   :  { %v695_v40 = vpop.eup %694  ;;  %504 = vst.msk [vmem:[%s1004_s3 + $0x28] sm:$0xff] %vm498_vm2, %v693_v39  ;;  %v467_v41 = vpop.f32.mrb[6].mxu1 }
 0x1f2   :  { %v442_v42 = vpop.f32.mrb[30].mxu0  ;;  %499 = vst.msk [vmem:[%s1004_s3] sm:$0xff] %vm498_vm2, %v695_v40  ;;  %704 = vtanh.f32 %v467_v41  ;;  %v469_v43 = vpop.f32.mrb[7].mxu1 }
 0x1f3   :  { %v444_v44 = vpop.f32.mrb[31].mxu0  ;;  %706 = vtanh.f32 %v442_v42 }
 0x1f4   :  { %v697_v45 = vpop.eup %696 }
 0x1f5   :  { %v699_v46 = vpop.eup %698  ;;  %505 = vst.msk [vmem:[%s1004_s3 + $0x30] sm:$0xff] %vm498_vm2, %v697_v45  ;;  %v472_v47 = vpop.f32.mrb[8].mxu1 }
 0x1f6   :  { %v447_v48 = vpop.f32.mrb[32].mxu0  ;;  %500 = vst.msk [vmem:[%s1004_s3 + $0x8] sm:$0xff] %vm498_vm2, %v699_v46  ;;  %708 = vtanh.f32 %v472_v47  ;;  %v474_v49 = vpop.f32.mrb[9].mxu1 }
 0x1f7   :  { %v449_v50 = vpop.f32.mrb[33].mxu0  ;;  %710 = vtanh.f32 %v447_v48 }
 0x1f8   :  { %v701_v51 = vpop.eup %700 }
 0x1f9   :  { %v703_v52 = vpop.eup %702  ;;  %506 = vst.msk [vmem:[%s1004_s3 + $0x38] sm:$0xff] %vm498_vm2, %v701_v51  ;;  %v477_v53 = vpop.f32.mrb[10].mxu1 }
 0x1fa   :  { %501 = vst.msk [vmem:[%s1004_s3 + $0x10] sm:$0xff] %vm498_vm2, %v703_v52  ;;  %712 = vtanh.f32 %v477_v53  ;;  %v479_v54 = vpop.f32.mrb[11].mxu1 }
 0x1fc   :  { %v705_v55 = vpop.eup %704 }
 0x1fd   :  { %v707_v56 = vpop.eup %706  ;;  %507 = vst.msk [vmem:[%s1004_s3 + $0x40] sm:$0xff] %vm498_vm2, %v705_v55  ;;  %v482_v57 = vpop.f32.mrb[12].mxu1 }
 0x1fe   :  { %502 = vst.msk [vmem:[%s1004_s3 + $0x18] sm:$0xff] %vm498_vm2, %v707_v56  ;;  %714 = vtanh.f32 %v482_v57  ;;  %v484_v58 = vpop.f32.mrb[13].mxu1 }
 0x200   :  { %v709_v59 = vpop.eup %708 }
 0x201   :  { %v711_v60 = vpop.eup %710  ;;  %508 = vst.msk [vmem:[%s1004_s3 + $0x48] sm:$0xff] %vm498_vm2, %v709_v59 }
 0x202   :  { %503 = vst.msk [vmem:[%s1004_s3 + $0x20] sm:$0xff] %vm498_vm2, %v711_v60 }
 0x204   :  { %v713_v61 = vpop.eup %712 }
 0x205   :  { %509 = vst.msk [vmem:[%s1004_s3 + $0x50] sm:$0xff] %vm498_vm2, %v713_v61 }
 0x208   :  { %v715_v62 = vpop.eup %714 }
 0x209   :  { %510 = vst.msk [vmem:[%s1004_s3 + $0x58] sm:$0xff] %vm498_vm2, %v715_v62 }

// kernel: decompose_net_forward.24
= control target key start
LH: loop header
LB: loop body
LE: loop exit
PB: predicated region body
PF: predicated region fallthrough
CT: control target
= control target key end

     0   :  { %v3503_v2 = vmov 0   ;;  %s1667_s25 = smov 111   ;;  %vm112_vm0 = vcmask 908288   ;;  %s1668_s29 = smov 1   ;;  %vm927_vm1 = vcmask 269312   ;;  %vm525_vm2 = vcmask 7168   ;;  %s3496_s0 = inlined_call_operand.vmem [shape: f32[32,546], index: 0, kind: input, shape index: {}]   ;;  %s3497_s5 = inlined_call_operand.vmem [shape: f32[32,1], index: 5, kind: input, shape index: {}]   ;;  %s3498_s1 = inlined_call_operand.vmem [shape: f32[9,512], index: 1, kind: input, shape index: {}]   ;;  %s3499_s4 = inlined_call_operand.vmem [shape: f32[32,1], index: 4, kind: input, shape index: {}]   ;;  %s3500_s2 = inlined_call_operand.vmem [shape: f32[12,288], index: 2, kind: input, shape index: {}]   ;;  %s3501_s3 = inlined_call_operand.vmem [shape: f32[12,1], index: 3, kind: input, shape index: {}]   ;;  %s3502_s6 = inlined_call_operand.vmem [shape: f32[12,512], index: 6, kind: output, shape index: {}]  }
   0x1   :  { %v1721_v0 = vld [vmem:[%s3496_s0 + $0x10] sm:$0xff]  ;;  %v1726_v1 = vld [vmem:[%s3496_s0] sm:$0xff]  ;;  %1656 = vset.pattern.permute.xlu1 %v3503_v2  ;;  %1657 = vset.pattern.permute.xlu0 %v3503_v2  ;;  %v1737_v3 = vld [vmem:[%s3496_s0 + $0x28] sm:$0xff]  ;;  %s1669_s7 = smov 2   ;;  %s1670_s8 = smov 16   ;;  %vm592_vm3 = vcmask 15360  }
   0x2   :  { %76 = vrot.lane.b32.xlu1 %v1721_v0, %s1667_s25  ;;  %72 = vrot.lane.b32.xlu0 %v1726_v1, %s1667_s25  ;;  %v1742_v4 = vld [vmem:[%s3496_s0 + $0x8] sm:$0xff]  ;;  %v1751_v5 = vld [vmem:[%s3496_s0 + $0x38] sm:$0xff]  ;;  %v169_v10 = vmul.f32 %v1726_v1, %v1726_v1  ;;  %v174_v11 = vmul.f32 %v1737_v3, %v1737_v3  ;;  %v171_v12 = vmul.f32 %v1721_v0, %v1721_v0  ;;  %s1671_s9 = smov 17   ;;  %s1672_s10 = smov 18   ;;  %vm659_vm4 = vcmask 130048  }
   0x3   :  { %v1756_v6 = vld [vmem:[%s3496_s0 + $0x30] sm:$0xff]  ;;  %v1765_v7 = vld [vmem:[%s3496_s0 + $0x40] sm:$0xff]  ;;  %v1770_v8 = vld [vmem:[%s3496_s0 + $0x18] sm:$0xff]  ;;  %v170_v9 = vmul.f32 %v1742_v4, %v1742_v4  ;;  %v176_v13 = vmul.f32 %v1751_v5, %v1751_v5  ;;  %s1673_s11 = smov 32   ;;  %s1674_s12 = smov 33   ;;  %vm726_vm5 = vcmask 138240  }
   0x4   :  { %v175_v14 = vmul.f32 %v1756_v6, %v1756_v6  ;;  %v1797_v15 = vld [vmem:[%s3496_s0 + $0x48] sm:$0xff]  ;;  %v1802_v16 = vld [vmem:[%s3496_s0 + $0x20] sm:$0xff]  ;;  %v1811_v17 = vld [vmem:[%s3496_s0 + $0x58] sm:$0xff]  ;;  %v177_v23 = vmul.f32 %v1765_v7, %v1765_v7  ;;  %v172_v24 = vmul.f32 %v1770_v8, %v1770_v8  ;;  %vm793_vm6 = vcmask 146432   ;;  %s1679_s30 = smov 110  }
   0x5   :  { %v1816_v18 = vld [vmem:[%s3496_s0 + $0x50] sm:$0xff]  ;;  %v1825_v19 = vld [vmem:[%s3496_s0 + $0x78] sm:$0xff]  ;;  %v1830_v20 = vld [vmem:[%s3496_s0 + $0x60] sm:$0xff]  ;;  %v178_v27 = vmul.f32 %v1797_v15, %v1797_v15  ;;  %v173_v28 = vmul.f32 %v1802_v16, %v1802_v16  ;;  %v180_v29 = vmul.f32 %v1811_v17, %v1811_v17  ;;  %vm860_vm7 = vcmask 261120  }
   0x6   :  { %82 = vrot.lane.b32.xlu1 %v1737_v3, %s1667_s25  ;;  %74 = vrot.lane.b32.xlu0 %v1742_v4, %s1667_s25  ;;  %v1839_v21 = vld [vmem:[%s3496_s0 + $0x88] sm:$0xff]  ;;  %v1844_v22 = vld [vmem:[%s3496_s0 + $0x80] sm:$0xff]  ;;  %v179_v30 = vmul.f32 %v1816_v18, %v1816_v18  ;;  %v184_v31 = vmul.f32 %v1825_v19, %v1825_v19  ;;  %v181_v32 = vmul.f32 %v1830_v20, %v1830_v20  ;;  %vm994_vm8 = vcmask 277504  }
   0x7   :  { %v1859_v25 = vld [vmem:[%s3496_s0 + $0x90] sm:$0xff]  ;;  %v1864_v26 = vld [vmem:[%s3496_s0 + $0x68] sm:$0xff]  ;;  %v186_v33 = vmul.f32 %v1839_v21, %v1839_v21  ;;  %v185_v34 = vmul.f32 %v1844_v22, %v1844_v22  ;;  %v1897_v35 = vld [vmem:[%s3496_s0 + $0x98] sm:$0xff]  ;;  %vm1063_vm9 = vcmask 1039360   ;;  %vm1110_vm10 = vcmask 1031168  }
   0x8   :  { %v1902_v36 = vld [vmem:[%s3496_s0 + $0x70] sm:$0xff]  ;;  %v187_v37 = vmul.f32 %v1859_v25, %v1859_v25  ;;  %v182_v38 = vmul.f32 %v1864_v26, %v1864_v26  ;;  %v188_v39 = vmul.f32 %v1897_v35, %v1897_v35  ;;  %v48_v41 = vld [vmem:[%s3497_s5] sm:$0xff]  ;;  %s1675_s0 = smov 34   ;;  %vm1157_vm11 = vcmask 916480  }
   0x9   :  { %v183_v40 = vmul.f32 %v1902_v36, %v1902_v36  ;;  %vm1251_vm12 = vcmask 900096   ;;  %vm1298_vm13 = vcmask 785408   ;;  %vm1345_vm14 = vcmask 777216  }
   0xa   :  { %86 = vrot.lane.b32.xlu1 %v1751_v5, %s1667_s25  ;;  %84 = vrot.lane.b32.xlu0 %v1756_v6, %s1667_s25  ;;  %vm1392_vm15 = vcmask 769024  }
   0xe   :  { %88 = vrot.lane.b32.xlu1 %v1765_v7, %s1667_s25  ;;  %78 = vrot.lane.b32.xlu0 %v1770_v8, %s1667_s25 }
  0x12   :  { %211 = vrot.lane.b32.xlu1 %v170_v9, %s1667_s25  ;;  %209 = vrot.lane.b32.xlu0 %v169_v10, %s1667_s25 }
  0x16   :  { %219 = vrot.lane.b32.xlu1 %v174_v11, %s1667_s25  ;;  %213 = vrot.lane.b32.xlu0 %v171_v12, %s1667_s25 }
  0x1a   :  { %223 = vrot.lane.b32.xlu1 %v176_v13, %s1667_s25  ;;  %221 = vrot.lane.b32.xlu0 %v175_v14, %s1667_s25 }
  0x1e   :  { %90 = vrot.lane.b32.xlu1 %v1797_v15, %s1667_s25  ;;  %80 = vrot.lane.b32.xlu0 %v1802_v16, %s1667_s25 }
  0x22   :  { %94 = vrot.lane.b32.xlu1 %v1811_v17, %s1667_s25  ;;  %92 = vrot.lane.b32.xlu0 %v1816_v18, %s1667_s25 }
  0x26   :  { %102 = vrot.lane.b32.xlu1 %v1825_v19, %s1667_s25  ;;  %96 = vrot.lane.b32.xlu0 %v1830_v20, %s1667_s25 }
  0x2a   :  { %106 = vrot.lane.b32.xlu1 %v1839_v21, %s1667_s25  ;;  %104 = vrot.lane.b32.xlu0 %v1844_v22, %s1667_s25 }
  0x2e   :  { %225 = vrot.lane.b32.xlu1 %v177_v23, %s1667_s25  ;;  %215 = vrot.lane.b32.xlu0 %v172_v24, %s1667_s25 }
  0x32   :  { %108 = vrot.lane.b32.xlu1 %v1859_v25, %s1667_s25  ;;  %98 = vrot.lane.b32.xlu0 %v1864_v26, %s1667_s25 }
  0x36   :  { %227 = vrot.lane.b32.xlu1 %v178_v27, %s1667_s25  ;;  %217 = vrot.lane.b32.xlu0 %v173_v28, %s1667_s25 }
  0x3a   :  { %231 = vrot.lane.b32.xlu1 %v180_v29, %s1667_s25  ;;  %229 = vrot.lane.b32.xlu0 %v179_v30, %s1667_s25 }
  0x3e   :  { %239 = vrot.lane.b32.xlu1 %v184_v31, %s1667_s25  ;;  %233 = vrot.lane.b32.xlu0 %v181_v32, %s1667_s25 }
  0x42   :  { %243 = vrot.lane.b32.xlu1 %v186_v33, %s1667_s25  ;;  %241 = vrot.lane.b32.xlu0 %v185_v34, %s1667_s25 }
  0x46   :  { %110 = vrot.lane.b32.xlu1 %v1897_v35, %s1667_s25  ;;  %100 = vrot.lane.b32.xlu0 %v1902_v36, %s1667_s25 }
  0x4a   :  { %245 = vrot.lane.b32.xlu1 %v187_v37, %s1667_s25  ;;  %235 = vrot.lane.b32.xlu0 %v182_v38, %s1667_s25 }
  0x4e   :  { %247 = vrot.lane.b32.xlu1 %v188_v39, %s1667_s25  ;;  %237 = vrot.lane.b32.xlu0 %v183_v40, %s1667_s25 }
  0x52   :  { %391 = vperm.xlu1 %1656, %v48_v41  }
  0x74   :  { %v77_v42 = vpop.permute.xlu1 %76  ;;  %v73_v43 = vpop.permute.xlu0 %72 }
  0x78   :  { %v83_v44 = vpop.permute.xlu1 %82  ;;  %v75_v45 = vpop.permute.xlu0 %74 }
  0x79   :  { %v113_v54 = vsel %vm112_vm0, %v73_v43, %v75_v45  ;;  %v114_v55 = vsel %vm112_vm0, %v75_v45, %v77_v42 }
  0x7a   :  { %v145_v62 = vadd.f32 %v114_v55, %v113_v54 }
  0x7c   :  { %v87_v46 = vpop.permute.xlu1 %86  ;;  %v85_v47 = vpop.permute.xlu0 %84 }
  0x7d   :  { %v117_v56 = vsel %vm112_vm0, %v83_v44, %v85_v47  ;;  %v118_v57 = vsel %vm112_vm0, %v85_v47, %v87_v46 }
  0x7e   :  { %v150_v63 = vadd.f32 %v118_v57, %v117_v56 }
  0x80   :  { %v89_v48 = vpop.permute.xlu1 %88  ;;  %v79_v49 = vpop.permute.xlu0 %78 }
  0x81   :  { %v119_v60 = vsel %vm112_vm0, %v87_v46, %v89_v48  ;;  %v115_v61 = vsel %vm112_vm0, %v77_v42, %v79_v49 }
  0x82   :  { %v151_v11 = vadd.f32 %v150_v63, %v119_v60  ;;  %v146_v12 = vadd.f32 %v145_v62, %v115_v61 }
  0x84   :  { %v212_v50 = vpop.permute.xlu1 %211  ;;  %v210_v51 = vpop.permute.xlu0 %209 }
  0x88   :  { %v220_v52 = vpop.permute.xlu1 %219  ;;  %v214_v53 = vpop.permute.xlu0 %213 }
  0x89   :  { %v250_v61 = vsel %vm112_vm0, %v212_v50, %v214_v53 }
  0x8c   :  { %v1927_v58 = vpop.permute.xlu1 %223  ;;  %v222_v59 = vpop.permute.xlu0 %221 }
  0x90   :  { %v91_v9 = vpop.permute.xlu1 %90  ;;  %v81_v10 = vpop.permute.xlu0 %80 }
  0x91   :  { %v120_v13 = vsel %vm112_vm0, %v89_v48, %v91_v9  ;;  %v116_v14 = vsel %vm112_vm0, %v79_v49, %v81_v10 }
  0x92   :  { %v152_v23 = vadd.f32 %v151_v11, %v120_v13  ;;  %v147_v24 = vadd.f32 %v146_v12, %v116_v14  ;;  %v249_v11 = vsel %vm112_vm0, %v210_v51, %v212_v50 }
  0x94   :  { %v95_v27 = vpop.permute.xlu1 %94  ;;  %153 = vadd.xlane.f32.xlu1 %v152_v23  ;;  %148 = vadd.xlane.f32.xlu0 %v147_v24  ;;  %v93_v28 = vpop.permute.xlu0 %92  ;;  %v281_v23 = vadd.f32 %v250_v61, %v249_v11 }
  0x95   :  { %v121_v54 = vsel %vm112_vm0, %v93_v28, %v95_v27  ;;  %v253_v28 = vsel %vm112_vm0, %v220_v52, %v222_v59 }
  0x98   :  { %v103_v29 = vpop.permute.xlu1 %102  ;;  %v97_v30 = vpop.permute.xlu0 %96 }
  0x99   :  { %v122_v45 = vsel %vm112_vm0, %v95_v27, %v97_v30 }
  0x9a   :  { %v155_v57 = vadd.f32 %v122_v45, %v121_v54 }
  0x9c   :  { %v107_v31 = vpop.permute.xlu1 %106  ;;  %v105_v32 = vpop.permute.xlu0 %104 }
  0x9d   :  { %v125_v46 = vsel %vm112_vm0, %v103_v29, %v105_v32  ;;  %v126_v47 = vsel %vm112_vm0, %v105_v32, %v107_v31  ;;  %v254_v29 = vsel %vm112_vm0, %v222_v59, %v1927_v58 }
  0x9e   :  { %v160_v60 = vadd.f32 %v126_v47, %v125_v46  ;;  %v286_v52 = vadd.f32 %v254_v29, %v253_v28 }
  0xa0   :  { %v226_v33 = vpop.permute.xlu1 %225  ;;  %v216_v34 = vpop.permute.xlu0 %215 }
  0xa1   :  { %v251_v12 = vsel %vm112_vm0, %v214_v53, %v216_v34  ;;  %v255_v53 = vsel %vm112_vm0, %v1927_v58, %v226_v33 }
  0xa2   :  { %v282_v51 = vadd.f32 %v281_v23, %v251_v12 }
  0xa4   :  { %v109_v37 = vpop.permute.xlu1 %108  ;;  %v99_v38 = vpop.permute.xlu0 %98 }
  0xa5   :  { %v127_v55 = vsel %vm112_vm0, %v107_v31, %v109_v37  ;;  %v123_v56 = vsel %vm112_vm0, %v97_v30, %v99_v38 }
  0xa6   :  { %v161_v9 = vadd.f32 %v160_v60, %v127_v55  ;;  %v156_v10 = vadd.f32 %v155_v57, %v123_v56  ;;  %v287_v55 = vadd.f32 %v286_v52, %v255_v53 }
  0xa8   :  { %v228_v39 = vpop.permute.xlu1 %227  ;;  %v218_v40 = vpop.permute.xlu0 %217 }
  0xa9   :  { %v252_v30 = vsel %vm112_vm0, %v216_v34, %v218_v40  ;;  %v256_v59 = vsel %vm112_vm0, %v226_v33, %v228_v39 }
  0xaa   :  { %v283_v46 = vadd.f32 %v282_v51, %v252_v30 }
  0xac   :  { %v232_v41 = vpop.permute.xlu1 %231  ;;  %v230_v42 = vpop.permute.xlu0 %229 }
  0xb0   :  { %v240_v43 = vpop.permute.xlu1 %239  ;;  %v234_v44 = vpop.permute.xlu0 %233 }
  0xb1   :  { %v258_v31 = vsel %vm112_vm0, %v232_v41, %v234_v44 }
  0xb4   :  { %v244_v48 = vpop.permute.xlu1 %243  ;;  %v242_v49 = vpop.permute.xlu0 %241 }
  0xb5   :  { %v261_v34 = vsel %vm112_vm0, %v240_v43, %v242_v49  ;;  %v262_v40 = vsel %vm112_vm0, %v242_v49, %v244_v48  ;;  %v457_v43 = vlaneseq  ;;  %v49_v49 = vld [vmem:[%s3497_s5 + $0x8] sm:$0xff] }
  0xb7   :  { %v1962_v61 = vshrl.u32 %v457_v43, 7 }
  0xb8   :  { %v111_v62 = vpop.permute.xlu1 %110  ;;  %v101_v63 = vpop.permute.xlu0 %100 }
  0xb9   :  { %v128_v13 = vsel %vm112_vm0, %v109_v37, %v111_v62  ;;  %v124_v14 = vsel %vm112_vm0, %v99_v38, %v101_v63  ;;  %v257_v37 = vsel %vm112_vm0, %v230_v42, %v232_v41  ;;  %v296_v42 = vadd.f32 %v262_v40, %v261_v34  ;;  %v1970_v62 = vld [vmem:[%s3498_s1 + $0x10] sm:$0xff] }
  0xba   :  { %v162_v24 = vadd.f32 %v161_v9, %v128_v13  ;;  %v157_v27 = vadd.f32 %v156_v10, %v124_v14  ;;  %v291_v45 = vadd.f32 %v258_v31, %v257_v37  ;;  %v499_v63 = vsub.s32 1, %v1962_v61  ;;  %v51_v9 = vld [vmem:[%s3497_s5 + $0x18] sm:$0xff]  ;;  %v1979_v10 = vld [vmem:[%s3498_s1] sm:$0xff]  ;;  %v1987_v14 = vld [vmem:[%s3498_s1 + $0x8] sm:$0xff] }
  0xbb   :  { %v566_v12 = vsub.s32 2, %v1962_v61  ;;  %v633_v29 = vsub.s32 3, %v1962_v61  ;;  %v700_v51 = vsub.s32 4, %v1962_v61 }
  0xbc   :  { %v246_v32 = vpop.permute.xlu1 %245  ;;  %163 = vadd.xlane.f32.xlu0 %v162_v24  ;;  %158 = vadd.xlane.f32.xlu1 %v157_v27  ;;  %v236_v50 = vpop.permute.xlu0 %235  ;;  %v508_v11 = vrot.slane %v1970_v62, %v499_v63  ;;  %v500_v13 = vrot.slane %v1979_v10, %v499_v63  ;;  %v504_v24 = vrot.slane %v1987_v14, %v499_v63  ;;  %v1994_v27 = vld [vmem:[%s3498_s1 + $0x18] sm:$0xff] }
  0xbd   :  { %v259_v38 = vsel %vm112_vm0, %v234_v44, %v236_v50  ;;  %v263_v58 = vsel %vm112_vm0, %v244_v48, %v246_v32  ;;  %v288_v44 = vadd.f32 %v287_v55, %v256_v59  ;;  %v50_v48 = vld [vmem:[%s3497_s5 + $0x10] sm:$0xff]  ;;  %v567_v23 = vrot.slane %v1979_v10, %v566_v12  ;;  %s1678_s5 = smov 112  }
  0xbe   :  { %v292_v56 = vadd.f32 %v291_v45, %v259_v38  ;;  %v297_v33 = vadd.f32 %v296_v42, %v263_v58  ;;  %v575_v28 = vrot.slane %v1970_v62, %v566_v12  ;;  %v512_v30 = vrot.slane %v1994_v27, %v499_v63  ;;  %v1618_v63 = vld [vmem:[%s3498_s1 + $0x28] ss:$0 sm:$0xff] }
  0xbf   :  { %v634_v31 = vrot.slane %v1979_v10, %v633_v29  ;;  %v579_v53 = vrot.slane %v1994_v27, %v566_v12  ;;  %v701_v37 = vrot.slane %v1979_v10, %v700_v51  ;;  %v638_v38 = vrot.slane %v1987_v14, %v633_v29 }
  0xc0   :  { %v248_v47 = vpop.permute.xlu1 %247  ;;  %284 = vadd.xlane.f32.xlu0 %v283_v46  ;;  %v238_v54 = vpop.permute.xlu0 %237  ;;  %v709_v52 = vrot.slane %v1970_v62, %v700_v51  ;;  %v767_v45 = vsub.s32 5, %v1962_v61  ;;  %v646_v46 = vrot.slane %v1994_v27, %v633_v29  ;;  %v705_v34 = vrot.slane %v1987_v14, %v700_v51 }
  0xc1   :  { %v260_v41 = vsel %vm112_vm0, %v236_v50, %v238_v54  ;;  %v264_v60 = vsel %vm112_vm0, %v246_v32, %v248_v47  ;;  %v571_v32 = vrot.slane %v1987_v14, %v566_v12  ;;  %v642_v50 = vrot.slane %v1970_v62, %v633_v29 }
  0xc2   :  { %v293_v57 = vadd.f32 %v292_v56, %v260_v41  ;;  %v298_v39 = vadd.f32 %v297_v33, %v264_v60  ;;  %v768_v59 = vrot.slane %v1979_v10, %v767_v45  ;;  %v776_v40 = vrot.slane %v1970_v62, %v767_v45 }
  0xc3   :  { %v834_v47 = vsub.s32 6, %v1962_v61  ;;  %v713_v54 = vrot.slane %v1994_v27, %v700_v51  ;;  %v772_v56 = vrot.slane %v1987_v14, %v767_v45  ;;  %v901_v41 = vsub.s32 7, %v1962_v61 }
  0xc4   :  { %289 = vadd.xlane.f32.xlu0 %v288_v44  ;;  %294 = vadd.xlane.f32.xlu1 %v293_v57  ;;  %v780_v42 = vrot.slane %v1994_v27, %v767_v45 }
  0xc5   :  { %v835_v55 = vrot.slane %v1979_v10, %v834_v47  ;;  %v843_v58 = vrot.slane %v1970_v62, %v834_v47  ;;  %v902_v44 = vrot.slane %v1979_v10, %v901_v41  ;;  %v839_v57 = vrot.slane %v1987_v14, %v834_v47 }
  0xc6   :  { %v910_v60 = vrot.slane %v1970_v62, %v901_v41  ;;  %v847_v33 = vrot.slane %v1994_v27, %v834_v47  ;;  %v906_v43 = vrot.slane %v1987_v14, %v901_v41 }
  0xc8   :  { %299 = vadd.xlane.f32.xlu0 %v298_v39  ;;  %v1617_v39 = vld [vmem:[%s3498_s1 + $0x20] ss:$0 sm:$0xff] }
  0xd5   :  { %396 = vperm.xlu1 %1656, %v49_v49   ;;  %v1619_v49 = vld [vmem:[%s3498_s1 + $0x30] ss:$0 sm:$0xff] }
  0xd9   :  { %401 = vperm.xlu1 %1656, %v50_v48   ;;  %v914_v48 = vrot.slane %v1994_v27, %v901_v41 }
  0xdd   :  { %406 = vperm.xlu1 %1656, %v51_v9   ;;  %v1620_v9 = vld [vmem:[%s3498_s1 + $0x38] ss:$0 sm:$0xff] }
  0xde   :  { %521 = vrot.lane.b32.xlu0 %v508_v11, %s1668_s29  ;;  %v2037_v11 = vpop.permute.xlu1 %391 }
  0xe1   :  { %517 = vrot.lane.b32.xlu1 %v500_v13, %s1668_s29 }
  0xe2   :  { %584 = vrot.lane.b32.xlu0 %v567_v23, %s1669_s7 }
  0xe5   :  { %519 = vrot.lane.b32.xlu1 %v504_v24, %s1668_s29 }
  0xe6   :  { %588 = vrot.lane.b32.xlu0 %v575_v28, %s1669_s7 }
  0xe9   :  { %523 = vrot.lane.b32.xlu1 %v512_v30, %s1668_s29  ;;  %s1677_s29 = smov 126  }
  0xea   :  { %651 = vrot.lane.b32.xlu0 %v634_v31, %s1670_s8 }
  0xed   :  { %586 = vrot.lane.b32.xlu1 %v571_v32, %s1669_s7 }
  0xee   :  { %655 = vrot.lane.b32.xlu0 %v642_v50, %s1670_s8 }
  0xf1   :  { %590 = vrot.lane.b32.xlu1 %v579_v53, %s1669_s7  ;;  %s1681_s7 = smov 95  }
  0xf2   :  { %718 = vrot.lane.b32.xlu0 %v701_v37, %s1671_s9 }
  0xf5   :  { %653 = vrot.lane.b32.xlu1 %v638_v38, %s1670_s8 }
  0xf6   :  { %722 = vrot.lane.b32.xlu0 %v709_v52, %s1671_s9 }
  0xf9   :  { %657 = vrot.lane.b32.xlu1 %v646_v46, %s1670_s8 }
  0xfa   :  { %785 = vrot.lane.b32.xlu0 %v768_v59, %s1672_s10 }
  0xfd   :  { %720 = vrot.lane.b32.xlu1 %v705_v34, %s1671_s9 }
  0xfe   :  { %789 = vrot.lane.b32.xlu0 %v776_v40, %s1672_s10 }
 0x101   :  { %724 = vrot.lane.b32.xlu1 %v713_v54, %s1671_s9 }
 0x102   :  { %852 = vrot.lane.b32.xlu0 %v835_v55, %s1673_s11 }
 0x105   :  { %787 = vrot.lane.b32.xlu1 %v772_v56, %s1672_s10 }
 0x106   :  { %856 = vrot.lane.b32.xlu0 %v843_v58, %s1673_s11 }
 0x109   :  { %791 = vrot.lane.b32.xlu1 %v780_v42, %s1672_s10 }
 0x10a   :  { %919 = vrot.lane.b32.xlu0 %v902_v44, %s1674_s12 }
 0x10d   :  { %854 = vrot.lane.b32.xlu1 %v839_v57, %s1673_s11 }
 0x10e   :  { %923 = vrot.lane.b32.xlu0 %v910_v60, %s1674_s12 }
 0x111   :  { %858 = vrot.lane.b32.xlu1 %v847_v33, %s1673_s11 }
 0x112   :  { %986 = vrot.lane.b32.xlu0 %v1617_v39, %s1675_s0 }
 0x115   :  { %921 = vrot.lane.b32.xlu1 %v906_v43, %s1674_s12 }
 0x116   :  { %990 = vrot.lane.b32.xlu0 %v1619_v49, %s1675_s0 }
 0x119   :  { %925 = vrot.lane.b32.xlu1 %v914_v48, %s1674_s12  ;;  %s1682_s12 = smov 94  }
 0x11d   :  { %988 = vrot.lane.b32.xlu1 %v1618_v63, %s1675_s0 }
 0x121   :  { %992 = vrot.lane.b32.xlu1 %v1620_v9, %s1675_s0  ;;  %v149_v12 = vpop.xlane.xlu0 %148  ;;  %v154_v13 = vpop.xlane.xlu1 %153 }
 0x122   :  { %v2039_v24 = vmul.f32 0.001953125, %v149_v12  ;;  %v2041_v29 = vmul.f32 0.001953125, %v154_v13  ;;  %v44_v12 = vld [vmem:[%s3499_s4] sm:$0xff] }
 0x124   :  { %v305_v32 = vmul.f32 %v2039_v24, %v2039_v24  ;;  %v306_v38 = vmul.f32 %v2041_v29, %v2041_v29  ;;  %v329_v2 = vsub.f32 %v1726_v1, %v2039_v24 }
 0x149   :  { %v164_v23 = vpop.xlane.xlu0 %163  ;;  %v159_v28 = vpop.xlane.xlu1 %158 }
 0x14a   :  { %v2043_v31 = vmul.f32 0.001953125, %v159_v28  ;;  %v2047_v53 = vmul.f32 0.001953125, %v164_v23 }
 0x14c   :  { %v307_v46 = vmul.f32 %v2043_v31, %v2043_v31  ;;  %v308_v56 = vmul.f32 %v2047_v53, %v2047_v53  ;;  %v342_v1 = vsub.f32 %v1864_v26, %v2043_v31 }
 0x14d   :  { %v285_v30 = vpop.xlane.xlu0 %284 }
 0x14e   :  { %v301_v50 = vmul.f32 0.001953125, %v285_v30 }
 0x150   :  { %v309_v51 = vsub.f32 %v301_v50, %v305_v32  ;;  %v46_v32 = vld [vmem:[%s3499_s4 + $0x10] sm:$0xff]  ;;  %v45_v50 = vld [vmem:[%s3499_s4 + $0x8] sm:$0xff] }
 0x151   :  { %v295_v37 = vpop.xlane.xlu1 %294  ;;  %v290_v52 = vpop.xlane.xlu0 %289 }
 0x152   :  { %v313_v45 = vmax.f32 %v309_v51, 0.0  ;;  %v303_v59 = vmul.f32 0.001953125, %v295_v37  ;;  %v302_v34 = vmul.f32 0.001953125, %v290_v52 }
 0x154   :  { %v317_v40 = vadd.f32 1e-05, %v313_v45  ;;  %v311_v47 = vsub.f32 %v303_v59, %v307_v46  ;;  %v310_v54 = vsub.f32 %v302_v34, %v306_v38  ;;  %v47_v59 = vld [vmem:[%s3499_s4 + $0x18] sm:$0xff]  ;;  %s1676_s4 = smov 127  }
 0x155   :  { %v2053_v55 = vpop.permute.xlu1 %396  ;;  %v300_v58 = vpop.xlane.xlu0 %299 }
 0x156   :  { %3594 = vst [vmem:[#allocation2_spill] sm:$0xff] %v2053_v55  ;;  %1658 = vrsqrt.f32 %v317_v40  ;;  %v315_v41 = vmax.f32 %v311_v47, 0.0  ;;  %v314_v42 = vmax.f32 %v310_v54, 0.0  ;;  %v304_v44 = vmul.f32 0.001953125, %v300_v58 }
 0x157   :  { %v331_v55 = vsub.f32 %v1721_v0, %v2039_v24 }
 0x158   :  { %v319_v57 = vadd.f32 1e-05, %v315_v41  ;;  %v318_v60 = vadd.f32 1e-05, %v314_v42  ;;  %v312_v33 = vsub.f32 %v304_v44, %v308_v56 }
 0x159   :  { %v2057_v39 = vpop.permute.xlu1 %401  ;;  %v2059_v43 = vpop.permute.xlu0 %521 }
 0x15a   :  { %3595 = vst [vmem:[#allocation3_spill] sm:$0xff] %v2057_v39  ;;  %1660 = vrsqrt.f32 %v319_v57  ;;  %v316_v49 = vmax.f32 %v312_v33, 0.0  ;;  %v333_v39 = vsub.f32 %v1802_v16, %v2039_v24  ;;  %v339_v16 = vsub.f32 %v1816_v18, %v2043_v31 }
 0x15b   :  { %1662 = vrsqrt.f32 %v318_v60 }
 0x15c   :  { %v320_v48 = vadd.f32 1e-05, %v316_v49 }
 0x15d   :  { %v2061_v63 = vpop.permute.xlu1 %406  ;;  %v2063_v9 = vpop.permute.xlu0 %584 }
 0x15e   :  { %3596 = vst [vmem:[#allocation4_spill] sm:$0xff] %v2061_v63  ;;  %1664 = vrsqrt.f32 %v320_v48  ;;  %v330_v63 = vsub.f32 %v1742_v4, %v2039_v24  ;;  %v343_v4 = vsub.f32 %v1902_v36, %v2043_v31 }
 0x160   :  { %v1659_v13 = vpop.eup %1658 }
 0x161   :  { %v325_v23 = vmul.f32 %v1659_v13, %v44_v12  ;;  %v2068_v28 = vpop.permute.xlu1 %517  ;;  %v2070_v30 = vpop.permute.xlu0 %588 }
 0x163   :  { %351 = vperm.xlu1 %1656, %v325_v23  }
 0x164   :  { %v1661_v51 = vpop.eup %1660 }
 0x165   :  { %v1663_v37 = vpop.eup %1662  ;;  %v327_v38 = vmul.f32 %v1661_v51, %v46_v32  ;;  %v2078_v52 = vpop.permute.xlu1 %519 }
 0x166   :  { %v2080_v45 = vpop.permute.xlu0 %651  ;;  %v326_v46 = vmul.f32 %v1663_v37, %v45_v50  ;;  %v2173_v26 = vsel %vm525_vm2, %v2078_v52, %v2059_v43 }
 0x167   :  { %3597 = vst [vmem:[#allocation5_spill] sm:$0xff] %v2080_v45  ;;  %361 = vperm.xlu1 %1656, %v327_v38  }
 0x168   :  { %v1665_v34 = vpop.eup %1664  ;;  %356 = vperm.xlu0 %1657, %v326_v46  }
 0x169   :  { %v328_v40 = vmul.f32 %v1665_v34, %v47_v59  ;;  %v2085_v47 = vpop.permute.xlu1 %523 }
 0x16a   :  { %v2087_v54 = vpop.permute.xlu0 %655 }
 0x16b   :  { %366 = vperm.xlu1 %1656, %v328_v40  }
 0x16d   :  { %v587_v56 = vpop.permute.xlu1 %586 }
 0x16e   :  { %v2089_v58 = vpop.permute.xlu0 %718 }
 0x16f   :  { %3598 = vst [vmem:[#allocation6_spill] sm:$0xff] %v2089_v58 }
 0x171   :  { %v2091_v41 = vpop.permute.xlu1 %590 }
 0x172   :  { %v2093_v42 = vpop.permute.xlu0 %722 }
 0x175   :  { %v654_v44 = vpop.permute.xlu1 %653 }
 0x176   :  { %v2095_v57 = vpop.permute.xlu0 %785 }
 0x177   :  { %3599 = vst [vmem:[#allocation7_spill] sm:$0xff] %v2095_v57 }
 0x179   :  { %v2097_v60 = vpop.permute.xlu1 %657 }
 0x17a   :  { %v2099_v33 = vpop.permute.xlu0 %789 }
 0x17d   :  { %v721_v49 = vpop.permute.xlu1 %720 }
 0x17e   :  { %v2103_v12 = vpop.permute.xlu0 %852 }
 0x17f   :  { %3600 = vst [vmem:[#allocation8_spill] sm:$0xff] %v2103_v12 }
 0x181   :  { %v2101_v48 = vpop.permute.xlu1 %724 }
 0x182   :  { %v2105_v23 = vpop.permute.xlu0 %856 }
 0x185   :  { %v788_v13 = vpop.permute.xlu1 %787 }
 0x186   :  { %v2111_v51 = vpop.permute.xlu0 %919 }
 0x187   :  { %3601 = vst [vmem:[#allocation9_spill] sm:$0xff] %v2111_v51 }
 0x189   :  { %v2107_v32 = vpop.permute.xlu1 %791 }
 0x18a   :  { %v2115_v38 = vpop.permute.xlu0 %923 }
 0x18b   :  { %3602 = vst [vmem:[#allocation10_spill] sm:$0xff] %v2115_v38 }
 0x18d   :  { %v2109_v50 = vpop.permute.xlu1 %854 }
 0x191   :  { %v2113_v37 = vpop.permute.xlu1 %858 }
 0x195   :  { %v2117_v46 = vpop.permute.xlu1 %921 }
 0x196   :  { %v2122_v59 = vsel %vm927_vm1, %v2117_v46, %v2115_v38  ;;  %v2155_v38 = vpop.permute.xlu0 %986 }
 0x197   :  { %3603 = vst [vmem:[#allocation11_spill] sm:$0xff] %v2122_v59  ;;  %v332_v59 = vsub.f32 %v1770_v8, %v2039_v24  ;;  %v459_v8 = vsub.s32 0, %v1962_v61  ;;  %v340_v24 = vsub.f32 %v1811_v17, %v2043_v31  ;;  %3605 = vst [vmem:[#allocation13_spill] sm:$0xff] %v2155_v38  ;;  %v2183_v17 = vsel %vm592_vm3, %v2063_v9, %v587_v56 }
 0x198   :  { %v2187_v61 = vsel %vm592_vm3, %v587_v56, %v2070_v30  ;;  %v2209_v56 = vsel %vm592_vm3, %v2070_v30, %v2091_v41  ;;  %v2235_v30 = vsel %vm726_vm5, %v2093_v42, %v2101_v48 }
 0x199   :  { %v2124_v34 = vpop.permute.xlu1 %925  ;;  %v2190_v0 = vrot.slane %v1994_v27, %v459_v8  ;;  %v2201_v18 = vrot.slane %v1979_v10, %v459_v8  ;;  %v2213_v27 = vsel %vm659_vm4, %v2080_v45, %v654_v44  ;;  %v2222_v10 = vsel %vm659_vm4, %v2087_v54, %v2097_v60 }
 0x19a   :  { %3604 = vst [vmem:[#allocation12_spill] sm:$0xff] %v2124_v34  ;;  %v341_v34 = vsub.f32 %v1830_v20, %v2043_v31  ;;  %v2168_v20 = vsel %vm525_vm2, %v2068_v28, %v2078_v52  ;;  %v2195_v52 = vsel %vm525_vm2, %v2059_v43, %v2085_v47  ;;  %v2198_v31 = vrot.slane %v1987_v14, %v459_v8 }
 0x19b   :  { %v2217_v43 = vsel %vm659_vm4, %v654_v44, %v2087_v54  ;;  %v2230_v14 = vsel %vm726_vm5, %v721_v49, %v2093_v42  ;;  %v2239_v44 = vsel %vm793_vm6, %v2095_v57, %v788_v13  ;;  %v2243_v54 = vsel %vm793_vm6, %v788_v13, %v2099_v33 }
 0x19c   :  { %3608 = vst [vmem:[#allocation16_spill] sm:$0xff] %v2230_v14  ;;  %3609 = vst [vmem:[#allocation17_spill] sm:$0xff] %v2239_v44  ;;  %v2250_v42 = vsel %vm793_vm6, %v2099_v33, %v2107_v32  ;;  %v2255_v57 = vsel %vm860_vm7, %v2103_v12, %v2109_v50  ;;  %v2260_v13 = vsel %vm860_vm7, %v2109_v50, %v2105_v23  ;;  %v3614_v50 = vld [vmem:[#allocation10_spill] sm:$0xff] }
 0x19d   :  { %v989_v40 = vpop.permute.xlu1 %988 }
 0x1a1   :  { %v2175_v36 = vpop.permute.xlu1 %992  ;;  %v3613_v12 = vld [vmem:[#allocation12_spill] sm:$0xff] }
 0x1a2   :  { %3606 = vst [vmem:[#allocation14_spill] sm:$0xff] %v2175_v36  ;;  %v2204_v36 = vrot.slane %v1970_v62, %v459_v8  ;;  %v2226_v62 = vsel %vm726_vm5, %v2089_v58, %v721_v49  ;;  %v2245_v58 = vpop.permute.xlu0 %990 }
 0x1a3   :  { %3607 = vst [vmem:[#allocation15_spill] sm:$0xff] %v2226_v62  ;;  %3610 = vst [vmem:[#allocation18_spill] sm:$0xff] %v2245_v58 }
 0x1e2   :  { %v352_v8 = vpop.permute.xlu1 %351 }
 0x1e3   :  { %v369_v62 = vmul.f32 %v352_v8, %v329_v2  ;;  %v370_v45 = vmul.f32 %v352_v8, %v330_v63  ;;  %v371_v49 = vmul.f32 %v352_v8, %v331_v55  ;;  %v372_v14 = vmul.f32 %v352_v8, %v332_v59 }
 0x1e4   :  { %v373_v44 = vmul.f32 %v352_v8, %v333_v39  ;;  %v2265_v2 = vsel %vm860_vm7, %v2105_v23, %v2113_v37  ;;  %v2273_v59 = vsel %vm927_vm1, %v2111_v51, %v2117_v46  ;;  %v2278_v39 = vsel %vm927_vm1, %v3614_v50, %v3613_v12 }
 0x1e5   :  { %3611 = vst [vmem:[#allocation19_spill] sm:$0xff] %v2265_v2  ;;  %v409_v55 = vadd.f32 %v2037_v11, %v369_v62  ;;  %v410_v63 = vadd.f32 %v2037_v11, %v370_v45  ;;  %v411_v33 = vadd.f32 %v2037_v11, %v371_v49  ;;  %3612 = vst [vmem:[#allocation20_spill] sm:$0xff] %v2273_v59 }
 0x1e6   :  { %3615 = vst [vmem:[#allocation10_spill] sm:$0xff] %v2278_v39  ;;  %v2282_v23 = vsel %vm994_vm8, %v2155_v38, %v989_v40  ;;  %v2286_v62 = vsel %vm994_vm8, %v989_v40, %v2245_v58  ;;  %v362_v45 = vpop.permute.xlu1 %361  ;;  %v412_v8 = vadd.f32 %v2037_v11, %v372_v14  ;;  %v413_v49 = vadd.f32 %v2037_v11, %v373_v44  ;;  %v3620_v44 = vld [vmem:[#allocation3_spill] sm:$0xff] }
 0x1e7   :  { %3616 = vst [vmem:[#allocation21_spill] sm:$0xff] %v2282_v23  ;;  %3617 = vst [vmem:[#allocation22_spill] sm:$0xff] %v2286_v62  ;;  %v2290_v46 = vmax.f32 %v409_v55, 0.0  ;;  %v2292_v51 = vmax.f32 %v410_v63, 0.0  ;;  %v357_v59 = vpop.permute.xlu0 %356  ;;  %v2294_v50 = vmax.f32 %v411_v33, 0.0  ;;  %v379_v39 = vmul.f32 %v362_v45, %v339_v16 }
 0x1e8   :  { %v380_v12 = vmul.f32 %v362_v45, %v340_v24  ;;  %v381_v38 = vmul.f32 %v362_v45, %v341_v34  ;;  %v382_v23 = vmul.f32 %v362_v45, %v342_v1  ;;  %v383_v2 = vmul.f32 %v362_v45, %v343_v4 }
 0x1e9   :  { %v3618_v40 = vsub.f32 %v1737_v3, %v2041_v29  ;;  %v3619_v14 = vsub.f32 %v1756_v6, %v2041_v29  ;;  %v419_v55 = vadd.f32 %v3620_v44, %v379_v39  ;;  %v3621_v16 = vsub.f32 %v1751_v5, %v2041_v29  ;;  %v3624_v5 = vld [vmem:[#allocation2_spill] sm:$0xff] }
 0x1ea   :  { %v420_v63 = vadd.f32 %v3620_v44, %v380_v12  ;;  %v421_v33 = vadd.f32 %v3620_v44, %v381_v38  ;;  %v2308_v1 = vmax.f32 %v412_v8, 0.0  ;;  %v422_v4 = vadd.f32 %v3620_v44, %v382_v23  ;;  %v367_v45 = vpop.permute.xlu1 %366 }
 0x1eb   :  { %v374_v62 = vmul.f32 %v357_v59, %v3618_v40  ;;  %v375_v11 = vmul.f32 %v357_v59, %v3619_v14  ;;  %v376_v34 = vmul.f32 %v357_v59, %v3621_v16  ;;  %v3622_v3 = vsub.f32 %v1765_v7, %v2041_v29 }
 0x1ec   :  { %v3623_v6 = vsub.f32 %v1797_v15, %v2041_v29  ;;  %v2317_v12 = vmax.f32 %v413_v49, 0.0  ;;  %v423_v38 = vadd.f32 %v3620_v44, %v383_v2  ;;  %v2320_v40 = vmax.f32 %v419_v55, 0.0 }
 0x1ed   :  { %v377_v24 = vmul.f32 %v357_v59, %v3622_v3  ;;  %v414_v8 = vadd.f32 %v3624_v5, %v374_v62  ;;  %v2323_v14 = vmax.f32 %v420_v63, 0.0  ;;  %v2325_v23 = vmax.f32 %v421_v33, 0.0 }
 0x1ee   :  { %v378_v39 = vmul.f32 %v357_v59, %v3623_v6  ;;  %v415_v7 = vadd.f32 %v3624_v5, %v375_v11  ;;  %v416_v16 = vadd.f32 %v3624_v5, %v376_v34  ;;  %v2329_v3 = vmax.f32 %v422_v4, 0.0 }
 0x1ef   :  { %v417_v15 = vadd.f32 %v3624_v5, %v377_v24  ;;  %v3625_v2 = vsub.f32 %v1825_v19, %v2047_v53  ;;  %v2336_v49 = vmax.f32 %v414_v8, 0.0  ;;  %v3626_v44 = vsub.f32 %v1844_v22, %v2047_v53  ;;  %v3630_v22 = vld [vmem:[#allocation4_spill] sm:$0xff] }
 0x1f0   :  { %v418_v29 = vadd.f32 %v3624_v5, %v378_v39  ;;  %v2338_v62 = vmax.f32 %v416_v16, 0.0  ;;  %v3627_v55 = vsub.f32 %v1839_v21, %v2047_v53  ;;  %v2346_v33 = vmax.f32 %v415_v7, 0.0 }
 0x1f1   :  { %v384_v59 = vmul.f32 %v367_v45, %v3625_v2  ;;  %v385_v11 = vmul.f32 %v367_v45, %v3626_v44  ;;  %v2348_v34 = vmax.f32 %v417_v15, 0.0  ;;  %v3628_v19 = vsub.f32 %v1859_v25, %v2047_v53 }
 0x1f2   :  { %v386_v63 = vmul.f32 %v367_v45, %v3627_v55  ;;  %v3629_v24 = vsub.f32 %v1897_v35, %v2047_v53  ;;  %v2356_v39 = vmax.f32 %v418_v29, 0.0  ;;  %v476_v25 = vmul.f32 %v2190_v0, %v2308_v1 }
 0x1f3   :  { %v387_v4 = vmul.f32 %v367_v45, %v3628_v19  ;;  %v424_v5 = vadd.f32 %v3630_v22, %v384_v59  ;;  %v425_v8 = vadd.f32 %v3630_v22, %v385_v11  ;;  %v480_v15 = vmul.f32 %v2190_v0, %v2348_v34 }
 0x1f4   :  { %v388_v6 = vmul.f32 %v367_v45, %v3629_v24  ;;  %v426_v21 = vadd.f32 %v3630_v22, %v386_v63  ;;  %v536_v45 = vmul.f32 %v2173_v26, %v2294_v50  ;;  %v541_v29 = vmul.f32 %v2173_v26, %v2338_v62 }
 0x1f5   :  { %v427_v7 = vadd.f32 %v3630_v22, %v387_v4  ;;  %v2367_v35 = vmax.f32 %v424_v5, 0.0  ;;  %v2369_v53 = vmax.f32 %v425_v8, 0.0  ;;  %v492_v44 = vpack.c.bf16 %v480_v15, %v476_v25 }
 0x1f6   :  { %v428_v16 = vadd.f32 %v3630_v22, %v388_v6  ;;  %v2375_v2 = vmax.f32 %v426_v21, 0.0  ;;  %v535_v11 = vmul.f32 %v2168_v20, %v2292_v51  ;;  %v556_v55 = vpack.c.bf16 %v541_v29, %v536_v45 }
 0x1f7   :  { %v2377_v59 = vmax.f32 %v427_v7, 0.0  ;;  %v540_v63 = vmul.f32 %v2168_v20, %v2346_v33  ;;  %v474_v19 = vmul.f32 %v2198_v31, %v2292_v51  ;;  %v478_v4 = vmul.f32 %v2198_v31, %v2346_v33  ;;  %1519 = vmatprep.subr.bf16.mxu1 %v492_v44 }
 0x1f8   :  { %v473_v24 = vmul.f32 %v2201_v18, %v2290_v46  ;;  %v477_v6 = vmul.f32 %v2201_v18, %v2336_v49  ;;  %v475_v22 = vmul.f32 %v2204_v36, %v2294_v50  ;;  %v479_v5 = vmul.f32 %v2204_v36, %v2338_v62  ;;  %1047 = vrot.lane.b32.xlu1 %v556_v55, %s1676_s4 }
 0x1f9   :  { %v555_v8 = vpack.c.bf16 %v540_v63, %v535_v11  ;;  %v490_v21 = vpack.c.bf16 %v478_v4, %v474_v19  ;;  %v538_v7 = vmul.f32 %v2085_v47, %v2317_v12  ;;  %v543_v25 = vmul.f32 %v2085_v47, %v2356_v39 }
 0x1fa   :  { %v489_v15 = vpack.c.bf16 %v477_v6, %v473_v24  ;;  %v491_v45 = vpack.c.bf16 %v479_v5, %v475_v22  ;;  %v484_v29 = vmul.f32 %v2190_v0, %v2329_v3  ;;  %v488_v44 = vmul.f32 %v2190_v0, %v2377_v59 }
 0x1fb   :  { %v2404_v58 = vmax.f32 %v423_v38, 0.0  ;;  %1045 = vrot.lane.b32.xlu0 %v555_v8, %s1676_s4  ;;  %1433 = vmatprep.subr.bf16.mxu0 %v490_v21  ;;  %v558_v11 = vpack.c.bf16 %v543_v25, %v538_v7  ;;  %v537_v55 = vmul.f32 %v2195_v52, %v2308_v1  ;;  %v542_v63 = vmul.f32 %v2195_v52, %v2348_v34 }
 0x1fc   :  { %v2411_v19 = vmax.f32 %v428_v16, 0.0  ;;  %1434 = vmatpush1.bf16.msra.mxu0 %v489_v15  ;;  %1520 = vmatpush1.bf16.msra.mxu1 %v491_v45  ;;  %v496_v4 = vpack.c.bf16 %v488_v44, %v484_v29  ;;  %v482_v0 = vmul.f32 %v2198_v31, %v2323_v14  ;;  %v486_v38 = vmul.f32 %v2198_v31, %v2369_v53 }
 0x1fd   :  { %1051 = vrot.lane.b32.xlu1 %v558_v11, %s1676_s4  ;;  %v557_v24 = vpack.c.bf16 %v542_v63, %v537_v55  ;;  %v481_v6 = vmul.f32 %v2201_v18, %v2320_v40  ;;  %v485_v22 = vmul.f32 %v2201_v18, %v2367_v35  ;;  %v483_v16 = vmul.f32 %v2204_v36, %v2325_v23 }
 0x1fe   :  { %1521 = vmatprep.subr.bf16.mxu1 %v496_v4  ;;  %v494_v5 = vpack.c.bf16 %v486_v38, %v482_v0  ;;  %v487_v8 = vmul.f32 %v2204_v36, %v2375_v2  ;;  %v545_v31 = vmul.f32 %v2168_v20, %v2323_v14  ;;  %v550_v21 = vmul.f32 %v2168_v20, %v2369_v53 }
 0x1ff   :  { %1049 = vrot.lane.b32.xlu0 %v557_v24, %s1676_s4  ;;  %v493_v7 = vpack.c.bf16 %v485_v22, %v481_v6  ;;  %v534_v18 = vmul.f32 %v2068_v28, %v2290_v46  ;;  %v539_v25 = vmul.f32 %v2068_v28, %v2336_v49  ;;  %v547_v15 = vmul.f32 %v2195_v52, %v2329_v3 }
 0x200   :  { %1435 = vmatprep.subr.bf16.mxu0 %v494_v5  ;;  %v495_v36 = vpack.c.bf16 %v487_v8, %v483_v16  ;;  %v560_v45 = vpack.c.bf16 %v550_v21, %v545_v31  ;;  %v552_v29 = vmul.f32 %v2195_v52, %v2377_v59  ;;  %v546_v20 = vmul.f32 %v2173_v26, %v2325_v23 }
 0x201   :  { %1436 = vmatpush1.bf16.msra.mxu0 %v493_v7  ;;  %v554_v44 = vpack.c.bf16 %v539_v25, %v534_v18  ;;  %v551_v11 = vmul.f32 %v2173_v26, %v2375_v2  ;;  %v544_v55 = vmul.f32 %v2068_v28, %v2320_v40  ;;  %v549_v63 = vmul.f32 %v2068_v28, %v2367_v35 }
 0x202   :  { %1522 = vmatpush1.bf16.msra.mxu1 %v495_v36  ;;  %1055 = vrot.lane.b32.xlu1 %v560_v45, %s1676_s4  ;;  %v562_v4 = vpack.c.bf16 %v552_v29, %v547_v15  ;;  %v548_v52 = vmul.f32 %v2085_v47, %v2404_v58  ;;  %v553_v0 = vmul.f32 %v2085_v47, %v2411_v19 }
 0x203   :  { %1043 = vrot.lane.b32.xlu0 %v554_v44, %s1676_s4  ;;  %v561_v38 = vpack.c.bf16 %v551_v11, %v546_v20  ;;  %v559_v26 = vpack.c.bf16 %v549_v63, %v544_v55  ;;  %v603_v24 = vmul.f32 %v2187_v61, %v2294_v50  ;;  %v608_v28 = vmul.f32 %v2187_v61, %v2338_v62 }
 0x204   :  { %v563_v6 = vpack.c.bf16 %v553_v0, %v548_v52  ;;  %v602_v22 = vmul.f32 %v2183_v17, %v2292_v51  ;;  %v607_v16 = vmul.f32 %v2183_v17, %v2346_v33  ;;  %v605_v47 = vmul.f32 %v2091_v41, %v2317_v12 }
 0x205   :  { %v623_v5 = vpack.c.bf16 %v608_v28, %v603_v24  ;;  %v610_v8 = vmul.f32 %v2091_v41, %v2356_v39  ;;  %v604_v31 = vmul.f32 %v2209_v56, %v2308_v1  ;;  %v609_v21 = vmul.f32 %v2209_v56, %v2348_v34 }
 0x206   :  { %1059 = vrot.lane.b32.xlu1 %v562_v4, %s1676_s4  ;;  %v622_v7 = vpack.c.bf16 %v607_v16, %v602_v22  ;;  %v2472_v18 = vmul.f32 %v2183_v17, %v2323_v14  ;;  %v2476_v25 = vmul.f32 %v2183_v17, %v2369_v53  ;;  %v2480_v15 = vmul.f32 %v2063_v9, %v2290_v46 }
 0x207   :  { %1057 = vrot.lane.b32.xlu0 %v561_v38, %s1676_s4  ;;  %v625_v36 = vpack.c.bf16 %v610_v8, %v605_v47  ;;  %v624_v45 = vpack.c.bf16 %v609_v21, %v604_v31  ;;  %v2485_v29 = vmul.f32 %v2063_v9, %v2336_v49  ;;  %v2489_v20 = vmul.f32 %v2209_v56, %v2329_v3  ;;  %v3633_v31 = vld [vmem:[#allocation5_spill] sm:$0xff] }
 0x208   :  { %v2495_v44 = vmul.f32 %v2209_v56, %v2377_v59  ;;  %v2499_v11 = vmul.f32 %v2187_v61, %v2325_v23  ;;  %v2503_v55 = vmul.f32 %v2187_v61, %v2375_v2  ;;  %v2509_v4 = vmul.f32 %v2063_v9, %v2320_v40 }
 0x209   :  { %v2513_v52 = vmul.f32 %v2063_v9, %v2367_v35  ;;  %v2517_v56 = vmul.f32 %v2091_v41, %v2404_v58  ;;  %v2526_v38 = vmul.f32 %v2091_v41, %v2411_v19  ;;  %v2530_v9 = vmul.f32 %v2217_v43, %v2294_v50 }
 0x20a   :  { %1053 = vrot.lane.b32.xlu1 %v559_v26, %s1676_s4  ;;  %v2537_v26 = vmul.f32 %v2217_v43, %v2338_v62  ;;  %v2541_v28 = vmul.f32 %v2213_v27, %v2292_v51  ;;  %v2545_v41 = vmul.f32 %v2213_v27, %v2346_v33  ;;  %v2555_v16 = vmul.f32 %v2097_v60, %v2356_v39 }
 0x20b   :  { %1061 = vrot.lane.b32.xlu0 %v563_v6, %s1676_s4  ;;  %v2551_v6 = vmul.f32 %v2097_v60, %v2317_v12  ;;  %v2559_v47 = vmul.f32 %v2222_v10, %v2308_v1  ;;  %v2567_v21 = vmul.f32 %v2222_v10, %v2348_v34  ;;  %v2571_v22 = vmul.f32 %v2213_v27, %v2323_v14 }
 0x20c   :  { %v2578_v8 = vmul.f32 %v2213_v27, %v2369_v53  ;;  %v2582_v0 = vmul.f32 %v3633_v31, %v2290_v46  ;;  %v2586_v61 = vmul.f32 %v3633_v31, %v2336_v49  ;;  %v2593_v24 = vmul.f32 %v2222_v10, %v2329_v3 }
 0x20d   :  { %3631 = vst [vmem:[#allocation3_spill] sm:$0xff] %v2559_v47  ;;  %3632 = vst [vmem:[#allocation2_spill] sm:$0xff] %v2567_v21  ;;  %v2597_v27 = vmul.f32 %v2222_v10, %v2377_v59  ;;  %v2601_v63 = vmul.f32 %v2217_v43, %v2325_v23  ;;  %v2613_v47 = vmul.f32 %v3633_v31, %v2320_v40 }
 0x20e   :  { %1094 = vrot.lane.b32.xlu1 %v623_v5, %s1677_s29  ;;  %3634 = vst [vmem:[#allocation4_spill] sm:$0xff] %v2582_v0  ;;  %3635 = vst [vmem:[#allocation5_spill] sm:$0xff] %v2593_v24  ;;  %v2609_v5 = vmul.f32 %v2217_v43, %v2375_v2  ;;  %v2619_v21 = vmul.f32 %v3633_v31, %v2367_v35  ;;  %v2623_v17 = vmul.f32 %v2097_v60, %v2404_v58  ;;  %v3643_v0 = vld [vmem:[#allocation16_spill] sm:$0xff]  ;;  %v3646_v24 = vld [vmem:[#allocation15_spill] sm:$0xff] }
 0x20f   :  { %1092 = vrot.lane.b32.xlu0 %v622_v7, %s1677_s29  ;;  %3636 = vst [vmem:[#allocation23_spill] sm:$0xff] %v2597_v27  ;;  %3637 = vst [vmem:[#allocation24_spill] sm:$0xff] %v2601_v63  ;;  %v2627_v7 = vmul.f32 %v2097_v60, %v2411_v19  ;;  %v2634_v10 = vmul.f32 %v3643_v0, %v2294_v50  ;;  %v2638_v31 = vmul.f32 %v3643_v0, %v2338_v62 }
 0x210   :  { %3638 = vst [vmem:[#allocation25_spill] sm:$0xff] %v2609_v5  ;;  %3639 = vst [vmem:[#allocation26_spill] sm:$0xff] %v2613_v47  ;;  %v2642_v27 = vmul.f32 %v3646_v24, %v2292_v51  ;;  %v2651_v43 = vmul.f32 %v3646_v24, %v2346_v33  ;;  %v2655_v63 = vmul.f32 %v2101_v48, %v2317_v12 }
 0x211   :  { %3640 = vst [vmem:[#allocation27_spill] sm:$0xff] %v2619_v21  ;;  %3641 = vst [vmem:[#allocation28_spill] sm:$0xff] %v2623_v17  ;;  %v2665_v60 = vmul.f32 %v2235_v30, %v2308_v1  ;;  %v2679_v5 = vmul.f32 %v3646_v24, %v2369_v53  ;;  %v3651_v47 = vpack.c.bf16 %v2476_v25, %v2472_v18 }
 0x212   :  { %3642 = vst [vmem:[#allocation29_spill] sm:$0xff] %v2627_v7  ;;  %1098 = vrot.lane.b32.xlu1 %v625_v36, %s1677_s29  ;;  %3644 = vst [vmem:[#allocation16_spill] sm:$0xff] %v2634_v10  ;;  %v2669_v36 = vmul.f32 %v2235_v30, %v2348_v34  ;;  %v2675_v7 = vmul.f32 %v3646_v24, %v2323_v14  ;;  %v3649_v10 = vld [vmem:[#allocation6_spill] sm:$0xff]  ;;  %v2699_v24 = vmul.f32 %v2235_v30, %v2329_v3 }
 0x213   :  { %3645 = vst [vmem:[#allocation30_spill] sm:$0xff] %v2638_v31  ;;  %3647 = vst [vmem:[#allocation15_spill] sm:$0xff] %v2642_v27  ;;  %1096 = vrot.lane.b32.xlu0 %v624_v45, %s1677_s29  ;;  %v2661_v45 = vmul.f32 %v2101_v48, %v2356_v39  ;;  %v2683_v31 = vmul.f32 %v3649_v10, %v2290_v46  ;;  %v3652_v21 = vpack.c.bf16 %v2485_v29, %v2480_v15 }
 0x214   :  { %3648 = vst [vmem:[#allocation31_spill] sm:$0xff] %v2651_v43  ;;  %v2695_v43 = vmul.f32 %v3649_v10, %v2336_v49  ;;  %v2709_v25 = vmul.f32 %v2235_v30, %v2377_v59  ;;  %v2717_v27 = vmul.f32 %v3643_v0, %v2375_v2  ;;  %v2723_v15 = vmul.f32 %v3649_v10, %v2320_v40 }
 0x215   :  { %3650 = vst [vmem:[#allocation6_spill] sm:$0xff] %v2683_v31  ;;  %v2727_v29 = vmul.f32 %v3649_v10, %v2367_v35  ;;  %v2731_v30 = vmul.f32 %v2101_v48, %v2404_v58  ;;  %v2739_v17 = vmul.f32 %v2101_v48, %v2411_v19  ;;  %v2743_v18 = vmul.f32 %v2243_v54, %v2294_v50 }
 0x216   :  { %1102 = vrot.lane.b32.xlu1 %v3651_v47, %s1677_s29  ;;  %v2713_v47 = vmul.f32 %v3643_v0, %v2325_v23  ;;  %3654 = vst [vmem:[#allocation33_spill] sm:$0xff] %v2723_v15  ;;  %v3658_v10 = vpack.c.bf16 %v2495_v44, %v2489_v20  ;;  %v3659_v0 = vld [vmem:[#allocation17_spill] sm:$0xff]  ;;  %v3661_v20 = vpack.c.bf16 %v2503_v55, %v2499_v11 }
 0x217   :  { %1090 = vrot.lane.b32.xlu0 %v3652_v21, %s1677_s29  ;;  %3655 = vst [vmem:[#allocation34_spill] sm:$0xff] %v2727_v29  ;;  %3656 = vst [vmem:[#allocation35_spill] sm:$0xff] %v2731_v30  ;;  %v2753_v21 = vmul.f32 %v2243_v54, %v2338_v62  ;;  %v2757_v48 = vmul.f32 %v3659_v0, %v2292_v51  ;;  %v2775_v31 = vmul.f32 %v2107_v32, %v2356_v39  ;;  %v3665_v29 = vld [vmem:[#allocation7_spill] sm:$0xff] }
 0x218   :  { %3653 = vst [vmem:[#allocation32_spill] sm:$0xff] %v2713_v47  ;;  %3657 = vst [vmem:[#allocation36_spill] sm:$0xff] %v2743_v18  ;;  %v2761_v47 = vmul.f32 %v3659_v0, %v2346_v33  ;;  %v2779_v15 = vmul.f32 %v2250_v42, %v2308_v1  ;;  %v2787_v55 = vmul.f32 %v2250_v42, %v2348_v34 }
 0x219   :  { %3660 = vst [vmem:[#allocation17_spill] sm:$0xff] %v2757_v48  ;;  %3663 = vst [vmem:[#allocation38_spill] sm:$0xff] %v2775_v31  ;;  %v2797_v30 = vmul.f32 %v3659_v0, %v2369_v53  ;;  %v2801_v18 = vmul.f32 %v3665_v29, %v2290_v46  ;;  %v2805_v11 = vmul.f32 %v3665_v29, %v2336_v49 }
 0x21a   :  { %1106 = vrot.lane.b32.xlu1 %v3658_v10, %s1677_s29  ;;  %v2771_v10 = vmul.f32 %v2107_v32, %v2317_v12  ;;  %3664 = vst [vmem:[#allocation39_spill] sm:$0xff] %v2779_v15  ;;  %v3666_v48 = vpack.c.bf16 %v2513_v52, %v2509_v4  ;;  %v2823_v31 = vmul.f32 %v2243_v54, %v2325_v23 }
 0x21b   :  { %1104 = vrot.lane.b32.xlu0 %v3661_v20, %s1677_s29  ;;  %v2791_v20 = vmul.f32 %v3659_v0, %v2323_v14  ;;  %v2815_v0 = vmul.f32 %v2250_v42, %v2329_v3  ;;  %v3669_v4 = vpack.c.bf16 %v2526_v38, %v2517_v56  ;;  %v2835_v44 = vmul.f32 %v2243_v54, %v2375_v2 }
 0x21c   :  { %3662 = vst [vmem:[#allocation37_spill] sm:$0xff] %v2771_v10  ;;  %v2819_v10 = vmul.f32 %v2250_v42, %v2377_v59  ;;  %3668 = vst [vmem:[#allocation40_spill] sm:$0xff] %v2823_v31  ;;  %v2839_v42 = vmul.f32 %v3665_v29, %v2320_v40  ;;  %v2845_v56 = vmul.f32 %v3665_v29, %v2367_v35 }
 0x21d   :  { %3667 = vst [vmem:[#allocation7_spill] sm:$0xff] %v2815_v0  ;;  %3670 = vst [vmem:[#allocation41_spill] sm:$0xff] %v2835_v44  ;;  %v2849_v38 = vmul.f32 %v2107_v32, %v2404_v58  ;;  %v2863_v15 = vmul.f32 %v2260_v13, %v2338_v62  ;;  %v2867_v29 = vmul.f32 %v2255_v57, %v2292_v51 }
 0x21e   :  { %1100 = vrot.lane.b32.xlu1 %v3666_v48, %s1677_s29  ;;  %v2859_v48 = vmul.f32 %v2260_v13, %v2294_v50  ;;  %v2879_v31 = vmul.f32 %v2255_v57, %v2346_v33  ;;  %v2883_v44 = vmul.f32 %v2113_v37, %v2317_v12  ;;  %v3678_v0 = vpack.c.bf16 %v2545_v41, %v2541_v28 }
 0x21f   :  { %1108 = vrot.lane.b32.xlu0 %v3669_v4, %s1677_s29  ;;  %3671 = vst [vmem:[#allocation42_spill] sm:$0xff] %v2849_v38  ;;  %v2853_v4 = vmul.f32 %v2107_v32, %v2411_v19  ;;  %3673 = vst [vmem:[#allocation44_spill] sm:$0xff] %v2863_v15  ;;  %v3675_v32 = vpack.c.bf16 %v2537_v26, %v2530_v9  ;;  %v2893_v26 = vmul.f32 %v2113_v37, %v2356_v39 }
 0x220   :  { %3672 = vst [vmem:[#allocation43_spill] sm:$0xff] %v2859_v48  ;;  %3674 = vst [vmem:[#allocation45_spill] sm:$0xff] %v2867_v29  ;;  %v2907_v28 = vmul.f32 %v2255_v57, %v2323_v14  ;;  %v2911_v41 = vmul.f32 %v2255_v57, %v2369_v53  ;;  %v3687_v57 = vpack.c.bf16 %v2555_v16, %v2551_v6 }
 0x221   :  { %3676 = vst [vmem:[#allocation46_spill] sm:$0xff] %v2879_v31  ;;  %3677 = vst [vmem:[#allocation47_spill] sm:$0xff] %v2883_v44  ;;  %v2941_v15 = vmul.f32 %v2260_v13, %v2325_v23  ;;  %v3692_v44 = vld [vmem:[#allocation3_spill] sm:$0xff]  ;;  %v3701_v31 = vld [vmem:[#allocation20_spill] sm:$0xff] }
 0x222   :  { %1141 = vrot.lane.b32.xlu1 %v3675_v32, %s1678_s5  ;;  %v3679_v32 = vld [vmem:[#allocation19_spill] sm:$0xff]  ;;  %3682 = vst [vmem:[#allocation49_spill] sm:$0xff] %v2907_v28 }
 0x223   :  { %1139 = vrot.lane.b32.xlu0 %v3678_v0, %s1678_s5  ;;  %v2897_v52 = vmul.f32 %v3679_v32, %v2308_v1  ;;  %v2901_v54 = vmul.f32 %v3679_v32, %v2348_v34  ;;  %v3683_v0 = vld [vmem:[#allocation8_spill] sm:$0xff]  ;;  %v2927_v29 = vmul.f32 %v3679_v32, %v2329_v3  ;;  %v2937_v48 = vmul.f32 %v3679_v32, %v2377_v59 }
 0x224   :  { %v2915_v9 = vmul.f32 %v3683_v0, %v2290_v46  ;;  %v2923_v38 = vmul.f32 %v3683_v0, %v2336_v49  ;;  %3689 = vst [vmem:[#allocation53_spill] sm:$0xff] %v2941_v15  ;;  %v2955_v32 = vmul.f32 %v3683_v0, %v2320_v40 }
 0x225   :  { %3680 = vst [vmem:[#allocation19_spill] sm:$0xff] %v2897_v52  ;;  %3681 = vst [vmem:[#allocation48_spill] sm:$0xff] %v2901_v54  ;;  %v2945_v52 = vmul.f32 %v2260_v13, %v2375_v2  ;;  %v3691_v54 = vld [vmem:[#allocation2_spill] sm:$0xff]  ;;  %v2963_v13 = vmul.f32 %v2113_v37, %v2404_v58 }
 0x226   :  { %3684 = vst [vmem:[#allocation8_spill] sm:$0xff] %v2915_v9  ;;  %3685 = vst [vmem:[#allocation50_spill] sm:$0xff] %v2923_v38  ;;  %1145 = vrot.lane.b32.xlu1 %v3687_v57, %s1678_s5  ;;  %v3693_v6 = vpack.c.bf16 %v3691_v54, %v3692_v44  ;;  %v2959_v57 = vmul.f32 %v3683_v0, %v2367_v35  ;;  %v2971_v54 = vmul.f32 %v2113_v37, %v2411_v19  ;;  %v3710_v38 = vld [vmem:[#allocation4_spill] sm:$0xff] }
 0x227   :  { %3686 = vst [vmem:[#allocation51_spill] sm:$0xff] %v2927_v29  ;;  %3688 = vst [vmem:[#allocation52_spill] sm:$0xff] %v2937_v48  ;;  %v2985_v29 = vmul.f32 %v3701_v31, %v2292_v51  ;;  %v2989_v44 = vmul.f32 %v3701_v31, %v2346_v33  ;;  %v3704_v37 = vpack.c.bf16 %v2578_v8, %v2571_v22  ;;  %v3727_v8 = vld [vmem:[#allocation18_spill] sm:$0xff] }
 0x228   :  { %3690 = vst [vmem:[#allocation54_spill] sm:$0xff] %v2945_v52  ;;  %1143 = vrot.lane.b32.xlu0 %v3693_v6, %s1678_s5  ;;  %3694 = vst [vmem:[#allocation2_spill] sm:$0xff] %v2955_v32  ;;  %v3698_v6 = vld [vmem:[#allocation11_spill] sm:$0xff]  ;;  %v3705_v32 = vld [vmem:[#allocation12_spill] sm:$0xff]  ;;  %v3711_v22 = vpack.c.bf16 %v2586_v61, %v3710_v38  ;;  %v3029_v61 = vmul.f32 %v3701_v31, %v2369_v53 }
 0x229   :  { %3695 = vst [vmem:[#allocation3_spill] sm:$0xff] %v2959_v57  ;;  %3696 = vst [vmem:[#allocation55_spill] sm:$0xff] %v2963_v13  ;;  %v2975_v16 = vmul.f32 %v3698_v6, %v2294_v50  ;;  %v2981_v9 = vmul.f32 %v3698_v6, %v2338_v62  ;;  %v2999_v57 = vmul.f32 %v3705_v32, %v2317_v12  ;;  %v3708_v52 = vld [vmem:[#allocation10_spill] sm:$0xff]  ;;  %v3713_v38 = vld [vmem:[#allocation9_spill] sm:$0xff] }
 0x22a   :  { %3697 = vst [vmem:[#allocation56_spill] sm:$0xff] %v2971_v54  ;;  %3702 = vst [vmem:[#allocation20_spill] sm:$0xff] %v2985_v29  ;;  %1149 = vrot.lane.b32.xlu1 %v3704_v37, %s1678_s5  ;;  %v3003_v15 = vmul.f32 %v3705_v32, %v2356_v39  ;;  %v3007_v48 = vmul.f32 %v3708_v52, %v2308_v1  ;;  %v3019_v0 = vmul.f32 %v3708_v52, %v2348_v34 }
 0x22b   :  { %3699 = vst [vmem:[#allocation11_spill] sm:$0xff] %v2975_v16  ;;  %3700 = vst [vmem:[#allocation57_spill] sm:$0xff] %v2981_v9  ;;  %v3023_v13 = vmul.f32 %v3701_v31, %v2323_v14  ;;  %v3037_v37 = vmul.f32 %v3713_v38, %v2336_v49  ;;  %v3043_v29 = vmul.f32 %v3708_v52, %v2329_v3  ;;  %v3721_v16 = vld [vmem:[#allocation25_spill] sm:$0xff]  ;;  %v3722_v9 = vld [vmem:[#allocation24_spill] sm:$0xff] }
 0x22c   :  { %3703 = vst [vmem:[#allocation58_spill] sm:$0xff] %v2989_v44  ;;  %3706 = vst [vmem:[#allocation12_spill] sm:$0xff] %v2999_v57  ;;  %1137 = vrot.lane.b32.xlu0 %v3711_v22, %s1678_s5  ;;  %v3033_v22 = vmul.f32 %v3713_v38, %v2290_v46  ;;  %v3047_v54 = vmul.f32 %v3708_v52, %v2377_v59  ;;  %v3051_v31 = vmul.f32 %v3698_v6, %v2325_v23  ;;  %v3717_v57 = vld [vmem:[#allocation23_spill] sm:$0xff] }
 0x22d   :  { %3707 = vst [vmem:[#allocation59_spill] sm:$0xff] %v3003_v15  ;;  %3709 = vst [vmem:[#allocation10_spill] sm:$0xff] %v3007_v48  ;;  %v3718_v15 = vld [vmem:[#allocation5_spill] sm:$0xff]  ;;  %v3067_v52 = vmul.f32 %v3713_v38, %v2320_v40  ;;  %v3723_v28 = vpack.c.bf16 %v3721_v16, %v3722_v9  ;;  %v3726_v48 = vld [vmem:[#allocation14_spill] sm:$0xff] }
 0x22e   :  { %3712 = vst [vmem:[#allocation4_spill] sm:$0xff] %v3019_v0  ;;  %3714 = vst [vmem:[#allocation9_spill] sm:$0xff] %v3043_v29  ;;  %v3719_v44 = vpack.c.bf16 %v3717_v57, %v3718_v15  ;;  %v3063_v0 = vmul.f32 %v3698_v6, %v2375_v2  ;;  %v3077_v57 = vmul.f32 %v3713_v38, %v2367_v35  ;;  %v3728_v16 = vld [vmem:[#allocation22_spill] sm:$0xff] }
 0x22f   :  { %3715 = vst [vmem:[#allocation60_spill] sm:$0xff] %v3047_v54  ;;  %3716 = vst [vmem:[#allocation61_spill] sm:$0xff] %v3051_v31  ;;  %v3085_v6 = vmul.f32 %v3705_v32, %v2411_v19  ;;  %v997_v9 = vsel %vm994_vm8, %v3727_v8, %v3726_v48  ;;  %v3094_v15 = vmul.f32 %v3728_v16, %v2294_v50  ;;  %v3729_v54 = vld [vmem:[#allocation21_spill] sm:$0xff]  ;;  %v3730_v50 = vld [vmem:[#allocation27_spill] sm:$0xff] }
 0x230   :  { %1153 = vrot.lane.b32.xlu1 %v3719_v44, %s1678_s5  ;;  %3720 = vst [vmem:[#allocation23_spill] sm:$0xff] %v3063_v0  ;;  %1151 = vrot.lane.b32.xlu0 %v3723_v28, %s1678_s5  ;;  %v3081_v44 = vmul.f32 %v3705_v32, %v2404_v58  ;;  %v3098_v38 = vmul.f32 %v3728_v16, %v2338_v62  ;;  %v3731_v31 = vld [vmem:[#allocation26_spill] sm:$0xff] }
 0x231   :  { %3725 = vst [vmem:[#allocation25_spill] sm:$0xff] %v3085_v6  ;;  %v3106_v8 = vmul.f32 %v3729_v54, %v2292_v51  ;;  %v3110_v28 = vmul.f32 %v3729_v54, %v2346_v33  ;;  %v3732_v0 = vpack.c.bf16 %v3730_v50, %v3731_v31  ;;  %v3120_v29 = vmul.f32 %v3726_v48, %v2317_v12  ;;  %v3733_v33 = vld [vmem:[#allocation29_spill] sm:$0xff] }
 0x232   :  { %3724 = vst [vmem:[#allocation5_spill] sm:$0xff] %v3081_v44  ;;  %v1025_v62 = vpack.c.bf16 %v3098_v38, %v3094_v15  ;;  %v3124_v51 = vmul.f32 %v3726_v48, %v2356_v39  ;;  %v3127_v32 = vmul.f32 %v997_v9, %v2308_v1  ;;  %v3734_v44 = vld [vmem:[#allocation28_spill] sm:$0xff]  ;;  %v3136_v31 = vmul.f32 %v997_v9, %v2348_v34 }
 0x233   :  { %v3735_v6 = vpack.c.bf16 %v3733_v33, %v3734_v44  ;;  %v3140_v12 = vmul.f32 %v3729_v54, %v2323_v14  ;;  %v3144_v39 = vmul.f32 %v3729_v54, %v2369_v53  ;;  %v3736_v44 = vld [vmem:[#allocation13_spill] sm:$0xff]  ;;  %v3157_v34 = vmul.f32 %v997_v9, %v2329_v3  ;;  %v3737_v33 = vld [vmem:[#allocation30_spill] sm:$0xff]  ;;  %v3741_v53 = vld [vmem:[#allocation15_spill] sm:$0xff] }
 0x234   :  { %1147 = vrot.lane.b32.xlu1 %v3732_v0, %s1678_s5  ;;  %v1024_v0 = vpack.c.bf16 %v3110_v28, %v3106_v8  ;;  %v3154_v50 = vmul.f32 %v3736_v44, %v2336_v49  ;;  %v3164_v54 = vmul.f32 %v997_v9, %v2377_v59  ;;  %v3738_v49 = vld [vmem:[#allocation16_spill] sm:$0xff]  ;;  %v3178_v14 = vmul.f32 %v3728_v16, %v2375_v2  ;;  %v3740_v9 = vld [vmem:[#allocation31_spill] sm:$0xff] }
 0x235   :  { %1155 = vrot.lane.b32.xlu0 %v3735_v6, %s1678_s5  ;;  %v3150_v6 = vmul.f32 %v3736_v44, %v2290_v46  ;;  %v3168_v46 = vmul.f32 %v3728_v16, %v2325_v23  ;;  %v3739_v1 = vpack.c.bf16 %v3737_v33, %v3738_v49  ;;  %v3182_v59 = vmul.f32 %v3736_v44, %v2320_v40 }
 0x236   :  { %v3186_v23 = vmul.f32 %v3736_v44, %v2367_v35  ;;  %v3742_v33 = vpack.c.bf16 %v3740_v9, %v3741_v53  ;;  %v3196_v2 = vmul.f32 %v3726_v48, %v2404_v58  ;;  %v3200_v40 = vmul.f32 %v3726_v48, %v2411_v19  ;;  %v3746_v48 = vld [vmem:[#allocation6_spill] sm:$0xff]  ;;  %v3752_v9 = vld [vmem:[#allocation33_spill] sm:$0xff] }
 0x237   :  { %v1023_v3 = vpack.c.bf16 %v3154_v50, %v3150_v6  ;;  %v1030_v35 = vpack.c.bf16 %v3178_v14, %v3168_v46  ;;  %v3743_v53 = vpack.c.bf16 %v2661_v45, %v2655_v63  ;;  %v3744_v58 = vpack.c.bf16 %v2669_v36, %v2665_v60  ;;  %v3749_v45 = vld [vmem:[#allocation32_spill] sm:$0xff]  ;;  %v3751_v36 = vld [vmem:[#allocation34_spill] sm:$0xff] }
 0x238   :  { %1188 = vrot.lane.b32.xlu1 %v3739_v1, %s1667_s25  ;;  %v1031_v1 = vpack.c.bf16 %v3164_v54, %v3157_v34  ;;  %v1028_v16 = vpack.c.bf16 %v3186_v23, %v3182_v59  ;;  %v1032_v44 = vpack.c.bf16 %v3200_v40, %v3196_v2  ;;  %v3745_v19 = vpack.c.bf16 %v2679_v5, %v2675_v7  ;;  %v3754_v7 = vld [vmem:[#allocation35_spill] sm:$0xff]  ;;  %v1418_v54 = vld [vmem:[%s3501_s3] sm:$0xff] }
 0x239   :  { %1186 = vrot.lane.b32.xlu0 %v3742_v33, %s1667_s25  ;;  %v3747_v49 = vpack.c.bf16 %v2695_v43, %v3746_v48  ;;  %v3748_v63 = vpack.c.bf16 %v2709_v25, %v2699_v24  ;;  %v3750_v60 = vpack.c.bf16 %v2717_v27, %v3749_v45  ;;  %v3753_v5 = vpack.c.bf16 %v3751_v36, %v3752_v9  ;;  %v3756_v33 = vld [vmem:[#allocation36_spill] sm:$0xff]  ;;  %v3758_v25 = vld [vmem:[#allocation17_spill] sm:$0xff]  ;;  %v3760_v27 = vld [vmem:[#allocation38_spill] sm:$0xff] }
 0x23a   :  { %v3755_v43 = vpack.c.bf16 %v2739_v17, %v3754_v7  ;;  %v3757_v24 = vpack.c.bf16 %v2753_v21, %v3756_v33  ;;  %v3763_v48 = vld [vmem:[#allocation39_spill] sm:$0xff]  ;;  %v3765_v17 = vpack.c.bf16 %v2797_v30, %v2791_v20  ;;  %v3766_v21 = vpack.c.bf16 %v2805_v11, %v2801_v18  ;;  %v3769_v45 = vld [vmem:[#allocation41_spill] sm:$0xff]  ;;  %v3773_v9 = vld [vmem:[#allocation42_spill] sm:$0xff] }
 0x23b   :  { %v3774_v30 = vpack.c.bf16 %v2853_v4, %v3773_v9  ;;  %v3775_v20 = vld [vmem:[#allocation44_spill] sm:$0xff]  ;;  %v3776_v18 = vld [vmem:[#allocation43_spill] sm:$0xff]  ;;  %v3786_v4 = vld [vmem:[#allocation49_spill] sm:$0xff]  ;;  %v3828_v38 = vpack.c.bf16 %v3136_v31, %v3127_v32  ;;  %v3829_v8 = vpack.c.bf16 %v3144_v39, %v3140_v12 }
 0x23c   :  { %1192 = vrot.lane.b32.xlu1 %v3743_v53, %s1667_s25  ;;  %v3759_v53 = vpack.c.bf16 %v2761_v47, %v3758_v25  ;;  %v3777_v11 = vpack.c.bf16 %v3775_v20, %v3776_v18  ;;  %v3787_v25 = vpack.c.bf16 %v2911_v41, %v3786_v4  ;;  %v3801_v9 = vld [vmem:[#allocation55_spill] sm:$0xff] }
 0x23d   :  { %1190 = vrot.lane.b32.xlu0 %v3744_v58, %s1667_s25  ;;  %v3761_v58 = vld [vmem:[#allocation37_spill] sm:$0xff]  ;;  %v1419_v34 = vld [vmem:[%s3501_s3 + $0x8] sm:$0xf] }
 0x240   :  { %1196 = vrot.lane.b32.xlu1 %v3745_v19, %s1667_s25  ;;  %v3762_v19 = vpack.c.bf16 %v3760_v27, %v3761_v58  ;;  %v3789_v27 = vld [vmem:[#allocation8_spill] sm:$0xff] }
 0x241   :  { %1184 = vrot.lane.b32.xlu0 %v3747_v49, %s1667_s25  ;;  %v3764_v49 = vpack.c.bf16 %v2787_v55, %v3763_v48  ;;  %v3772_v55 = vpack.c.bf16 %v2845_v56, %v2839_v42  ;;  %v3784_v42 = vld [vmem:[#allocation19_spill] sm:$0xff] }
 0x242   :  { %v3792_v48 = vld [vmem:[#allocation51_spill] sm:$0xff] }
 0x244   :  { %1200 = vrot.lane.b32.xlu1 %v3748_v63, %s1667_s25  ;;  %v3767_v63 = vld [vmem:[#allocation7_spill] sm:$0xff] }
 0x245   :  { %1198 = vrot.lane.b32.xlu0 %v3750_v60, %s1667_s25  ;;  %v3768_v47 = vpack.c.bf16 %v2819_v10, %v3767_v63  ;;  %v3770_v60 = vld [vmem:[#allocation40_spill] sm:$0xff]  ;;  %v3779_v10 = vld [vmem:[#allocation45_spill] sm:$0xff] }
 0x246   :  { %v3771_v36 = vpack.c.bf16 %v3769_v45, %v3770_v60  ;;  %v3797_v45 = vld [vmem:[#allocation3_spill] sm:$0xff]  ;;  %v3798_v60 = vld [vmem:[#allocation2_spill] sm:$0xff] }
 0x248   :  { %1194 = vrot.lane.b32.xlu1 %v3753_v5, %s1667_s25  ;;  %v3778_v5 = vld [vmem:[#allocation46_spill] sm:$0xff] }
 0x249   :  { %1202 = vrot.lane.b32.xlu0 %v3755_v43, %s1667_s25  ;;  %s1680_s25 = smov 96   ;;  %v3780_v7 = vpack.c.bf16 %v3778_v5, %v3779_v10  ;;  %v3781_v43 = vld [vmem:[#allocation47_spill] sm:$0xff] }
 0x24a   :  { %v3782_v33 = vpack.c.bf16 %v2893_v26, %v3781_v43  ;;  %v3804_v5 = vld [vmem:[#allocation11_spill] sm:$0xff] }
 0x24c   :  { %1235 = vrot.lane.b32.xlu1 %v3757_v24, %s1679_s30  ;;  %v3783_v24 = vld [vmem:[#allocation48_spill] sm:$0xff] }
 0x24d   :  { %1233 = vrot.lane.b32.xlu0 %v3759_v53, %s1679_s30  ;;  %v3785_v56 = vpack.c.bf16 %v3783_v24, %v3784_v42  ;;  %v3788_v53 = vld [vmem:[#allocation50_spill] sm:$0xff]  ;;  %v3807_v24 = vld [vmem:[#allocation20_spill] sm:$0xff] }
 0x24e   :  { %v3790_v58 = vpack.c.bf16 %v3788_v53, %v3789_v27  ;;  %v3810_v53 = vld [vmem:[#allocation12_spill] sm:$0xff] }
 0x250   :  { %1239 = vrot.lane.b32.xlu1 %v3762_v19, %s1679_s30  ;;  %v3791_v19 = vld [vmem:[#allocation52_spill] sm:$0xff] }
 0x251   :  { %1237 = vrot.lane.b32.xlu0 %v3764_v49, %s1679_s30  ;;  %v3793_v49 = vpack.c.bf16 %v3791_v19, %v3792_v48  ;;  %v3812_v19 = vld [vmem:[#allocation4_spill] sm:$0xff]  ;;  %v3813_v48 = vld [vmem:[#allocation10_spill] sm:$0xff] }
 0x254   :  { %1243 = vrot.lane.b32.xlu1 %v3765_v17, %s1679_s30  ;;  %v3794_v17 = vld [vmem:[#allocation54_spill] sm:$0xff] }
 0x255   :  { %1231 = vrot.lane.b32.xlu0 %v3766_v21, %s1679_s30  ;;  %v3795_v21 = vld [vmem:[#allocation53_spill] sm:$0xff] }
 0x256   :  { %v3796_v26 = vpack.c.bf16 %v3794_v17, %v3795_v21 }
 0x258   :  { %1247 = vrot.lane.b32.xlu1 %v3768_v47, %s1679_s30 }
 0x259   :  { %1245 = vrot.lane.b32.xlu0 %v3771_v36, %s1679_s30  ;;  %v3799_v36 = vpack.c.bf16 %v3797_v45, %v3798_v60  ;;  %v3816_v45 = vpack.c.bf16 %v3037_v37, %v3033_v22  ;;  %v1410_v22 = vld [vmem:[%s3500_s2 + $0x8] sm:$0xff] }
 0x25c   :  { %1241 = vrot.lane.b32.xlu1 %v3772_v55, %s1679_s30  ;;  %v3800_v55 = vld [vmem:[#allocation56_spill] sm:$0xff] }
 0x25d   :  { %1249 = vrot.lane.b32.xlu0 %v3774_v30, %s1679_s30  ;;  %v3802_v30 = vpack.c.bf16 %v3800_v55, %v3801_v9  ;;  %v3818_v55 = vld [vmem:[#allocation9_spill] sm:$0xff] }
 0x260   :  { %1282 = vrot.lane.b32.xlu1 %v3777_v11, %s1680_s25  ;;  %v3803_v11 = vld [vmem:[#allocation57_spill] sm:$0xff] }
 0x261   :  { %1280 = vrot.lane.b32.xlu0 %v3780_v7, %s1680_s25  ;;  %v3805_v10 = vpack.c.bf16 %v3803_v11, %v3804_v5 }
 0x264   :  { %1286 = vrot.lane.b32.xlu1 %v3782_v33, %s1680_s25  ;;  %v3806_v33 = vld [vmem:[#allocation58_spill] sm:$0xff] }
 0x265   :  { %1284 = vrot.lane.b32.xlu0 %v3785_v56, %s1680_s25  ;;  %v3808_v42 = vpack.c.bf16 %v3806_v33, %v3807_v24  ;;  %v3824_v33 = vld [vmem:[#allocation25_spill] sm:$0xff] }
 0x266   :  { %v3825_v24 = vld [vmem:[#allocation5_spill] sm:$0xff] }
 0x268   :  { %1290 = vrot.lane.b32.xlu1 %v3787_v25, %s1680_s25  ;;  %v3809_v25 = vld [vmem:[#allocation59_spill] sm:$0xff] }
 0x269   :  { %1278 = vrot.lane.b32.xlu0 %v3790_v58, %s1680_s25  ;;  %v3811_v27 = vpack.c.bf16 %v3809_v25, %v3810_v53 }
 0x26a   :  { %v1048_v63 = vpop.permute.xlu1 %1047 }
 0x26c   :  { %1294 = vrot.lane.b32.xlu1 %v3793_v49, %s1680_s25  ;;  %v3814_v49 = vpack.c.bf16 %v3812_v19, %v3813_v48 }
 0x26d   :  { %1292 = vrot.lane.b32.xlu0 %v3796_v26, %s1680_s25  ;;  %v1046_v47 = vpop.permute.xlu0 %1045  ;;  %v3815_v26 = vpack.c.bf16 %v3029_v61, %v3023_v13  ;;  %v3820_v61 = vld [vmem:[#allocation23_spill] sm:$0xff] }
 0x26e   :  { %v1065_v41 = vsel %vm1063_vm9, %v1046_v47, %v1048_v63 }
 0x26f   :  { %1437 = vmatprep.subr.bf16.mxu0 %v1065_v41  ;;  %v1052_v20 = vpop.permute.xlu1 %1051  ;;  %v3817_v41 = vld [vmem:[#allocation60_spill] sm:$0xff] }
 0x270   :  { %1288 = vrot.lane.b32.xlu1 %v3799_v36, %s1680_s25  ;;  %v3819_v9 = vpack.c.bf16 %v3817_v41, %v3818_v55 }
 0x271   :  { %1296 = vrot.lane.b32.xlu0 %v3802_v30, %s1680_s25  ;;  %v1050_v18 = vpop.permute.xlu0 %1049  ;;  %v3821_v30 = vld [vmem:[#allocation61_spill] sm:$0xff] }
 0x272   :  { %v1067_v7 = vsel %vm1063_vm9, %v1050_v18, %v1052_v20  ;;  %v1066_v43 = vsel %vm1063_vm9, %v1048_v63, %v1050_v18  ;;  %v3822_v20 = vpack.c.bf16 %v3820_v61, %v3821_v30  ;;  %v1413_v18 = vld [vmem:[%s3500_s2 + $0x20] sm:$0xf] }
 0x273   :  { %1523 = vmatprep.subr.bf16.mxu1 %v1067_v7  ;;  %v1416_v5 = vpack.c.bf16 %v1413_v18, %v1410_v22  ;;  %v3823_v7 = vpack.c.bf16 %v3077_v57, %v3067_v52 }
 0x274   :  { %1329 = vrot.lane.b32.xlu1 %v3805_v10, %s1681_s7  ;;  %1524 = vmatpush1.bf16.msra.mxu1 %v1066_v43  ;;  %v1056_v56 = vpop.permute.xlu1 %1055 }
 0x275   :  { %1327 = vrot.lane.b32.xlu0 %v3808_v42, %s1681_s7  ;;  %v1044_v4 = vpop.permute.xlu0 %1043  ;;  %1551 = vmatprep.mubr.bf16.mxu1 %v1416_v5  ;;  %v3826_v42 = vpack.c.bf16 %v3824_v33, %v3825_v24 }
 0x276   :  { %v1064_v58 = vsel %vm1063_vm9, %v1044_v4, %v1046_v47  ;;  %1465 = vmatprep.mubr.bf16.mxu0 %v1416_v5 }
 0x277   :  { %1438 = vmatpush1.bf16.msra.mxu0 %v1064_v58 }
 0x278   :  { %1333 = vrot.lane.b32.xlu1 %v3811_v27, %s1681_s7  ;;  %v1060_v17 = vpop.permute.xlu1 %1059  ;;  %v3827_v27 = vpack.c.bf16 %v3124_v51, %v3120_v29 }
 0x279   :  { %1331 = vrot.lane.b32.xlu0 %v3814_v49, %s1681_s7  ;;  %v1058_v21 = vpop.permute.xlu0 %1057 }
 0x27a   :  { %v1069_v63 = vsel %vm1063_vm9, %v1056_v56, %v1058_v21  ;;  %v1070_v37 = vsel %vm1063_vm9, %v1058_v21, %v1060_v17 }
 0x27b   :  { %1439 = vmatprep.subr.bf16.mxu0 %v1069_v63 }
 0x27c   :  { %1337 = vrot.lane.b32.xlu1 %v3815_v26, %s1681_s7  ;;  %v1054_v47 = vpop.permute.xlu1 %1053 }
 0x27d   :  { %1325 = vrot.lane.b32.xlu0 %v3816_v45, %s1681_s7  ;;  %v1062_v60 = vpop.permute.xlu0 %1061  ;;  %v1068_v36 = vsel %vm1063_vm9, %v1054_v47, %v1056_v56 }
 0x27e   :  { %1440 = vmatpush1.bf16.msra.mxu0 %v1068_v36  ;;  %v1071_v13 = vsel %vm1063_vm9, %v1060_v17, %v1062_v60 }
 0x27f   :  { %1525 = vmatprep.subr.bf16.mxu1 %v1071_v13 }
 0x280   :  { %1341 = vrot.lane.b32.xlu1 %v3819_v9, %s1681_s7  ;;  %1526 = vmatpush1.bf16.msra.mxu1 %v1070_v37  ;;  %v1095_v11 = vpop.permute.xlu1 %1094 }
 0x281   :  { %1339 = vrot.lane.b32.xlu0 %v3822_v20, %s1681_s7  ;;  %v1093_v10 = vpop.permute.xlu0 %1092 }
 0x282   :  { %v1112_v43 = vsel %vm1110_vm10, %v1093_v10, %v1095_v11 }
 0x283   :  { %1441 = vmatprep.subr.bf16.mxu0 %v1112_v43 }
 0x284   :  { %1335 = vrot.lane.b32.xlu1 %v3823_v7, %s1681_s7  ;;  %v1099_v56 = vpop.permute.xlu1 %1098 }
 0x285   :  { %1343 = vrot.lane.b32.xlu0 %v3826_v42, %s1681_s7  ;;  %v1097_v4 = vpop.permute.xlu0 %1096 }
 0x286   :  { %v1114_v52 = vsel %vm1110_vm10, %v1097_v4, %v1099_v56  ;;  %v1113_v57 = vsel %vm1110_vm10, %v1095_v11, %v1097_v4 }
 0x287   :  { %1527 = vmatprep.subr.bf16.mxu1 %v1114_v52 }
 0x288   :  { %1376 = vrot.lane.b32.xlu1 %v1025_v62, %s1682_s12  ;;  %1528 = vmatpush1.bf16.msra.mxu1 %v1113_v57  ;;  %v1103_v25 = vpop.permute.xlu1 %1102 }
 0x289   :  { %1374 = vrot.lane.b32.xlu0 %v1024_v0, %s1682_s12  ;;  %v1091_v53 = vpop.permute.xlu0 %1090 }
 0x28a   :  { %v1111_v15 = vsel %vm1110_vm10, %v1091_v53, %v1093_v10 }
 0x28b   :  { %1442 = vmatpush1.bf16.msra.mxu0 %v1111_v15 }
 0x28c   :  { %1380 = vrot.lane.b32.xlu1 %v3827_v27, %s1682_s12  ;;  %v1107_v62 = vpop.permute.xlu1 %1106 }
 0x28d   :  { %1378 = vrot.lane.b32.xlu0 %v3828_v38, %s1682_s12  ;;  %v1105_v28 = vpop.permute.xlu0 %1104 }
 0x28e   :  { %v1116_v0 = vsel %vm1110_vm10, %v1103_v25, %v1105_v28  ;;  %v1117_v12 = vsel %vm1110_vm10, %v1105_v28, %v1107_v62 }
 0x28f   :  { %1443 = vmatprep.subr.bf16.mxu0 %v1116_v0 }
 0x290   :  { %1384 = vrot.lane.b32.xlu1 %v3829_v8, %s1682_s12  ;;  %v1101_v29 = vpop.permute.xlu1 %1100 }
 0x291   :  { %1372 = vrot.lane.b32.xlu0 %v1023_v3, %s1682_s12  ;;  %v1109_v51 = vpop.permute.xlu0 %1108  ;;  %v1115_v32 = vsel %vm1110_vm10, %v1101_v29, %v1103_v25 }
 0x292   :  { %1444 = vmatpush1.bf16.msra.mxu0 %v1115_v32  ;;  %v1118_v31 = vsel %vm1110_vm10, %v1107_v62, %v1109_v51 }
 0x293   :  { %1529 = vmatprep.subr.bf16.mxu1 %v1118_v31 }
 0x294   :  { %1388 = vrot.lane.b32.xlu1 %v1031_v1, %s1682_s12  ;;  %1530 = vmatpush1.bf16.msra.mxu1 %v1117_v12  ;;  %v1142_v39 = vpop.permute.xlu1 %1141 }
 0x295   :  { %1386 = vrot.lane.b32.xlu0 %v1030_v35, %s1682_s12  ;;  %v1140_v6 = vpop.permute.xlu0 %1139 }
 0x296   :  { %v1159_v50 = vsel %vm1157_vm11, %v1140_v6, %v1142_v39 }
 0x297   :  { %1445 = vmatprep.subr.bf16.mxu0 %v1159_v50 }
 0x298   :  { %1382 = vrot.lane.b32.xlu1 %v1028_v16, %s1682_s12  ;;  %v1146_v14 = vpop.permute.xlu1 %1145 }
 0x299   :  { %1390 = vrot.lane.b32.xlu0 %v1032_v44, %s1682_s12 }
 0x29a   :  { %v1144_v46 = vpop.permute.xlu0 %1143 }
 0x29b   :  { %v1161_v3 = vsel %vm1157_vm11, %v1144_v46, %v1146_v14  ;;  %v1160_v59 = vsel %vm1157_vm11, %v1142_v39, %v1144_v46 }
 0x29c   :  { %1427 = vperm.xlu1 %1656, %v1419_v34   ;;  %1531 = vmatprep.subr.bf16.mxu1 %v1161_v3  ;;  %v1150_v23 = vpop.permute.xlu1 %1149 }
 0x29d   :  { %1422 = vperm.xlu0 %1657, %v1418_v54   ;;  %1532 = vmatpush1.bf16.msra.mxu1 %v1160_v59 }
 0x29e   :  { %v1138_v1 = vpop.permute.xlu0 %1137 }
 0x29f   :  { %v1158_v2 = vsel %vm1157_vm11, %v1138_v1, %v1140_v6 }
 0x2a0   :  { %1446 = vmatpush1.bf16.msra.mxu0 %v1158_v2 }
 0x2a2   :  { %v1154_v40 = vpop.permute.xlu1 %1153  ;;  %v1152_v35 = vpop.permute.xlu0 %1151 }
 0x2a3   :  { %v1163_v16 = vsel %vm1157_vm11, %v1150_v23, %v1152_v35  ;;  %v1164_v49 = vsel %vm1157_vm11, %v1152_v35, %v1154_v40 }
 0x2a4   :  { %1447 = vmatprep.subr.bf16.mxu0 %v1163_v16 }
 0x2a6   :  { %v1148_v44 = vpop.permute.xlu1 %1147 }
 0x2a7   :  { %v1156_v58 = vpop.permute.xlu0 %1155  ;;  %v1162_v19 = vsel %vm1157_vm11, %v1148_v44, %v1150_v23 }
 0x2a8   :  { %1448 = vmatpush1.bf16.msra.mxu0 %v1162_v19  ;;  %v1165_v48 = vsel %vm1157_vm11, %v1154_v40, %v1156_v58 }
 0x2a9   :  { %1533 = vmatprep.subr.bf16.mxu1 %v1165_v48 }
 0x2aa   :  { %1534 = vmatpush1.bf16.msra.mxu1 %v1164_v49  ;;  %v1189_v17 = vpop.permute.xlu1 %1188 }
 0x2ab   :  { %v1187_v21 = vpop.permute.xlu0 %1186 }
 0x2ac   :  { %v1206_v26 = vsel %vm112_vm0, %v1187_v21, %v1189_v17 }
 0x2ad   :  { %1449 = vmatprep.subr.bf16.mxu0 %v1206_v26 }
 0x2ae   :  { %v1193_v63 = vpop.permute.xlu1 %1192 }
 0x2af   :  { %v1191_v45 = vpop.permute.xlu0 %1190 }
 0x2b0   :  { %v1208_v47 = vsel %vm112_vm0, %v1191_v45, %v1193_v63  ;;  %v1207_v60 = vsel %vm112_vm0, %v1189_v17, %v1191_v45  ;;  %v1409_v45 = vld [vmem:[%s3500_s2] sm:$0xff] }
 0x2b1   :  { %1535 = vmatprep.subr.bf16.mxu1 %v1208_v47  ;;  %v1412_v47 = vld [vmem:[%s3500_s2 + $0x18] sm:$0xf] }
 0x2b2   :  { %1536 = vmatpush1.bf16.msra.mxu1 %v1207_v60  ;;  %v1197_v36 = vpop.permute.xlu1 %1196 }
 0x2b3   :  { %v1185_v41 = vpop.permute.xlu0 %1184 }
 0x2b4   :  { %v1205_v55 = vsel %vm112_vm0, %v1185_v41, %v1187_v21 }
 0x2b5   :  { %1450 = vmatpush1.bf16.msra.mxu0 %v1205_v55 }
 0x2b6   :  { %v1201_v9 = vpop.permute.xlu1 %1200 }
 0x2b7   :  { %v1199_v13 = vpop.permute.xlu0 %1198 }
 0x2b8   :  { %v1210_v61 = vsel %vm112_vm0, %v1197_v36, %v1199_v13  ;;  %v1211_v18 = vsel %vm112_vm0, %v1199_v13, %v1201_v9 }
 0x2b9   :  { %1451 = vmatprep.subr.bf16.mxu0 %v1210_v61 }
 0x2ba   :  { %v1195_v30 = vpop.permute.xlu1 %1194 }
 0x2bb   :  { %v1203_v20 = vpop.permute.xlu0 %1202  ;;  %v1209_v37 = vsel %vm112_vm0, %v1195_v30, %v1197_v36 }
 0x2bc   :  { %1452 = vmatpush1.bf16.msra.mxu0 %v1209_v37  ;;  %v1212_v22 = vsel %vm112_vm0, %v1201_v9, %v1203_v20  ;;  %v1415_v9 = vpack.c.bf16 %v1412_v47, %v1409_v45  ;;  %v3830_v20 = vmov 0  }
 0x2bd   :  { %1537 = vmatprep.subr.bf16.mxu1 %v1212_v22 }
 0x2be   :  { %1538 = vmatpush1.bf16.msra.mxu1 %v1211_v18  ;;  %v1236_v11 = vpop.permute.xlu1 %1235 }
 0x2bf   :  { %v1234_v5 = vpop.permute.xlu0 %1233 }
 0x2c0   :  { %v1253_v10 = vsel %vm1251_vm12, %v1234_v5, %v1236_v11 }
 0x2c1   :  { %1453 = vmatprep.subr.bf16.mxu0 %v1253_v10 }
 0x2c2   :  { %v1240_v7 = vpop.permute.xlu1 %1239 }
 0x2c3   :  { %v1238_v43 = vpop.permute.xlu0 %1237 }
 0x2c4   :  { %v1255_v33 = vsel %vm1251_vm12, %v1238_v43, %v1240_v7  ;;  %v1254_v24 = vsel %vm1251_vm12, %v1236_v11, %v1238_v43 }
 0x2c5   :  { %1539 = vmatprep.subr.bf16.mxu1 %v1255_v33 }
 0x2c6   :  { %1540 = vmatpush1.bf16.msra.mxu1 %v1254_v24  ;;  %v1244_v42 = vpop.permute.xlu1 %1243 }
 0x2c7   :  { %v1232_v56 = vpop.permute.xlu0 %1231 }
 0x2c8   :  { %v1252_v4 = vsel %vm1251_vm12, %v1232_v56, %v1234_v5  ;;  %v1414_v56 = vld [vmem:[%s3500_s2 + $0x28] sm:$0xf] }
 0x2c9   :  { %1454 = vmatpush1.bf16.msra.mxu0 %v1252_v4 }
 0x2ca   :  { %v1248_v52 = vpop.permute.xlu1 %1247 }
 0x2cb   :  { %v1246_v57 = vpop.permute.xlu0 %1245 }
 0x2cc   :  { %v1257_v25 = vsel %vm1251_vm12, %v1244_v42, %v1246_v57  ;;  %v1258_v62 = vsel %vm1251_vm12, %v1246_v57, %v1248_v52 }
 0x2cd   :  { %1455 = vmatprep.subr.bf16.mxu0 %v1257_v25 }
 0x2ce   :  { %v1242_v53 = vpop.permute.xlu1 %1241 }
 0x2cf   :  { %v1250_v27 = vpop.permute.xlu0 %1249  ;;  %v1256_v15 = vsel %vm1251_vm12, %v1242_v53, %v1244_v42  ;;  %v1411_v42 = vld [vmem:[%s3500_s2 + $0x10] sm:$0xff] }
 0x2d0   :  { %1456 = vmatpush1.bf16.msra.mxu0 %v1256_v15  ;;  %v1259_v38 = vsel %vm1251_vm12, %v1248_v52, %v1250_v27  ;;  %v1417_v25 = vpack.c.bf16 %v1414_v56, %v1411_v42 }
 0x2d1   :  { %1541 = vmatprep.subr.bf16.mxu1 %v1259_v38 }
 0x2d2   :  { %1542 = vmatpush1.bf16.msra.mxu1 %v1258_v62  ;;  %v1283_v28 = vpop.permute.xlu1 %1282 }
 0x2d3   :  { %v1281_v8 = vpop.permute.xlu0 %1280 }
 0x2d4   :  { %v1300_v0 = vsel %vm1298_vm13, %v1281_v8, %v1283_v28 }
 0x2d5   :  { %1457 = vmatprep.subr.bf16.mxu0 %v1300_v0 }
 0x2d6   :  { %v1287_v29 = vpop.permute.xlu1 %1286 }
 0x2d7   :  { %v1285_v51 = vpop.permute.xlu0 %1284 }
 0x2d8   :  { %v1302_v32 = vsel %vm1298_vm13, %v1285_v51, %v1287_v29  ;;  %v1301_v31 = vsel %vm1298_vm13, %v1283_v28, %v1285_v51 }
 0x2d9   :  { %1543 = vmatprep.subr.bf16.mxu1 %v1302_v32 }
 0x2da   :  { %1544 = vmatpush1.bf16.msra.mxu1 %v1301_v31  ;;  %v1291_v12 = vpop.permute.xlu1 %1290 }
 0x2db   :  { %v1279_v39 = vpop.permute.xlu0 %1278 }
 0x2dc   :  { %v1299_v6 = vsel %vm1298_vm13, %v1279_v39, %v1281_v8 }
 0x2dd   :  { %1458 = vmatpush1.bf16.msra.mxu0 %v1299_v6 }
 0x2de   :  { %v1295_v50 = vpop.permute.xlu1 %1294 }
 0x2df   :  { %v1293_v34 = vpop.permute.xlu0 %1292 }
 0x2e0   :  { %v1304_v14 = vsel %vm1298_vm13, %v1291_v12, %v1293_v34  ;;  %v1305_v23 = vsel %vm1298_vm13, %v1293_v34, %v1295_v50 }
 0x2e1   :  { %1459 = vmatprep.subr.bf16.mxu0 %v1304_v14 }
 0x2e2   :  { %v1289_v54 = vpop.permute.xlu1 %1288 }
 0x2e3   :  { %v1297_v46 = vpop.permute.xlu0 %1296  ;;  %v1303_v3 = vsel %vm1298_vm13, %v1289_v54, %v1291_v12 }
 0x2e4   :  { %1460 = vmatpush1.bf16.msra.mxu0 %v1303_v3  ;;  %v1306_v59 = vsel %vm1298_vm13, %v1295_v50, %v1297_v46 }
 0x2e5   :  { %1545 = vmatprep.subr.bf16.mxu1 %v1306_v59 }
 0x2e6   :  { %1546 = vmatpush1.bf16.msra.mxu1 %v1305_v23  ;;  %v1330_v1 = vpop.permute.xlu1 %1329 }
 0x2e7   :  { %v1328_v2 = vpop.permute.xlu0 %1327 }
 0x2e8   :  { %v1347_v40 = vsel %vm1345_vm14, %v1328_v2, %v1330_v1 }
 0x2e9   :  { %1461 = vmatprep.subr.bf16.mxu0 %v1347_v40 }
 0x2ea   :  { %v1334_v35 = vpop.permute.xlu1 %1333 }
 0x2eb   :  { %v1332_v16 = vpop.permute.xlu0 %1331 }
 0x2ec   :  { %v1349_v44 = vsel %vm1345_vm14, %v1332_v16, %v1334_v35  ;;  %v1348_v58 = vsel %vm1345_vm14, %v1330_v1, %v1332_v16 }
 0x2ed   :  { %1547 = vmatprep.subr.bf16.mxu1 %v1349_v44 }
 0x2ee   :  { %1548 = vmatpush1.bf16.msra.mxu1 %v1348_v58  ;;  %v1338_v19 = vpop.permute.xlu1 %1337 }
 0x2ef   :  { %v1326_v48 = vpop.permute.xlu0 %1325 }
 0x2f0   :  { %v1346_v49 = vsel %vm1345_vm14, %v1326_v48, %v1328_v2 }
 0x2f1   :  { %1462 = vmatpush1.bf16.msra.mxu0 %v1346_v49 }
 0x2f2   :  { %v1342_v17 = vpop.permute.xlu1 %1341 }
 0x2f3   :  { %v1340_v21 = vpop.permute.xlu0 %1339 }
 0x2f4   :  { %v1351_v26 = vsel %vm1345_vm14, %v1338_v19, %v1340_v21  ;;  %v1352_v55 = vsel %vm1345_vm14, %v1340_v21, %v1342_v17 }
 0x2f5   :  { %1463 = vmatprep.subr.bf16.mxu0 %v1351_v26 }
 0x2f6   :  { %v1336_v63 = vpop.permute.xlu1 %1335 }
 0x2f7   :  { %v1344_v60 = vpop.permute.xlu0 %1343  ;;  %v1350_v36 = vsel %vm1345_vm14, %v1336_v63, %v1338_v19 }
 0x2f8   :  { %1464 = vmatpush1.bf16.msra.mxu0 %v1350_v36  ;;  %v1353_v41 = vsel %vm1345_vm14, %v1342_v17, %v1344_v60 }
 0x2f9   :  { %1549 = vmatprep.subr.bf16.mxu1 %v1353_v41 }
 0x2fa   :  { %1550 = vmatpush1.bf16.msra.mxu1 %v1352_v55  ;;  %v1377_v13 = vpop.permute.xlu1 %1376 }
 0x2fb   :  { %v1375_v61 = vpop.permute.xlu0 %1374  ;;  %1466 = vmatmul.mubr.bf16.vlgmr.msra.gmra.mrb[0].mxu0 %v1415_v9 }
 0x2fc   :  { %v1394_v30 = vsel %vm1392_vm15, %v1375_v61, %v1377_v13  ;;  %1508 = vmatprep.mubr.bf16.mxu0 %v3830_v20 }
 0x2fd   :  { %1476 = vmatprep.subr.bf16.mxu0 %v1394_v30  ;;  %1552 = vmatmul.mubr.bf16.vlgmr.msra.gmra.mrb[0].mxu1 %v1415_v9 }
 0x2fe   :  { %v1381_v37 = vpop.permute.xlu1 %1380  ;;  %1594 = vmatprep.mubr.bf16.mxu1 %v3830_v20 }
 0x2ff   :  { %v1379_v22 = vpop.permute.xlu0 %1378 }
 0x300   :  { %v1395_v18 = vsel %vm1392_vm15, %v1377_v13, %v1379_v22  ;;  %v1396_v11 = vsel %vm1392_vm15, %v1379_v22, %v1381_v37 }
 0x301   :  { %1562 = vmatprep.subr.bf16.mxu1 %v1396_v11 }
 0x302   :  { %1563 = vmatpush1.bf16.msra.mxu1 %v1395_v18  ;;  %v1385_v5 = vpop.permute.xlu1 %1384 }
 0x303   :  { %v1373_v10 = vpop.permute.xlu0 %1372 }
 0x304   :  { %v1393_v7 = vsel %vm1392_vm15, %v1373_v10, %v1375_v61 }
 0x305   :  { %1477 = vmatpush1.bf16.msra.mxu0 %v1393_v7 }
 0x306   :  { %v1389_v43 = vpop.permute.xlu1 %1388 }
 0x307   :  { %v1387_v33 = vpop.permute.xlu0 %1386 }
 0x308   :  { %v1398_v24 = vsel %vm1392_vm15, %v1385_v5, %v1387_v33  ;;  %v1399_v27 = vsel %vm1392_vm15, %v1387_v33, %v1389_v43 }
 0x309   :  { %1478 = vmatprep.subr.bf16.mxu0 %v1398_v24 }
 0x30a   :  { %v1383_v4 = vpop.permute.xlu1 %1382 }
 0x30b   :  { %v1397_v52 = vsel %vm1392_vm15, %v1383_v4, %v1385_v5  ;;  %v1391_v57 = vpop.permute.xlu0 %1390 }
 0x30c   :  { %1479 = vmatpush1.bf16.msra.mxu0 %v1397_v52  ;;  %v1400_v53 = vsel %vm1392_vm15, %v1389_v43, %v1391_v57 }
 0x30d   :  { %1564 = vmatprep.subr.bf16.mxu1 %v1400_v53 }
 0x30e   :  { %1565 = vmatpush1.bf16.msra.mxu1 %v1399_v27 }
 0x30f   :  { %1621 = vmatmul.mubr.msk.bf16.vlgmr.msra.gmra.mrb[0].mxu0 %vm860_vm7, %v1417_v25 }
 0x311   :  { %1622 = vmatmul.mubr.msk.bf16.vlgmr.msra.gmra.mrb[0].mxu1 %vm860_vm7, %v1417_v25 }
 0x31b   :  { %v1428_v62 = vpop.permute.xlu1 %1427 }
 0x31c   :  { %v1423_v15 = vpop.permute.xlu0 %1422 }
 0x3e2   :  { %v1510_v38 = vpop.f32.mrb[0].mxu0 }
 0x3e3   :  { %v1623_v28 = vadd.f32 %v1510_v38, %v1423_v15  ;;  %v1512_v8 = vpop.f32.mrb[1].mxu0 }
 0x3e4   :  { %v1624_v0 = vadd.f32 %v1512_v8, %v1423_v15  ;;  %v1596_v29 = vpop.f32.mrb[0].mxu1  ;;  %v1514_v51 = vpop.f32.mrb[2].mxu0 }
 0x3e5   :  { %1605 = vst [vmem:[%s3502_s6] sm:$0xff] %v1623_v28  ;;  %v1627_v32 = vadd.f32 %v1596_v29, %v1423_v15  ;;  %v1625_v31 = vadd.f32 %v1514_v51, %v1428_v62  ;;  %v1598_v12 = vpop.f32.mrb[1].mxu1  ;;  %v1516_v39 = vpop.f32.mrb[3].mxu0 }
 0x3e6   :  { %1606 = vst [vmem:[%s3502_s6 + $0x8] sm:$0xff] %v1624_v0  ;;  %v1628_v6 = vadd.f32 %v1598_v12, %v1423_v15  ;;  %v1626_v50 = vadd.f32 %v1516_v39, %v1428_v62  ;;  %v1600_v34 = vpop.f32.mrb[2].mxu1 }
 0x3e7   :  { %1607 = vst [vmem:[%s3502_s6 + $0x10] sm:$0xff] %v1627_v32  ;;  %1609 = vst [vmem:[%s3502_s6 + $0x20] sm:$0xf] %v1625_v31  ;;  %v1629_v14 = vadd.f32 %v1600_v34, %v1428_v62  ;;  %v1602_v54 = vpop.f32.mrb[3].mxu1 }
 0x3e8   :  { %1608 = vst [vmem:[%s3502_s6 + $0x18] sm:$0xff] %v1628_v6  ;;  %1610 = vst [vmem:[%s3502_s6 + $0x28] sm:$0xf] %v1626_v50  ;;  %v1630_v46 = vadd.f32 %v1602_v54, %v1428_v62 }
 0x3e9   :  { %1611 = vst [vmem:[%s3502_s6 + $0x30] sm:$0xf] %v1629_v14 }
 0x3ea   :  { %1612 = vst [vmem:[%s3502_s6 + $0x38] sm:$0xf] %v1630_v46 }

// kernel: decompose_net_forward.22
= control target key start
LH: loop header
LB: loop body
LE: loop exit
PB: predicated region body
PF: predicated region fallthrough
CT: control target
= control target key end

     0   :  { %v293_v2 = vmov 0.0|0.0   ;;  %vm294_vm0 = vmmov 0   ;;  %v295_v4 = vmov 0.0   ;;  %s371_s0 = inlined_call_operand.vmem [shape: f32[16,32], index: 0, kind: input, shape index: {}]   ;;  %s372_s1 = inlined_call_operand.vmem [shape: f32[8,16], index: 1, kind: input, shape index: {}]   ;;  %s373_s2 = inlined_call_operand.vmem [shape: f32[16,8], index: 2, kind: input, shape index: {}]   ;;  %s374_s3 = inlined_call_operand.vmem [shape: f32[8,1], index: 3, kind: input, shape index: {}]   ;;  %s375_s4 = inlined_call_operand.vmem [shape: f32[16,32], index: 4, kind: output, shape index: {0}]   ;;  %s376_s5 = inlined_call_operand.hbm [shape: s32[1,32], index: 5, kind: output, shape index: {1}]  }
   0x1   :  { %v20_v0 = vld [vmem:[%s371_s0] sm:$0xff]  ;;  %v21_v1 = vld [vmem:[%s371_s0 + $0x8] sm:$0xff]  ;;  %259 = vmatprep.subr.bf16.mxu0 %v293_v2  ;;  %251 = vmatprep.mubr.msk.f32.mxu0 %vm294_vm0, %v295_v4 }
   0x2   :  { %v260_v3 = vpack.c.bf16 %v21_v1, %v20_v0  ;;  %v25_v5 = vld [vmem:[%s374_s3] sm:$0xff] }
   0x3   :  { %11 = vsyncpa [#allocation3], 0  ;;  %v296_v6 = vmov 0   ;;  %v22_v7 = vld [vmem:[%s372_s1] sm:$0xff]  ;;  %vm26_vm1 = vcmask 130048   ;;  %vm132_vm2 = vcmask 64512   ;;  %v107_v18 = vlaneseq }
   0x4   :  { %268 = vset.pattern.permute.xlu0 %v296_v6  ;;  %261 = vmatpush3.bf16.msra.mxu0 %v260_v3  ;;  %v23_v8 = vld [vmem:[%s373_s2] sm:$0xff]  ;;  %vm109_vm3 = vcmask 261120   ;;  %vm216_vm7 = vcmask 253952   ;;  %v24_v31 = vld [vmem:[%s373_s2 + $0x8] sm:$0xff]  ;;  %v297_v32 = vmov 1.0   ;;  %s298_s27 = smov [#allocation2]  }
   0x5   :  { %103 = vperm.xlu0 %268, %v25_v5   ;;  %256 = vmatprep.mubr.msk.f32.mxu1 %vm132_vm2, %v23_v8  ;;  %v108_v21 = vshrl.u32 %v107_v18, 7  ;;  %s226_s28 = sshll.u32 %s298_s27, 4  ;;  %s227_s28 = int_to_ptr.vmem [resolvable:$true] %s226_s28 }
   0x6   :  { %s269_s29 = scalar_lea.vmem %s227_s28, 16  ;;  %s273_s30 = scalar_lea.vmem %s227_s28, 32 }
   0x7   :  { %252 = vmatmul.mubr.msk.f32.vlgmr.msra.gmra.mrb[0].mxu0 %vm26_vm1, %v22_v7  ;;  %p270_p0 = scmp.ne.s32.totalorder %s227_s28, %s269_s29  ;;  %p274_p1 = scmp.lt.s32.totalorder %s227_s28, %s227_s28 }
   0x8   :  { %p275_p2 = scmp.lt.s32.totalorder %s273_s30, %s269_s29 }
   0xa   :  { %p276_p3 = por %p275_p2, %p274_p1 }
   0xc   :  { %p277_p4 = pnand %p276_p3, %p270_p0 }
  0x84   :  { %v104_v10 = vpop.permute.xlu0 %103 }
  0xda   :  { %v96_v9 = vpop.f32.mrb[0].mxu0 }
  0xdb   :  { %v100_v11 = vmul.f32 2.0, %v96_v9  ;;  %v253_v12 = vpop.f32.mrb[1].mxu0 }
  0xdd   :  { %v106_v13 = vsub.f32 %v104_v10, %v100_v11 }
  0xdf   :  { %v110_v14 = vsel %vm109_vm3, %v106_v13, inf }
  0xe0   :  { %v111_v15 = vrot.slane %v110_v14, 4 }
  0xe2   :  { %v112_v16 = vmin.f32 %v110_v14, %v111_v15 }
  0xe4   :  { %v113_v17 = vrot.slane %v112_v16, 2 }
  0xe6   :  { %v114_v19 = vmin.f32 %v112_v16, %v113_v17 }
  0xe8   :  { %v115_v20 = vrot.slane %v114_v19, 1 }
  0xea   :  { %v116_v22 = vmin.f32 %v114_v19, %v115_v20 }
  0xec   :  { %vm117_vm4 = vcmp.le.f32.partialorder %v106_v13, %v116_v22 }
  0xed   :  { %v118_v23 = vsel %vm117_vm4, %v108_v21, 8 }
  0xee   :  { %v119_v24 = vsel %vm109_vm3, %v118_v23, 2147483647 }
  0xef   :  { %v120_v25 = vrot.slane %v119_v24, 4 }
  0xf1   :  { %vm121_vm5 = vcmp.lt.s32.totalorder %v119_v24, %v120_v25 }
  0xf2   :  { %v122_v26 = vsel %vm121_vm5, %v119_v24, %v120_v25 }
  0xf3   :  { %v123_v27 = vrot.slane %v122_v26, 2 }
  0xf5   :  { %vm124_vm6 = vcmp.lt.s32.totalorder %v122_v26, %v123_v27 }
  0xf6   :  { %v125_v28 = vsel %vm124_vm6, %v122_v26, %v123_v27 }
  0xf7   :  { %v126_v29 = vrot.slane %v125_v28, 1 }
  0xf9   :  { %vm127_vm8 = vcmp.lt.s32.totalorder %v125_v28, %v126_v29 }
  0xfa   :  { %v128_v30 = vsel %vm127_vm8, %v125_v28, %v126_v29 }
  0xfb   :  { %vm129_vm9 = vcmp.eq.s32.totalorder %v108_v21, %v128_v30  ;;  %217 = vst.msk [vmem:[#allocation2] sm:$0x1] %vm216_vm7, %v128_v30 }
  0xfc   :  { %254 = vmatprep.subr.msk.mxu1 %vm129_vm9, %v297_v32 }
  0xfd   :  { %255 = vmatpush3.msk.msra.mxu1 %vm129_vm9, %v297_v32 }
  0xfe   :  { %257 = vmatmul.mubr.msk.f32.vlgmr.msra.gmra.mrb[0].mxu1 %vm132_vm2, %v24_v31 }
  0xff   :  { %280 = shalt.err (!%p277_p4)
}
 0x100   :  { %s281_s2 = scalar_lea.hbm %s376_s5, 16 }
 0x101   :  { %p282_p5 = scmp.ne.s32.totalorder %s376_s5, %s281_s2  ;;  %p285_p6 = scmp.lt.u32.totalorder %s281_s2, %s376_s5 }
 0x103   :  { %p287_p7 = pnand %p285_p6, %p282_p5 }
 0x105   :  { %290 = shalt.err (!%p287_p7)
}
 0x106   :  { %229 = dma.vmem_to_hbm [thread:$0]  %s227_s28, 16, %s376_s5, [#allocation3]  }
 0x1d1   :  { %v258_v33 = vpop.f32.mrb[0].mxu1 }
 0x1d2   :  { %215 = vst.msk [vmem:[%s375_s4 + $0x8] sm:$0xff] %vm109_vm3, %v258_v33  ;;  %v205_v34 = vpop.f32.mrb[1].mxu1 }
 0x1d3   :  { %214 = vst.msk [vmem:[%s375_s4] sm:$0xff] %vm109_vm3, %v205_v34 }
 0x1d4   :  { %291 = dma.done.wait [#allocation3], 16  }
 0x1d5   :  { %292 = vsyncadd [#allocation3], 4294967280 }
 0x1d6   :  { %235 = vsyncpa [#allocation3], 1 }

</bundles_post_ra>
